<compile_context>
chip_gen: v6e
topology: v6e:2x2x1
jax: 0.10.0
libtpu: 0.0.40
codegen_flags: <defaults>
</compile_context>

<pallas_src>
import numpy as np

import jax
import jax.numpy as jnp
from jax import lax
from jax.experimental import pallas as pl
from jax.experimental.pallas import tpu as pltpu


LRELU_SLOPE = 0.2
IN_EPS = 1e-5


# ---------------------------------------------------------------------------
# Single fused kernel: conv1 .. conv6 (+InstanceNorm, +LeakyReLU) for one sample
# ---------------------------------------------------------------------------
def _disc_kernel(p1_ref, w1_ref, b1_ref, w2_ref, w3_ref, w4_ref,
                 s2_ref, s3_ref, s4_ref, wc_ref, bc_ref, o_ref):
    f32 = jnp.float32

    # ---- Layer 1: (256,128) @ (128,64) + bias + LeakyReLU -------------------
    x1 = jnp.dot(p1_ref[...], w1_ref[...], preferred_element_type=f32)
    x1 = x1 + b1_ref[...]
    x1 = jnp.where(x1 >= 0, x1, LRELU_SLOPE * x1).astype(jnp.bfloat16)   # (256, 64)

    # ---- Layers 2-4: per-tap gather-matmul + tap GEMM, IN (biased var), LReLU
    # Conv bias is omitted on purpose: InstanceNorm2d(affine=False) cancels any
    # per-channel constant shift exactly.
    def conv_in_lrelu(x_prev, s_ref, w_ref):
        acc = None
        for t in range(16):                       # tap = kh*4 + kw (static unroll)
            gathered = jnp.dot(s_ref[t], x_prev,
                               preferred_element_type=f32).astype(jnp.bfloat16)
            contrib = jnp.dot(gathered, w_ref[t], preferred_element_type=f32)
            acc = contrib if acc is None else acc + contrib
        mean = jnp.mean(acc, axis=0, keepdims=True)
        var = jnp.maximum(jnp.mean(acc * acc, axis=0, keepdims=True) - mean * mean, 0.0)
        y = (acc - mean) * lax.rsqrt(var + IN_EPS)
        return jnp.where(y >= 0, y, LRELU_SLOPE * y)

    x2 = conv_in_lrelu(x1, s2_ref, w2_ref).astype(jnp.bfloat16)   # (64, 128)
    x3 = conv_in_lrelu(x2, s3_ref, w3_ref).astype(jnp.bfloat16)   # (16, 256)
    x4 = conv_in_lrelu(x3, s4_ref, w4_ref)                        # (9, 512) f32

    # ---- conv5 o conv6 collapsed epilogue (both linear, final spatial 1x1) ---
    prod = x4 * wc_ref[...]                                        # (9, 512) f32
    total = jnp.sum(jnp.sum(prod, axis=1, keepdims=True), axis=0, keepdims=True)
    o_ref[...] = total + bc_ref[...]                               # (1, 1)


# ---------------------------------------------------------------------------
# Host-side preparation (runs once, outside the hot path)
# ---------------------------------------------------------------------------
def _im2col(x_nhwc, ksize, stride, padding):
    """Patches with K ordered (kh, kw, c), c minor; rows row-major over (oh, ow)."""
    n, h, w, c = x_nhwc.shape
    xp = jnp.pad(x_nhwc, ((0, 0), (padding, padding), (padding, padding), (0, 0)))
    oh = (h + 2 * padding - ksize) // stride + 1
    ow = (w + 2 * padding - ksize) // stride + 1
    cols = [xp[:, kh:kh + stride * oh:stride, kw:kw + stride * ow:stride, :]
            for kh in range(ksize) for kw in range(ksize)]
    patches = jnp.stack(cols, axis=3)                       # (N, OH, OW, 16, C)
    return patches.reshape(n, oh * ow, ksize * ksize * c), oh, ow


def _tap_selectors(ih, iw, stride):
    """0/1 matrices S[tap] (out_pos, in_pos): in-kernel im2col as a matmul."""
    oh = (ih + 2 - 4) // stride + 1
    ow = (iw + 2 - 4) // stride + 1
    sel = np.zeros((16, oh * ow, ih * iw), np.float32)
    for kh in range(4):
        for kw in range(4):
            for i in range(oh):
                for j in range(ow):
                    r = stride * i + kh - 1
                    c = stride * j + kw - 1
                    if 0 <= r < ih and 0 <= c < iw:
                        sel[kh * 4 + kw, i * ow + j, r * iw + c] = 1.0
    return jnp.asarray(sel, dtype=jnp.bfloat16)


def _weight_taps(w_oihw):
    """OIHW -> (16 taps, IC, OC), tap = kh*4 + kw."""
    oc, ic, kh, kw = w_oihw.shape
    return jnp.transpose(w_oihw, (2, 3, 1, 0)).reshape(kh * kw, ic, oc).astype(jnp.bfloat16)


def prepare_params(params):
    (w1, b1), (w2, b2), (w3, b3), (w4, b4), (w5, b5), (w6, b6) = params

    # Layer-1 weight in (kh, kw, ic) order, ic zero-padded 3 -> 8 (K = 128, lane dense).
    w1t = jnp.transpose(w1, (2, 3, 1, 0))                       # (4,4,3,64)
    w1t = jnp.pad(w1t, ((0, 0), (0, 0), (0, 5), (0, 0))).reshape(128, 64).astype(jnp.bfloat16)
    b1r = b1.reshape(1, 64).astype(jnp.float32)

    # b2/b3/b4 are unused: IN(affine=False) makes per-channel bias a no-op (exact).
    w2t, w3t, w4t = _weight_taps(w2), _weight_taps(w3), _weight_taps(w4)

    # conv5 (512->1) and conv6 (1->1) are both linear with no activation between them
    # and end at a 1x1 output for 32x32 inputs, so they compose exactly into a single
    # (3,3,512) weight on conv4's normalized output plus a scalar bias.
    w6c = w6[0, 0, 1:3, 1:3]                                    # taps of conv6 that see data
    bc = (b6[0] + b5[0] * jnp.sum(w6c)).reshape(1, 1).astype(jnp.float32)
    wc = jnp.zeros((3, 3, 512), jnp.float32)
    for a in range(2):
        for b in range(2):
            wc = wc + w6c[a, b] * jnp.transpose(w5[0, :, 1 - a:4 - a, 1 - b:4 - b], (1, 2, 0))
    wc = wc.reshape(9, 512)

    return dict(
        w1=w1t, b1=b1r, w2t=w2t, w3t=w3t, w4t=w4t,
        s2=_tap_selectors(16, 16, 2),    # (16, 64, 256)
        s3=_tap_selectors(8, 8, 2),      # (16, 16, 64)
        s4=_tap_selectors(4, 4, 1),      # (16, 9, 16)
        wc=wc, bc=bc,
    )


# ---------------------------------------------------------------------------
# Forward pass: one pallas_call over the batch
# ---------------------------------------------------------------------------
def discriminator_forward(x_nchw, prep):
    n, c, h, w = x_nchw.shape
    assert (c, h, w) == (3, 32, 32), "kernel is specialized to 3x32x32 inputs"

    x = jnp.transpose(x_nchw, (0, 2, 3, 1)).astype(jnp.float32)     # NHWC
    x = jnp.pad(x, ((0, 0), (0, 0), (0, 0), (0, 5)))                # C: 3 -> 8
    patches1, _, _ = _im2col(x, 4, 2, 1)                            # (N, 256, 128)
    patches1 = patches1.astype(jnp.bfloat16)

    flops = 2 * n * (256 * 128 * 64
                     + 16 * (64 * 256 * 64 + 64 * 64 * 128)
                     + 16 * (16 * 64 * 128 + 16 * 128 * 256)
                     + 16 * (9 * 16 * 256 + 9 * 256 * 512)
                     + 9 * 512)
    cost = pl.CostEstimate(flops=flops,
                           transcendentals=n * (128 + 256 + 512),
                           bytes_accessed=6_200_000 + n * 256 * 128 * 2)

    out = pl.pallas_call(
        _disc_kernel,
        out_shape=jax.ShapeDtypeStruct((n, 1, 1), jnp.float32),
        grid=(n,),
        in_specs=[
            pl.BlockSpec((None, 256, 128), lambda i: (i, 0, 0)),    # per-sample patches
            pl.BlockSpec((128, 64), lambda i: (0, 0)),              # w1
            pl.BlockSpec((1, 64), lambda i: (0, 0)),                # b1
            pl.BlockSpec((16, 64, 128), lambda i: (0, 0, 0)),       # w2 taps
            pl.BlockSpec((16, 128, 256), lambda i: (0, 0, 0)),      # w3 taps
            pl.BlockSpec((16, 256, 512), lambda i: (0, 0, 0)),      # w4 taps
            pl.BlockSpec((16, 64, 256), lambda i: (0, 0, 0)),       # layer-2 selectors
            pl.BlockSpec((16, 16, 64), lambda i: (0, 0, 0)),        # layer-3 selectors
            pl.BlockSpec((16, 9, 16), lambda i: (0, 0, 0)),         # layer-4 selectors
            pl.BlockSpec((9, 512), lambda i: (0, 0)),               # conv5*conv6 weight
            pl.BlockSpec((1, 1), lambda i: (0, 0)),                 # conv5*conv6 bias
        ],
        out_specs=pl.BlockSpec((None, 1, 1), lambda i: (i, 0, 0)),
        compiler_params=pltpu.CompilerParams(
            dimension_semantics=("parallel",),          # v7x: one sample per TensorCore
            vmem_limit_bytes=32 * 1024 * 1024,          # ~12 MiB resident set, 64 MiB phys.
        ),
        cost_estimate=cost,
    )(patches1, prep["w1"], prep["b1"], prep["w2t"], prep["w3t"], prep["w4t"],
      prep["s2"], prep["s3"], prep["s4"], prep["wc"], prep["bc"])

    return out.reshape(n, 1, 1, 1)


# ---------------------------------------------------------------------------
# Parameter init (PyTorch-style uniform) and pure-JAX f32 reference
# ---------------------------------------------------------------------------
def init_params(key):
    shapes = [
        (64, 3, 4, 4),
        (128, 64, 4, 4),
        (256, 128, 4, 4),
        (512, 256, 4, 4),
        (1, 512, 4, 4),
        (1, 1, 4, 4),
    ]
    params = []
    for i, s in enumerate(shapes):
        kw_, kb = jax.random.split(jax.random.fold_in(key, i))
        fan_in = s[1] * s[2] * s[3]
        bound = 1.0 / (fan_in ** 0.5)
        w = jax.random.uniform(kw_, s, jnp.float32, -bound, bound)
        b = jax.random.uniform(kb, (s[0],), jnp.float32, -bound, bound)
        params.append((w, b))
    return params


def reference_forward(x, params):
    def conv(x, w, b, stride):
        y = lax.conv_general_dilated(
            x, w, window_strides=(stride, stride), padding=((1, 1), (1, 1)),
            dimension_numbers=("NCHW", "OIHW", "NCHW"),
            precision=lax.Precision.HIGHEST)
        return y + b.reshape(1, -1, 1, 1)

    def inorm(x):
        m = jnp.mean(x, axis=(2, 3), keepdims=True)
        v = jnp.mean((x - m) ** 2, axis=(2, 3), keepdims=True)
        return (x - m) * lax.rsqrt(v + IN_EPS)

    def lrelu(x):
        return jnp.where(x >= 0, x, LRELU_SLOPE * x)

    (w1, b1), (w2, b2), (w3, b3), (w4, b4), (w5, b5), (w6, b6) = params
    x = lrelu(conv(x, w1, b1, 2))
    x = lrelu(inorm(conv(x, w2, b2, 2)))
    x = lrelu(inorm(conv(x, w3, b3, 2)))
    x = lrelu(inorm(conv(x, w4, b4, 1)))
    x = conv(x, w5, b5, 1)
    x = conv(x, w6, b6, 1)
    return x


if __name__ == "__main__":
    key = jax.random.PRNGKey(0)
    params = init_params(jax.random.fold_in(key, 1))
    # N=2, C=3, H=W=32: spatial chain 32 -> 16 -> 8 -> 4 -> 3 -> 2 -> 1.
    x = jax.random.normal(jax.random.fold_in(key, 2), (2, 3, 32, 32), jnp.float32)

    prep = prepare_params(params)
    fwd = jax.jit(lambda xx: discriminator_forward(xx, prep))
    out = fwd(x)
    jax.block_until_ready(out)

    assert out.shape == (2, 1, 1, 1), out.shape
    assert out.dtype == jnp.float32

    # Correctness vs. a pure-JAX f32 reference (kernel uses bf16 operands internally,
    # so allow a few-percent tolerance per the review's guidance).
    ref = reference_forward(x, params)
    err = float(jnp.max(jnp.abs(out - ref)))
    scale = float(jnp.max(jnp.abs(ref)))
    assert err <= 4e-2 + 5e-2 * scale, f"mismatch vs reference: err={err}, scale={scale}"

    print("KERNEL_OK")
</pallas_src>

<mosaic_0001>
module attributes {stable_mosaic.version = 11 : i64} {
  func.func @_disc_kernel(%arg0: i32, %arg1: memref<1x256x128xbf16, #tpu.memory_space<vmem>>, %arg2: memref<128x64xbf16, #tpu.memory_space<vmem>>, %arg3: memref<1x64xf32, #tpu.memory_space<vmem>>, %arg4: memref<16x64x128xbf16, #tpu.memory_space<vmem>>, %arg5: memref<16x128x256xbf16, #tpu.memory_space<vmem>>, %arg6: memref<16x256x512xbf16, #tpu.memory_space<vmem>>, %arg7: memref<16x64x256xbf16, #tpu.memory_space<vmem>>, %arg8: memref<16x16x64xbf16, #tpu.memory_space<vmem>>, %arg9: memref<16x9x16xbf16, #tpu.memory_space<vmem>>, %arg10: memref<9x512xf32, #tpu.memory_space<vmem>>, %arg11: memref<1x1xf32, #tpu.memory_space<vmem>>, %arg12: memref<1x1x1xf32, #tpu.memory_space<vmem>>) attributes {dimension_semantics = [#tpu.dimension_semantics<parallel>], iteration_bounds = array<i64: 2>, scalar_prefetch = 0 : i64, scratch_operands = 0 : i64, tpu.core_type = #tpu.core_type<tc>, window_params = [{transform_indices = @transform_0, window_bounds = array<i64: 1, 256, 128>}, {pipeline_mode = #tpu.pipeline_mode<synchronous>, transform_indices = @transform_1, window_bounds = array<i64: 128, 64>}, {pipeline_mode = #tpu.pipeline_mode<synchronous>, transform_indices = @transform_2, window_bounds = array<i64: 1, 64>}, {pipeline_mode = #tpu.pipeline_mode<synchronous>, transform_indices = @transform_3, window_bounds = array<i64: 16, 64, 128>}, {pipeline_mode = #tpu.pipeline_mode<synchronous>, transform_indices = @transform_4, window_bounds = array<i64: 16, 128, 256>}, {pipeline_mode = #tpu.pipeline_mode<synchronous>, transform_indices = @transform_5, window_bounds = array<i64: 16, 256, 512>}, {pipeline_mode = #tpu.pipeline_mode<synchronous>, transform_indices = @transform_6, window_bounds = array<i64: 16, 64, 256>}, {pipeline_mode = #tpu.pipeline_mode<synchronous>, transform_indices = @transform_7, window_bounds = array<i64: 16, 16, 64>}, {pipeline_mode = #tpu.pipeline_mode<synchronous>, transform_indices = @transform_8, window_bounds = array<i64: 16, 9, 16>}, {pipeline_mode = #tpu.pipeline_mode<synchronous>, transform_indices = @transform_9, window_bounds = array<i64: 9, 512>}, {pipeline_mode = #tpu.pipeline_mode<synchronous>, transform_indices = @transform_10, window_bounds = array<i64: 1, 1>}, {transform_indices = @transform_11, window_bounds = array<i64: 1, 1, 1>}]} {
    %c0 = arith.constant 0 : index
    %c0_0 = arith.constant 0 : index
    %c0_1 = arith.constant 0 : index
    %0 = vector.load %arg1[%c0, %c0_0, %c0_1] : memref<1x256x128xbf16, #tpu.memory_space<vmem>>, vector<1x256x128xbf16>
    %1 = vector.shape_cast %0 : vector<1x256x128xbf16> to vector<256x128xbf16>
    %c0_2 = arith.constant 0 : index
    %c0_3 = arith.constant 0 : index
    %2 = vector.load %arg2[%c0_2, %c0_3] : memref<128x64xbf16, #tpu.memory_space<vmem>>, vector<128x64xbf16>
    %cst = arith.constant dense<0.000000e+00> : vector<256x64xf32>
    %3 = tpu.matmul %1, %2, %cst {dimension_numbers = #tpu.dot_dimension_numbers<[1], [0], [0], [1], [0, 0, 1, 1], [], []>} : vector<256x128xbf16>, vector<128x64xbf16>, vector<256x64xf32> -> vector<256x64xf32>
    %c0_4 = arith.constant 0 : index
    %c0_5 = arith.constant 0 : index
    %4 = vector.load %arg3[%c0_4, %c0_5] : memref<1x64xf32, #tpu.memory_space<vmem>>, vector<1x64xf32>
    %5 = vector.broadcast %4 : vector<1x64xf32> to vector<256x64xf32>
    %6 = arith.addf %3, %5 : vector<256x64xf32>
    %cst_6 = arith.constant 0.000000e+00 : f32
    %7 = vector.broadcast %cst_6 : f32 to vector<256x64xf32>
    %8 = arith.cmpf oge, %6, %7 : vector<256x64xf32>
    %cst_7 = arith.constant 2.000000e-01 : f32
    %9 = vector.broadcast %cst_7 : f32 to vector<256x64xf32>
    %10 = arith.mulf %9, %6 : vector<256x64xf32>
    %11 = arith.select %8, %6, %10 : vector<256x64xi1>, vector<256x64xf32>
    %12 = arith.truncf %11 : vector<256x64xf32> to vector<256x64xbf16>
    %c0_8 = arith.constant 0 : index
    %c0_9 = arith.constant 0 : index
    %c0_10 = arith.constant 0 : index
    %13 = vector.load %arg7[%c0_8, %c0_9, %c0_10] : memref<16x64x256xbf16, #tpu.memory_space<vmem>>, vector<1x64x256xbf16>
    %14 = vector.shape_cast %13 : vector<1x64x256xbf16> to vector<64x256xbf16>
    %cst_11 = arith.constant dense<0.000000e+00> : vector<64x64xf32>
    %15 = tpu.matmul %14, %12, %cst_11 {dimension_numbers = #tpu.dot_dimension_numbers<[1], [0], [0], [1], [0, 0, 1, 1], [], []>} : vector<64x256xbf16>, vector<256x64xbf16>, vector<64x64xf32> -> vector<64x64xf32>
    %16 = arith.truncf %15 : vector<64x64xf32> to vector<64x64xbf16>
    %c0_12 = arith.constant 0 : index
    %c0_13 = arith.constant 0 : index
    %c0_14 = arith.constant 0 : index
    %17 = vector.load %arg4[%c0_12, %c0_13, %c0_14] : memref<16x64x128xbf16, #tpu.memory_space<vmem>>, vector<1x64x128xbf16>
    %18 = vector.shape_cast %17 : vector<1x64x128xbf16> to vector<64x128xbf16>
    %cst_15 = arith.constant dense<0.000000e+00> : vector<64x128xf32>
    %19 = tpu.matmul %16, %18, %cst_15 {dimension_numbers = #tpu.dot_dimension_numbers<[1], [0], [0], [1], [0, 0, 1, 1], [], []>} : vector<64x64xbf16>, vector<64x128xbf16>, vector<64x128xf32> -> vector<64x128xf32>
    %c1 = arith.constant 1 : index
    %c0_16 = arith.constant 0 : index
    %c0_17 = arith.constant 0 : index
    %20 = vector.load %arg7[%c1, %c0_16, %c0_17] : memref<16x64x256xbf16, #tpu.memory_space<vmem>>, vector<1x64x256xbf16>
    %21 = vector.shape_cast %20 : vector<1x64x256xbf16> to vector<64x256xbf16>
    %cst_18 = arith.constant dense<0.000000e+00> : vector<64x64xf32>
    %22 = tpu.matmul %21, %12, %cst_18 {dimension_numbers = #tpu.dot_dimension_numbers<[1], [0], [0], [1], [0, 0, 1, 1], [], []>} : vector<64x256xbf16>, vector<256x64xbf16>, vector<64x64xf32> -> vector<64x64xf32>
    %23 = arith.truncf %22 : vector<64x64xf32> to vector<64x64xbf16>
    %c1_19 = arith.constant 1 : index
    %c0_20 = arith.constant 0 : index
    %c0_21 = arith.constant 0 : index
    %24 = vector.load %arg4[%c1_19, %c0_20, %c0_21] : memref<16x64x128xbf16, #tpu.memory_space<vmem>>, vector<1x64x128xbf16>
    %25 = vector.shape_cast %24 : vector<1x64x128xbf16> to vector<64x128xbf16>
    %cst_22 = arith.constant dense<0.000000e+00> : vector<64x128xf32>
    %26 = tpu.matmul %23, %25, %cst_22 {dimension_numbers = #tpu.dot_dimension_numbers<[1], [0], [0], [1], [0, 0, 1, 1], [], []>} : vector<64x64xbf16>, vector<64x128xbf16>, vector<64x128xf32> -> vector<64x128xf32>
    %27 = arith.addf %19, %26 : vector<64x128xf32>
    %c2 = arith.constant 2 : index
    %c0_23 = arith.constant 0 : index
    %c0_24 = arith.constant 0 : index
    %28 = vector.load %arg7[%c2, %c0_23, %c0_24] : memref<16x64x256xbf16, #tpu.memory_space<vmem>>, vector<1x64x256xbf16>
    %29 = vector.shape_cast %28 : vector<1x64x256xbf16> to vector<64x256xbf16>
    %cst_25 = arith.constant dense<0.000000e+00> : vector<64x64xf32>
    %30 = tpu.matmul %29, %12, %cst_25 {dimension_numbers = #tpu.dot_dimension_numbers<[1], [0], [0], [1], [0, 0, 1, 1], [], []>} : vector<64x256xbf16>, vector<256x64xbf16>, vector<64x64xf32> -> vector<64x64xf32>
    %31 = arith.truncf %30 : vector<64x64xf32> to vector<64x64xbf16>
    %c2_26 = arith.constant 2 : index
    %c0_27 = arith.constant 0 : index
    %c0_28 = arith.constant 0 : index
    %32 = vector.load %arg4[%c2_26, %c0_27, %c0_28] : memref<16x64x128xbf16, #tpu.memory_space<vmem>>, vector<1x64x128xbf16>
    %33 = vector.shape_cast %32 : vector<1x64x128xbf16> to vector<64x128xbf16>
    %cst_29 = arith.constant dense<0.000000e+00> : vector<64x128xf32>
    %34 = tpu.matmul %31, %33, %cst_29 {dimension_numbers = #tpu.dot_dimension_numbers<[1], [0], [0], [1], [0, 0, 1, 1], [], []>} : vector<64x64xbf16>, vector<64x128xbf16>, vector<64x128xf32> -> vector<64x128xf32>
    %35 = arith.addf %27, %34 : vector<64x128xf32>
    %c3 = arith.constant 3 : index
    %c0_30 = arith.constant 0 : index
    %c0_31 = arith.constant 0 : index
    %36 = vector.load %arg7[%c3, %c0_30, %c0_31] : memref<16x64x256xbf16, #tpu.memory_space<vmem>>, vector<1x64x256xbf16>
    %37 = vector.shape_cast %36 : vector<1x64x256xbf16> to vector<64x256xbf16>
    %cst_32 = arith.constant dense<0.000000e+00> : vector<64x64xf32>
    %38 = tpu.matmul %37, %12, %cst_32 {dimension_numbers = #tpu.dot_dimension_numbers<[1], [0], [0], [1], [0, 0, 1, 1], [], []>} : vector<64x256xbf16>, vector<256x64xbf16>, vector<64x64xf32> -> vector<64x64xf32>
    %39 = arith.truncf %38 : vector<64x64xf32> to vector<64x64xbf16>
    %c3_33 = arith.constant 3 : index
    %c0_34 = arith.constant 0 : index
    %c0_35 = arith.constant 0 : index
    %40 = vector.load %arg4[%c3_33, %c0_34, %c0_35] : memref<16x64x128xbf16, #tpu.memory_space<vmem>>, vector<1x64x128xbf16>
    %41 = vector.shape_cast %40 : vector<1x64x128xbf16> to vector<64x128xbf16>
    %cst_36 = arith.constant dense<0.000000e+00> : vector<64x128xf32>
    %42 = tpu.matmul %39, %41, %cst_36 {dimension_numbers = #tpu.dot_dimension_numbers<[1], [0], [0], [1], [0, 0, 1, 1], [], []>} : vector<64x64xbf16>, vector<64x128xbf16>, vector<64x128xf32> -> vector<64x128xf32>
    %43 = arith.addf %35, %42 : vector<64x128xf32>
    %c4 = arith.constant 4 : index
    %c0_37 = arith.constant 0 : index
    %c0_38 = arith.constant 0 : index
    %44 = vector.load %arg7[%c4, %c0_37, %c0_38] : memref<16x64x256xbf16, #tpu.memory_space<vmem>>, vector<1x64x256xbf16>
    %45 = vector.shape_cast %44 : vector<1x64x256xbf16> to vector<64x256xbf16>
    %cst_39 = arith.constant dense<0.000000e+00> : vector<64x64xf32>
    %46 = tpu.matmul %45, %12, %cst_39 {dimension_numbers = #tpu.dot_dimension_numbers<[1], [0], [0], [1], [0, 0, 1, 1], [], []>} : vector<64x256xbf16>, vector<256x64xbf16>, vector<64x64xf32> -> vector<64x64xf32>
    %47 = arith.truncf %46 : vector<64x64xf32> to vector<64x64xbf16>
    %c4_40 = arith.constant 4 : index
    %c0_41 = arith.constant 0 : index
    %c0_42 = arith.constant 0 : index
    %48 = vector.load %arg4[%c4_40, %c0_41, %c0_42] : memref<16x64x128xbf16, #tpu.memory_space<vmem>>, vector<1x64x128xbf16>
    %49 = vector.shape_cast %48 : vector<1x64x128xbf16> to vector<64x128xbf16>
    %cst_43 = arith.constant dense<0.000000e+00> : vector<64x128xf32>
    %50 = tpu.matmul %47, %49, %cst_43 {dimension_numbers = #tpu.dot_dimension_numbers<[1], [0], [0], [1], [0, 0, 1, 1], [], []>} : vector<64x64xbf16>, vector<64x128xbf16>, vector<64x128xf32> -> vector<64x128xf32>
    %51 = arith.addf %43, %50 : vector<64x128xf32>
    %c5 = arith.constant 5 : index
    %c0_44 = arith.constant 0 : index
    %c0_45 = arith.constant 0 : index
    %52 = vector.load %arg7[%c5, %c0_44, %c0_45] : memref<16x64x256xbf16, #tpu.memory_space<vmem>>, vector<1x64x256xbf16>
    %53 = vector.shape_cast %52 : vector<1x64x256xbf16> to vector<64x256xbf16>
    %cst_46 = arith.constant dense<0.000000e+00> : vector<64x64xf32>
    %54 = tpu.matmul %53, %12, %cst_46 {dimension_numbers = #tpu.dot_dimension_numbers<[1], [0], [0], [1], [0, 0, 1, 1], [], []>} : vector<64x256xbf16>, vector<256x64xbf16>, vector<64x64xf32> -> vector<64x64xf32>
    %55 = arith.truncf %54 : vector<64x64xf32> to vector<64x64xbf16>
    %c5_47 = arith.constant 5 : index
    %c0_48 = arith.constant 0 : index
    %c0_49 = arith.constant 0 : index
    %56 = vector.load %arg4[%c5_47, %c0_48, %c0_49] : memref<16x64x128xbf16, #tpu.memory_space<vmem>>, vector<1x64x128xbf16>
    %57 = vector.shape_cast %56 : vector<1x64x128xbf16> to vector<64x128xbf16>
    %cst_50 = arith.constant dense<0.000000e+00> : vector<64x128xf32>
    %58 = tpu.matmul %55, %57, %cst_50 {dimension_numbers = #tpu.dot_dimension_numbers<[1], [0], [0], [1], [0, 0, 1, 1], [], []>} : vector<64x64xbf16>, vector<64x128xbf16>, vector<64x128xf32> -> vector<64x128xf32>
    %59 = arith.addf %51, %58 : vector<64x128xf32>
    %c6 = arith.constant 6 : index
    %c0_51 = arith.constant 0 : index
    %c0_52 = arith.constant 0 : index
    %60 = vector.load %arg7[%c6, %c0_51, %c0_52] : memref<16x64x256xbf16, #tpu.memory_space<vmem>>, vector<1x64x256xbf16>
    %61 = vector.shape_cast %60 : vector<1x64x256xbf16> to vector<64x256xbf16>
    %cst_53 = arith.constant dense<0.000000e+00> : vector<64x64xf32>
    %62 = tpu.matmul %61, %12, %cst_53 {dimension_numbers = #tpu.dot_dimension_numbers<[1], [0], [0], [1], [0, 0, 1, 1], [], []>} : vector<64x256xbf16>, vector<256x64xbf16>, vector<64x64xf32> -> vector<64x64xf32>
    %63 = arith.truncf %62 : vector<64x64xf32> to vector<64x64xbf16>
    %c6_54 = arith.constant 6 : index
    %c0_55 = arith.constant 0 : index
    %c0_56 = arith.constant 0 : index
    %64 = vector.load %arg4[%c6_54, %c0_55, %c0_56] : memref<16x64x128xbf16, #tpu.memory_space<vmem>>, vector<1x64x128xbf16>
    %65 = vector.shape_cast %64 : vector<1x64x128xbf16> to vector<64x128xbf16>
    %cst_57 = arith.constant dense<0.000000e+00> : vector<64x128xf32>
    %66 = tpu.matmul %63, %65, %cst_57 {dimension_numbers = #tpu.dot_dimension_numbers<[1], [0], [0], [1], [0, 0, 1, 1], [], []>} : vector<64x64xbf16>, vector<64x128xbf16>, vector<64x128xf32> -> vector<64x128xf32>
    %67 = arith.addf %59, %66 : vector<64x128xf32>
    %c7 = arith.constant 7 : index
    %c0_58 = arith.constant 0 : index
    %c0_59 = arith.constant 0 : index
    %68 = vector.load %arg7[%c7, %c0_58, %c0_59] : memref<16x64x256xbf16, #tpu.memory_space<vmem>>, vector<1x64x256xbf16>
    %69 = vector.shape_cast %68 : vector<1x64x256xbf16> to vector<64x256xbf16>
    %cst_60 = arith.constant dense<0.000000e+00> : vector<64x64xf32>
    %70 = tpu.matmul %69, %12, %cst_60 {dimension_numbers = #tpu.dot_dimension_numbers<[1], [0], [0], [1], [0, 0, 1, 1], [], []>} : vector<64x256xbf16>, vector<256x64xbf16>, vector<64x64xf32> -> vector<64x64xf32>
    %71 = arith.truncf %70 : vector<64x64xf32> to vector<64x64xbf16>
    %c7_61 = arith.constant 7 : index
    %c0_62 = arith.constant 0 : index
    %c0_63 = arith.constant 0 : index
    %72 = vector.load %arg4[%c7_61, %c0_62, %c0_63] : memref<16x64x128xbf16, #tpu.memory_space<vmem>>, vector<1x64x128xbf16>
    %73 = vector.shape_cast %72 : vector<1x64x128xbf16> to vector<64x128xbf16>
    %cst_64 = arith.constant dense<0.000000e+00> : vector<64x128xf32>
    %74 = tpu.matmul %71, %73, %cst_64 {dimension_numbers = #tpu.dot_dimension_numbers<[1], [0], [0], [1], [0, 0, 1, 1], [], []>} : vector<64x64xbf16>, vector<64x128xbf16>, vector<64x128xf32> -> vector<64x128xf32>
    %75 = arith.addf %67, %74 : vector<64x128xf32>
    %c8 = arith.constant 8 : index
    %c0_65 = arith.constant 0 : index
    %c0_66 = arith.constant 0 : index
    %76 = vector.load %arg7[%c8, %c0_65, %c0_66] : memref<16x64x256xbf16, #tpu.memory_space<vmem>>, vector<1x64x256xbf16>
    %77 = vector.shape_cast %76 : vector<1x64x256xbf16> to vector<64x256xbf16>
    %cst_67 = arith.constant dense<0.000000e+00> : vector<64x64xf32>
    %78 = tpu.matmul %77, %12, %cst_67 {dimension_numbers = #tpu.dot_dimension_numbers<[1], [0], [0], [1], [0, 0, 1, 1], [], []>} : vector<64x256xbf16>, vector<256x64xbf16>, vector<64x64xf32> -> vector<64x64xf32>
    %79 = arith.truncf %78 : vector<64x64xf32> to vector<64x64xbf16>
    %c8_68 = arith.constant 8 : index
    %c0_69 = arith.constant 0 : index
    %c0_70 = arith.constant 0 : index
    %80 = vector.load %arg4[%c8_68, %c0_69, %c0_70] : memref<16x64x128xbf16, #tpu.memory_space<vmem>>, vector<1x64x128xbf16>
    %81 = vector.shape_cast %80 : vector<1x64x128xbf16> to vector<64x128xbf16>
    %cst_71 = arith.constant dense<0.000000e+00> : vector<64x128xf32>
    %82 = tpu.matmul %79, %81, %cst_71 {dimension_numbers = #tpu.dot_dimension_numbers<[1], [0], [0], [1], [0, 0, 1, 1], [], []>} : vector<64x64xbf16>, vector<64x128xbf16>, vector<64x128xf32> -> vector<64x128xf32>
    %83 = arith.addf %75, %82 : vector<64x128xf32>
    %c9 = arith.constant 9 : index
    %c0_72 = arith.constant 0 : index
    %c0_73 = arith.constant 0 : index
    %84 = vector.load %arg7[%c9, %c0_72, %c0_73] : memref<16x64x256xbf16, #tpu.memory_space<vmem>>, vector<1x64x256xbf16>
    %85 = vector.shape_cast %84 : vector<1x64x256xbf16> to vector<64x256xbf16>
    %cst_74 = arith.constant dense<0.000000e+00> : vector<64x64xf32>
    %86 = tpu.matmul %85, %12, %cst_74 {dimension_numbers = #tpu.dot_dimension_numbers<[1], [0], [0], [1], [0, 0, 1, 1], [], []>} : vector<64x256xbf16>, vector<256x64xbf16>, vector<64x64xf32> -> vector<64x64xf32>
    %87 = arith.truncf %86 : vector<64x64xf32> to vector<64x64xbf16>
    %c9_75 = arith.constant 9 : index
    %c0_76 = arith.constant 0 : index
    %c0_77 = arith.constant 0 : index
    %88 = vector.load %arg4[%c9_75, %c0_76, %c0_77] : memref<16x64x128xbf16, #tpu.memory_space<vmem>>, vector<1x64x128xbf16>
    %89 = vector.shape_cast %88 : vector<1x64x128xbf16> to vector<64x128xbf16>
    %cst_78 = arith.constant dense<0.000000e+00> : vector<64x128xf32>
    %90 = tpu.matmul %87, %89, %cst_78 {dimension_numbers = #tpu.dot_dimension_numbers<[1], [0], [0], [1], [0, 0, 1, 1], [], []>} : vector<64x64xbf16>, vector<64x128xbf16>, vector<64x128xf32> -> vector<64x128xf32>
    %91 = arith.addf %83, %90 : vector<64x128xf32>
    %c10 = arith.constant 10 : index
    %c0_79 = arith.constant 0 : index
    %c0_80 = arith.constant 0 : index
    %92 = vector.load %arg7[%c10, %c0_79, %c0_80] : memref<16x64x256xbf16, #tpu.memory_space<vmem>>, vector<1x64x256xbf16>
    %93 = vector.shape_cast %92 : vector<1x64x256xbf16> to vector<64x256xbf16>
    %cst_81 = arith.constant dense<0.000000e+00> : vector<64x64xf32>
    %94 = tpu.matmul %93, %12, %cst_81 {dimension_numbers = #tpu.dot_dimension_numbers<[1], [0], [0], [1], [0, 0, 1, 1], [], []>} : vector<64x256xbf16>, vector<256x64xbf16>, vector<64x64xf32> -> vector<64x64xf32>
    %95 = arith.truncf %94 : vector<64x64xf32> to vector<64x64xbf16>
    %c10_82 = arith.constant 10 : index
    %c0_83 = arith.constant 0 : index
    %c0_84 = arith.constant 0 : index
    %96 = vector.load %arg4[%c10_82, %c0_83, %c0_84] : memref<16x64x128xbf16, #tpu.memory_space<vmem>>, vector<1x64x128xbf16>
    %97 = vector.shape_cast %96 : vector<1x64x128xbf16> to vector<64x128xbf16>
    %cst_85 = arith.constant dense<0.000000e+00> : vector<64x128xf32>
    %98 = tpu.matmul %95, %97, %cst_85 {dimension_numbers = #tpu.dot_dimension_numbers<[1], [0], [0], [1], [0, 0, 1, 1], [], []>} : vector<64x64xbf16>, vector<64x128xbf16>, vector<64x128xf32> -> vector<64x128xf32>
    %99 = arith.addf %91, %98 : vector<64x128xf32>
    %c11 = arith.constant 11 : index
    %c0_86 = arith.constant 0 : index
    %c0_87 = arith.constant 0 : index
    %100 = vector.load %arg7[%c11, %c0_86, %c0_87] : memref<16x64x256xbf16, #tpu.memory_space<vmem>>, vector<1x64x256xbf16>
    %101 = vector.shape_cast %100 : vector<1x64x256xbf16> to vector<64x256xbf16>
    %cst_88 = arith.constant dense<0.000000e+00> : vector<64x64xf32>
    %102 = tpu.matmul %101, %12, %cst_88 {dimension_numbers = #tpu.dot_dimension_numbers<[1], [0], [0], [1], [0, 0, 1, 1], [], []>} : vector<64x256xbf16>, vector<256x64xbf16>, vector<64x64xf32> -> vector<64x64xf32>
    %103 = arith.truncf %102 : vector<64x64xf32> to vector<64x64xbf16>
    %c11_89 = arith.constant 11 : index
    %c0_90 = arith.constant 0 : index
    %c0_91 = arith.constant 0 : index
    %104 = vector.load %arg4[%c11_89, %c0_90, %c0_91] : memref<16x64x128xbf16, #tpu.memory_space<vmem>>, vector<1x64x128xbf16>
    %105 = vector.shape_cast %104 : vector<1x64x128xbf16> to vector<64x128xbf16>
    %cst_92 = arith.constant dense<0.000000e+00> : vector<64x128xf32>
    %106 = tpu.matmul %103, %105, %cst_92 {dimension_numbers = #tpu.dot_dimension_numbers<[1], [0], [0], [1], [0, 0, 1, 1], [], []>} : vector<64x64xbf16>, vector<64x128xbf16>, vector<64x128xf32> -> vector<64x128xf32>
    %107 = arith.addf %99, %106 : vector<64x128xf32>
    %c12 = arith.constant 12 : index
    %c0_93 = arith.constant 0 : index
    %c0_94 = arith.constant 0 : index
    %108 = vector.load %arg7[%c12, %c0_93, %c0_94] : memref<16x64x256xbf16, #tpu.memory_space<vmem>>, vector<1x64x256xbf16>
    %109 = vector.shape_cast %108 : vector<1x64x256xbf16> to vector<64x256xbf16>
    %cst_95 = arith.constant dense<0.000000e+00> : vector<64x64xf32>
    %110 = tpu.matmul %109, %12, %cst_95 {dimension_numbers = #tpu.dot_dimension_numbers<[1], [0], [0], [1], [0, 0, 1, 1], [], []>} : vector<64x256xbf16>, vector<256x64xbf16>, vector<64x64xf32> -> vector<64x64xf32>
    %111 = arith.truncf %110 : vector<64x64xf32> to vector<64x64xbf16>
    %c12_96 = arith.constant 12 : index
    %c0_97 = arith.constant 0 : index
    %c0_98 = arith.constant 0 : index
    %112 = vector.load %arg4[%c12_96, %c0_97, %c0_98] : memref<16x64x128xbf16, #tpu.memory_space<vmem>>, vector<1x64x128xbf16>
    %113 = vector.shape_cast %112 : vector<1x64x128xbf16> to vector<64x128xbf16>
    %cst_99 = arith.constant dense<0.000000e+00> : vector<64x128xf32>
    %114 = tpu.matmul %111, %113, %cst_99 {dimension_numbers = #tpu.dot_dimension_numbers<[1], [0], [0], [1], [0, 0, 1, 1], [], []>} : vector<64x64xbf16>, vector<64x128xbf16>, vector<64x128xf32> -> vector<64x128xf32>
    %115 = arith.addf %107, %114 : vector<64x128xf32>
    %c13 = arith.constant 13 : index
    %c0_100 = arith.constant 0 : index
    %c0_101 = arith.constant 0 : index
    %116 = vector.load %arg7[%c13, %c0_100, %c0_101] : memref<16x64x256xbf16, #tpu.memory_space<vmem>>, vector<1x64x256xbf16>
    %117 = vector.shape_cast %116 : vector<1x64x256xbf16> to vector<64x256xbf16>
    %cst_102 = arith.constant dense<0.000000e+00> : vector<64x64xf32>
    %118 = tpu.matmul %117, %12, %cst_102 {dimension_numbers = #tpu.dot_dimension_numbers<[1], [0], [0], [1], [0, 0, 1, 1], [], []>} : vector<64x256xbf16>, vector<256x64xbf16>, vector<64x64xf32> -> vector<64x64xf32>
    %119 = arith.truncf %118 : vector<64x64xf32> to vector<64x64xbf16>
    %c13_103 = arith.constant 13 : index
    %c0_104 = arith.constant 0 : index
    %c0_105 = arith.constant 0 : index
    %120 = vector.load %arg4[%c13_103, %c0_104, %c0_105] : memref<16x64x128xbf16, #tpu.memory_space<vmem>>, vector<1x64x128xbf16>
    %121 = vector.shape_cast %120 : vector<1x64x128xbf16> to vector<64x128xbf16>
    %cst_106 = arith.constant dense<0.000000e+00> : vector<64x128xf32>
    %122 = tpu.matmul %119, %121, %cst_106 {dimension_numbers = #tpu.dot_dimension_numbers<[1], [0], [0], [1], [0, 0, 1, 1], [], []>} : vector<64x64xbf16>, vector<64x128xbf16>, vector<64x128xf32> -> vector<64x128xf32>
    %123 = arith.addf %115, %122 : vector<64x128xf32>
    %c14 = arith.constant 14 : index
    %c0_107 = arith.constant 0 : index
    %c0_108 = arith.constant 0 : index
    %124 = vector.load %arg7[%c14, %c0_107, %c0_108] : memref<16x64x256xbf16, #tpu.memory_space<vmem>>, vector<1x64x256xbf16>
    %125 = vector.shape_cast %124 : vector<1x64x256xbf16> to vector<64x256xbf16>
    %cst_109 = arith.constant dense<0.000000e+00> : vector<64x64xf32>
    %126 = tpu.matmul %125, %12, %cst_109 {dimension_numbers = #tpu.dot_dimension_numbers<[1], [0], [0], [1], [0, 0, 1, 1], [], []>} : vector<64x256xbf16>, vector<256x64xbf16>, vector<64x64xf32> -> vector<64x64xf32>
    %127 = arith.truncf %126 : vector<64x64xf32> to vector<64x64xbf16>
    %c14_110 = arith.constant 14 : index
    %c0_111 = arith.constant 0 : index
    %c0_112 = arith.constant 0 : index
    %128 = vector.load %arg4[%c14_110, %c0_111, %c0_112] : memref<16x64x128xbf16, #tpu.memory_space<vmem>>, vector<1x64x128xbf16>
    %129 = vector.shape_cast %128 : vector<1x64x128xbf16> to vector<64x128xbf16>
    %cst_113 = arith.constant dense<0.000000e+00> : vector<64x128xf32>
    %130 = tpu.matmul %127, %129, %cst_113 {dimension_numbers = #tpu.dot_dimension_numbers<[1], [0], [0], [1], [0, 0, 1, 1], [], []>} : vector<64x64xbf16>, vector<64x128xbf16>, vector<64x128xf32> -> vector<64x128xf32>
    %131 = arith.addf %123, %130 : vector<64x128xf32>
    %c15 = arith.constant 15 : index
    %c0_114 = arith.constant 0 : index
    %c0_115 = arith.constant 0 : index
    %132 = vector.load %arg7[%c15, %c0_114, %c0_115] : memref<16x64x256xbf16, #tpu.memory_space<vmem>>, vector<1x64x256xbf16>
    %133 = vector.shape_cast %132 : vector<1x64x256xbf16> to vector<64x256xbf16>
    %cst_116 = arith.constant dense<0.000000e+00> : vector<64x64xf32>
    %134 = tpu.matmul %133, %12, %cst_116 {dimension_numbers = #tpu.dot_dimension_numbers<[1], [0], [0], [1], [0, 0, 1, 1], [], []>} : vector<64x256xbf16>, vector<256x64xbf16>, vector<64x64xf32> -> vector<64x64xf32>
    %135 = arith.truncf %134 : vector<64x64xf32> to vector<64x64xbf16>
    %c15_117 = arith.constant 15 : index
    %c0_118 = arith.constant 0 : index
    %c0_119 = arith.constant 0 : index
    %136 = vector.load %arg4[%c15_117, %c0_118, %c0_119] : memref<16x64x128xbf16, #tpu.memory_space<vmem>>, vector<1x64x128xbf16>
    %137 = vector.shape_cast %136 : vector<1x64x128xbf16> to vector<64x128xbf16>
    %cst_120 = arith.constant dense<0.000000e+00> : vector<64x128xf32>
    %138 = tpu.matmul %135, %137, %cst_120 {dimension_numbers = #tpu.dot_dimension_numbers<[1], [0], [0], [1], [0, 0, 1, 1], [], []>} : vector<64x64xbf16>, vector<64x128xbf16>, vector<64x128xf32> -> vector<64x128xf32>
    %139 = arith.addf %131, %138 : vector<64x128xf32>
    %cst_121 = arith.constant dense<0.000000e+00> : vector<128xf32>
    %140 = vector.multi_reduction <add>, %139, %cst_121 [0] : vector<64x128xf32> to vector<128xf32>
    %141 = vector.shape_cast %140 : vector<128xf32> to vector<1x128xf32>
    %cst_122 = arith.constant 6.400000e+01 : f32
    %142 = vector.broadcast %cst_122 : f32 to vector<1x128xf32>
    %143 = arith.divf %141, %142 : vector<1x128xf32>
    %144 = arith.mulf %139, %139 : vector<64x128xf32>
    %cst_123 = arith.constant dense<0.000000e+00> : vector<128xf32>
    %145 = vector.multi_reduction <add>, %144, %cst_123 [0] : vector<64x128xf32> to vector<128xf32>
    %146 = vector.shape_cast %145 : vector<128xf32> to vector<1x128xf32>
    %cst_124 = arith.constant 6.400000e+01 : f32
    %147 = vector.broadcast %cst_124 : f32 to vector<1x128xf32>
    %148 = arith.divf %146, %147 : vector<1x128xf32>
    %149 = arith.mulf %143, %143 : vector<1x128xf32>
    %150 = arith.subf %148, %149 : vector<1x128xf32>
    %cst_125 = arith.constant 0.000000e+00 : f32
    %151 = vector.broadcast %cst_125 : f32 to vector<1x128xf32>
    %152 = arith.maximumf %150, %151 : vector<1x128xf32>
    %153 = vector.broadcast %143 : vector<1x128xf32> to vector<64x128xf32>
    %154 = arith.subf %139, %153 : vector<64x128xf32>
    %cst_126 = arith.constant 9.99999974E-6 : f32
    %155 = vector.broadcast %cst_126 : f32 to vector<1x128xf32>
    %156 = arith.addf %152, %155 : vector<1x128xf32>
    %157 = math.rsqrt %156 : vector<1x128xf32>
    %158 = vector.broadcast %157 : vector<1x128xf32> to vector<64x128xf32>
    %159 = arith.mulf %154, %158 : vector<64x128xf32>
    %cst_127 = arith.constant 0.000000e+00 : f32
    %160 = vector.broadcast %cst_127 : f32 to vector<64x128xf32>
    %161 = arith.cmpf oge, %159, %160 : vector<64x128xf32>
    %cst_128 = arith.constant 2.000000e-01 : f32
    %162 = vector.broadcast %cst_128 : f32 to vector<64x128xf32>
    %163 = arith.mulf %162, %159 : vector<64x128xf32>
    %164 = arith.select %161, %159, %163 : vector<64x128xi1>, vector<64x128xf32>
    %165 = arith.truncf %164 : vector<64x128xf32> to vector<64x128xbf16>
    %c0_129 = arith.constant 0 : index
    %c0_130 = arith.constant 0 : index
    %c0_131 = arith.constant 0 : index
    %166 = vector.load %arg8[%c0_129, %c0_130, %c0_131] : memref<16x16x64xbf16, #tpu.memory_space<vmem>>, vector<1x16x64xbf16>
    %167 = vector.shape_cast %166 : vector<1x16x64xbf16> to vector<16x64xbf16>
    %cst_132 = arith.constant dense<0.000000e+00> : vector<16x128xf32>
    %168 = tpu.matmul %167, %165, %cst_132 {dimension_numbers = #tpu.dot_dimension_numbers<[1], [0], [0], [1], [0, 0, 1, 1], [], []>} : vector<16x64xbf16>, vector<64x128xbf16>, vector<16x128xf32> -> vector<16x128xf32>
    %169 = arith.truncf %168 : vector<16x128xf32> to vector<16x128xbf16>
    %c0_133 = arith.constant 0 : index
    %c0_134 = arith.constant 0 : index
    %c0_135 = arith.constant 0 : index
    %170 = vector.load %arg5[%c0_133, %c0_134, %c0_135] : memref<16x128x256xbf16, #tpu.memory_space<vmem>>, vector<1x128x256xbf16>
    %171 = vector.shape_cast %170 : vector<1x128x256xbf16> to vector<128x256xbf16>
    %cst_136 = arith.constant dense<0.000000e+00> : vector<16x256xf32>
    %172 = tpu.matmul %169, %171, %cst_136 {dimension_numbers = #tpu.dot_dimension_numbers<[1], [0], [0], [1], [0, 0, 1, 1], [], []>} : vector<16x128xbf16>, vector<128x256xbf16>, vector<16x256xf32> -> vector<16x256xf32>
    %c1_137 = arith.constant 1 : index
    %c0_138 = arith.constant 0 : index
    %c0_139 = arith.constant 0 : index
    %173 = vector.load %arg8[%c1_137, %c0_138, %c0_139] : memref<16x16x64xbf16, #tpu.memory_space<vmem>>, vector<1x16x64xbf16>
    %174 = vector.shape_cast %173 : vector<1x16x64xbf16> to vector<16x64xbf16>
    %cst_140 = arith.constant dense<0.000000e+00> : vector<16x128xf32>
    %175 = tpu.matmul %174, %165, %cst_140 {dimension_numbers = #tpu.dot_dimension_numbers<[1], [0], [0], [1], [0, 0, 1, 1], [], []>} : vector<16x64xbf16>, vector<64x128xbf16>, vector<16x128xf32> -> vector<16x128xf32>
    %176 = arith.truncf %175 : vector<16x128xf32> to vector<16x128xbf16>
    %c1_141 = arith.constant 1 : index
    %c0_142 = arith.constant 0 : index
    %c0_143 = arith.constant 0 : index
    %177 = vector.load %arg5[%c1_141, %c0_142, %c0_143] : memref<16x128x256xbf16, #tpu.memory_space<vmem>>, vector<1x128x256xbf16>
    %178 = vector.shape_cast %177 : vector<1x128x256xbf16> to vector<128x256xbf16>
    %cst_144 = arith.constant dense<0.000000e+00> : vector<16x256xf32>
    %179 = tpu.matmul %176, %178, %cst_144 {dimension_numbers = #tpu.dot_dimension_numbers<[1], [0], [0], [1], [0, 0, 1, 1], [], []>} : vector<16x128xbf16>, vector<128x256xbf16>, vector<16x256xf32> -> vector<16x256xf32>
    %180 = arith.addf %172, %179 : vector<16x256xf32>
    %c2_145 = arith.constant 2 : index
    %c0_146 = arith.constant 0 : index
    %c0_147 = arith.constant 0 : index
    %181 = vector.load %arg8[%c2_145, %c0_146, %c0_147] : memref<16x16x64xbf16, #tpu.memory_space<vmem>>, vector<1x16x64xbf16>
    %182 = vector.shape_cast %181 : vector<1x16x64xbf16> to vector<16x64xbf16>
    %cst_148 = arith.constant dense<0.000000e+00> : vector<16x128xf32>
    %183 = tpu.matmul %182, %165, %cst_148 {dimension_numbers = #tpu.dot_dimension_numbers<[1], [0], [0], [1], [0, 0, 1, 1], [], []>} : vector<16x64xbf16>, vector<64x128xbf16>, vector<16x128xf32> -> vector<16x128xf32>
    %184 = arith.truncf %183 : vector<16x128xf32> to vector<16x128xbf16>
    %c2_149 = arith.constant 2 : index
    %c0_150 = arith.constant 0 : index
    %c0_151 = arith.constant 0 : index
    %185 = vector.load %arg5[%c2_149, %c0_150, %c0_151] : memref<16x128x256xbf16, #tpu.memory_space<vmem>>, vector<1x128x256xbf16>
    %186 = vector.shape_cast %185 : vector<1x128x256xbf16> to vector<128x256xbf16>
    %cst_152 = arith.constant dense<0.000000e+00> : vector<16x256xf32>
    %187 = tpu.matmul %184, %186, %cst_152 {dimension_numbers = #tpu.dot_dimension_numbers<[1], [0], [0], [1], [0, 0, 1, 1], [], []>} : vector<16x128xbf16>, vector<128x256xbf16>, vector<16x256xf32> -> vector<16x256xf32>
    %188 = arith.addf %180, %187 : vector<16x256xf32>
    %c3_153 = arith.constant 3 : index
    %c0_154 = arith.constant 0 : index
    %c0_155 = arith.constant 0 : index
    %189 = vector.load %arg8[%c3_153, %c0_154, %c0_155] : memref<16x16x64xbf16, #tpu.memory_space<vmem>>, vector<1x16x64xbf16>
    %190 = vector.shape_cast %189 : vector<1x16x64xbf16> to vector<16x64xbf16>
    %cst_156 = arith.constant dense<0.000000e+00> : vector<16x128xf32>
    %191 = tpu.matmul %190, %165, %cst_156 {dimension_numbers = #tpu.dot_dimension_numbers<[1], [0], [0], [1], [0, 0, 1, 1], [], []>} : vector<16x64xbf16>, vector<64x128xbf16>, vector<16x128xf32> -> vector<16x128xf32>
    %192 = arith.truncf %191 : vector<16x128xf32> to vector<16x128xbf16>
    %c3_157 = arith.constant 3 : index
    %c0_158 = arith.constant 0 : index
    %c0_159 = arith.constant 0 : index
    %193 = vector.load %arg5[%c3_157, %c0_158, %c0_159] : memref<16x128x256xbf16, #tpu.memory_space<vmem>>, vector<1x128x256xbf16>
    %194 = vector.shape_cast %193 : vector<1x128x256xbf16> to vector<128x256xbf16>
    %cst_160 = arith.constant dense<0.000000e+00> : vector<16x256xf32>
    %195 = tpu.matmul %192, %194, %cst_160 {dimension_numbers = #tpu.dot_dimension_numbers<[1], [0], [0], [1], [0, 0, 1, 1], [], []>} : vector<16x128xbf16>, vector<128x256xbf16>, vector<16x256xf32> -> vector<16x256xf32>
    %196 = arith.addf %188, %195 : vector<16x256xf32>
    %c4_161 = arith.constant 4 : index
    %c0_162 = arith.constant 0 : index
    %c0_163 = arith.constant 0 : index
    %197 = vector.load %arg8[%c4_161, %c0_162, %c0_163] : memref<16x16x64xbf16, #tpu.memory_space<vmem>>, vector<1x16x64xbf16>
    %198 = vector.shape_cast %197 : vector<1x16x64xbf16> to vector<16x64xbf16>
    %cst_164 = arith.constant dense<0.000000e+00> : vector<16x128xf32>
    %199 = tpu.matmul %198, %165, %cst_164 {dimension_numbers = #tpu.dot_dimension_numbers<[1], [0], [0], [1], [0, 0, 1, 1], [], []>} : vector<16x64xbf16>, vector<64x128xbf16>, vector<16x128xf32> -> vector<16x128xf32>
    %200 = arith.truncf %199 : vector<16x128xf32> to vector<16x128xbf16>
    %c4_165 = arith.constant 4 : index
    %c0_166 = arith.constant 0 : index
    %c0_167 = arith.constant 0 : index
    %201 = vector.load %arg5[%c4_165, %c0_166, %c0_167] : memref<16x128x256xbf16, #tpu.memory_space<vmem>>, vector<1x128x256xbf16>
    %202 = vector.shape_cast %201 : vector<1x128x256xbf16> to vector<128x256xbf16>
    %cst_168 = arith.constant dense<0.000000e+00> : vector<16x256xf32>
    %203 = tpu.matmul %200, %202, %cst_168 {dimension_numbers = #tpu.dot_dimension_numbers<[1], [0], [0], [1], [0, 0, 1, 1], [], []>} : vector<16x128xbf16>, vector<128x256xbf16>, vector<16x256xf32> -> vector<16x256xf32>
    %204 = arith.addf %196, %203 : vector<16x256xf32>
    %c5_169 = arith.constant 5 : index
    %c0_170 = arith.constant 0 : index
    %c0_171 = arith.constant 0 : index
    %205 = vector.load %arg8[%c5_169, %c0_170, %c0_171] : memref<16x16x64xbf16, #tpu.memory_space<vmem>>, vector<1x16x64xbf16>
    %206 = vector.shape_cast %205 : vector<1x16x64xbf16> to vector<16x64xbf16>
    %cst_172 = arith.constant dense<0.000000e+00> : vector<16x128xf32>
    %207 = tpu.matmul %206, %165, %cst_172 {dimension_numbers = #tpu.dot_dimension_numbers<[1], [0], [0], [1], [0, 0, 1, 1], [], []>} : vector<16x64xbf16>, vector<64x128xbf16>, vector<16x128xf32> -> vector<16x128xf32>
    %208 = arith.truncf %207 : vector<16x128xf32> to vector<16x128xbf16>
    %c5_173 = arith.constant 5 : index
    %c0_174 = arith.constant 0 : index
    %c0_175 = arith.constant 0 : index
    %209 = vector.load %arg5[%c5_173, %c0_174, %c0_175] : memref<16x128x256xbf16, #tpu.memory_space<vmem>>, vector<1x128x256xbf16>
    %210 = vector.shape_cast %209 : vector<1x128x256xbf16> to vector<128x256xbf16>
    %cst_176 = arith.constant dense<0.000000e+00> : vector<16x256xf32>
    %211 = tpu.matmul %208, %210, %cst_176 {dimension_numbers = #tpu.dot_dimension_numbers<[1], [0], [0], [1], [0, 0, 1, 1], [], []>} : vector<16x128xbf16>, vector<128x256xbf16>, vector<16x256xf32> -> vector<16x256xf32>
    %212 = arith.addf %204, %211 : vector<16x256xf32>
    %c6_177 = arith.constant 6 : index
    %c0_178 = arith.constant 0 : index
    %c0_179 = arith.constant 0 : index
    %213 = vector.load %arg8[%c6_177, %c0_178, %c0_179] : memref<16x16x64xbf16, #tpu.memory_space<vmem>>, vector<1x16x64xbf16>
    %214 = vector.shape_cast %213 : vector<1x16x64xbf16> to vector<16x64xbf16>
    %cst_180 = arith.constant dense<0.000000e+00> : vector<16x128xf32>
    %215 = tpu.matmul %214, %165, %cst_180 {dimension_numbers = #tpu.dot_dimension_numbers<[1], [0], [0], [1], [0, 0, 1, 1], [], []>} : vector<16x64xbf16>, vector<64x128xbf16>, vector<16x128xf32> -> vector<16x128xf32>
    %216 = arith.truncf %215 : vector<16x128xf32> to vector<16x128xbf16>
    %c6_181 = arith.constant 6 : index
    %c0_182 = arith.constant 0 : index
    %c0_183 = arith.constant 0 : index
    %217 = vector.load %arg5[%c6_181, %c0_182, %c0_183] : memref<16x128x256xbf16, #tpu.memory_space<vmem>>, vector<1x128x256xbf16>
    %218 = vector.shape_cast %217 : vector<1x128x256xbf16> to vector<128x256xbf16>
    %cst_184 = arith.constant dense<0.000000e+00> : vector<16x256xf32>
    %219 = tpu.matmul %216, %218, %cst_184 {dimension_numbers = #tpu.dot_dimension_numbers<[1], [0], [0], [1], [0, 0, 1, 1], [], []>} : vector<16x128xbf16>, vector<128x256xbf16>, vector<16x256xf32> -> vector<16x256xf32>
    %220 = arith.addf %212, %219 : vector<16x256xf32>
    %c7_185 = arith.constant 7 : index
    %c0_186 = arith.constant 0 : index
    %c0_187 = arith.constant 0 : index
    %221 = vector.load %arg8[%c7_185, %c0_186, %c0_187] : memref<16x16x64xbf16, #tpu.memory_space<vmem>>, vector<1x16x64xbf16>
    %222 = vector.shape_cast %221 : vector<1x16x64xbf16> to vector<16x64xbf16>
    %cst_188 = arith.constant dense<0.000000e+00> : vector<16x128xf32>
    %223 = tpu.matmul %222, %165, %cst_188 {dimension_numbers = #tpu.dot_dimension_numbers<[1], [0], [0], [1], [0, 0, 1, 1], [], []>} : vector<16x64xbf16>, vector<64x128xbf16>, vector<16x128xf32> -> vector<16x128xf32>
    %224 = arith.truncf %223 : vector<16x128xf32> to vector<16x128xbf16>
    %c7_189 = arith.constant 7 : index
    %c0_190 = arith.constant 0 : index
    %c0_191 = arith.constant 0 : index
    %225 = vector.load %arg5[%c7_189, %c0_190, %c0_191] : memref<16x128x256xbf16, #tpu.memory_space<vmem>>, vector<1x128x256xbf16>
    %226 = vector.shape_cast %225 : vector<1x128x256xbf16> to vector<128x256xbf16>
    %cst_192 = arith.constant dense<0.000000e+00> : vector<16x256xf32>
    %227 = tpu.matmul %224, %226, %cst_192 {dimension_numbers = #tpu.dot_dimension_numbers<[1], [0], [0], [1], [0, 0, 1, 1], [], []>} : vector<16x128xbf16>, vector<128x256xbf16>, vector<16x256xf32> -> vector<16x256xf32>
    %228 = arith.addf %220, %227 : vector<16x256xf32>
    %c8_193 = arith.constant 8 : index
    %c0_194 = arith.constant 0 : index
    %c0_195 = arith.constant 0 : index
    %229 = vector.load %arg8[%c8_193, %c0_194, %c0_195] : memref<16x16x64xbf16, #tpu.memory_space<vmem>>, vector<1x16x64xbf16>
    %230 = vector.shape_cast %229 : vector<1x16x64xbf16> to vector<16x64xbf16>
    %cst_196 = arith.constant dense<0.000000e+00> : vector<16x128xf32>
    %231 = tpu.matmul %230, %165, %cst_196 {dimension_numbers = #tpu.dot_dimension_numbers<[1], [0], [0], [1], [0, 0, 1, 1], [], []>} : vector<16x64xbf16>, vector<64x128xbf16>, vector<16x128xf32> -> vector<16x128xf32>
    %232 = arith.truncf %231 : vector<16x128xf32> to vector<16x128xbf16>
    %c8_197 = arith.constant 8 : index
    %c0_198 = arith.constant 0 : index
    %c0_199 = arith.constant 0 : index
    %233 = vector.load %arg5[%c8_197, %c0_198, %c0_199] : memref<16x128x256xbf16, #tpu.memory_space<vmem>>, vector<1x128x256xbf16>
    %234 = vector.shape_cast %233 : vector<1x128x256xbf16> to vector<128x256xbf16>
    %cst_200 = arith.constant dense<0.000000e+00> : vector<16x256xf32>
    %235 = tpu.matmul %232, %234, %cst_200 {dimension_numbers = #tpu.dot_dimension_numbers<[1], [0], [0], [1], [0, 0, 1, 1], [], []>} : vector<16x128xbf16>, vector<128x256xbf16>, vector<16x256xf32> -> vector<16x256xf32>
    %236 = arith.addf %228, %235 : vector<16x256xf32>
    %c9_201 = arith.constant 9 : index
    %c0_202 = arith.constant 0 : index
    %c0_203 = arith.constant 0 : index
    %237 = vector.load %arg8[%c9_201, %c0_202, %c0_203] : memref<16x16x64xbf16, #tpu.memory_space<vmem>>, vector<1x16x64xbf16>
    %238 = vector.shape_cast %237 : vector<1x16x64xbf16> to vector<16x64xbf16>
    %cst_204 = arith.constant dense<0.000000e+00> : vector<16x128xf32>
    %239 = tpu.matmul %238, %165, %cst_204 {dimension_numbers = #tpu.dot_dimension_numbers<[1], [0], [0], [1], [0, 0, 1, 1], [], []>} : vector<16x64xbf16>, vector<64x128xbf16>, vector<16x128xf32> -> vector<16x128xf32>
    %240 = arith.truncf %239 : vector<16x128xf32> to vector<16x128xbf16>
    %c9_205 = arith.constant 9 : index
    %c0_206 = arith.constant 0 : index
    %c0_207 = arith.constant 0 : index
    %241 = vector.load %arg5[%c9_205, %c0_206, %c0_207] : memref<16x128x256xbf16, #tpu.memory_space<vmem>>, vector<1x128x256xbf16>
    %242 = vector.shape_cast %241 : vector<1x128x256xbf16> to vector<128x256xbf16>
    %cst_208 = arith.constant dense<0.000000e+00> : vector<16x256xf32>
    %243 = tpu.matmul %240, %242, %cst_208 {dimension_numbers = #tpu.dot_dimension_numbers<[1], [0], [0], [1], [0, 0, 1, 1], [], []>} : vector<16x128xbf16>, vector<128x256xbf16>, vector<16x256xf32> -> vector<16x256xf32>
    %244 = arith.addf %236, %243 : vector<16x256xf32>
    %c10_209 = arith.constant 10 : index
    %c0_210 = arith.constant 0 : index
    %c0_211 = arith.constant 0 : index
    %245 = vector.load %arg8[%c10_209, %c0_210, %c0_211] : memref<16x16x64xbf16, #tpu.memory_space<vmem>>, vector<1x16x64xbf16>
    %246 = vector.shape_cast %245 : vector<1x16x64xbf16> to vector<16x64xbf16>
    %cst_212 = arith.constant dense<0.000000e+00> : vector<16x128xf32>
    %247 = tpu.matmul %246, %165, %cst_212 {dimension_numbers = #tpu.dot_dimension_numbers<[1], [0], [0], [1], [0, 0, 1, 1], [], []>} : vector<16x64xbf16>, vector<64x128xbf16>, vector<16x128xf32> -> vector<16x128xf32>
    %248 = arith.truncf %247 : vector<16x128xf32> to vector<16x128xbf16>
    %c10_213 = arith.constant 10 : index
    %c0_214 = arith.constant 0 : index
    %c0_215 = arith.constant 0 : index
    %249 = vector.load %arg5[%c10_213, %c0_214, %c0_215] : memref<16x128x256xbf16, #tpu.memory_space<vmem>>, vector<1x128x256xbf16>
    %250 = vector.shape_cast %249 : vector<1x128x256xbf16> to vector<128x256xbf16>
    %cst_216 = arith.constant dense<0.000000e+00> : vector<16x256xf32>
    %251 = tpu.matmul %248, %250, %cst_216 {dimension_numbers = #tpu.dot_dimension_numbers<[1], [0], [0], [1], [0, 0, 1, 1], [], []>} : vector<16x128xbf16>, vector<128x256xbf16>, vector<16x256xf32> -> vector<16x256xf32>
    %252 = arith.addf %244, %251 : vector<16x256xf32>
    %c11_217 = arith.constant 11 : index
    %c0_218 = arith.constant 0 : index
    %c0_219 = arith.constant 0 : index
    %253 = vector.load %arg8[%c11_217, %c0_218, %c0_219] : memref<16x16x64xbf16, #tpu.memory_space<vmem>>, vector<1x16x64xbf16>
    %254 = vector.shape_cast %253 : vector<1x16x64xbf16> to vector<16x64xbf16>
    %cst_220 = arith.constant dense<0.000000e+00> : vector<16x128xf32>
    %255 = tpu.matmul %254, %165, %cst_220 {dimension_numbers = #tpu.dot_dimension_numbers<[1], [0], [0], [1], [0, 0, 1, 1], [], []>} : vector<16x64xbf16>, vector<64x128xbf16>, vector<16x128xf32> -> vector<16x128xf32>
    %256 = arith.truncf %255 : vector<16x128xf32> to vector<16x128xbf16>
    %c11_221 = arith.constant 11 : index
    %c0_222 = arith.constant 0 : index
    %c0_223 = arith.constant 0 : index
    %257 = vector.load %arg5[%c11_221, %c0_222, %c0_223] : memref<16x128x256xbf16, #tpu.memory_space<vmem>>, vector<1x128x256xbf16>
    %258 = vector.shape_cast %257 : vector<1x128x256xbf16> to vector<128x256xbf16>
    %cst_224 = arith.constant dense<0.000000e+00> : vector<16x256xf32>
    %259 = tpu.matmul %256, %258, %cst_224 {dimension_numbers = #tpu.dot_dimension_numbers<[1], [0], [0], [1], [0, 0, 1, 1], [], []>} : vector<16x128xbf16>, vector<128x256xbf16>, vector<16x256xf32> -> vector<16x256xf32>
    %260 = arith.addf %252, %259 : vector<16x256xf32>
    %c12_225 = arith.constant 12 : index
    %c0_226 = arith.constant 0 : index
    %c0_227 = arith.constant 0 : index
    %261 = vector.load %arg8[%c12_225, %c0_226, %c0_227] : memref<16x16x64xbf16, #tpu.memory_space<vmem>>, vector<1x16x64xbf16>
    %262 = vector.shape_cast %261 : vector<1x16x64xbf16> to vector<16x64xbf16>
    %cst_228 = arith.constant dense<0.000000e+00> : vector<16x128xf32>
    %263 = tpu.matmul %262, %165, %cst_228 {dimension_numbers = #tpu.dot_dimension_numbers<[1], [0], [0], [1], [0, 0, 1, 1], [], []>} : vector<16x64xbf16>, vector<64x128xbf16>, vector<16x128xf32> -> vector<16x128xf32>
    %264 = arith.truncf %263 : vector<16x128xf32> to vector<16x128xbf16>
    %c12_229 = arith.constant 12 : index
    %c0_230 = arith.constant 0 : index
    %c0_231 = arith.constant 0 : index
    %265 = vector.load %arg5[%c12_229, %c0_230, %c0_231] : memref<16x128x256xbf16, #tpu.memory_space<vmem>>, vector<1x128x256xbf16>
    %266 = vector.shape_cast %265 : vector<1x128x256xbf16> to vector<128x256xbf16>
    %cst_232 = arith.constant dense<0.000000e+00> : vector<16x256xf32>
    %267 = tpu.matmul %264, %266, %cst_232 {dimension_numbers = #tpu.dot_dimension_numbers<[1], [0], [0], [1], [0, 0, 1, 1], [], []>} : vector<16x128xbf16>, vector<128x256xbf16>, vector<16x256xf32> -> vector<16x256xf32>
    %268 = arith.addf %260, %267 : vector<16x256xf32>
    %c13_233 = arith.constant 13 : index
    %c0_234 = arith.constant 0 : index
    %c0_235 = arith.constant 0 : index
    %269 = vector.load %arg8[%c13_233, %c0_234, %c0_235] : memref<16x16x64xbf16, #tpu.memory_space<vmem>>, vector<1x16x64xbf16>
    %270 = vector.shape_cast %269 : vector<1x16x64xbf16> to vector<16x64xbf16>
    %cst_236 = arith.constant dense<0.000000e+00> : vector<16x128xf32>
    %271 = tpu.matmul %270, %165, %cst_236 {dimension_numbers = #tpu.dot_dimension_numbers<[1], [0], [0], [1], [0, 0, 1, 1], [], []>} : vector<16x64xbf16>, vector<64x128xbf16>, vector<16x128xf32> -> vector<16x128xf32>
    %272 = arith.truncf %271 : vector<16x128xf32> to vector<16x128xbf16>
    %c13_237 = arith.constant 13 : index
    %c0_238 = arith.constant 0 : index
    %c0_239 = arith.constant 0 : index
    %273 = vector.load %arg5[%c13_237, %c0_238, %c0_239] : memref<16x128x256xbf16, #tpu.memory_space<vmem>>, vector<1x128x256xbf16>
    %274 = vector.shape_cast %273 : vector<1x128x256xbf16> to vector<128x256xbf16>
    %cst_240 = arith.constant dense<0.000000e+00> : vector<16x256xf32>
    %275 = tpu.matmul %272, %274, %cst_240 {dimension_numbers = #tpu.dot_dimension_numbers<[1], [0], [0], [1], [0, 0, 1, 1], [], []>} : vector<16x128xbf16>, vector<128x256xbf16>, vector<16x256xf32> -> vector<16x256xf32>
    %276 = arith.addf %268, %275 : vector<16x256xf32>
    %c14_241 = arith.constant 14 : index
    %c0_242 = arith.constant 0 : index
    %c0_243 = arith.constant 0 : index
    %277 = vector.load %arg8[%c14_241, %c0_242, %c0_243] : memref<16x16x64xbf16, #tpu.memory_space<vmem>>, vector<1x16x64xbf16>
    %278 = vector.shape_cast %277 : vector<1x16x64xbf16> to vector<16x64xbf16>
    %cst_244 = arith.constant dense<0.000000e+00> : vector<16x128xf32>
    %279 = tpu.matmul %278, %165, %cst_244 {dimension_numbers = #tpu.dot_dimension_numbers<[1], [0], [0], [1], [0, 0, 1, 1], [], []>} : vector<16x64xbf16>, vector<64x128xbf16>, vector<16x128xf32> -> vector<16x128xf32>
    %280 = arith.truncf %279 : vector<16x128xf32> to vector<16x128xbf16>
    %c14_245 = arith.constant 14 : index
    %c0_246 = arith.constant 0 : index
    %c0_247 = arith.constant 0 : index
    %281 = vector.load %arg5[%c14_245, %c0_246, %c0_247] : memref<16x128x256xbf16, #tpu.memory_space<vmem>>, vector<1x128x256xbf16>
    %282 = vector.shape_cast %281 : vector<1x128x256xbf16> to vector<128x256xbf16>
    %cst_248 = arith.constant dense<0.000000e+00> : vector<16x256xf32>
    %283 = tpu.matmul %280, %282, %cst_248 {dimension_numbers = #tpu.dot_dimension_numbers<[1], [0], [0], [1], [0, 0, 1, 1], [], []>} : vector<16x128xbf16>, vector<128x256xbf16>, vector<16x256xf32> -> vector<16x256xf32>
    %284 = arith.addf %276, %283 : vector<16x256xf32>
    %c15_249 = arith.constant 15 : index
    %c0_250 = arith.constant 0 : index
    %c0_251 = arith.constant 0 : index
    %285 = vector.load %arg8[%c15_249, %c0_250, %c0_251] : memref<16x16x64xbf16, #tpu.memory_space<vmem>>, vector<1x16x64xbf16>
    %286 = vector.shape_cast %285 : vector<1x16x64xbf16> to vector<16x64xbf16>
    %cst_252 = arith.constant dense<0.000000e+00> : vector<16x128xf32>
    %287 = tpu.matmul %286, %165, %cst_252 {dimension_numbers = #tpu.dot_dimension_numbers<[1], [0], [0], [1], [0, 0, 1, 1], [], []>} : vector<16x64xbf16>, vector<64x128xbf16>, vector<16x128xf32> -> vector<16x128xf32>
    %288 = arith.truncf %287 : vector<16x128xf32> to vector<16x128xbf16>
    %c15_253 = arith.constant 15 : index
    %c0_254 = arith.constant 0 : index
    %c0_255 = arith.constant 0 : index
    %289 = vector.load %arg5[%c15_253, %c0_254, %c0_255] : memref<16x128x256xbf16, #tpu.memory_space<vmem>>, vector<1x128x256xbf16>
    %290 = vector.shape_cast %289 : vector<1x128x256xbf16> to vector<128x256xbf16>
    %cst_256 = arith.constant dense<0.000000e+00> : vector<16x256xf32>
    %291 = tpu.matmul %288, %290, %cst_256 {dimension_numbers = #tpu.dot_dimension_numbers<[1], [0], [0], [1], [0, 0, 1, 1], [], []>} : vector<16x128xbf16>, vector<128x256xbf16>, vector<16x256xf32> -> vector<16x256xf32>
    %292 = arith.addf %284, %291 : vector<16x256xf32>
    %cst_257 = arith.constant dense<0.000000e+00> : vector<256xf32>
    %293 = vector.multi_reduction <add>, %292, %cst_257 [0] : vector<16x256xf32> to vector<256xf32>
    %294 = vector.shape_cast %293 : vector<256xf32> to vector<1x256xf32>
    %cst_258 = arith.constant 1.600000e+01 : f32
    %295 = vector.broadcast %cst_258 : f32 to vector<1x256xf32>
    %296 = arith.divf %294, %295 : vector<1x256xf32>
    %297 = arith.mulf %292, %292 : vector<16x256xf32>
    %cst_259 = arith.constant dense<0.000000e+00> : vector<256xf32>
    %298 = vector.multi_reduction <add>, %297, %cst_259 [0] : vector<16x256xf32> to vector<256xf32>
    %299 = vector.shape_cast %298 : vector<256xf32> to vector<1x256xf32>
    %cst_260 = arith.constant 1.600000e+01 : f32
    %300 = vector.broadcast %cst_260 : f32 to vector<1x256xf32>
    %301 = arith.divf %299, %300 : vector<1x256xf32>
    %302 = arith.mulf %296, %296 : vector<1x256xf32>
    %303 = arith.subf %301, %302 : vector<1x256xf32>
    %cst_261 = arith.constant 0.000000e+00 : f32
    %304 = vector.broadcast %cst_261 : f32 to vector<1x256xf32>
    %305 = arith.maximumf %303, %304 : vector<1x256xf32>
    %306 = vector.broadcast %296 : vector<1x256xf32> to vector<16x256xf32>
    %307 = arith.subf %292, %306 : vector<16x256xf32>
    %cst_262 = arith.constant 9.99999974E-6 : f32
    %308 = vector.broadcast %cst_262 : f32 to vector<1x256xf32>
    %309 = arith.addf %305, %308 : vector<1x256xf32>
    %310 = math.rsqrt %309 : vector<1x256xf32>
    %311 = vector.broadcast %310 : vector<1x256xf32> to vector<16x256xf32>
    %312 = arith.mulf %307, %311 : vector<16x256xf32>
    %cst_263 = arith.constant 0.000000e+00 : f32
    %313 = vector.broadcast %cst_263 : f32 to vector<16x256xf32>
    %314 = arith.cmpf oge, %312, %313 : vector<16x256xf32>
    %cst_264 = arith.constant 2.000000e-01 : f32
    %315 = vector.broadcast %cst_264 : f32 to vector<16x256xf32>
    %316 = arith.mulf %315, %312 : vector<16x256xf32>
    %317 = arith.select %314, %312, %316 : vector<16x256xi1>, vector<16x256xf32>
    %318 = arith.truncf %317 : vector<16x256xf32> to vector<16x256xbf16>
    %c0_265 = arith.constant 0 : index
    %c0_266 = arith.constant 0 : index
    %c0_267 = arith.constant 0 : index
    %319 = vector.load %arg9[%c0_265, %c0_266, %c0_267] : memref<16x9x16xbf16, #tpu.memory_space<vmem>>, vector<1x9x16xbf16>
    %320 = vector.shape_cast %319 : vector<1x9x16xbf16> to vector<9x16xbf16>
    %cst_268 = arith.constant dense<0.000000e+00> : vector<9x256xf32>
    %321 = tpu.matmul %320, %318, %cst_268 {dimension_numbers = #tpu.dot_dimension_numbers<[1], [0], [0], [1], [0, 0, 1, 1], [], []>} : vector<9x16xbf16>, vector<16x256xbf16>, vector<9x256xf32> -> vector<9x256xf32>
    %322 = arith.truncf %321 : vector<9x256xf32> to vector<9x256xbf16>
    %c0_269 = arith.constant 0 : index
    %c0_270 = arith.constant 0 : index
    %c0_271 = arith.constant 0 : index
    %323 = vector.load %arg6[%c0_269, %c0_270, %c0_271] : memref<16x256x512xbf16, #tpu.memory_space<vmem>>, vector<1x256x512xbf16>
    %324 = vector.shape_cast %323 : vector<1x256x512xbf16> to vector<256x512xbf16>
    %cst_272 = arith.constant dense<0.000000e+00> : vector<9x512xf32>
    %325 = tpu.matmul %322, %324, %cst_272 {dimension_numbers = #tpu.dot_dimension_numbers<[1], [0], [0], [1], [0, 0, 1, 1], [], []>} : vector<9x256xbf16>, vector<256x512xbf16>, vector<9x512xf32> -> vector<9x512xf32>
    %c1_273 = arith.constant 1 : index
    %c0_274 = arith.constant 0 : index
    %c0_275 = arith.constant 0 : index
    %326 = vector.load %arg9[%c1_273, %c0_274, %c0_275] : memref<16x9x16xbf16, #tpu.memory_space<vmem>>, vector<1x9x16xbf16>
    %327 = vector.shape_cast %326 : vector<1x9x16xbf16> to vector<9x16xbf16>
    %cst_276 = arith.constant dense<0.000000e+00> : vector<9x256xf32>
    %328 = tpu.matmul %327, %318, %cst_276 {dimension_numbers = #tpu.dot_dimension_numbers<[1], [0], [0], [1], [0, 0, 1, 1], [], []>} : vector<9x16xbf16>, vector<16x256xbf16>, vector<9x256xf32> -> vector<9x256xf32>
    %329 = arith.truncf %328 : vector<9x256xf32> to vector<9x256xbf16>
    %c1_277 = arith.constant 1 : index
    %c0_278 = arith.constant 0 : index
    %c0_279 = arith.constant 0 : index
    %330 = vector.load %arg6[%c1_277, %c0_278, %c0_279] : memref<16x256x512xbf16, #tpu.memory_space<vmem>>, vector<1x256x512xbf16>
    %331 = vector.shape_cast %330 : vector<1x256x512xbf16> to vector<256x512xbf16>
    %cst_280 = arith.constant dense<0.000000e+00> : vector<9x512xf32>
    %332 = tpu.matmul %329, %331, %cst_280 {dimension_numbers = #tpu.dot_dimension_numbers<[1], [0], [0], [1], [0, 0, 1, 1], [], []>} : vector<9x256xbf16>, vector<256x512xbf16>, vector<9x512xf32> -> vector<9x512xf32>
    %333 = arith.addf %325, %332 : vector<9x512xf32>
    %c2_281 = arith.constant 2 : index
    %c0_282 = arith.constant 0 : index
    %c0_283 = arith.constant 0 : index
    %334 = vector.load %arg9[%c2_281, %c0_282, %c0_283] : memref<16x9x16xbf16, #tpu.memory_space<vmem>>, vector<1x9x16xbf16>
    %335 = vector.shape_cast %334 : vector<1x9x16xbf16> to vector<9x16xbf16>
    %cst_284 = arith.constant dense<0.000000e+00> : vector<9x256xf32>
    %336 = tpu.matmul %335, %318, %cst_284 {dimension_numbers = #tpu.dot_dimension_numbers<[1], [0], [0], [1], [0, 0, 1, 1], [], []>} : vector<9x16xbf16>, vector<16x256xbf16>, vector<9x256xf32> -> vector<9x256xf32>
    %337 = arith.truncf %336 : vector<9x256xf32> to vector<9x256xbf16>
    %c2_285 = arith.constant 2 : index
    %c0_286 = arith.constant 0 : index
    %c0_287 = arith.constant 0 : index
    %338 = vector.load %arg6[%c2_285, %c0_286, %c0_287] : memref<16x256x512xbf16, #tpu.memory_space<vmem>>, vector<1x256x512xbf16>
    %339 = vector.shape_cast %338 : vector<1x256x512xbf16> to vector<256x512xbf16>
    %cst_288 = arith.constant dense<0.000000e+00> : vector<9x512xf32>
    %340 = tpu.matmul %337, %339, %cst_288 {dimension_numbers = #tpu.dot_dimension_numbers<[1], [0], [0], [1], [0, 0, 1, 1], [], []>} : vector<9x256xbf16>, vector<256x512xbf16>, vector<9x512xf32> -> vector<9x512xf32>
    %341 = arith.addf %333, %340 : vector<9x512xf32>
    %c3_289 = arith.constant 3 : index
    %c0_290 = arith.constant 0 : index
    %c0_291 = arith.constant 0 : index
    %342 = vector.load %arg9[%c3_289, %c0_290, %c0_291] : memref<16x9x16xbf16, #tpu.memory_space<vmem>>, vector<1x9x16xbf16>
    %343 = vector.shape_cast %342 : vector<1x9x16xbf16> to vector<9x16xbf16>
    %cst_292 = arith.constant dense<0.000000e+00> : vector<9x256xf32>
    %344 = tpu.matmul %343, %318, %cst_292 {dimension_numbers = #tpu.dot_dimension_numbers<[1], [0], [0], [1], [0, 0, 1, 1], [], []>} : vector<9x16xbf16>, vector<16x256xbf16>, vector<9x256xf32> -> vector<9x256xf32>
    %345 = arith.truncf %344 : vector<9x256xf32> to vector<9x256xbf16>
    %c3_293 = arith.constant 3 : index
    %c0_294 = arith.constant 0 : index
    %c0_295 = arith.constant 0 : index
    %346 = vector.load %arg6[%c3_293, %c0_294, %c0_295] : memref<16x256x512xbf16, #tpu.memory_space<vmem>>, vector<1x256x512xbf16>
    %347 = vector.shape_cast %346 : vector<1x256x512xbf16> to vector<256x512xbf16>
    %cst_296 = arith.constant dense<0.000000e+00> : vector<9x512xf32>
    %348 = tpu.matmul %345, %347, %cst_296 {dimension_numbers = #tpu.dot_dimension_numbers<[1], [0], [0], [1], [0, 0, 1, 1], [], []>} : vector<9x256xbf16>, vector<256x512xbf16>, vector<9x512xf32> -> vector<9x512xf32>
    %349 = arith.addf %341, %348 : vector<9x512xf32>
    %c4_297 = arith.constant 4 : index
    %c0_298 = arith.constant 0 : index
    %c0_299 = arith.constant 0 : index
    %350 = vector.load %arg9[%c4_297, %c0_298, %c0_299] : memref<16x9x16xbf16, #tpu.memory_space<vmem>>, vector<1x9x16xbf16>
    %351 = vector.shape_cast %350 : vector<1x9x16xbf16> to vector<9x16xbf16>
    %cst_300 = arith.constant dense<0.000000e+00> : vector<9x256xf32>
    %352 = tpu.matmul %351, %318, %cst_300 {dimension_numbers = #tpu.dot_dimension_numbers<[1], [0], [0], [1], [0, 0, 1, 1], [], []>} : vector<9x16xbf16>, vector<16x256xbf16>, vector<9x256xf32> -> vector<9x256xf32>
    %353 = arith.truncf %352 : vector<9x256xf32> to vector<9x256xbf16>
    %c4_301 = arith.constant 4 : index
    %c0_302 = arith.constant 0 : index
    %c0_303 = arith.constant 0 : index
    %354 = vector.load %arg6[%c4_301, %c0_302, %c0_303] : memref<16x256x512xbf16, #tpu.memory_space<vmem>>, vector<1x256x512xbf16>
    %355 = vector.shape_cast %354 : vector<1x256x512xbf16> to vector<256x512xbf16>
    %cst_304 = arith.constant dense<0.000000e+00> : vector<9x512xf32>
    %356 = tpu.matmul %353, %355, %cst_304 {dimension_numbers = #tpu.dot_dimension_numbers<[1], [0], [0], [1], [0, 0, 1, 1], [], []>} : vector<9x256xbf16>, vector<256x512xbf16>, vector<9x512xf32> -> vector<9x512xf32>
    %357 = arith.addf %349, %356 : vector<9x512xf32>
    %c5_305 = arith.constant 5 : index
    %c0_306 = arith.constant 0 : index
    %c0_307 = arith.constant 0 : index
    %358 = vector.load %arg9[%c5_305, %c0_306, %c0_307] : memref<16x9x16xbf16, #tpu.memory_space<vmem>>, vector<1x9x16xbf16>
    %359 = vector.shape_cast %358 : vector<1x9x16xbf16> to vector<9x16xbf16>
    %cst_308 = arith.constant dense<0.000000e+00> : vector<9x256xf32>
    %360 = tpu.matmul %359, %318, %cst_308 {dimension_numbers = #tpu.dot_dimension_numbers<[1], [0], [0], [1], [0, 0, 1, 1], [], []>} : vector<9x16xbf16>, vector<16x256xbf16>, vector<9x256xf32> -> vector<9x256xf32>
    %361 = arith.truncf %360 : vector<9x256xf32> to vector<9x256xbf16>
    %c5_309 = arith.constant 5 : index
    %c0_310 = arith.constant 0 : index
    %c0_311 = arith.constant 0 : index
    %362 = vector.load %arg6[%c5_309, %c0_310, %c0_311] : memref<16x256x512xbf16, #tpu.memory_space<vmem>>, vector<1x256x512xbf16>
    %363 = vector.shape_cast %362 : vector<1x256x512xbf16> to vector<256x512xbf16>
    %cst_312 = arith.constant dense<0.000000e+00> : vector<9x512xf32>
    %364 = tpu.matmul %361, %363, %cst_312 {dimension_numbers = #tpu.dot_dimension_numbers<[1], [0], [0], [1], [0, 0, 1, 1], [], []>} : vector<9x256xbf16>, vector<256x512xbf16>, vector<9x512xf32> -> vector<9x512xf32>
    %365 = arith.addf %357, %364 : vector<9x512xf32>
    %c6_313 = arith.constant 6 : index
    %c0_314 = arith.constant 0 : index
    %c0_315 = arith.constant 0 : index
    %366 = vector.load %arg9[%c6_313, %c0_314, %c0_315] : memref<16x9x16xbf16, #tpu.memory_space<vmem>>, vector<1x9x16xbf16>
    %367 = vector.shape_cast %366 : vector<1x9x16xbf16> to vector<9x16xbf16>
    %cst_316 = arith.constant dense<0.000000e+00> : vector<9x256xf32>
    %368 = tpu.matmul %367, %318, %cst_316 {dimension_numbers = #tpu.dot_dimension_numbers<[1], [0], [0], [1], [0, 0, 1, 1], [], []>} : vector<9x16xbf16>, vector<16x256xbf16>, vector<9x256xf32> -> vector<9x256xf32>
    %369 = arith.truncf %368 : vector<9x256xf32> to vector<9x256xbf16>
    %c6_317 = arith.constant 6 : index
    %c0_318 = arith.constant 0 : index
    %c0_319 = arith.constant 0 : index
    %370 = vector.load %arg6[%c6_317, %c0_318, %c0_319] : memref<16x256x512xbf16, #tpu.memory_space<vmem>>, vector<1x256x512xbf16>
    %371 = vector.shape_cast %370 : vector<1x256x512xbf16> to vector<256x512xbf16>
    %cst_320 = arith.constant dense<0.000000e+00> : vector<9x512xf32>
    %372 = tpu.matmul %369, %371, %cst_320 {dimension_numbers = #tpu.dot_dimension_numbers<[1], [0], [0], [1], [0, 0, 1, 1], [], []>} : vector<9x256xbf16>, vector<256x512xbf16>, vector<9x512xf32> -> vector<9x512xf32>
    %373 = arith.addf %365, %372 : vector<9x512xf32>
    %c7_321 = arith.constant 7 : index
    %c0_322 = arith.constant 0 : index
    %c0_323 = arith.constant 0 : index
    %374 = vector.load %arg9[%c7_321, %c0_322, %c0_323] : memref<16x9x16xbf16, #tpu.memory_space<vmem>>, vector<1x9x16xbf16>
    %375 = vector.shape_cast %374 : vector<1x9x16xbf16> to vector<9x16xbf16>
    %cst_324 = arith.constant dense<0.000000e+00> : vector<9x256xf32>
    %376 = tpu.matmul %375, %318, %cst_324 {dimension_numbers = #tpu.dot_dimension_numbers<[1], [0], [0], [1], [0, 0, 1, 1], [], []>} : vector<9x16xbf16>, vector<16x256xbf16>, vector<9x256xf32> -> vector<9x256xf32>
    %377 = arith.truncf %376 : vector<9x256xf32> to vector<9x256xbf16>
    %c7_325 = arith.constant 7 : index
    %c0_326 = arith.constant 0 : index
    %c0_327 = arith.constant 0 : index
    %378 = vector.load %arg6[%c7_325, %c0_326, %c0_327] : memref<16x256x512xbf16, #tpu.memory_space<vmem>>, vector<1x256x512xbf16>
    %379 = vector.shape_cast %378 : vector<1x256x512xbf16> to vector<256x512xbf16>
    %cst_328 = arith.constant dense<0.000000e+00> : vector<9x512xf32>
    %380 = tpu.matmul %377, %379, %cst_328 {dimension_numbers = #tpu.dot_dimension_numbers<[1], [0], [0], [1], [0, 0, 1, 1], [], []>} : vector<9x256xbf16>, vector<256x512xbf16>, vector<9x512xf32> -> vector<9x512xf32>
    %381 = arith.addf %373, %380 : vector<9x512xf32>
    %c8_329 = arith.constant 8 : index
    %c0_330 = arith.constant 0 : index
    %c0_331 = arith.constant 0 : index
    %382 = vector.load %arg9[%c8_329, %c0_330, %c0_331] : memref<16x9x16xbf16, #tpu.memory_space<vmem>>, vector<1x9x16xbf16>
    %383 = vector.shape_cast %382 : vector<1x9x16xbf16> to vector<9x16xbf16>
    %cst_332 = arith.constant dense<0.000000e+00> : vector<9x256xf32>
    %384 = tpu.matmul %383, %318, %cst_332 {dimension_numbers = #tpu.dot_dimension_numbers<[1], [0], [0], [1], [0, 0, 1, 1], [], []>} : vector<9x16xbf16>, vector<16x256xbf16>, vector<9x256xf32> -> vector<9x256xf32>
    %385 = arith.truncf %384 : vector<9x256xf32> to vector<9x256xbf16>
    %c8_333 = arith.constant 8 : index
    %c0_334 = arith.constant 0 : index
    %c0_335 = arith.constant 0 : index
    %386 = vector.load %arg6[%c8_333, %c0_334, %c0_335] : memref<16x256x512xbf16, #tpu.memory_space<vmem>>, vector<1x256x512xbf16>
    %387 = vector.shape_cast %386 : vector<1x256x512xbf16> to vector<256x512xbf16>
    %cst_336 = arith.constant dense<0.000000e+00> : vector<9x512xf32>
    %388 = tpu.matmul %385, %387, %cst_336 {dimension_numbers = #tpu.dot_dimension_numbers<[1], [0], [0], [1], [0, 0, 1, 1], [], []>} : vector<9x256xbf16>, vector<256x512xbf16>, vector<9x512xf32> -> vector<9x512xf32>
    %389 = arith.addf %381, %388 : vector<9x512xf32>
    %c9_337 = arith.constant 9 : index
    %c0_338 = arith.constant 0 : index
    %c0_339 = arith.constant 0 : index
    %390 = vector.load %arg9[%c9_337, %c0_338, %c0_339] : memref<16x9x16xbf16, #tpu.memory_space<vmem>>, vector<1x9x16xbf16>
    %391 = vector.shape_cast %390 : vector<1x9x16xbf16> to vector<9x16xbf16>
    %cst_340 = arith.constant dense<0.000000e+00> : vector<9x256xf32>
    %392 = tpu.matmul %391, %318, %cst_340 {dimension_numbers = #tpu.dot_dimension_numbers<[1], [0], [0], [1], [0, 0, 1, 1], [], []>} : vector<9x16xbf16>, vector<16x256xbf16>, vector<9x256xf32> -> vector<9x256xf32>
    %393 = arith.truncf %392 : vector<9x256xf32> to vector<9x256xbf16>
    %c9_341 = arith.constant 9 : index
    %c0_342 = arith.constant 0 : index
    %c0_343 = arith.constant 0 : index
    %394 = vector.load %arg6[%c9_341, %c0_342, %c0_343] : memref<16x256x512xbf16, #tpu.memory_space<vmem>>, vector<1x256x512xbf16>
    %395 = vector.shape_cast %394 : vector<1x256x512xbf16> to vector<256x512xbf16>
    %cst_344 = arith.constant dense<0.000000e+00> : vector<9x512xf32>
    %396 = tpu.matmul %393, %395, %cst_344 {dimension_numbers = #tpu.dot_dimension_numbers<[1], [0], [0], [1], [0, 0, 1, 1], [], []>} : vector<9x256xbf16>, vector<256x512xbf16>, vector<9x512xf32> -> vector<9x512xf32>
    %397 = arith.addf %389, %396 : vector<9x512xf32>
    %c10_345 = arith.constant 10 : index
    %c0_346 = arith.constant 0 : index
    %c0_347 = arith.constant 0 : index
    %398 = vector.load %arg9[%c10_345, %c0_346, %c0_347] : memref<16x9x16xbf16, #tpu.memory_space<vmem>>, vector<1x9x16xbf16>
    %399 = vector.shape_cast %398 : vector<1x9x16xbf16> to vector<9x16xbf16>
    %cst_348 = arith.constant dense<0.000000e+00> : vector<9x256xf32>
    %400 = tpu.matmul %399, %318, %cst_348 {dimension_numbers = #tpu.dot_dimension_numbers<[1], [0], [0], [1], [0, 0, 1, 1], [], []>} : vector<9x16xbf16>, vector<16x256xbf16>, vector<9x256xf32> -> vector<9x256xf32>
    %401 = arith.truncf %400 : vector<9x256xf32> to vector<9x256xbf16>
    %c10_349 = arith.constant 10 : index
    %c0_350 = arith.constant 0 : index
    %c0_351 = arith.constant 0 : index
    %402 = vector.load %arg6[%c10_349, %c0_350, %c0_351] : memref<16x256x512xbf16, #tpu.memory_space<vmem>>, vector<1x256x512xbf16>
    %403 = vector.shape_cast %402 : vector<1x256x512xbf16> to vector<256x512xbf16>
    %cst_352 = arith.constant dense<0.000000e+00> : vector<9x512xf32>
    %404 = tpu.matmul %401, %403, %cst_352 {dimension_numbers = #tpu.dot_dimension_numbers<[1], [0], [0], [1], [0, 0, 1, 1], [], []>} : vector<9x256xbf16>, vector<256x512xbf16>, vector<9x512xf32> -> vector<9x512xf32>
    %405 = arith.addf %397, %404 : vector<9x512xf32>
    %c11_353 = arith.constant 11 : index
    %c0_354 = arith.constant 0 : index
    %c0_355 = arith.constant 0 : index
    %406 = vector.load %arg9[%c11_353, %c0_354, %c0_355] : memref<16x9x16xbf16, #tpu.memory_space<vmem>>, vector<1x9x16xbf16>
    %407 = vector.shape_cast %406 : vector<1x9x16xbf16> to vector<9x16xbf16>
    %cst_356 = arith.constant dense<0.000000e+00> : vector<9x256xf32>
    %408 = tpu.matmul %407, %318, %cst_356 {dimension_numbers = #tpu.dot_dimension_numbers<[1], [0], [0], [1], [0, 0, 1, 1], [], []>} : vector<9x16xbf16>, vector<16x256xbf16>, vector<9x256xf32> -> vector<9x256xf32>
    %409 = arith.truncf %408 : vector<9x256xf32> to vector<9x256xbf16>
    %c11_357 = arith.constant 11 : index
    %c0_358 = arith.constant 0 : index
    %c0_359 = arith.constant 0 : index
    %410 = vector.load %arg6[%c11_357, %c0_358, %c0_359] : memref<16x256x512xbf16, #tpu.memory_space<vmem>>, vector<1x256x512xbf16>
    %411 = vector.shape_cast %410 : vector<1x256x512xbf16> to vector<256x512xbf16>
    %cst_360 = arith.constant dense<0.000000e+00> : vector<9x512xf32>
    %412 = tpu.matmul %409, %411, %cst_360 {dimension_numbers = #tpu.dot_dimension_numbers<[1], [0], [0], [1], [0, 0, 1, 1], [], []>} : vector<9x256xbf16>, vector<256x512xbf16>, vector<9x512xf32> -> vector<9x512xf32>
    %413 = arith.addf %405, %412 : vector<9x512xf32>
    %c12_361 = arith.constant 12 : index
    %c0_362 = arith.constant 0 : index
    %c0_363 = arith.constant 0 : index
    %414 = vector.load %arg9[%c12_361, %c0_362, %c0_363] : memref<16x9x16xbf16, #tpu.memory_space<vmem>>, vector<1x9x16xbf16>
    %415 = vector.shape_cast %414 : vector<1x9x16xbf16> to vector<9x16xbf16>
    %cst_364 = arith.constant dense<0.000000e+00> : vector<9x256xf32>
    %416 = tpu.matmul %415, %318, %cst_364 {dimension_numbers = #tpu.dot_dimension_numbers<[1], [0], [0], [1], [0, 0, 1, 1], [], []>} : vector<9x16xbf16>, vector<16x256xbf16>, vector<9x256xf32> -> vector<9x256xf32>
    %417 = arith.truncf %416 : vector<9x256xf32> to vector<9x256xbf16>
    %c12_365 = arith.constant 12 : index
    %c0_366 = arith.constant 0 : index
    %c0_367 = arith.constant 0 : index
    %418 = vector.load %arg6[%c12_365, %c0_366, %c0_367] : memref<16x256x512xbf16, #tpu.memory_space<vmem>>, vector<1x256x512xbf16>
    %419 = vector.shape_cast %418 : vector<1x256x512xbf16> to vector<256x512xbf16>
    %cst_368 = arith.constant dense<0.000000e+00> : vector<9x512xf32>
    %420 = tpu.matmul %417, %419, %cst_368 {dimension_numbers = #tpu.dot_dimension_numbers<[1], [0], [0], [1], [0, 0, 1, 1], [], []>} : vector<9x256xbf16>, vector<256x512xbf16>, vector<9x512xf32> -> vector<9x512xf32>
    %421 = arith.addf %413, %420 : vector<9x512xf32>
    %c13_369 = arith.constant 13 : index
    %c0_370 = arith.constant 0 : index
    %c0_371 = arith.constant 0 : index
    %422 = vector.load %arg9[%c13_369, %c0_370, %c0_371] : memref<16x9x16xbf16, #tpu.memory_space<vmem>>, vector<1x9x16xbf16>
    %423 = vector.shape_cast %422 : vector<1x9x16xbf16> to vector<9x16xbf16>
    %cst_372 = arith.constant dense<0.000000e+00> : vector<9x256xf32>
    %424 = tpu.matmul %423, %318, %cst_372 {dimension_numbers = #tpu.dot_dimension_numbers<[1], [0], [0], [1], [0, 0, 1, 1], [], []>} : vector<9x16xbf16>, vector<16x256xbf16>, vector<9x256xf32> -> vector<9x256xf32>
    %425 = arith.truncf %424 : vector<9x256xf32> to vector<9x256xbf16>
    %c13_373 = arith.constant 13 : index
    %c0_374 = arith.constant 0 : index
    %c0_375 = arith.constant 0 : index
    %426 = vector.load %arg6[%c13_373, %c0_374, %c0_375] : memref<16x256x512xbf16, #tpu.memory_space<vmem>>, vector<1x256x512xbf16>
    %427 = vector.shape_cast %426 : vector<1x256x512xbf16> to vector<256x512xbf16>
    %cst_376 = arith.constant dense<0.000000e+00> : vector<9x512xf32>
    %428 = tpu.matmul %425, %427, %cst_376 {dimension_numbers = #tpu.dot_dimension_numbers<[1], [0], [0], [1], [0, 0, 1, 1], [], []>} : vector<9x256xbf16>, vector<256x512xbf16>, vector<9x512xf32> -> vector<9x512xf32>
    %429 = arith.addf %421, %428 : vector<9x512xf32>
    %c14_377 = arith.constant 14 : index
    %c0_378 = arith.constant 0 : index
    %c0_379 = arith.constant 0 : index
    %430 = vector.load %arg9[%c14_377, %c0_378, %c0_379] : memref<16x9x16xbf16, #tpu.memory_space<vmem>>, vector<1x9x16xbf16>
    %431 = vector.shape_cast %430 : vector<1x9x16xbf16> to vector<9x16xbf16>
    %cst_380 = arith.constant dense<0.000000e+00> : vector<9x256xf32>
    %432 = tpu.matmul %431, %318, %cst_380 {dimension_numbers = #tpu.dot_dimension_numbers<[1], [0], [0], [1], [0, 0, 1, 1], [], []>} : vector<9x16xbf16>, vector<16x256xbf16>, vector<9x256xf32> -> vector<9x256xf32>
    %433 = arith.truncf %432 : vector<9x256xf32> to vector<9x256xbf16>
    %c14_381 = arith.constant 14 : index
    %c0_382 = arith.constant 0 : index
    %c0_383 = arith.constant 0 : index
    %434 = vector.load %arg6[%c14_381, %c0_382, %c0_383] : memref<16x256x512xbf16, #tpu.memory_space<vmem>>, vector<1x256x512xbf16>
    %435 = vector.shape_cast %434 : vector<1x256x512xbf16> to vector<256x512xbf16>
    %cst_384 = arith.constant dense<0.000000e+00> : vector<9x512xf32>
    %436 = tpu.matmul %433, %435, %cst_384 {dimension_numbers = #tpu.dot_dimension_numbers<[1], [0], [0], [1], [0, 0, 1, 1], [], []>} : vector<9x256xbf16>, vector<256x512xbf16>, vector<9x512xf32> -> vector<9x512xf32>
    %437 = arith.addf %429, %436 : vector<9x512xf32>
    %c15_385 = arith.constant 15 : index
    %c0_386 = arith.constant 0 : index
    %c0_387 = arith.constant 0 : index
    %438 = vector.load %arg9[%c15_385, %c0_386, %c0_387] : memref<16x9x16xbf16, #tpu.memory_space<vmem>>, vector<1x9x16xbf16>
    %439 = vector.shape_cast %438 : vector<1x9x16xbf16> to vector<9x16xbf16>
    %cst_388 = arith.constant dense<0.000000e+00> : vector<9x256xf32>
    %440 = tpu.matmul %439, %318, %cst_388 {dimension_numbers = #tpu.dot_dimension_numbers<[1], [0], [0], [1], [0, 0, 1, 1], [], []>} : vector<9x16xbf16>, vector<16x256xbf16>, vector<9x256xf32> -> vector<9x256xf32>
    %441 = arith.truncf %440 : vector<9x256xf32> to vector<9x256xbf16>
    %c15_389 = arith.constant 15 : index
    %c0_390 = arith.constant 0 : index
    %c0_391 = arith.constant 0 : index
    %442 = vector.load %arg6[%c15_389, %c0_390, %c0_391] : memref<16x256x512xbf16, #tpu.memory_space<vmem>>, vector<1x256x512xbf16>
    %443 = vector.shape_cast %442 : vector<1x256x512xbf16> to vector<256x512xbf16>
    %cst_392 = arith.constant dense<0.000000e+00> : vector<9x512xf32>
    %444 = tpu.matmul %441, %443, %cst_392 {dimension_numbers = #tpu.dot_dimension_numbers<[1], [0], [0], [1], [0, 0, 1, 1], [], []>} : vector<9x256xbf16>, vector<256x512xbf16>, vector<9x512xf32> -> vector<9x512xf32>
    %445 = arith.addf %437, %444 : vector<9x512xf32>
    %cst_393 = arith.constant dense<0.000000e+00> : vector<512xf32>
    %446 = vector.multi_reduction <add>, %445, %cst_393 [0] : vector<9x512xf32> to vector<512xf32>
    %447 = vector.shape_cast %446 : vector<512xf32> to vector<1x512xf32>
    %cst_394 = arith.constant 9.000000e+00 : f32
    %448 = vector.broadcast %cst_394 : f32 to vector<1x512xf32>
    %449 = arith.divf %447, %448 : vector<1x512xf32>
    %450 = arith.mulf %445, %445 : vector<9x512xf32>
    %cst_395 = arith.constant dense<0.000000e+00> : vector<512xf32>
    %451 = vector.multi_reduction <add>, %450, %cst_395 [0] : vector<9x512xf32> to vector<512xf32>
    %452 = vector.shape_cast %451 : vector<512xf32> to vector<1x512xf32>
    %cst_396 = arith.constant 9.000000e+00 : f32
    %453 = vector.broadcast %cst_396 : f32 to vector<1x512xf32>
    %454 = arith.divf %452, %453 : vector<1x512xf32>
    %455 = arith.mulf %449, %449 : vector<1x512xf32>
    %456 = arith.subf %454, %455 : vector<1x512xf32>
    %cst_397 = arith.constant 0.000000e+00 : f32
    %457 = vector.broadcast %cst_397 : f32 to vector<1x512xf32>
    %458 = arith.maximumf %456, %457 : vector<1x512xf32>
    %459 = vector.broadcast %449 : vector<1x512xf32> to vector<9x512xf32>
    %460 = arith.subf %445, %459 : vector<9x512xf32>
    %cst_398 = arith.constant 9.99999974E-6 : f32
    %461 = vector.broadcast %cst_398 : f32 to vector<1x512xf32>
    %462 = arith.addf %458, %461 : vector<1x512xf32>
    %463 = math.rsqrt %462 : vector<1x512xf32>
    %464 = vector.broadcast %463 : vector<1x512xf32> to vector<9x512xf32>
    %465 = arith.mulf %460, %464 : vector<9x512xf32>
    %cst_399 = arith.constant 0.000000e+00 : f32
    %466 = vector.broadcast %cst_399 : f32 to vector<9x512xf32>
    %467 = arith.cmpf oge, %465, %466 : vector<9x512xf32>
    %cst_400 = arith.constant 2.000000e-01 : f32
    %468 = vector.broadcast %cst_400 : f32 to vector<9x512xf32>
    %469 = arith.mulf %468, %465 : vector<9x512xf32>
    %470 = arith.select %467, %465, %469 : vector<9x512xi1>, vector<9x512xf32>
    %c0_401 = arith.constant 0 : index
    %c0_402 = arith.constant 0 : index
    %471 = vector.load %arg10[%c0_401, %c0_402] : memref<9x512xf32, #tpu.memory_space<vmem>>, vector<9x512xf32>
    %472 = arith.mulf %470, %471 : vector<9x512xf32>
    %cst_403 = arith.constant dense<0.000000e+00> : vector<9xf32>
    %473 = vector.multi_reduction <add>, %472, %cst_403 [1] : vector<9x512xf32> to vector<9xf32>
    %474 = vector.shape_cast %473 : vector<9xf32> to vector<9x1xf32>
    %cst_404 = arith.constant dense<0.000000e+00> : vector<1xf32>
    %475 = vector.multi_reduction <add>, %474, %cst_404 [0] : vector<9x1xf32> to vector<1xf32>
    %476 = vector.shape_cast %475 : vector<1xf32> to vector<1x1xf32>
    %c0_405 = arith.constant 0 : index
    %c0_406 = arith.constant 0 : index
    %477 = vector.load %arg11[%c0_405, %c0_406] : memref<1x1xf32, #tpu.memory_space<vmem>>, vector<1x1xf32>
    %478 = arith.addf %476, %477 : vector<1x1xf32>
    %c0_407 = arith.constant 0 : index
    %c0_408 = arith.constant 0 : index
    %c0_409 = arith.constant 0 : index
    %479 = vector.load %arg12[%c0_407, %c0_408, %c0_409] : memref<1x1x1xf32, #tpu.memory_space<vmem>>, vector<1x1x1xf32>
    %480 = vector.shape_cast %479 : vector<1x1x1xf32> to vector<1x1xf32>
    %481 = vector.shape_cast %478 : vector<1x1xf32> to vector<1x1x1xf32>
    tpu.vector_store %arg12[%c0_407, %c0_408, %c0_409], %481 {strides = array<i32>} : memref<1x1x1xf32, #tpu.memory_space<vmem>>, vector<1x1x1xf32>,
    return
  }
  func.func @transform_0(%arg0: i32) -> (i32, i32, i32) {
    %c0_i32 = arith.constant 0 : i32
    %c0_i32_0 = arith.constant 0 : i32
    %c0_i32_1 = arith.constant 0 : i32
    return %arg0, %c0_i32, %c0_i32_0 : i32, i32, i32
  }
  func.func @transform_1(%arg0: i32) -> (i32, i32) {
    %c0_i32 = arith.constant 0 : i32
    %c0_i32_0 = arith.constant 0 : i32
    %c0_i32_1 = arith.constant 0 : i32
    return %c0_i32, %c0_i32_0 : i32, i32
  }
  func.func @transform_2(%arg0: i32) -> (i32, i32) {
    %c0_i32 = arith.constant 0 : i32
    %c0_i32_0 = arith.constant 0 : i32
    %c0_i32_1 = arith.constant 0 : i32
    return %c0_i32, %c0_i32_0 : i32, i32
  }
  func.func @transform_3(%arg0: i32) -> (i32, i32, i32) {
    %c0_i32 = arith.constant 0 : i32
    %c0_i32_0 = arith.constant 0 : i32
    %c0_i32_1 = arith.constant 0 : i32
    %c0_i32_2 = arith.constant 0 : i32
    return %c0_i32, %c0_i32_0, %c0_i32_1 : i32, i32, i32
  }
  func.func @transform_4(%arg0: i32) -> (i32, i32, i32) {
    %c0_i32 = arith.constant 0 : i32
    %c0_i32_0 = arith.constant 0 : i32
    %c0_i32_1 = arith.constant 0 : i32
    %c0_i32_2 = arith.constant 0 : i32
    return %c0_i32, %c0_i32_0, %c0_i32_1 : i32, i32, i32
  }
  func.func @transform_5(%arg0: i32) -> (i32, i32, i32) {
    %c0_i32 = arith.constant 0 : i32
    %c0_i32_0 = arith.constant 0 : i32
    %c0_i32_1 = arith.constant 0 : i32
    %c0_i32_2 = arith.constant 0 : i32
    return %c0_i32, %c0_i32_0, %c0_i32_1 : i32, i32, i32
  }
  func.func @transform_6(%arg0: i32) -> (i32, i32, i32) {
    %c0_i32 = arith.constant 0 : i32
    %c0_i32_0 = arith.constant 0 : i32
    %c0_i32_1 = arith.constant 0 : i32
    %c0_i32_2 = arith.constant 0 : i32
    return %c0_i32, %c0_i32_0, %c0_i32_1 : i32, i32, i32
  }
  func.func @transform_7(%arg0: i32) -> (i32, i32, i32) {
    %c0_i32 = arith.constant 0 : i32
    %c0_i32_0 = arith.constant 0 : i32
    %c0_i32_1 = arith.constant 0 : i32
    %c0_i32_2 = arith.constant 0 : i32
    return %c0_i32, %c0_i32_0, %c0_i32_1 : i32, i32, i32
  }
  func.func @transform_8(%arg0: i32) -> (i32, i32, i32) {
    %c0_i32 = arith.constant 0 : i32
    %c0_i32_0 = arith.constant 0 : i32
    %c0_i32_1 = arith.constant 0 : i32
    %c0_i32_2 = arith.constant 0 : i32
    return %c0_i32, %c0_i32_0, %c0_i32_1 : i32, i32, i32
  }
  func.func @transform_9(%arg0: i32) -> (i32, i32) {
    %c0_i32 = arith.constant 0 : i32
    %c0_i32_0 = arith.constant 0 : i32
    %c0_i32_1 = arith.constant 0 : i32
    return %c0_i32, %c0_i32_0 : i32, i32
  }
  func.func @transform_10(%arg0: i32) -> (i32, i32) {
    %c0_i32 = arith.constant 0 : i32
    %c0_i32_0 = arith.constant 0 : i32
    %c0_i32_1 = arith.constant 0 : i32
    return %c0_i32, %c0_i32_0 : i32, i32
  }
  func.func @transform_11(%arg0: i32) -> (i32, i32, i32) {
    %c0_i32 = arith.constant 0 : i32
    %c0_i32_0 = arith.constant 0 : i32
    %c0_i32_1 = arith.constant 0 : i32
    return %arg0, %c0_i32, %c0_i32_0 : i32, i32, i32
  }
}

</mosaic_0001>

<bundles_post_ra>
// kernel: _lambda_.1
= control target key start
LH: loop header
LB: loop body
LE: loop exit
PB: predicated region body
PF: predicated region fallthrough
CT: control target
= control target key end

     0   :  { %s23522_s19 = smov 0   ;;  %s29592_s0 = inlined_call_operand.vmem [shape: bf16[2,256,128], index: 0, kind: input, shape index: {}]   ;;  %s29593_s1 = inlined_call_operand.vmem [shape: bf16[128,64], index: 1, kind: input, shape index: {}]   ;;  %s29594_s2 = inlined_call_operand.vmem [shape: f32[1,64], index: 2, kind: input, shape index: {}]   ;;  %s29595_s3 = inlined_call_operand.vmem [shape: bf16[16,64,128], index: 3, kind: input, shape index: {}]   ;;  %s29596_s4 = inlined_call_operand.vmem [shape: bf16[16,128,256], index: 4, kind: input, shape index: {}]   ;;  %s29597_s5 = inlined_call_operand.vmem [shape: bf16[16,256,512], index: 5, kind: input, shape index: {}]   ;;  %s29598_s6 = inlined_call_operand.vmem [shape: bf16[16,64,256], index: 6, kind: input, shape index: {}]   ;;  %s29599_s7 = inlined_call_operand.vmem [shape: bf16[16,16,64], index: 7, kind: input, shape index: {}]   ;;  %s29600_s8 = inlined_call_operand.vmem [shape: bf16[16,9,16], index: 8, kind: input, shape index: {}]   ;;  %s29601_s9 = inlined_call_operand.vmem [shape: f32[9,512], index: 9, kind: input, shape index: {}]   ;;  %s29602_s10 = inlined_call_operand.<no memory space> [shape: f32[1,1], index: 10, kind: input, shape index: {}]   ;;  %s29603_s11 = inlined_call_operand.vmem [shape: f32[2,1,1], index: 11, kind: output, shape index: {}]  }
   0x1   :  { %v16_v0 = vstv %s29602_s10 }
   0x2   :  { %17 = vst [vmem:[#allocation2] sm:$0x1] %v16_v0 }
   0x3 LB: > { %s16688_s20 = sadd.s32 4294967295, %s23454_s19   ;;  %p16692_p0 = scmp.ge.s32.totalorder %s23454_s19, 1  ;;  %s23454_s19 = sphi %s23522_s19, %s23_s19  }
   0x4   : > { %p339_p1 = scmp.lt.s32.totalorder %s23454_s19, 3 }
   0x6   : > { %p340_p2 = pnand %p16692_p0, %p339_p1 }
   0x8   : > { %343 = sbr.rel (%p340_p2) target bundleno = 8605 (0x219d), region = 64 }
   0xd   : > { %v21202_v1 = vld [vmem:[%s29593_s1 + $0x38] sm:$0xff]   ;;  %p377_p3 = scmp.lt.s32.totalorder %s16688_s20, 1  ;;  %v21203_v2 = vld [vmem:[%s29593_s1 + $0x30] sm:$0xff]   ;;  %v21204_v3 = vld [vmem:[%s29593_s1 + $0x28] sm:$0xff]  }
   0xe   : > { %20695 = vmatprep.subr.bf16.mxu0 %v21202_v1  ;;  %v21205_v4 = vld [vmem:[%s29593_s1 + $0x20] sm:$0xff]   ;;  %v21206_v6 = vld [vmem:[%s29593_s1 + $0x18] sm:$0xff]   ;;  %v21207_v7 = vld [vmem:[%s29593_s1 + $0x10] sm:$0xff]  }
   0xf   : > { %s29609_s20 = smov (!%p377_p3, %s16688_s20), 1  ;;  %20696 = vmatpush3.bf16.msra.mxu0 %v21202_v1  ;;  %v21208_v8 = vld [vmem:[%s29593_s1 + $0x8] sm:$0xff]   ;;  %v21209_v9 = vld [vmem:[%s29593_s1] sm:$0xff]   ;;  %v21226_v25 = vld [vmem:[%s29595_s3 + $0x38] sm:$0xff]  }
  0x10   : > { %20697 = vmatprep.subr.bf16.mxu0 %v21203_v2  ;;  %s19822_s26 = sshll.u32 %s29609_s20, 7  ;;  %v21227_v26 = vld [vmem:[%s29595_s3 + $0x30] sm:$0xff]   ;;  %v21228_v27 = vld [vmem:[%s29595_s3 + $0x28] sm:$0xff]   ;;  %v21229_v28 = vld [vmem:[%s29595_s3 + $0x20] sm:$0xff]  }
  0x11   : > { %s23545_s29 = scalar_lea.vmem %s29592_s0, %s19822_s26  ;;  %v21232_v29 = vld [vmem:[%s29598_s6 + $0x4] ss:$8 sps:$4 sm:$0xff]   ;;  %v23596_v30 = vld [vmem:[%s29594_s2] ss:$0 sm:$0xff]  ;;  %s384_s26 = scalar_lea.vmem %s29603_s11, %s29609_s20 }
  0x12   : > { %v21210_v5 = vld [vmem:[%s23545_s29] sm:$0xff]   ;;  %v21211_v10 = vld [vmem:[%s23545_s29 + $0x8] sm:$0xff]   ;;  %v21212_v11 = vld [vmem:[%s23545_s29 + $0x10] sm:$0xff]   ;;  %938 = vmatprep.mubr.bf16.mxu1 %v21232_v29 }
  0x13   : > { %20698 = vmatpush3.bf16.msra.mxu0 %v21203_v2  ;;  %20711 = vmatprep.mubr.bf16.mxu0 %v21210_v5  ;;  %v21213_v12 = vld [vmem:[%s23545_s29 + $0x18] sm:$0xff]   ;;  %v21214_v13 = vld [vmem:[%s23545_s29 + $0x20] sm:$0xff]   ;;  %v21215_v14 = vld [vmem:[%s23545_s29 + $0x28] sm:$0xff]  }
  0x14   : > { %20699 = vmatprep.subr.bf16.mxu0 %v21204_v3  ;;  %v21216_v15 = vld [vmem:[%s23545_s29 + $0x30] sm:$0xff]   ;;  %v21217_v16 = vld [vmem:[%s23545_s29 + $0x38] sm:$0xff]   ;;  %v21218_v17 = vld [vmem:[%s23545_s29 + $0x40] sm:$0xff]  }
  0x15   : > { %v21219_v18 = vld [vmem:[%s23545_s29 + $0x48] sm:$0xff]   ;;  %v21220_v19 = vld [vmem:[%s23545_s29 + $0x50] sm:$0xff]   ;;  %v21221_v20 = vld [vmem:[%s23545_s29 + $0x58] sm:$0xff]  }
  0x16   : > { %v21222_v21 = vld [vmem:[%s23545_s29 + $0x60] sm:$0xff]   ;;  %v21223_v22 = vld [vmem:[%s23545_s29 + $0x68] sm:$0xff]   ;;  %v21224_v23 = vld [vmem:[%s23545_s29 + $0x70] sm:$0xff]  }
  0x17   : > { %20700 = vmatpush3.bf16.msra.mxu0 %v21204_v3  ;;  %v21225_v24 = vld [vmem:[%s23545_s29 + $0x78] sm:$0xff]  }
  0x18   : > { %20701 = vmatprep.subr.bf16.mxu0 %v21205_v4 }
  0x1b   : > { %20702 = vmatpush3.bf16.msra.mxu0 %v21205_v4 }
  0x1c   : > { %20703 = vmatprep.subr.bf16.mxu0 %v21206_v6 }
  0x1f   : > { %20704 = vmatpush3.bf16.msra.mxu0 %v21206_v6 }
  0x20   : > { %20705 = vmatprep.subr.bf16.mxu0 %v21207_v7 }
  0x23   : > { %20706 = vmatpush3.bf16.msra.mxu0 %v21207_v7 }
  0x24   : > { %20707 = vmatprep.subr.bf16.mxu0 %v21208_v8 }
  0x27   : > { %20708 = vmatpush3.bf16.msra.mxu0 %v21208_v8 }
  0x28   : > { %20709 = vmatprep.subr.bf16.mxu0 %v21209_v9 }
  0x2b   : > { %20710 = vmatpush3.bf16.msra.mxu0 %v21209_v9 }
  0x2c   : > { %20743 = vmatprep.subr.bf16.mxu0 %v21226_v25 }
  0x2e   : > { %20712 = vmatmul.mubr.bf16.vlgmr.msra.gmra.mxu0 %v21211_v10 }
  0x2f   : > { %20715 = vmatprep.mubr.bf16.mxu0 %v21212_v11  ;;  %20744 = vmatpush3.bf16.msra.mxu0 %v21226_v25 }
  0x30   : > { %20745 = vmatprep.subr.bf16.mxu0 %v21227_v26 }
  0x33   : > { %20746 = vmatpush3.bf16.msra.mxu0 %v21227_v26 }
  0x34   : > { %20747 = vmatprep.subr.bf16.mxu0 %v21228_v27 }
  0x36   : > { %20716 = vmatmul.mubr.bf16.gmra.mxu0 %v21213_v12 }
  0x37   : > { %20719 = vmatprep.mubr.bf16.mxu0 %v21214_v13  ;;  %20748 = vmatpush3.bf16.msra.mxu0 %v21228_v27 }
  0x38   : > { %20749 = vmatprep.subr.bf16.mxu0 %v21229_v28 }
  0x3b   : > { %20750 = vmatpush3.bf16.msra.mxu0 %v21229_v28 }
  0x3e   : > { %20720 = vmatmul.mubr.bf16.gmra.mxu0 %v21215_v14 }
  0x3f   : > { %20723 = vmatprep.mubr.bf16.mxu0 %v21216_v15 }
  0x46   : > { %20724 = vmatmul.mubr.bf16.gmra.mxu0 %v21217_v16 }
  0x47   : > { %20727 = vmatprep.mubr.bf16.mxu0 %v21218_v17 }
  0x4e   : > { %20728 = vmatmul.mubr.bf16.gmra.mxu0 %v21219_v18 }
  0x4f   : > { %20731 = vmatprep.mubr.bf16.mxu0 %v21220_v19 }
  0x56   : > { %20732 = vmatmul.mubr.bf16.gmra.mxu0 %v21221_v20 }
  0x57   : > { %20735 = vmatprep.mubr.bf16.mxu0 %v21222_v21 }
  0x5e   : > { %20736 = vmatmul.mubr.bf16.gmra.mxu0 %v21223_v22 }
  0x5f   : > { %20739 = vmatprep.mubr.bf16.mxu0 %v21224_v23 }
  0x66   : > { %20740 = vmatmul.mubr.bf16.gmra.mxu0 %v21225_v24 }
  0xee   : > { %v20713_v31 = vpop.f32.mrf.mxu0 }
  0xef   : > { %v628_v32 = vadd.f32 %v20713_v31, %v23596_v30 }
  0xf0   : > { %v23599_v33 = vpop.f32.mrf.mxu0 }
  0xf1   : > { %v780_v35 = vmul.f32 0.2, %v628_v32  ;;  %vm748_vm0 = vcmp.ge.f32.partialorder %v628_v32, 0.0 }
  0xf2   : > { %v20714_v34 = vpop.f32.mrf.mxu0 }
  0xf3   : > { %v631_v36 = vadd.f32 %v20714_v34, %v23596_v30  ;;  %v812_v40 = vsel %vm748_vm0, %v628_v32, %v780_v35 }
  0xf4   : > { %v23602_v37 = vpop.f32.mrf.mxu0 }
  0xf5   : > { %vm749_vm1 = vcmp.ge.f32.partialorder %v631_v36, 0.0  ;;  %v781_v38 = vmul.f32 0.2, %v631_v36 }
  0xf6   : > { %v20717_v39 = vpop.f32.mrf.mxu0 }
  0xf7   : > { %v813_v41 = vsel %vm749_vm1, %v631_v36, %v781_v38  ;;  %v644_v42 = vadd.f32 %v20717_v39, %v23596_v30 }
  0xf8   : > { %v23605_v43 = vpack.c.bf16 %v813_v41, %v812_v40  ;;  %v23607_v44 = vpop.f32.mrf.mxu0 }
  0xf9   : > { %v784_v46 = vmul.f32 0.2, %v644_v42  ;;  %vm752_vm2 = vcmp.ge.f32.partialorder %v644_v42, 0.0 }
  0xfa   : > { %v20718_v45 = vpop.f32.mrf.mxu0 }
  0xfb   : > { %v647_v47 = vadd.f32 %v20718_v45, %v23596_v30  ;;  %v816_v51 = vsel %vm752_vm2, %v644_v42, %v784_v46 }
  0xfc   : > { %v23610_v48 = vpop.f32.mrf.mxu0 }
  0xfd   : > { %vm753_vm3 = vcmp.ge.f32.partialorder %v647_v47, 0.0  ;;  %v785_v49 = vmul.f32 0.2, %v647_v47 }
  0xfe   : > { %v20721_v50 = vpop.f32.mrf.mxu0 }
  0xff   : > { %v817_v52 = vsel %vm753_vm3, %v647_v47, %v785_v49  ;;  %v23631_v7 = vadd.f32 %v20721_v50, %v23596_v30 }
 0x100   : > { %v23612_v53 = vpack.c.bf16 %v817_v52, %v816_v51  ;;  %v651_v54 = vpop.f32.mrf.mxu0 }
 0x101   : > { %v23639_v13 = vmul.f32 0.2, %v23631_v7  ;;  %v23649_v28 = vadd.f32 %v23596_v30, %v651_v54  ;;  %vm756_vm15 = vcmp.ge.f32.partialorder %v23631_v7, 0.0 }
 0x102   : > { %v20722_v55 = vpop.f32.mrf.mxu0 }
 0x103   : > { %v23634_v9 = vadd.f32 %v20722_v55, %v23596_v30  ;;  %vm754_vm0 = vcmp.ge.f32.partialorder %v23649_v28, 0.0 }
 0x104   : > { %v23614_v56 = vpop.f32.mrf.mxu0 }
 0x105   : > { %v789_v17 = vmul.f32 0.2, %v23634_v9  ;;  %v655_v55 = vadd.f32 %v23596_v30, %v23614_v56  ;;  %vm757_vm14 = vcmp.ge.f32.partialorder %v23634_v9, 0.0 }
 0x106   : > { %v20725_v57 = vpop.f32.mrf.mxu0 }
 0x107   : > { %v676_v10 = vadd.f32 %v20725_v57, %v23596_v30  ;;  %vm755_vm3 = vcmp.ge.f32.partialorder %v655_v55, 0.0 }
 0x108   : > { %v667_v58 = vpop.f32.mrf.mxu0 }
 0x109   : > { %v668_v14 = vadd.f32 %v23596_v30, %v667_v58  ;;  %vm760_vm4 = vcmp.ge.f32.partialorder %v676_v10, 0.0  ;;  %v792_v21 = vmul.f32 0.2, %v676_v10 }
 0x10a   : > { %v20726_v59 = vpop.f32.mrf.mxu0 }
 0x10b   : > { %v679_v11 = vadd.f32 %v20726_v59, %v23596_v30  ;;  %vm758_vm6 = vcmp.ge.f32.partialorder %v668_v14, 0.0  ;;  %v824_v38 = vsel %vm760_vm4, %v676_v10, %v792_v21  ;;  %v790_v46 = vmul.f32 0.2, %v668_v14 }
 0x10c   : > { %v670_v60 = vpop.f32.mrf.mxu0  ;;  %v639_v21 = vadd.f32 %v23596_v30, %v23610_v48 }
 0x10d   : > { %v671_v15 = vadd.f32 %v23596_v30, %v670_v60  ;;  %v793_v19 = vmul.f32 0.2, %v679_v11  ;;  %vm761_vm5 = vcmp.ge.f32.partialorder %v679_v11, 0.0  ;;  %v822_v56 = vsel %vm758_vm6, %v668_v14, %v790_v46 }
 0x10e   : > { %v23616_v61 = vpop.f32.mrf.mxu0 }
 0x10f   : > { %v791_v23 = vmul.f32 0.2, %v671_v15  ;;  %vm759_vm7 = vcmp.ge.f32.partialorder %v671_v15, 0.0  ;;  %v825_v29 = vsel %vm761_vm5, %v679_v11, %v793_v19  ;;  %v821_v11 = vsel %vm757_vm14, %v23634_v9, %v789_v17 }
 0x110   : > { %v23618_v62 = vpop.f32.mrf.mxu0  ;;  %v23655_v47 = vpack.c.bf16 %v825_v29, %v824_v38  ;;  %v786_v19 = vmul.f32 0.2, %v23649_v28  ;;  %v783_v29 = vmul.f32 0.2, %v639_v21  ;;  %v623_v38 = vadd.f32 %v23596_v30, %v23602_v37 }
 0x111   : > { %v823_v57 = vsel %vm759_vm7, %v671_v15, %v791_v23 }
 0x112   : > { %v23620_v63 = vpop.f32.mrf.mxu0  ;;  %v779_v37 = vmul.f32 0.2, %v623_v38  ;;  %vm747_vm14 = vcmp.ge.f32.partialorder %v623_v38, 0.0 }
 0x114   : > { %v23622_v0 = vpop.f32.mrf.mxu0 }
 0x116   : > { %v23624_v1 = vpop.f32.mrf.mxu0 }
 0x118   : > { %v23626_v2 = vpop.f32.mrf.mxu0 }
 0x11a   : > { %v20734_v3 = vpop.f32.mrf.mxu0 }
 0x11b   : > { %v711_v59 = vadd.f32 %v20734_v3, %v23596_v30 }
 0x11c   : > { %v23628_v4 = vpop.f32.mrf.mxu0 }
 0x11d   : > { %v703_v14 = vadd.f32 %v23596_v30, %v23628_v4  ;;  %vm769_vm4 = vcmp.ge.f32.partialorder %v711_v59, 0.0 }
 0x11e   : > { %v20737_v5 = vpop.f32.mrf.mxu0 }
 0x11f   : > { %v724_v34 = vadd.f32 %v20737_v5, %v23596_v30  ;;  %vm767_vm6 = vcmp.ge.f32.partialorder %v703_v14, 0.0 }
 0x120   : > { %v715_v6 = vpop.f32.mrf.mxu0 }
 0x121   : > { %v804_v50 = vmul.f32 0.2, %v724_v34  ;;  %v716_v51 = vadd.f32 %v23596_v30, %v715_v6  ;;  %vm772_vm13 = vcmp.ge.f32.partialorder %v724_v34, 0.0  ;;  %v23674_v6 = vpack.c.bf16 %v823_v57, %v822_v56  ;;  %v21235_v56 = vld [vmem:[%s29598_s6 + $0x10] ss:$8 sps:$4 sm:$0xff]  }
 0x122   : > { %v20738_v8 = vpop.f32.mrf.mxu0 }
 0x123   : > { %v727_v24 = vadd.f32 %v20738_v8, %v23596_v30  ;;  %v708_v8 = vadd.f32 %v23624_v1, %v23596_v30  ;;  %v836_v3 = vsel %vm772_vm13, %v724_v34, %v804_v50  ;;  %v802_v10 = vmul.f32 0.2, %v716_v51 }
 0x124   : > { %v718_v12 = vpop.f32.mrf.mxu0  ;;  %vm770_vm2 = vcmp.ge.f32.partialorder %v716_v51, 0.0  ;;  %v820_v1 = vsel %vm756_vm15, %v23631_v7, %v23639_v13  ;;  %v695_v7 = vadd.f32 %v23620_v63, %v23596_v30 }
 0x125   : > { %v805_v39 = vmul.f32 0.2, %v727_v24  ;;  %v719_v40 = vadd.f32 %v23596_v30, %v718_v12  ;;  %vm773_vm12 = vcmp.ge.f32.partialorder %v727_v24, 0.0  ;;  %v787_v12 = vmul.f32 0.2, %v655_v55 }
 0x126   : > { %v20741_v16 = vpop.f32.mrf.mxu0  ;;  %v23691_v9 = vpack.c.bf16 %v821_v11, %v820_v1  ;;  %v800_v17 = vmul.f32 0.2, %v708_v8  ;;  %v834_v4 = vsel %vm770_vm2, %v716_v51, %v802_v10  ;;  %vm768_vm5 = vcmp.ge.f32.partialorder %v708_v8, 0.0  ;;  %v21239_v10 = vld [vmem:[%s29598_s6 + $0x34] ss:$8 sps:$4 sm:$0xff]  }
 0x127   : > { %v740_v18 = vadd.f32 %v20741_v16, %v23596_v30  ;;  %v837_v60 = vsel %vm773_vm12, %v727_v24, %v805_v39  ;;  %v803_v5 = vmul.f32 0.2, %v719_v40  ;;  %vm771_vm1 = vcmp.ge.f32.partialorder %v719_v40, 0.0  ;;  %v21241_v11 = vld [vmem:[%s29598_s6 + $0x30] ss:$8 sps:$4 sm:$0xff]  }
 0x128   : > { %v731_v20 = vpop.f32.mrf.mxu0  ;;  %v23680_v15 = vpack.c.bf16 %v837_v60, %v836_v3  ;;  %v801_v16 = vmul.f32 0.2, %v711_v59  ;;  %v799_v24 = vmul.f32 0.2, %v703_v14  ;;  %v832_v63 = vsel %vm768_vm5, %v708_v8, %v800_v17  ;;  %v21236_v8 = vld [vmem:[%s29598_s6 + $0x24] ss:$8 sps:$4 sm:$0xff]  }
 0x129   : > { %v732_v22 = vadd.f32 %v23596_v30, %v731_v20  ;;  %v808_v26 = vmul.f32 0.2, %v740_v18  ;;  %vm776_vm8 = vcmp.ge.f32.partialorder %v740_v18, 0.0  ;;  %v700_v20 = vadd.f32 %v23596_v30, %v23626_v2  ;;  %v21238_v3 = vld [vmem:[%s29598_s6 + $0x20] ss:$8 sps:$4 sm:$0xff]  }
 0x12a   : > { %v20742_v25 = vpop.f32.mrf.mxu0  ;;  %v833_v13 = vsel %vm769_vm4, %v711_v59, %v801_v16  ;;  %v818_v2 = vsel %vm754_vm0, %v23649_v28, %v786_v19  ;;  %v831_v28 = vsel %vm767_vm6, %v703_v14, %v799_v24  ;;  %v21230_v59 = vld [vmem:[%s29598_s6] ss:$8 sps:$4 sm:$0xff]   ;;  %v21245_v14 = vld [vmem:[%s29598_s6 + $0x54] ss:$8 sps:$4 sm:$0xff]   ;;  %v21248_v1 = vld [vmem:[%s29598_s6 + $0x64] ss:$8 sps:$4 sm:$0xff]  }
 0x12b   : > { %v743_v27 = vadd.f32 %v20742_v25, %v23596_v30  ;;  %v806_v31 = vmul.f32 0.2, %v732_v22  ;;  %vm774_vm10 = vcmp.ge.f32.partialorder %v732_v22, 0.0  ;;  %v840_v41 = vsel %vm776_vm8, %v740_v18, %v808_v26  ;;  %v21242_v16 = vld [vmem:[%s29598_s6 + $0x40] ss:$8 sps:$4 sm:$0xff]  }
 0x12c   : > { %v734_v32 = vpop.f32.mrf.mxu0  ;;  %v835_v18 = vsel %vm771_vm1, %v719_v40, %v803_v5  ;;  %v636_v25 = vadd.f32 %v23596_v30, %v23607_v44  ;;  %v692_v26 = vadd.f32 %v23616_v61, %v23596_v30  ;;  %vm766_vm7 = vcmp.ge.f32.partialorder %v700_v20, 0.0  ;;  %v21233_v5 = vld [vmem:[%s29598_s6 + $0x14] ss:$8 sps:$4 sm:$0xff]   ;;  %v21250_v19 = vld [vmem:[%s29598_s6 + $0x60] ss:$8 sps:$4 sm:$0xff]  }
 0x12d   : > { %vm777_vm9 = vcmp.ge.f32.partialorder %v743_v27, 0.0  ;;  %v809_v35 = vmul.f32 0.2, %v743_v27  ;;  %v735_v36 = vadd.f32 %v23596_v30, %v734_v32  ;;  %v838_v52 = vsel %vm774_vm10, %v732_v22, %v806_v31  ;;  %v21251_v17 = vld [vmem:[%s29598_s6 + $0x74] ss:$8 sps:$4 sm:$0xff]  }
 0x12e   : > { %v819_v22 = vsel %vm755_vm3, %v655_v55, %v787_v12  ;;  %v23697_v23 = vpack.c.bf16 %v835_v18, %v834_v4  ;;  %v23712_v31 = vpack.c.bf16 %v833_v13, %v832_v63  ;;  %vm751_vm8 = vcmp.ge.f32.partialorder %v639_v21, 0.0  ;;  %v21244_v12 = vld [vmem:[%s29598_s6 + $0x44] ss:$8 sps:$4 sm:$0xff]   ;;  %v21247_v18 = vld [vmem:[%s29598_s6 + $0x50] ss:$8 sps:$4 sm:$0xff]  }
 0x12f   : > { %v841_v42 = vsel %vm777_vm9, %v743_v27, %v809_v35  ;;  %vm775_vm11 = vcmp.ge.f32.partialorder %v735_v36, 0.0  ;;  %v807_v45 = vmul.f32 0.2, %v735_v36  ;;  %v23708_v48 = vpack.c.bf16 %v819_v22, %v818_v2  ;;  %v21254_v4 = vld [vmem:[%s29595_s3 + $0x18] sm:$0xff]   ;;  %v21256_v22 = vld [vmem:[%s29595_s3 + $0x8] sm:$0xff]  }
 0x130   : > { %v23657_v49 = vpack.c.bf16 %v841_v42, %v840_v41  ;;  %v798_v27 = vmul.f32 0.2, %v700_v20  ;;  %v797_v44 = vmul.f32 0.2, %v695_v7  ;;  %v687_v32 = vadd.f32 %v23596_v30, %v23622_v0  ;;  %v21258_v13 = vld [vmem:[%s29595_s3 + $0x58] sm:$0xff]  }
 0x131   : > { %v839_v54 = vsel %vm775_vm11, %v735_v36, %v807_v45  ;;  %v782_v34 = vmul.f32 0.2, %v636_v25  ;;  %vm765_vm9 = vcmp.ge.f32.partialorder %v695_v7, 0.0  ;;  %vm750_vm10 = vcmp.ge.f32.partialorder %v636_v25, 0.0 }
 0x132   : > { %v23663_v58 = vpack.c.bf16 %v839_v54, %v838_v52  ;;  %19847 = vmatprep.subr.bf16.mxu1 %v23657_v49  ;;  %19943 = vmatprep.subr.bf16.mxu0 %v23657_v49  ;;  %v796_v61 = vmul.f32 0.2, %v692_v26  ;;  %v684_v35 = vadd.f32 %v23596_v30, %v23618_v62  ;;  %v830_v36 = vsel %vm766_vm7, %v700_v20, %v798_v27  ;;  %v21253_v20 = vld [vmem:[%s29598_s6 + $0x70] ss:$8 sps:$4 sm:$0xff]  }
 0x133   : > { %19848 = vmatpush3.bf16.msra.mxu1 %v23655_v47  ;;  %v815_v39 = vsel %vm751_vm8, %v639_v21, %v783_v29  ;;  %vm764_vm11 = vcmp.ge.f32.partialorder %v692_v26, 0.0  ;;  %v23722_v40 = vpack.c.bf16 %v831_v28, %v830_v36  ;;  %v829_v0 = vsel %vm765_vm9, %v695_v7, %v797_v44  ;;  %v21255_v21 = vld [vmem:[%s29595_s3 + $0x10] sm:$0xff]   ;;  %v21257_v7 = vld [vmem:[%s29595_s3] sm:$0xff]  }
 0x134   : > { %19849 = vmatprep.subr.bf16.mxu1 %v23663_v58  ;;  %v795_v41 = vmul.f32 0.2, %v687_v32  ;;  %v620_v42 = vadd.f32 %v23596_v30, %v23599_v33  ;;  %v814_v45 = vsel %vm750_vm10, %v636_v25, %v782_v34  ;;  %vm763_vm12 = vcmp.ge.f32.partialorder %v687_v32, 0.0  ;;  %v21259_v36 = vld [vmem:[%s29595_s3 + $0x50] sm:$0xff]  }
 0x135   : > { %v23728_v62 = vpack.c.bf16 %v815_v39, %v814_v45  ;;  %v828_v46 = vsel %vm764_vm11, %v692_v26, %v796_v61  ;;  %v794_v50 = vmul.f32 0.2, %v684_v35  ;;  %vm762_vm13 = vcmp.ge.f32.partialorder %v684_v35, 0.0 }
 0x136   : > { %v23730_v51 = vpack.c.bf16 %v829_v0, %v828_v46  ;;  %v827_v52 = vsel %vm763_vm12, %v687_v32, %v795_v41  ;;  %v778_v54 = vmul.f32 0.2, %v620_v42  ;;  %vm746_vm15 = vcmp.ge.f32.partialorder %v620_v42, 0.0  ;;  %v21260_v41 = vld [vmem:[%s29595_s3 + $0x48] sm:$0xff]  }
 0x137   : > { %19850 = vmatpush3.bf16.msra.mxu1 %v23674_v6  ;;  %v826_v30 = vsel %vm762_vm13, %v684_v35, %v794_v50  ;;  %v811_v33 = vsel %vm747_vm14, %v623_v38, %v779_v37  ;;  %vm1134_vm0 = vcmask 523264   ;;  %v21261_v37 = vld [vmem:[%s29595_s3 + $0x40] sm:$0xff]   ;;  %vm23457_vm1 = vmmov 0  }
 0x138   : > { %19851 = vmatprep.subr.bf16.mxu1 %v23680_v15  ;;  %v23734_v55 = vpack.c.bf16 %v827_v52, %v826_v30  ;;  %v810_v57 = vsel %vm746_vm15, %v620_v42, %v778_v54  ;;  %vm7921_vm14 = vcmask 130048   ;;  %vm16457_vm15 = vcmask 1040384  }
 0x139   : > { %v23741_v60 = vpack.c.bf16 %v811_v33, %v810_v57 }
 0x13b   : > { %19852 = vmatpush3.bf16.msra.mxu1 %v23691_v9 }
 0x13c   : > { %19853 = vmatprep.subr.bf16.mxu1 %v23697_v23 }
 0x13f   : > { %19854 = vmatpush3.bf16.msra.mxu1 %v23708_v48 }
 0x140   : > { %19855 = vmatprep.subr.bf16.mxu1 %v23712_v31 }
 0x143   : > { %19856 = vmatpush3.bf16.msra.mxu1 %v23612_v53 }
 0x144   : > { %19857 = vmatprep.subr.bf16.mxu1 %v23722_v40 }
 0x147   : > { %19858 = vmatpush3.bf16.msra.mxu1 %v23728_v62 }
 0x148   : > { %19859 = vmatprep.subr.bf16.mxu1 %v23730_v51 }
 0x14b   : > { %19860 = vmatpush3.bf16.msra.mxu1 %v23605_v43 }
 0x14c   : > { %19861 = vmatprep.subr.bf16.mxu1 %v23734_v55 }
 0x14f   : > { %19862 = vmatpush3.bf16.msra.mxu1 %v23741_v60 }
 0x150   : > { %19887 = vmatprep.subr.bf16.mxu1 %v23657_v49 }
 0x152   : > { %939 = vmatmul.mubr.bf16.vlgmr.msra.gmra.mxu1 %v21230_v59 }
 0x153   : > { %19888 = vmatpush3.bf16.msra.mxu1 %v23655_v47  ;;  %946 = vmatprep.mubr.bf16.mxu1 %v21233_v5 }
 0x154   : > { %19889 = vmatprep.subr.bf16.mxu1 %v23663_v58 }
 0x157   : > { %19890 = vmatpush3.bf16.msra.mxu1 %v23674_v6 }
 0x158   : > { %19891 = vmatprep.subr.bf16.mxu1 %v23680_v15 }
 0x15a   : > { %947 = vmatmul.mubr.bf16.gmra.mxu1 %v21235_v56 }
 0x15b   : > { %19892 = vmatpush3.bf16.msra.mxu1 %v23691_v9  ;;  %954 = vmatprep.mubr.bf16.mxu1 %v21236_v8 }
 0x15c   : > { %19893 = vmatprep.subr.bf16.mxu1 %v23697_v23 }
 0x15f   : > { %19894 = vmatpush3.bf16.msra.mxu1 %v23708_v48 }
 0x160   : > { %19895 = vmatprep.subr.bf16.mxu1 %v23712_v31 }
 0x162   : > { %955 = vmatmul.mubr.bf16.gmra.mxu1 %v21238_v3 }
 0x163   : > { %19896 = vmatpush3.bf16.msra.mxu1 %v23612_v53  ;;  %962 = vmatprep.mubr.bf16.mxu1 %v21239_v10 }
 0x164   : > { %19897 = vmatprep.subr.bf16.mxu1 %v23722_v40 }
 0x167   : > { %19898 = vmatpush3.bf16.msra.mxu1 %v23728_v62 }
 0x168   : > { %19899 = vmatprep.subr.bf16.mxu1 %v23730_v51 }
 0x16a   : > { %963 = vmatmul.mubr.bf16.gmra.mxu1 %v21241_v11 }
 0x16b   : > { %19900 = vmatpush3.bf16.msra.mxu1 %v23605_v43  ;;  %1064 = vmatprep.mubr.bf16.mxu1 %v21244_v12 }
 0x16c   : > { %19901 = vmatprep.subr.bf16.mxu1 %v23734_v55 }
 0x16f   : > { %19902 = vmatpush3.bf16.msra.mxu1 %v23741_v60 }
 0x170   : > { %20759 = vmatprep.subr.bf16.mxu1 %v21254_v4 }
 0x172   : > { %1065 = vmatmul.mubr.bf16.vlgmr.msra.gmra.mxu1 %v21242_v16 }
 0x173   : > { %1072 = vmatprep.mubr.bf16.mxu1 %v21245_v14  ;;  %20760 = vmatpush3.bf16.msra.mxu1 %v21254_v4 }
 0x174   : > { %20761 = vmatprep.subr.bf16.mxu1 %v21255_v21 }
 0x177   : > { %20762 = vmatpush3.bf16.msra.mxu1 %v21255_v21 }
 0x178   : > { %20763 = vmatprep.subr.bf16.mxu1 %v21256_v22 }
 0x17a   : > { %1073 = vmatmul.mubr.bf16.gmra.mxu1 %v21247_v18 }
 0x17b   : > { %1080 = vmatprep.mubr.bf16.mxu1 %v21248_v1  ;;  %20764 = vmatpush3.bf16.msra.mxu1 %v21256_v22 }
 0x17c   : > { %20765 = vmatprep.subr.bf16.mxu1 %v21257_v7 }
 0x17f   : > { %20766 = vmatpush3.bf16.msra.mxu1 %v21257_v7 }
 0x180   : > { %20775 = vmatprep.subr.bf16.mxu1 %v21258_v13 }
 0x182   : > { %1081 = vmatmul.mubr.bf16.gmra.mxu1 %v21250_v19 }
 0x183   : > { %1088 = vmatprep.mubr.bf16.mxu1 %v21251_v17 }
 0x18a   : > { %1089 = vmatmul.mubr.bf16.gmra.mxu1 %v21253_v20 }
 0x212   : > { %v19863_v24 = vpop.f32.mrf.mxu1 }
 0x214   : > { %v19864_v25 = vpop.f32.mrf.mxu1 }
 0x215   : > { %v19865_v63 = vadd.f32 %v19864_v25, %v19863_v24 }
 0x216   : > { %v19866_v2 = vpop.f32.mrf.mxu1 }
 0x218   : > { %v19867_v26 = vpop.f32.mrf.mxu1 }
 0x219   : > { %v19868_v27 = vadd.f32 %v19867_v26, %v19866_v2 }
 0x21a   : > { %v19869_v29 = vpop.f32.mrf.mxu1 }
 0x21b   : > { %v971_v44 = vpack.c.bf16 %v19868_v27, %v19865_v63 }
 0x21c   : > { %v19870_v32 = vpop.f32.mrf.mxu1 }
 0x21d   : > { %20767 = vmatprep.mubr.msk.bf16.mxu1 %vm1134_vm0, %v971_v44  ;;  %v19871_v61 = vadd.f32 %v19870_v32, %v19869_v29 }
 0x21e   : > { %v19872_v28 = vpop.f32.mrf.mxu1 }
 0x220   : > { %v19873_v34 = vpop.f32.mrf.mxu1 }
 0x221   : > { %v19874_v35 = vadd.f32 %v19873_v34, %v19872_v28  ;;  %v21264_v34 = vld [vmem:[%s29598_s6 + $0x84] ss:$8 sps:$4 sm:$0xff]  }
 0x222   : > { %v19875_v38 = vpop.f32.mrf.mxu1 }
 0x223   : > { %v972_v39 = vpack.c.bf16 %v19874_v35, %v19871_v61  ;;  %v21262_v35 = vld [vmem:[%s29598_s6 + $0x80] ss:$8 sps:$4 sm:$0xff]  }
 0x224   : > { %v19876_v0 = vpop.f32.mrf.mxu1 }
 0x225   : > { %20768 = vmatmul.mubr.msk.bf16.vlgmr.msra.gmra.mxu1 %vm1134_vm0, %v972_v39  ;;  %v19877_v46 = vadd.f32 %v19876_v0, %v19875_v38  ;;  %v21267_v38 = vld [vmem:[%s29598_s6 + $0x90] ss:$8 sps:$4 sm:$0xff]   ;;  %v21268_v39 = vld [vmem:[%s29598_s6 + $0xa4] ss:$8 sps:$4 sm:$0xff]   ;;  %v21270_v0 = vld [vmem:[%s29598_s6 + $0xa0] ss:$8 sps:$4 sm:$0xff]  }
 0x226   : > { %20776 = vmatpush3.bf16.msra.mxu1 %v21258_v13  ;;  %v19878_v42 = vpop.f32.mrf.mxu1 }
 0x227   : > { %20777 = vmatprep.subr.bf16.mxu1 %v21259_v36 }
 0x228   : > { %v19879_v45 = vpop.f32.mrf.mxu1 }
 0x229   : > { %v19880_v50 = vadd.f32 %v19879_v45, %v19878_v42  ;;  %v21273_v42 = vld [vmem:[%s29598_s6 + $0xb0] ss:$8 sps:$4 sm:$0xff]  }
 0x22a   : > { %20778 = vmatpush3.bf16.msra.mxu1 %v21259_v36  ;;  %v19881_v52 = vpop.f32.mrf.mxu1  ;;  %v21265_v36 = vld [vmem:[%s29598_s6 + $0x94] ss:$8 sps:$4 sm:$0xff]  }
 0x22b   : > { %v973_v54 = vpack.c.bf16 %v19880_v50, %v19877_v46  ;;  %20779 = vmatprep.subr.bf16.mxu1 %v21260_v41 }
 0x22c   : > { %v19882_v30 = vpop.f32.mrf.mxu1 }
 0x22d   : > { %20771 = vmatprep.mubr.msk.bf16.mxu1 %vm1134_vm0, %v973_v54  ;;  %v19883_v59 = vadd.f32 %v19882_v30, %v19881_v52 }
 0x22e   : > { %20780 = vmatpush3.bf16.msra.mxu1 %v21260_v41  ;;  %v19884_v33 = vpop.f32.mrf.mxu1  ;;  %v21271_v41 = vld [vmem:[%s29598_s6 + $0xb4] ss:$8 sps:$4 sm:$0xff]  }
 0x22f   : > { %20781 = vmatprep.subr.bf16.mxu1 %v21261_v37 }
 0x230   : > { %v19885_v57 = vpop.f32.mrf.mxu1 }
 0x231   : > { %v19886_v5 = vadd.f32 %v19885_v57, %v19884_v33 }
 0x232   : > { %20782 = vmatpush3.bf16.msra.mxu1 %v21261_v37  ;;  %v19903_v56 = vpop.f32.mrf.mxu1 }
 0x233   : > { %v974_v8 = vpack.c.bf16 %v19886_v5, %v19883_v59  ;;  %19991 = vmatprep.subr.bf16.mxu1 %v23657_v49 }
 0x234   : > { %v19904_v3 = vpop.f32.mrf.mxu1 }
 0x235   : > { %20772 = vmatmul.mubr.msk.bf16.gmra.mxu1 %vm1134_vm0, %v974_v8  ;;  %v19905_v12 = vadd.f32 %v19904_v3, %v19903_v56 }
 0x236   : > { %v19906_v10 = vpop.f32.mrf.mxu1 }
 0x238   : > { %v19907_v11 = vpop.f32.mrf.mxu1 }
 0x239   : > { %v19908_v16 = vadd.f32 %v19907_v11, %v19906_v10 }
 0x23a   : > { %v19909_v14 = vpop.f32.mrf.mxu1 }
 0x23b   : > { %v1097_v18 = vpack.c.bf16 %v19908_v16, %v19905_v12 }
 0x23c   : > { %v19910_v1 = vpop.f32.mrf.mxu1 }
 0x23d   : > { %20751 = vmatprep.mubr.msk.bf16.mxu0 %vm1134_vm0, %v1097_v18  ;;  %v19911_v20 = vadd.f32 %v19910_v1, %v19909_v14 }
 0x23e   : > { %v19912_v19 = vpop.f32.mrf.mxu1 }
 0x240   : > { %v19913_v17 = vpop.f32.mrf.mxu1 }
 0x241   : > { %v19914_v4 = vadd.f32 %v19913_v17, %v19912_v19 }
 0x242   : > { %v19915_v21 = vpop.f32.mrf.mxu1 }
 0x243   : > { %v1098_v22 = vpack.c.bf16 %v19914_v4, %v19911_v20 }
 0x244   : > { %v19916_v7 = vpop.f32.mrf.mxu1 }
 0x245   : > { %20752 = vmatmul.mubr.msk.bf16.vlgmr.msra.gmra.mxu0 %vm1134_vm0, %v1098_v22  ;;  %v19917_v24 = vadd.f32 %v19916_v7, %v19915_v21 }
 0x246   : > { %19944 = vmatpush3.bf16.msra.mxu0 %v23655_v47  ;;  %v19918_v13 = vpop.f32.mrf.mxu1 }
 0x247   : > { %19945 = vmatprep.subr.bf16.mxu0 %v23663_v58 }
 0x248   : > { %v19919_v25 = vpop.f32.mrf.mxu1 }
 0x249   : > { %v19920_v2 = vadd.f32 %v19919_v25, %v19918_v13 }
 0x24a   : > { %19946 = vmatpush3.bf16.msra.mxu0 %v23674_v6  ;;  %v19921_v26 = vpop.f32.mrf.mxu1 }
 0x24b   : > { %v1099_v63 = vpack.c.bf16 %v19920_v2, %v19917_v24  ;;  %19947 = vmatprep.subr.bf16.mxu0 %v23680_v15 }
 0x24c   : > { %v19922_v27 = vpop.f32.mrf.mxu1 }
 0x24d   : > { %20755 = vmatprep.mubr.msk.bf16.mxu0 %vm1134_vm0, %v1099_v63  ;;  %v19923_v44 = vadd.f32 %v19922_v27, %v19921_v26 }
 0x24e   : > { %19948 = vmatpush3.bf16.msra.mxu0 %v23691_v9  ;;  %v19924_v29 = vpop.f32.mrf.mxu1 }
 0x24f   : > { %19949 = vmatprep.subr.bf16.mxu0 %v23697_v23 }
 0x250   : > { %v19925_v32 = vpop.f32.mrf.mxu1 }
 0x251   : > { %v19926_v28 = vadd.f32 %v19925_v32, %v19924_v29 }
 0x252   : > { %19950 = vmatpush3.bf16.msra.mxu0 %v23708_v48 }
 0x253   : > { %v1100_v61 = vpack.c.bf16 %v19926_v28, %v19923_v44  ;;  %19951 = vmatprep.subr.bf16.mxu0 %v23712_v31 }
 0x255   : > { %20756 = vmatmul.mubr.msk.bf16.gmra.mxu0 %vm1134_vm0, %v1100_v61 }
 0x256   : > { %19952 = vmatpush3.bf16.msra.mxu0 %v23612_v53  ;;  %1394 = vmatprep.mubr.bf16.mxu0 %v21264_v34 }
 0x257   : > { %19953 = vmatprep.subr.bf16.mxu0 %v23722_v40 }
 0x25a   : > { %19954 = vmatpush3.bf16.msra.mxu0 %v23728_v62 }
 0x25b   : > { %19955 = vmatprep.subr.bf16.mxu0 %v23730_v51 }
 0x25e   : > { %19956 = vmatpush3.bf16.msra.mxu0 %v23605_v43 }
 0x25f   : > { %19957 = vmatprep.subr.bf16.mxu0 %v23734_v55 }
 0x262   : > { %19958 = vmatpush3.bf16.msra.mxu0 %v23741_v60 }
 0x265   : > { %1395 = vmatmul.mubr.bf16.vlgmr.msra.gmra.mxu0 %v21262_v35 }
 0x266   : > { %1402 = vmatprep.mubr.bf16.mxu0 %v21265_v36 }
 0x26d   : > { %1403 = vmatmul.mubr.bf16.gmra.mxu0 %v21267_v38 }
 0x26e   : > { %1410 = vmatprep.mubr.bf16.mxu0 %v21268_v39 }
 0x275   : > { %1411 = vmatmul.mubr.bf16.gmra.mxu0 %v21270_v0 }
 0x276   : > { %1418 = vmatprep.mubr.bf16.mxu0 %v21271_v41 }
 0x27d   : > { %1419 = vmatmul.mubr.bf16.gmra.mxu0 %v21273_v42 }
 0x2e5   : > { %v20769_v45 = vpop.f32.mrf.mxu1 }
 0x2e7   : > { %v1282_v46 = vpop.f32.mrf.mxu1 }
 0x2e9   : > { %v20770_v30 = vpop.f32.mrf.mxu1 }
 0x2eb   : > { %v23880_v59 = vpop.f32.mrf.mxu1 }
 0x2f5   : > { %v20773_v5 = vpop.f32.mrf.mxu1 }
 0x2f7   : > { %v1298_v8 = vpop.f32.mrf.mxu1 }
 0x2f9   : > { %v20774_v16 = vpop.f32.mrf.mxu1 }
 0x305   : > { %v20753_v50 = vpop.f32.mrf.mxu0 }
 0x306   : > { %v23874_v37 = vadd.f32 %v20769_v45, %v20753_v50  ;;  %v21276_v45 = vld [vmem:[%s29598_s6 + $0xc4] ss:$8 sps:$4 sm:$0xff]   ;;  %v21274_v50 = vld [vmem:[%s29598_s6 + $0xc0] ss:$8 sps:$4 sm:$0xff]  }
 0x307   : > { %v1181_v52 = vpop.f32.mrf.mxu0 }
 0x308   : > { %v23876_v54 = vadd.f32 %v1282_v46, %v1181_v52  ;;  %v21277_v52 = vld [vmem:[%s29598_s6 + $0xd4] ss:$8 sps:$4 sm:$0xff]  }
 0x309   : > { %v20754_v33 = vpop.f32.mrf.mxu0 }
 0x30a   : > { %v23878_v57 = vadd.f32 %v20770_v30, %v20754_v33  ;;  %v21279_v30 = vld [vmem:[%s29598_s6 + $0xd0] ss:$8 sps:$4 sm:$0xff]   ;;  %v21280_v33 = vld [vmem:[%s29598_s6 + $0xe4] ss:$8 sps:$4 sm:$0xff]  }
 0x30b   : > { %v23882_v56 = vpop.f32.mrf.mxu0 }
 0x315   : > { %v20757_v3 = vpop.f32.mrf.mxu0 }
 0x316   : > { %v23884_v10 = vadd.f32 %v20773_v5, %v20757_v3  ;;  %v21282_v5 = vld [vmem:[%s29598_s6 + $0xe0] ss:$8 sps:$4 sm:$0xff]   ;;  %v21285_v3 = vld [vmem:[%s29598_s6 + $0xf0] ss:$8 sps:$4 sm:$0xff]  }
 0x317   : > { %v1197_v11 = vpop.f32.mrf.mxu0 }
 0x318   : > { %v23886_v12 = vadd.f32 %v1298_v8, %v1197_v11  ;;  %v21283_v8 = vld [vmem:[%s29598_s6 + $0xf4] ss:$8 sps:$4 sm:$0xff]   ;;  %v21288_v11 = vld [vmem:[%s29598_s6 + $0x104] ss:$8 sps:$4 sm:$0xff]  }
 0x319   : > { %v20758_v14 = vpop.f32.mrf.mxu0 }
 0x31a   : > { %v23888_v18 = vadd.f32 %v20774_v16, %v20758_v14  ;;  %v21286_v16 = vld [vmem:[%s29598_s6 + $0x100] ss:$8 sps:$4 sm:$0xff]   ;;  %v21289_v14 = vld [vmem:[%s29598_s6 + $0x114] ss:$8 sps:$4 sm:$0xff]  }
 0x31b   : > { %v23890_v1 = vpop.f32.mrf.mxu0 }
 0x325   : > { %v19959_v19 = vpop.f32.mrf.mxu0 }
 0x327   : > { %v19960_v17 = vpop.f32.mrf.mxu0 }
 0x328   : > { %v19961_v21 = vadd.f32 %v19960_v17, %v19959_v19  ;;  %v21291_v19 = vld [vmem:[%s29598_s6 + $0x110] ss:$8 sps:$4 sm:$0xff]   ;;  %v21292_v17 = vld [vmem:[%s29598_s6 + $0x124] ss:$8 sps:$4 sm:$0xff]  }
 0x329   : > { %v19962_v20 = vpop.f32.mrf.mxu0 }
 0x32b   : > { %v19963_v4 = vpop.f32.mrf.mxu0 }
 0x32c   : > { %v19964_v22 = vadd.f32 %v19963_v4, %v19962_v20  ;;  %v21294_v20 = vld [vmem:[%s29598_s6 + $0x120] ss:$8 sps:$4 sm:$0xff]   ;;  %v21295_v4 = vld [vmem:[%s29598_s6 + $0x134] ss:$8 sps:$4 sm:$0xff]  }
 0x32d   : > { %v19965_v7 = vpop.f32.mrf.mxu0 }
 0x32e   : > { %v1427_v13 = vpack.c.bf16 %v19964_v22, %v19961_v21  ;;  %v21297_v21 = vld [vmem:[%s29598_s6 + $0x130] ss:$8 sps:$4 sm:$0xff]  }
 0x32f   : > { %v19966_v24 = vpop.f32.mrf.mxu0  ;;  %v21298_v22 = vld [vmem:[%s29595_s3 + $0x78] sm:$0xff]  }
 0x330   : > { %20783 = vmatprep.mubr.msk.bf16.mxu1 %vm1134_vm0, %v1427_v13  ;;  %v19967_v26 = vadd.f32 %v19966_v24, %v19965_v7  ;;  %20791 = vmatprep.subr.bf16.mxu0 %v21298_v22  ;;  %v21299_v7 = vld [vmem:[%s29595_s3 + $0x70] sm:$0xff]   ;;  %v21300_v13 = vld [vmem:[%s29595_s3 + $0x68] sm:$0xff]   ;;  %v21301_v24 = vld [vmem:[%s29595_s3 + $0x60] sm:$0xff]  }
 0x331   : > { %v19968_v25 = vpop.f32.mrf.mxu0  ;;  %20792 = vmatpush3.bf16.msra.mxu0 %v21298_v22 }
 0x332   : > { %20793 = vmatprep.subr.bf16.mxu0 %v21299_v7 }
 0x333   : > { %v19969_v2 = vpop.f32.mrf.mxu0 }
 0x334   : > { %v19970_v63 = vadd.f32 %v19969_v2, %v19968_v25  ;;  %v21302_v25 = vld [vmem:[%s29595_s3 + $0x98] sm:$0xff]   ;;  %v23990_v2 = vpop.f32.mrf.mxu1 }
 0x335   : > { %v19971_v27 = vpop.f32.mrf.mxu0  ;;  %20794 = vmatpush3.bf16.msra.mxu0 %v21299_v7 }
 0x336   : > { %v1428_v29 = vpack.c.bf16 %v19970_v63, %v19967_v26  ;;  %20795 = vmatprep.subr.bf16.mxu0 %v21300_v13 }
 0x337   : > { %v19972_v44 = vpop.f32.mrf.mxu0 }
 0x338   : > { %20784 = vmatmul.mubr.msk.bf16.vlgmr.msra.gmra.mxu1 %vm1134_vm0, %v1428_v29  ;;  %v19973_v28 = vadd.f32 %v19972_v44, %v19971_v27 }
 0x339   : > { %19992 = vmatpush3.bf16.msra.mxu1 %v23655_v47  ;;  %v19974_v32 = vpop.f32.mrf.mxu0  ;;  %20796 = vmatpush3.bf16.msra.mxu0 %v21300_v13 }
 0x33a   : > { %19993 = vmatprep.subr.bf16.mxu1 %v23663_v58  ;;  %20797 = vmatprep.subr.bf16.mxu0 %v21301_v24 }
 0x33b   : > { %v19975_v34 = vpop.f32.mrf.mxu0 }
 0x33c   : > { %v19976_v61 = vadd.f32 %v19975_v34, %v19974_v32 }
 0x33d   : > { %19994 = vmatpush3.bf16.msra.mxu1 %v23674_v6  ;;  %v19977_v35 = vpop.f32.mrf.mxu0  ;;  %20798 = vmatpush3.bf16.msra.mxu0 %v21301_v24 }
 0x33e   : > { %v1429_v36 = vpack.c.bf16 %v19976_v61, %v19973_v28  ;;  %19995 = vmatprep.subr.bf16.mxu1 %v23680_v15  ;;  %20807 = vmatprep.subr.bf16.mxu0 %v21302_v25 }
 0x33f   : > { %v19978_v38 = vpop.f32.mrf.mxu0 }
 0x340   : > { %20787 = vmatprep.mubr.msk.bf16.mxu1 %vm1134_vm0, %v1429_v36  ;;  %v19979_v0 = vadd.f32 %v19978_v38, %v19977_v35 }
 0x341   : > { %19996 = vmatpush3.bf16.msra.mxu1 %v23691_v9  ;;  %v19980_v39 = vpop.f32.mrf.mxu0 }
 0x342   : > { %19997 = vmatprep.subr.bf16.mxu1 %v23697_v23 }
 0x343   : > { %v19981_v41 = vpop.f32.mrf.mxu0 }
 0x344   : > { %v19982_v42 = vadd.f32 %v19981_v41, %v19980_v39 }
 0x345   : > { %19998 = vmatpush3.bf16.msra.mxu1 %v23708_v48 }
 0x346   : > { %v1430_v46 = vpack.c.bf16 %v19982_v42, %v19979_v0  ;;  %19999 = vmatprep.subr.bf16.mxu1 %v23712_v31 }
 0x348   : > { %20788 = vmatmul.mubr.msk.bf16.gmra.mxu1 %vm1134_vm0, %v1430_v46 }
 0x349   : > { %20000 = vmatpush3.bf16.msra.mxu1 %v23612_v53  ;;  %1630 = vmatprep.mubr.bf16.mxu1 %v21276_v45 }
 0x34a   : > { %20001 = vmatprep.subr.bf16.mxu1 %v23722_v40 }
 0x34d   : > { %20002 = vmatpush3.bf16.msra.mxu1 %v23728_v62 }
 0x34e   : > { %20003 = vmatprep.subr.bf16.mxu1 %v23730_v51 }
 0x351   : > { %20004 = vmatpush3.bf16.msra.mxu1 %v23605_v43 }
 0x352   : > { %20005 = vmatprep.subr.bf16.mxu1 %v23734_v55 }
 0x355   : > { %20006 = vmatpush3.bf16.msra.mxu1 %v23741_v60 }
 0x356   : > { %20039 = vmatprep.subr.bf16.mxu1 %v23657_v49 }
 0x358   : > { %1631 = vmatmul.mubr.bf16.vlgmr.msra.gmra.mxu1 %v21274_v50 }
 0x359   : > { %20040 = vmatpush3.bf16.msra.mxu1 %v23655_v47  ;;  %1638 = vmatprep.mubr.bf16.mxu1 %v21277_v52 }
 0x35a   : > { %20041 = vmatprep.subr.bf16.mxu1 %v23663_v58 }
 0x35d   : > { %20042 = vmatpush3.bf16.msra.mxu1 %v23674_v6 }
 0x35e   : > { %20043 = vmatprep.subr.bf16.mxu1 %v23680_v15 }
 0x360   : > { %1639 = vmatmul.mubr.bf16.gmra.mxu1 %v21279_v30 }
 0x361   : > { %20044 = vmatpush3.bf16.msra.mxu1 %v23691_v9  ;;  %1646 = vmatprep.mubr.bf16.mxu1 %v21280_v33 }
 0x362   : > { %20045 = vmatprep.subr.bf16.mxu1 %v23697_v23 }
 0x365   : > { %20046 = vmatpush3.bf16.msra.mxu1 %v23708_v48 }
 0x366   : > { %20047 = vmatprep.subr.bf16.mxu1 %v23712_v31 }
 0x368   : > { %1647 = vmatmul.mubr.bf16.gmra.mxu1 %v21282_v5 }
 0x369   : > { %20048 = vmatpush3.bf16.msra.mxu1 %v23612_v53  ;;  %1654 = vmatprep.mubr.bf16.mxu1 %v21283_v8  ;;  %v21303_v8 = vld [vmem:[%s29595_s3 + $0x90] sm:$0xff]  }
 0x36a   : > { %20049 = vmatprep.subr.bf16.mxu1 %v23722_v40 }
 0x36d   : > { %20050 = vmatpush3.bf16.msra.mxu1 %v23728_v62 }
 0x36e   : > { %20051 = vmatprep.subr.bf16.mxu1 %v23730_v51 }
 0x370   : > { %1655 = vmatmul.mubr.bf16.gmra.mxu1 %v21285_v3 }
 0x371   : > { %20052 = vmatpush3.bf16.msra.mxu1 %v23605_v43  ;;  %1866 = vmatprep.mubr.bf16.mxu1 %v21288_v11 }
 0x372   : > { %20053 = vmatprep.subr.bf16.mxu1 %v23734_v55 }
 0x375   : > { %20054 = vmatpush3.bf16.msra.mxu1 %v23741_v60 }
 0x378   : > { %1867 = vmatmul.mubr.bf16.vlgmr.msra.gmra.mxu1 %v21286_v16  ;;  %v21304_v16 = vld [vmem:[%s29595_s3 + $0x88] sm:$0xff]  }
 0x379   : > { %1874 = vmatprep.mubr.bf16.mxu1 %v21289_v14 }
 0x380   : > { %1875 = vmatmul.mubr.bf16.gmra.mxu1 %v21291_v19 }
 0x381   : > { %1882 = vmatprep.mubr.bf16.mxu1 %v21292_v17 }
 0x388   : > { %1883 = vmatmul.mubr.bf16.gmra.mxu1 %v21294_v20 }
 0x389   : > { %1890 = vmatprep.mubr.bf16.mxu1 %v21295_v4 }
 0x390   : > { %1891 = vmatmul.mubr.bf16.gmra.mxu1 %v21297_v21  ;;  %v21305_v21 = vld [vmem:[%s29595_s3 + $0x80] sm:$0xff]  }
 0x3f8   : > { %v20785_v26 = vpop.f32.mrf.mxu1 }
 0x3f9   : > { %v23993_v63 = vadd.f32 %v20785_v26, %v23874_v37 }
 0x3fa   : > { %v1510_v27 = vpop.f32.mrf.mxu1 }
 0x3fb   : > { %v23996_v29 = vadd.f32 %v1510_v27, %v23876_v54 }
 0x3fc   : > { %v20786_v44 = vpop.f32.mrf.mxu1 }
 0x3fd   : > { %v23999_v32 = vadd.f32 %v20786_v44, %v23878_v57 }
 0x3fe   : > { %v24001_v28 = vpop.f32.mrf.mxu1 }
 0x408   : > { %v20789_v34 = vpop.f32.mrf.mxu1 }
 0x409   : > { %v24004_v61 = vadd.f32 %v20789_v34, %v23884_v10 }
 0x40a   : > { %v1526_v35 = vpop.f32.mrf.mxu1 }
 0x40b   : > { %v24007_v36 = vadd.f32 %v1526_v35, %v23886_v12 }
 0x40c   : > { %v20790_v37 = vpop.f32.mrf.mxu1 }
 0x40d   : > { %v24010_v38 = vadd.f32 %v20790_v37, %v23888_v18 }
 0x40e   : > { %v24012_v54 = vpop.f32.mrf.mxu1 }
 0x418   : > { %v20007_v39 = vpop.f32.mrf.mxu1 }
 0x41a   : > { %v20008_v0 = vpop.f32.mrf.mxu1 }
 0x41b   : > { %v20009_v42 = vadd.f32 %v20008_v0, %v20007_v39 }
 0x41c   : > { %v20010_v57 = vpop.f32.mrf.mxu1 }
 0x41e   : > { %v20011_v41 = vpop.f32.mrf.mxu1 }
 0x41f   : > { %v20012_v45 = vadd.f32 %v20011_v41, %v20010_v57 }
 0x420   : > { %v20013_v46 = vpop.f32.mrf.mxu1 }
 0x421   : > { %v1663_v50 = vpack.c.bf16 %v20012_v45, %v20009_v42 }
 0x422   : > { %v20014_v10 = vpop.f32.mrf.mxu1 }
 0x423   : > { %20799 = vmatprep.mubr.msk.bf16.mxu0 %vm1134_vm0, %v1663_v50  ;;  %v20015_v30 = vadd.f32 %v20014_v10, %v20013_v46 }
 0x424   : > { %v20016_v52 = vpop.f32.mrf.mxu1 }
 0x426   : > { %v20017_v12 = vpop.f32.mrf.mxu1 }
 0x427   : > { %v20018_v33 = vadd.f32 %v20017_v12, %v20016_v52 }
 0x428   : > { %v20019_v5 = vpop.f32.mrf.mxu1 }
 0x429   : > { %v1664_v18 = vpack.c.bf16 %v20018_v33, %v20015_v30 }
 0x42a   : > { %v20020_v3 = vpop.f32.mrf.mxu1 }
 0x42b   : > { %20800 = vmatmul.mubr.msk.bf16.vlgmr.msra.gmra.mxu0 %vm1134_vm0, %v1664_v18  ;;  %v20021_v19 = vadd.f32 %v20020_v3, %v20019_v5 }
 0x42c   : > { %20808 = vmatpush3.bf16.msra.mxu0 %v21302_v25  ;;  %v20022_v11 = vpop.f32.mrf.mxu1 }
 0x42d   : > { %20809 = vmatprep.subr.bf16.mxu0 %v21303_v8 }
 0x42e   : > { %v20023_v14 = vpop.f32.mrf.mxu1 }
 0x42f   : > { %v20024_v17 = vadd.f32 %v20023_v14, %v20022_v11 }
 0x430   : > { %20810 = vmatpush3.bf16.msra.mxu0 %v21303_v8  ;;  %v20025_v20 = vpop.f32.mrf.mxu1 }
 0x431   : > { %v1665_v4 = vpack.c.bf16 %v20024_v17, %v20021_v19  ;;  %20811 = vmatprep.subr.bf16.mxu0 %v21304_v16 }
 0x432   : > { %v20026_v22 = vpop.f32.mrf.mxu1 }
 0x433   : > { %20803 = vmatprep.mubr.msk.bf16.mxu0 %vm1134_vm0, %v1665_v4  ;;  %v20027_v24 = vadd.f32 %v20026_v22, %v20025_v20  ;;  %v21308_v20 = vld [vmem:[%s29598_s6 + $0x144] ss:$8 sps:$4 sm:$0xff]   ;;  %v21309_v22 = vld [vmem:[%s29598_s6 + $0x154] ss:$8 sps:$4 sm:$0xff]  }
 0x434   : > { %20812 = vmatpush3.bf16.msra.mxu0 %v21304_v16  ;;  %v20028_v7 = vpop.f32.mrf.mxu1 }
 0x435   : > { %20813 = vmatprep.subr.bf16.mxu0 %v21305_v21 }
 0x436   : > { %v20029_v13 = vpop.f32.mrf.mxu1 }
 0x437   : > { %v20030_v25 = vadd.f32 %v20029_v13, %v20028_v7  ;;  %v21311_v7 = vld [vmem:[%s29598_s6 + $0x150] ss:$8 sps:$4 sm:$0xff]   ;;  %v21312_v13 = vld [vmem:[%s29598_s6 + $0x164] ss:$8 sps:$4 sm:$0xff]  }
 0x438   : > { %20814 = vmatpush3.bf16.msra.mxu0 %v21305_v21  ;;  %v20055_v26 = vpop.f32.mrf.mxu1  ;;  %v21306_v21 = vld [vmem:[%s29598_s6 + $0x140] ss:$8 sps:$4 sm:$0xff]  }
 0x439   : > { %v1666_v27 = vpack.c.bf16 %v20030_v25, %v20027_v24  ;;  %20087 = vmatprep.subr.bf16.mxu0 %v23657_v49  ;;  %v21314_v24 = vld [vmem:[%s29598_s6 + $0x160] ss:$8 sps:$4 sm:$0xff]   ;;  %v21315_v25 = vld [vmem:[%s29598_s6 + $0x174] ss:$8 sps:$4 sm:$0xff]  }
 0x43a   : > { %v20056_v44 = vpop.f32.mrf.mxu1 }
 0x43b   : > { %20804 = vmatmul.mubr.msk.bf16.gmra.mxu0 %vm1134_vm0, %v1666_v27  ;;  %v20057_v37 = vadd.f32 %v20056_v44, %v20055_v26  ;;  %v21317_v26 = vld [vmem:[%s29598_s6 + $0x170] ss:$8 sps:$4 sm:$0xff]   ;;  %v21320_v27 = vld [vmem:[%s29598_s6 + $0x184] ss:$8 sps:$4 sm:$0xff]   ;;  %v21318_v44 = vld [vmem:[%s29598_s6 + $0x180] ss:$8 sps:$4 sm:$0xff]  }
 0x43c   : > { %v20058_v34 = vpop.f32.mrf.mxu1 }
 0x43e   : > { %v20059_v35 = vpop.f32.mrf.mxu1 }
 0x43f   : > { %v20060_v39 = vadd.f32 %v20059_v35, %v20058_v34  ;;  %v21321_v34 = vld [vmem:[%s29598_s6 + $0x194] ss:$8 sps:$4 sm:$0xff]   ;;  %v21323_v35 = vld [vmem:[%s29598_s6 + $0x190] ss:$8 sps:$4 sm:$0xff]  }
 0x440   : > { %v20061_v0 = vpop.f32.mrf.mxu1 }
 0x441   : > { %v1899_v57 = vpack.c.bf16 %v20060_v39, %v20057_v37  ;;  %v21324_v37 = vld [vmem:[%s29598_s6 + $0x1a4] ss:$8 sps:$4 sm:$0xff]   ;;  %v21326_v39 = vld [vmem:[%s29598_s6 + $0x1a0] ss:$8 sps:$4 sm:$0xff]  }
 0x442   : > { %v20062_v41 = vpop.f32.mrf.mxu1 }
 0x443   : > { %20815 = vmatprep.mubr.msk.bf16.mxu0 %vm1134_vm0, %v1899_v57  ;;  %v20063_v46 = vadd.f32 %v20062_v41, %v20061_v0  ;;  %v21327_v0 = vld [vmem:[%s29598_s6 + $0x1b4] ss:$8 sps:$4 sm:$0xff]   ;;  %v21329_v57 = vld [vmem:[%s29598_s6 + $0x1b0] ss:$8 sps:$4 sm:$0xff]  }
 0x444   : > { %v20064_v42 = vpop.f32.mrf.mxu1  ;;  %v21330_v41 = vld [vmem:[%s29595_s3 + $0xb8] sm:$0xff]  }
 0x445   : > { %20823 = vmatprep.subr.bf16.mxu1 %v21330_v41 }
 0x446   : > { %v20065_v45 = vpop.f32.mrf.mxu1  ;;  %20824 = vmatpush3.bf16.msra.mxu1 %v21330_v41 }
 0x447   : > { %v20066_v50 = vadd.f32 %v20065_v45, %v20064_v42  ;;  %v21331_v42 = vld [vmem:[%s29595_s3 + $0xb0] sm:$0xff]   ;;  %v21332_v45 = vld [vmem:[%s29595_s3 + $0xa8] sm:$0xff]  }
 0x448   : > { %v20067_v10 = vpop.f32.mrf.mxu1  ;;  %20825 = vmatprep.subr.bf16.mxu1 %v21331_v42 }
 0x449   : > { %v1900_v52 = vpack.c.bf16 %v20066_v50, %v20063_v46  ;;  %v21333_v46 = vld [vmem:[%s29595_s3 + $0xa0] sm:$0xff]   ;;  %v21334_v50 = vld [vmem:[%s29595_s3 + $0xd8] sm:$0xff]  }
 0x44a   : > { %v20068_v12 = vpop.f32.mrf.mxu1  ;;  %20826 = vmatpush3.bf16.msra.mxu1 %v21331_v42 }
 0x44b   : > { %20816 = vmatmul.mubr.msk.bf16.vlgmr.msra.gmra.mxu0 %vm1134_vm0, %v1900_v52  ;;  %v20069_v33 = vadd.f32 %v20068_v12, %v20067_v10  ;;  %20827 = vmatprep.subr.bf16.mxu1 %v21332_v45 }
 0x44c   : > { %20088 = vmatpush3.bf16.msra.mxu0 %v23655_v47  ;;  %v20070_v30 = vpop.f32.mrf.mxu1 }
 0x44d   : > { %20089 = vmatprep.subr.bf16.mxu0 %v23663_v58 }
 0x44e   : > { %v20071_v5 = vpop.f32.mrf.mxu1  ;;  %20828 = vmatpush3.bf16.msra.mxu1 %v21332_v45 }
 0x44f   : > { %v20072_v18 = vadd.f32 %v20071_v5, %v20070_v30  ;;  %20829 = vmatprep.subr.bf16.mxu1 %v21333_v46 }
 0x450   : > { %20090 = vmatpush3.bf16.msra.mxu0 %v23674_v6  ;;  %v20073_v8 = vpop.f32.mrf.mxu1 }
 0x451   : > { %v1901_v3 = vpack.c.bf16 %v20072_v18, %v20069_v33  ;;  %20091 = vmatprep.subr.bf16.mxu0 %v23680_v15 }
 0x452   : > { %v20074_v11 = vpop.f32.mrf.mxu1  ;;  %20830 = vmatpush3.bf16.msra.mxu1 %v21333_v46 }
 0x453   : > { %20819 = vmatprep.mubr.msk.bf16.mxu0 %vm1134_vm0, %v1901_v3  ;;  %v20075_v14 = vadd.f32 %v20074_v11, %v20073_v8  ;;  %20839 = vmatprep.subr.bf16.mxu1 %v21334_v50 }
 0x454   : > { %20092 = vmatpush3.bf16.msra.mxu0 %v23691_v9  ;;  %v20076_v16 = vpop.f32.mrf.mxu1 }
 0x455   : > { %20093 = vmatprep.subr.bf16.mxu0 %v23697_v23 }
 0x456   : > { %v20077_v19 = vpop.f32.mrf.mxu1 }
 0x457   : > { %v20078_v17 = vadd.f32 %v20077_v19, %v20076_v16 }
 0x458   : > { %20094 = vmatpush3.bf16.msra.mxu0 %v23708_v48 }
 0x459   : > { %v1902_v4 = vpack.c.bf16 %v20078_v17, %v20075_v14  ;;  %20095 = vmatprep.subr.bf16.mxu0 %v23712_v31 }
 0x45b   : > { %20820 = vmatmul.mubr.msk.bf16.gmra.mxu0 %vm1134_vm0, %v1902_v4 }
 0x45c   : > { %20096 = vmatpush3.bf16.msra.mxu0 %v23612_v53  ;;  %2102 = vmatprep.mubr.bf16.mxu0 %v21308_v20 }
 0x45d   : > { %20097 = vmatprep.subr.bf16.mxu0 %v23722_v40 }
 0x460   : > { %20098 = vmatpush3.bf16.msra.mxu0 %v23728_v62 }
 0x461   : > { %20099 = vmatprep.subr.bf16.mxu0 %v23730_v51 }
 0x464   : > { %20100 = vmatpush3.bf16.msra.mxu0 %v23605_v43 }
 0x465   : > { %20101 = vmatprep.subr.bf16.mxu0 %v23734_v55 }
 0x468   : > { %20102 = vmatpush3.bf16.msra.mxu0 %v23741_v60 }
 0x469   : > { %20135 = vmatprep.subr.bf16.mxu0 %v23657_v49 }
 0x46b   : > { %2103 = vmatmul.mubr.bf16.vlgmr.msra.gmra.mxu0 %v21306_v21 }
 0x46c   : > { %20136 = vmatpush3.bf16.msra.mxu0 %v23655_v47  ;;  %2110 = vmatprep.mubr.bf16.mxu0 %v21309_v22 }
 0x46d   : > { %20137 = vmatprep.subr.bf16.mxu0 %v23663_v58 }
 0x470   : > { %20138 = vmatpush3.bf16.msra.mxu0 %v23674_v6 }
 0x471   : > { %20139 = vmatprep.subr.bf16.mxu0 %v23680_v15 }
 0x473   : > { %2111 = vmatmul.mubr.bf16.gmra.mxu0 %v21311_v7 }
 0x474   : > { %20140 = vmatpush3.bf16.msra.mxu0 %v23691_v9  ;;  %2118 = vmatprep.mubr.bf16.mxu0 %v21312_v13 }
 0x475   : > { %20141 = vmatprep.subr.bf16.mxu0 %v23697_v23 }
 0x478   : > { %20142 = vmatpush3.bf16.msra.mxu0 %v23708_v48 }
 0x479   : > { %20143 = vmatprep.subr.bf16.mxu0 %v23712_v31 }
 0x47b   : > { %2119 = vmatmul.mubr.bf16.gmra.mxu0 %v21314_v24 }
 0x47c   : > { %20144 = vmatpush3.bf16.msra.mxu0 %v23612_v53  ;;  %2126 = vmatprep.mubr.bf16.mxu0 %v21315_v25 }
 0x47d   : > { %20145 = vmatprep.subr.bf16.mxu0 %v23722_v40 }
 0x480   : > { %20146 = vmatpush3.bf16.msra.mxu0 %v23728_v62 }
 0x481   : > { %20147 = vmatprep.subr.bf16.mxu0 %v23730_v51 }
 0x483   : > { %2127 = vmatmul.mubr.bf16.gmra.mxu0 %v21317_v26 }
 0x484   : > { %20148 = vmatpush3.bf16.msra.mxu0 %v23605_v43  ;;  %2338 = vmatprep.mubr.bf16.mxu0 %v21320_v27 }
 0x485   : > { %20149 = vmatprep.subr.bf16.mxu0 %v23734_v55 }
 0x488   : > { %20150 = vmatpush3.bf16.msra.mxu0 %v23741_v60 }
 0x48b   : > { %2339 = vmatmul.mubr.bf16.vlgmr.msra.gmra.mxu0 %v21318_v44 }
 0x48c   : > { %2346 = vmatprep.mubr.bf16.mxu0 %v21321_v34 }
 0x493   : > { %2347 = vmatmul.mubr.bf16.gmra.mxu0 %v21323_v35 }
 0x494   : > { %2354 = vmatprep.mubr.bf16.mxu0 %v21324_v37 }
 0x49b   : > { %2355 = vmatmul.mubr.bf16.gmra.mxu0 %v21326_v39 }
 0x49c   : > { %2362 = vmatprep.mubr.bf16.mxu0 %v21327_v0 }
 0x4a3   : > { %2363 = vmatmul.mubr.bf16.gmra.mxu0 %v21329_v57 }
 0x4eb   : > { %v20801_v10 = vpop.f32.mrf.mxu0 }
 0x4ec   : > { %v1779_v52 = vadd.f32 %v20801_v10, %v23993_v63 }
 0x4ed   : > { %v1746_v12 = vpop.f32.mrf.mxu0 }
 0x4ee   : > { %v1777_v30 = vadd.f32 %v1746_v12, %v23996_v29  ;;  %v21335_v12 = vld [vmem:[%s29595_s3 + $0xd0] sm:$0xff]  }
 0x4ef   : > { %v20802_v33 = vpop.f32.mrf.mxu0 }
 0x4f0   : > { %v1780_v5 = vadd.f32 %v20802_v33, %v23999_v32 }
 0x4f1   : > { %v24129_v18 = vpop.f32.mrf.mxu0 }
 0x4fb   : > { %v20805_v8 = vpop.f32.mrf.mxu0 }
 0x4fc   : > { %v1783_v3 = vadd.f32 %v20805_v8, %v24004_v61 }
 0x4fd   : > { %v1762_v11 = vpop.f32.mrf.mxu0 }
 0x4fe   : > { %v1781_v16 = vadd.f32 %v1762_v11, %v24007_v36 }
 0x4ff   : > { %v20806_v14 = vpop.f32.mrf.mxu0 }
 0x500   : > { %v1784_v19 = vadd.f32 %v20806_v14, %v24010_v38 }
 0x501   : > { %v24134_v17 = vpop.f32.mrf.mxu0 }
 0x50b   : > { %v20817_v63 = vpop.f32.mrf.mxu0 }
 0x50c   : > { %v24136_v20 = vadd.f32 %v20817_v63, %v1779_v52 }
 0x50d   : > { %v1982_v29 = vpop.f32.mrf.mxu0 }
 0x50e   : > { %v24138_v4 = vadd.f32 %v1982_v29, %v1777_v30 }
 0x50f   : > { %v20818_v32 = vpop.f32.mrf.mxu0 }
 0x510   : > { %v24140_v21 = vadd.f32 %v20818_v32, %v1780_v5  ;;  %v21336_v5 = vld [vmem:[%s29595_s3 + $0xc8] sm:$0xff]  }
 0x511   : > { %v24142_v22 = vpop.f32.mrf.mxu0 }
 0x51b   : > { %v20821_v61 = vpop.f32.mrf.mxu0 }
 0x51c   : > { %v24144_v7 = vadd.f32 %v20821_v61, %v1783_v3 }
 0x51d   : > { %v1998_v36 = vpop.f32.mrf.mxu0 }
 0x51e   : > { %v24146_v13 = vadd.f32 %v1998_v36, %v1781_v16 }
 0x51f   : > { %v20822_v38 = vpop.f32.mrf.mxu0 }
 0x520   : > { %v24148_v24 = vadd.f32 %v20822_v38, %v1784_v19  ;;  %v21337_v19 = vld [vmem:[%s29595_s3 + $0xc0] sm:$0xff]  }
 0x521   : > { %v24150_v25 = vpop.f32.mrf.mxu0 }
 0x52b   : > { %v20103_v26 = vpop.f32.mrf.mxu0 }
 0x52d   : > { %v20104_v27 = vpop.f32.mrf.mxu0 }
 0x52e   : > { %v20105_v35 = vadd.f32 %v20104_v27, %v20103_v26 }
 0x52f   : > { %v20106_v44 = vpop.f32.mrf.mxu0 }
 0x531   : > { %v20107_v34 = vpop.f32.mrf.mxu0 }
 0x532   : > { %v20108_v37 = vadd.f32 %v20107_v34, %v20106_v44 }
 0x533   : > { %v20109_v39 = vpop.f32.mrf.mxu0 }
 0x534   : > { %v2135_v0 = vpack.c.bf16 %v20108_v37, %v20105_v35 }
 0x535   : > { %v20110_v57 = vpop.f32.mrf.mxu0 }
 0x536   : > { %20831 = vmatprep.mubr.msk.bf16.mxu1 %vm1134_vm0, %v2135_v0  ;;  %v20111_v45 = vadd.f32 %v20110_v57, %v20109_v39 }
 0x537   : > { %v20112_v41 = vpop.f32.mrf.mxu0 }
 0x539   : > { %v20113_v42 = vpop.f32.mrf.mxu0 }
 0x53a   : > { %v20114_v46 = vadd.f32 %v20113_v42, %v20112_v41 }
 0x53b   : > { %v20115_v10 = vpop.f32.mrf.mxu0 }
 0x53c   : > { %v2136_v52 = vpack.c.bf16 %v20114_v46, %v20111_v45 }
 0x53d   : > { %v20116_v30 = vpop.f32.mrf.mxu0 }
 0x53e   : > { %20832 = vmatmul.mubr.msk.bf16.vlgmr.msra.gmra.mxu1 %vm1134_vm0, %v2136_v52  ;;  %v20117_v3 = vadd.f32 %v20116_v30, %v20115_v10 }
 0x53f   : > { %20840 = vmatpush3.bf16.msra.mxu1 %v21334_v50  ;;  %v20118_v33 = vpop.f32.mrf.mxu0 }
 0x540   : > { %20841 = vmatprep.subr.bf16.mxu1 %v21335_v12 }
 0x541   : > { %v20119_v8 = vpop.f32.mrf.mxu0 }
 0x542   : > { %v20120_v11 = vadd.f32 %v20119_v8, %v20118_v33 }
 0x543   : > { %20842 = vmatpush3.bf16.msra.mxu1 %v21335_v12  ;;  %v20121_v16 = vpop.f32.mrf.mxu0 }
 0x544   : > { %v2137_v14 = vpack.c.bf16 %v20120_v11, %v20117_v3  ;;  %20843 = vmatprep.subr.bf16.mxu1 %v21336_v5 }
 0x545   : > { %v20122_v63 = vpop.f32.mrf.mxu0 }
 0x546   : > { %20835 = vmatprep.mubr.msk.bf16.mxu1 %vm1134_vm0, %v2137_v14  ;;  %v20123_v32 = vadd.f32 %v20122_v63, %v20121_v16 }
 0x547   : > { %20844 = vmatpush3.bf16.msra.mxu1 %v21336_v5  ;;  %v20124_v50 = vpop.f32.mrf.mxu0 }
 0x548   : > { %20845 = vmatprep.subr.bf16.mxu1 %v21337_v19 }
 0x549   : > { %v20125_v29 = vpop.f32.mrf.mxu0 }
 0x54a   : > { %v20126_v61 = vadd.f32 %v20125_v29, %v20124_v50  ;;  %v21340_v50 = vld [vmem:[%s29598_s6 + $0x1c4] ss:$8 sps:$4 sm:$0xff]  }
 0x54b   : > { %20846 = vmatpush3.bf16.msra.mxu1 %v21337_v19  ;;  %v20151_v36 = vpop.f32.mrf.mxu0 }
 0x54c   : > { %v2138_v38 = vpack.c.bf16 %v20126_v61, %v20123_v32  ;;  %20183 = vmatprep.subr.bf16.mxu1 %v23657_v49  ;;  %v21338_v32 = vld [vmem:[%s29598_s6 + $0x1c0] ss:$8 sps:$4 sm:$0xff]   ;;  %v21341_v61 = vld [vmem:[%s29598_s6 + $0x1d4] ss:$8 sps:$4 sm:$0xff]  }
 0x54d   : > { %v20152_v26 = vpop.f32.mrf.mxu0 }
 0x54e   : > { %20836 = vmatmul.mubr.msk.bf16.gmra.mxu1 %vm1134_vm0, %v2138_v38  ;;  %v20153_v34 = vadd.f32 %v20152_v26, %v20151_v36  ;;  %v21343_v36 = vld [vmem:[%s29598_s6 + $0x1d0] ss:$8 sps:$4 sm:$0xff]   ;;  %v21344_v38 = vld [vmem:[%s29598_s6 + $0x1e4] ss:$8 sps:$4 sm:$0xff]   ;;  %v21346_v26 = vld [vmem:[%s29598_s6 + $0x1e0] ss:$8 sps:$4 sm:$0xff]  }
 0x54f   : > { %v20154_v27 = vpop.f32.mrf.mxu0 }
 0x551   : > { %v20155_v44 = vpop.f32.mrf.mxu0 }
 0x552   : > { %v20156_v35 = vadd.f32 %v20155_v44, %v20154_v27  ;;  %v21347_v27 = vld [vmem:[%s29598_s6 + $0x1f4] ss:$8 sps:$4 sm:$0xff]   ;;  %v21349_v44 = vld [vmem:[%s29598_s6 + $0x1f0] ss:$8 sps:$4 sm:$0xff]  }
 0x553   : > { %v20157_v37 = vpop.f32.mrf.mxu0 }
 0x554   : > { %v2371_v39 = vpack.c.bf16 %v20156_v35, %v20153_v34  ;;  %v21352_v34 = vld [vmem:[%s29598_s6 + $0x204] ss:$8 sps:$4 sm:$0xff]   ;;  %v21350_v35 = vld [vmem:[%s29598_s6 + $0x200] ss:$8 sps:$4 sm:$0xff]  }
 0x555   : > { %v20158_v0 = vpop.f32.mrf.mxu0 }
 0x556   : > { %20847 = vmatprep.mubr.msk.bf16.mxu1 %vm1134_vm0, %v2371_v39  ;;  %v20159_v42 = vadd.f32 %v20158_v0, %v20157_v37  ;;  %v21355_v37 = vld [vmem:[%s29598_s6 + $0x214] ss:$8 sps:$4 sm:$0xff]   ;;  %v21353_v39 = vld [vmem:[%s29598_s6 + $0x210] ss:$8 sps:$4 sm:$0xff]   ;;  %v21358_v0 = vld [vmem:[%s29598_s6 + $0x224] ss:$8 sps:$4 sm:$0xff]  }
 0x557   : > { %v20160_v57 = vpop.f32.mrf.mxu0 }
 0x559   : > { %v20161_v41 = vpop.f32.mrf.mxu0 }
 0x55a   : > { %v20162_v45 = vadd.f32 %v20161_v41, %v20160_v57  ;;  %v21356_v57 = vld [vmem:[%s29598_s6 + $0x220] ss:$8 sps:$4 sm:$0xff]   ;;  %v21361_v41 = vld [vmem:[%s29598_s6 + $0x234] ss:$8 sps:$4 sm:$0xff]  }
 0x55b   : > { %v20163_v46 = vpop.f32.mrf.mxu0 }
 0x55c   : > { %v2372_v10 = vpack.c.bf16 %v20162_v45, %v20159_v42  ;;  %v21359_v42 = vld [vmem:[%s29598_s6 + $0x230] ss:$8 sps:$4 sm:$0xff]  }
 0x55d   : > { %v20164_v52 = vpop.f32.mrf.mxu0  ;;  %v21362_v45 = vld [vmem:[%s29595_s3 + $0xf8] sm:$0xff]  }
 0x55e   : > { %20848 = vmatmul.mubr.msk.bf16.vlgmr.msra.gmra.mxu1 %vm1134_vm0, %v2372_v10  ;;  %v20165_v30 = vadd.f32 %v20164_v52, %v20163_v46  ;;  %20855 = vmatprep.subr.bf16.mxu0 %v21362_v45  ;;  %v21363_v46 = vld [vmem:[%s29595_s3 + $0xf0] sm:$0xff]   ;;  %v21364_v10 = vld [vmem:[%s29595_s3 + $0xe8] sm:$0xff]   ;;  %v21365_v52 = vld [vmem:[%s29595_s3 + $0xe0] sm:$0xff]  }
 0x55f   : > { %20184 = vmatpush3.bf16.msra.mxu1 %v23655_v47  ;;  %v20166_v12 = vpop.f32.mrf.mxu0  ;;  %20856 = vmatpush3.bf16.msra.mxu0 %v21362_v45 }
 0x560   : > { %20185 = vmatprep.subr.bf16.mxu1 %v23663_v58  ;;  %20857 = vmatprep.subr.bf16.mxu0 %v21363_v46 }
 0x561   : > { %v20167_v33 = vpop.f32.mrf.mxu0 }
 0x562   : > { %v20168_v5 = vadd.f32 %v20167_v33, %v20166_v12  ;;  %v21366_v12 = vld [vmem:[%s29595_s3 + $0x118] sm:$0xff]  }
 0x563   : > { %20186 = vmatpush3.bf16.msra.mxu1 %v23674_v6  ;;  %v20169_v8 = vpop.f32.mrf.mxu0  ;;  %20858 = vmatpush3.bf16.msra.mxu0 %v21363_v46 }
 0x564   : > { %v2373_v3 = vpack.c.bf16 %v20168_v5, %v20165_v30  ;;  %20187 = vmatprep.subr.bf16.mxu1 %v23680_v15  ;;  %20859 = vmatprep.subr.bf16.mxu0 %v21364_v10 }
 0x565   : > { %v20170_v11 = vpop.f32.mrf.mxu0 }
 0x566   : > { %20851 = vmatprep.mubr.msk.bf16.mxu1 %vm1134_vm0, %v2373_v3  ;;  %v20171_v14 = vadd.f32 %v20170_v11, %v20169_v8 }
 0x567   : > { %20188 = vmatpush3.bf16.msra.mxu1 %v23691_v9  ;;  %v20172_v16 = vpop.f32.mrf.mxu0  ;;  %20860 = vmatpush3.bf16.msra.mxu0 %v21364_v10 }
 0x568   : > { %20189 = vmatprep.subr.bf16.mxu1 %v23697_v23  ;;  %20861 = vmatprep.subr.bf16.mxu0 %v21365_v52 }
 0x569   : > { %v20173_v19 = vpop.f32.mrf.mxu0 }
 0x56a   : > { %v20174_v63 = vadd.f32 %v20173_v19, %v20172_v16 }
 0x56b   : > { %20190 = vmatpush3.bf16.msra.mxu1 %v23708_v48  ;;  %20862 = vmatpush3.bf16.msra.mxu0 %v21365_v52 }
 0x56c   : > { %v2374_v29 = vpack.c.bf16 %v20174_v63, %v20171_v14  ;;  %20191 = vmatprep.subr.bf16.mxu1 %v23712_v31  ;;  %20871 = vmatprep.subr.bf16.mxu0 %v21366_v12 }
 0x56e   : > { %20852 = vmatmul.mubr.msk.bf16.gmra.mxu1 %vm1134_vm0, %v2374_v29 }
 0x56f   : > { %20192 = vmatpush3.bf16.msra.mxu1 %v23612_v53  ;;  %2574 = vmatprep.mubr.bf16.mxu1 %v21340_v50 }
 0x570   : > { %20193 = vmatprep.subr.bf16.mxu1 %v23722_v40 }
 0x573   : > { %20194 = vmatpush3.bf16.msra.mxu1 %v23728_v62 }
 0x574   : > { %20195 = vmatprep.subr.bf16.mxu1 %v23730_v51 }
 0x577   : > { %20196 = vmatpush3.bf16.msra.mxu1 %v23605_v43 }
 0x578   : > { %20197 = vmatprep.subr.bf16.mxu1 %v23734_v55 }
 0x57b   : > { %20198 = vmatpush3.bf16.msra.mxu1 %v23741_v60 }
 0x57c   : > { %20231 = vmatprep.subr.bf16.mxu1 %v23657_v49 }
 0x57e   : > { %2575 = vmatmul.mubr.bf16.vlgmr.msra.gmra.mxu1 %v21338_v32 }
 0x57f   : > { %20232 = vmatpush3.bf16.msra.mxu1 %v23655_v47  ;;  %2582 = vmatprep.mubr.bf16.mxu1 %v21341_v61 }
 0x580   : > { %20233 = vmatprep.subr.bf16.mxu1 %v23663_v58 }
 0x583   : > { %20234 = vmatpush3.bf16.msra.mxu1 %v23674_v6 }
 0x584   : > { %20235 = vmatprep.subr.bf16.mxu1 %v23680_v15 }
 0x586   : > { %2583 = vmatmul.mubr.bf16.gmra.mxu1 %v21343_v36 }
 0x587   : > { %20236 = vmatpush3.bf16.msra.mxu1 %v23691_v9  ;;  %2590 = vmatprep.mubr.bf16.mxu1 %v21344_v38 }
 0x588   : > { %20237 = vmatprep.subr.bf16.mxu1 %v23697_v23 }
 0x58b   : > { %20238 = vmatpush3.bf16.msra.mxu1 %v23708_v48 }
 0x58c   : > { %20239 = vmatprep.subr.bf16.mxu1 %v23712_v31 }
 0x58e   : > { %2591 = vmatmul.mubr.bf16.gmra.mxu1 %v21346_v26 }
 0x58f   : > { %20240 = vmatpush3.bf16.msra.mxu1 %v23612_v53  ;;  %2598 = vmatprep.mubr.bf16.mxu1 %v21347_v27 }
 0x590   : > { %20241 = vmatprep.subr.bf16.mxu1 %v23722_v40 }
 0x593   : > { %20242 = vmatpush3.bf16.msra.mxu1 %v23728_v62 }
 0x594   : > { %20243 = vmatprep.subr.bf16.mxu1 %v23730_v51 }
 0x596   : > { %2599 = vmatmul.mubr.bf16.gmra.mxu1 %v21349_v44 }
 0x597   : > { %20244 = vmatpush3.bf16.msra.mxu1 %v23605_v43  ;;  %2810 = vmatprep.mubr.bf16.mxu1 %v21352_v34 }
 0x598   : > { %20245 = vmatprep.subr.bf16.mxu1 %v23734_v55 }
 0x59b   : > { %20246 = vmatpush3.bf16.msra.mxu1 %v23741_v60 }
 0x59e   : > { %2811 = vmatmul.mubr.bf16.vlgmr.msra.gmra.mxu1 %v21350_v35 }
 0x59f   : > { %2818 = vmatprep.mubr.bf16.mxu1 %v21355_v37 }
 0x5a6   : > { %2819 = vmatmul.mubr.bf16.gmra.mxu1 %v21353_v39 }
 0x5a7   : > { %2826 = vmatprep.mubr.bf16.mxu1 %v21358_v0 }
 0x5ae   : > { %2827 = vmatmul.mubr.bf16.gmra.mxu1 %v21356_v57 }
 0x5af   : > { %2834 = vmatprep.mubr.bf16.mxu1 %v21361_v41 }
 0x5b6   : > { %2835 = vmatmul.mubr.bf16.gmra.mxu1 %v21359_v42 }
 0x5fe   : > { %v20833_v30 = vpop.f32.mrf.mxu1 }
 0x5ff   : > { %v2251_v33 = vadd.f32 %v20833_v30, %v24136_v20 }
 0x600   : > { %v2218_v5 = vpop.f32.mrf.mxu1 }
 0x601   : > { %v2249_v8 = vadd.f32 %v2218_v5, %v24138_v4 }
 0x602   : > { %v20834_v3 = vpop.f32.mrf.mxu1 }
 0x603   : > { %v2252_v11 = vadd.f32 %v20834_v3, %v24140_v21 }
 0x604   : > { %v24267_v16 = vpop.f32.mrf.mxu1 }
 0x60e   : > { %v20837_v14 = vpop.f32.mrf.mxu1 }
 0x60f   : > { %v2255_v19 = vadd.f32 %v20837_v14, %v24144_v7  ;;  %v21367_v14 = vld [vmem:[%s29595_s3 + $0x110] sm:$0xff]  }
 0x610   : > { %v2234_v63 = vpop.f32.mrf.mxu1 }
 0x611   : > { %v2253_v50 = vadd.f32 %v2234_v63, %v24146_v13 }
 0x612   : > { %v20838_v29 = vpop.f32.mrf.mxu1 }
 0x613   : > { %v2256_v32 = vadd.f32 %v20838_v29, %v24148_v24 }
 0x614   : > { %v24272_v61 = vpop.f32.mrf.mxu1 }
 0x61e   : > { %v20849_v20 = vpop.f32.mrf.mxu1 }
 0x61f   : > { %v24274_v36 = vadd.f32 %v20849_v20, %v2251_v33 }
 0x620   : > { %v2454_v4 = vpop.f32.mrf.mxu1 }
 0x621   : > { %v24276_v38 = vadd.f32 %v2454_v4, %v2249_v8 }
 0x622   : > { %v20850_v21 = vpop.f32.mrf.mxu1 }
 0x623   : > { %v24278_v26 = vadd.f32 %v20850_v21, %v2252_v11 }
 0x624   : > { %v24280_v27 = vpop.f32.mrf.mxu1 }
 0x62e   : > { %v20853_v7 = vpop.f32.mrf.mxu1 }
 0x62f   : > { %v24282_v44 = vadd.f32 %v20853_v7, %v2255_v19  ;;  %v21369_v7 = vld [vmem:[%s29595_s3 + $0x100] sm:$0xff]  }
 0x630   : > { %v2470_v13 = vpop.f32.mrf.mxu1 }
 0x631   : > { %v24284_v34 = vadd.f32 %v2470_v13, %v2253_v50  ;;  %v21368_v50 = vld [vmem:[%s29595_s3 + $0x108] sm:$0xff]  }
 0x632   : > { %v20854_v24 = vpop.f32.mrf.mxu1 }
 0x633   : > { %v24286_v35 = vadd.f32 %v20854_v24, %v2256_v32 }
 0x634   : > { %v24288_v37 = vpop.f32.mrf.mxu1 }
 0x63e   : > { %v20199_v39 = vpop.f32.mrf.mxu1 }
 0x640   : > { %v20200_v0 = vpop.f32.mrf.mxu1 }
 0x641   : > { %v20201_v42 = vadd.f32 %v20200_v0, %v20199_v39 }
 0x642   : > { %v20202_v57 = vpop.f32.mrf.mxu1 }
 0x644   : > { %v20203_v41 = vpop.f32.mrf.mxu1 }
 0x645   : > { %v20204_v45 = vadd.f32 %v20203_v41, %v20202_v57 }
 0x646   : > { %v20205_v46 = vpop.f32.mrf.mxu1 }
 0x647   : > { %v2607_v10 = vpack.c.bf16 %v20204_v45, %v20201_v42 }
 0x648   : > { %v20206_v52 = vpop.f32.mrf.mxu1 }
 0x649   : > { %20863 = vmatprep.mubr.msk.bf16.mxu0 %vm1134_vm0, %v2607_v10  ;;  %v20207_v5 = vadd.f32 %v20206_v52, %v20205_v46 }
 0x64a   : > { %v20208_v30 = vpop.f32.mrf.mxu1 }
 0x64c   : > { %v20209_v33 = vpop.f32.mrf.mxu1 }
 0x64d   : > { %v20210_v8 = vadd.f32 %v20209_v33, %v20208_v30 }
 0x64e   : > { %v20211_v3 = vpop.f32.mrf.mxu1 }
 0x64f   : > { %v2608_v11 = vpack.c.bf16 %v20210_v8, %v20207_v5 }
 0x650   : > { %v20212_v19 = vpop.f32.mrf.mxu1 }
 0x651   : > { %20864 = vmatmul.mubr.msk.bf16.vlgmr.msra.gmra.mxu0 %vm1134_vm0, %v2608_v11  ;;  %v20213_v32 = vadd.f32 %v20212_v19, %v20211_v3 }
 0x652   : > { %20872 = vmatpush3.bf16.msra.mxu0 %v21366_v12  ;;  %v20214_v63 = vpop.f32.mrf.mxu1 }
 0x653   : > { %20873 = vmatprep.subr.bf16.mxu0 %v21367_v14 }
 0x654   : > { %v20215_v29 = vpop.f32.mrf.mxu1 }
 0x655   : > { %v20216_v20 = vadd.f32 %v20215_v29, %v20214_v63 }
 0x656   : > { %20874 = vmatpush3.bf16.msra.mxu0 %v21367_v14  ;;  %v20217_v4 = vpop.f32.mrf.mxu1 }
 0x657   : > { %v2609_v21 = vpack.c.bf16 %v20216_v20, %v20213_v32  ;;  %20875 = vmatprep.subr.bf16.mxu0 %v21368_v50 }
 0x658   : > { %v20218_v13 = vpop.f32.mrf.mxu1 }
 0x659   : > { %20867 = vmatprep.mubr.msk.bf16.mxu0 %vm1134_vm0, %v2609_v21  ;;  %v20219_v39 = vadd.f32 %v20218_v13, %v20217_v4 }
 0x65a   : > { %20876 = vmatpush3.bf16.msra.mxu0 %v21368_v50  ;;  %v20220_v12 = vpop.f32.mrf.mxu1 }
 0x65b   : > { %20877 = vmatprep.subr.bf16.mxu0 %v21369_v7 }
 0x65c   : > { %v20221_v24 = vpop.f32.mrf.mxu1 }
 0x65d   : > { %v20222_v0 = vadd.f32 %v20221_v24, %v20220_v12 }
 0x65e   : > { %20878 = vmatpush3.bf16.msra.mxu0 %v21369_v7  ;;  %v20247_v57 = vpop.f32.mrf.mxu1 }
 0x65f   : > { %v2610_v41 = vpack.c.bf16 %v20222_v0, %v20219_v39  ;;  %20279 = vmatprep.subr.bf16.mxu0 %v23657_v49 }
 0x660   : > { %v20248_v42 = vpop.f32.mrf.mxu1 }
 0x661   : > { %20868 = vmatmul.mubr.msk.bf16.gmra.mxu0 %vm1134_vm0, %v2610_v41  ;;  %v20249_v10 = vadd.f32 %v20248_v42, %v20247_v57  ;;  %v21372_v57 = vld [vmem:[%s29598_s6 + $0x244] ss:$8 sps:$4 sm:$0xff]   ;;  %v21370_v42 = vld [vmem:[%s29598_s6 + $0x240] ss:$8 sps:$4 sm:$0xff]  }
 0x662   : > { %v20250_v45 = vpop.f32.mrf.mxu1 }
 0x664   : > { %v20251_v46 = vpop.f32.mrf.mxu1 }
 0x665   : > { %v20252_v52 = vadd.f32 %v20251_v46, %v20250_v45  ;;  %v21375_v45 = vld [vmem:[%s29598_s6 + $0x254] ss:$8 sps:$4 sm:$0xff]   ;;  %v21373_v46 = vld [vmem:[%s29598_s6 + $0x250] ss:$8 sps:$4 sm:$0xff]  }
 0x666   : > { %v20253_v30 = vpop.f32.mrf.mxu1 }
 0x667   : > { %v2843_v33 = vpack.c.bf16 %v20252_v52, %v20249_v10  ;;  %v21378_v10 = vld [vmem:[%s29598_s6 + $0x264] ss:$8 sps:$4 sm:$0xff]   ;;  %v21376_v52 = vld [vmem:[%s29598_s6 + $0x260] ss:$8 sps:$4 sm:$0xff]  }
 0x668   : > { %v20254_v5 = vpop.f32.mrf.mxu1 }
 0x669   : > { %20879 = vmatprep.mubr.msk.bf16.mxu0 %vm1134_vm0, %v2843_v33  ;;  %v20255_v11 = vadd.f32 %v20254_v5, %v20253_v30  ;;  %v21381_v30 = vld [vmem:[%s29598_s6 + $0x274] ss:$8 sps:$4 sm:$0xff]   ;;  %v21379_v33 = vld [vmem:[%s29598_s6 + $0x270] ss:$8 sps:$4 sm:$0xff]   ;;  %v21384_v5 = vld [vmem:[%s29598_s6 + $0x284] ss:$8 sps:$4 sm:$0xff]  }
 0x66a   : > { %v20256_v8 = vpop.f32.mrf.mxu1 }
 0x66c   : > { %v20257_v3 = vpop.f32.mrf.mxu1 }
 0x66d   : > { %v20258_v14 = vadd.f32 %v20257_v3, %v20256_v8  ;;  %v21382_v8 = vld [vmem:[%s29598_s6 + $0x280] ss:$8 sps:$4 sm:$0xff]   ;;  %v21387_v3 = vld [vmem:[%s29598_s6 + $0x294] ss:$8 sps:$4 sm:$0xff]  }
 0x66e   : > { %v20259_v19 = vpop.f32.mrf.mxu1 }
 0x66f   : > { %v2844_v63 = vpack.c.bf16 %v20258_v14, %v20255_v11  ;;  %v21385_v11 = vld [vmem:[%s29598_s6 + $0x290] ss:$8 sps:$4 sm:$0xff]   ;;  %v21390_v14 = vld [vmem:[%s29598_s6 + $0x2a4] ss:$8 sps:$4 sm:$0xff]  }
 0x670   : > { %v20260_v50 = vpop.f32.mrf.mxu1 }
 0x671   : > { %20880 = vmatmul.mubr.msk.bf16.vlgmr.msra.gmra.mxu0 %vm1134_vm0, %v2844_v63  ;;  %v20261_v32 = vadd.f32 %v20260_v50, %v20259_v19  ;;  %v21388_v19 = vld [vmem:[%s29598_s6 + $0x2a0] ss:$8 sps:$4 sm:$0xff]   ;;  %v21393_v63 = vld [vmem:[%s29598_s6 + $0x2b4] ss:$8 sps:$4 sm:$0xff]   ;;  %v21391_v50 = vld [vmem:[%s29598_s6 + $0x2b0] ss:$8 sps:$4 sm:$0xff]  }
 0x672   : > { %20280 = vmatpush3.bf16.msra.mxu0 %v23655_v47  ;;  %v20262_v29 = vpop.f32.mrf.mxu1 }
 0x673   : > { %20281 = vmatprep.subr.bf16.mxu0 %v23663_v58 }
 0x674   : > { %v20263_v20 = vpop.f32.mrf.mxu1 }
 0x675   : > { %v20264_v4 = vadd.f32 %v20263_v20, %v20262_v29  ;;  %v21394_v29 = vld [vmem:[%s29595_s3 + $0x138] sm:$0xff]   ;;  %v21396_v20 = vld [vmem:[%s29595_s3 + $0x128] sm:$0xff]  }
 0x676   : > { %20282 = vmatpush3.bf16.msra.mxu0 %v23674_v6  ;;  %v20265_v21 = vpop.f32.mrf.mxu1  ;;  %20887 = vmatprep.subr.bf16.mxu1 %v21394_v29 }
 0x677   : > { %v2845_v7 = vpack.c.bf16 %v20264_v4, %v20261_v32  ;;  %20283 = vmatprep.subr.bf16.mxu0 %v23680_v15  ;;  %20888 = vmatpush3.bf16.msra.mxu1 %v21394_v29  ;;  %v21395_v32 = vld [vmem:[%s29595_s3 + $0x130] sm:$0xff]   ;;  %v21397_v4 = vld [vmem:[%s29595_s3 + $0x120] sm:$0xff]  }
 0x678   : > { %v20266_v13 = vpop.f32.mrf.mxu1  ;;  %20889 = vmatprep.subr.bf16.mxu1 %v21395_v32 }
 0x679   : > { %20883 = vmatprep.mubr.msk.bf16.mxu0 %vm1134_vm0, %v2845_v7  ;;  %v20267_v24 = vadd.f32 %v20266_v13, %v20265_v21  ;;  %v21398_v21 = vld [vmem:[%s29595_s3 + $0x158] sm:$0xff]  }
 0x67a   : > { %20284 = vmatpush3.bf16.msra.mxu0 %v23691_v9  ;;  %v20268_v12 = vpop.f32.mrf.mxu1 }
 0x67b   : > { %20285 = vmatprep.subr.bf16.mxu0 %v23697_v23  ;;  %20890 = vmatpush3.bf16.msra.mxu1 %v21395_v32 }
 0x67c   : > { %v20269_v39 = vpop.f32.mrf.mxu1  ;;  %20891 = vmatprep.subr.bf16.mxu1 %v21396_v20 }
 0x67d   : > { %v20270_v0 = vadd.f32 %v20269_v39, %v20268_v12 }
 0x67e   : > { %20286 = vmatpush3.bf16.msra.mxu0 %v23708_v48 }
 0x67f   : > { %v2846_v41 = vpack.c.bf16 %v20270_v0, %v20267_v24  ;;  %20287 = vmatprep.subr.bf16.mxu0 %v23712_v31  ;;  %20892 = vmatpush3.bf16.msra.mxu1 %v21396_v20 }
 0x680   : > { %20893 = vmatprep.subr.bf16.mxu1 %v21397_v4 }
 0x681   : > { %20884 = vmatmul.mubr.msk.bf16.gmra.mxu0 %vm1134_vm0, %v2846_v41 }
 0x682   : > { %20288 = vmatpush3.bf16.msra.mxu0 %v23612_v53  ;;  %3046 = vmatprep.mubr.bf16.mxu0 %v21372_v57 }
 0x683   : > { %20289 = vmatprep.subr.bf16.mxu0 %v23722_v40  ;;  %20894 = vmatpush3.bf16.msra.mxu1 %v21397_v4 }
 0x684   : > { %20903 = vmatprep.subr.bf16.mxu1 %v21398_v21 }
 0x686   : > { %20290 = vmatpush3.bf16.msra.mxu0 %v23728_v62 }
 0x687   : > { %20291 = vmatprep.subr.bf16.mxu0 %v23730_v51 }
 0x68a   : > { %20292 = vmatpush3.bf16.msra.mxu0 %v23605_v43 }
 0x68b   : > { %20293 = vmatprep.subr.bf16.mxu0 %v23734_v55 }
 0x68e   : > { %20294 = vmatpush3.bf16.msra.mxu0 %v23741_v60 }
 0x68f   : > { %20327 = vmatprep.subr.bf16.mxu0 %v23657_v49 }
 0x691   : > { %3047 = vmatmul.mubr.bf16.vlgmr.msra.gmra.mxu0 %v21370_v42 }
 0x692   : > { %20328 = vmatpush3.bf16.msra.mxu0 %v23655_v47  ;;  %3054 = vmatprep.mubr.bf16.mxu0 %v21375_v45 }
 0x693   : > { %20329 = vmatprep.subr.bf16.mxu0 %v23663_v58 }
 0x696   : > { %20330 = vmatpush3.bf16.msra.mxu0 %v23674_v6 }
 0x697   : > { %20331 = vmatprep.subr.bf16.mxu0 %v23680_v15 }
 0x699   : > { %3055 = vmatmul.mubr.bf16.gmra.mxu0 %v21373_v46 }
 0x69a   : > { %20332 = vmatpush3.bf16.msra.mxu0 %v23691_v9  ;;  %3062 = vmatprep.mubr.bf16.mxu0 %v21378_v10 }
 0x69b   : > { %20333 = vmatprep.subr.bf16.mxu0 %v23697_v23 }
 0x69e   : > { %20334 = vmatpush3.bf16.msra.mxu0 %v23708_v48 }
 0x69f   : > { %20335 = vmatprep.subr.bf16.mxu0 %v23712_v31 }
 0x6a1   : > { %3063 = vmatmul.mubr.bf16.gmra.mxu0 %v21376_v52 }
 0x6a2   : > { %20336 = vmatpush3.bf16.msra.mxu0 %v23612_v53  ;;  %3070 = vmatprep.mubr.bf16.mxu0 %v21381_v30 }
 0x6a3   : > { %20337 = vmatprep.subr.bf16.mxu0 %v23722_v40 }
 0x6a6   : > { %20338 = vmatpush3.bf16.msra.mxu0 %v23728_v62 }
 0x6a7   : > { %20339 = vmatprep.subr.bf16.mxu0 %v23730_v51 }
 0x6a9   : > { %3071 = vmatmul.mubr.bf16.gmra.mxu0 %v21379_v33 }
 0x6aa   : > { %20340 = vmatpush3.bf16.msra.mxu0 %v23605_v43  ;;  %3282 = vmatprep.mubr.bf16.mxu0 %v21384_v5 }
 0x6ab   : > { %20341 = vmatprep.subr.bf16.mxu0 %v23734_v55 }
 0x6ae   : > { %20342 = vmatpush3.bf16.msra.mxu0 %v23741_v60 }
 0x6b1   : > { %3283 = vmatmul.mubr.bf16.vlgmr.msra.gmra.mxu0 %v21382_v8 }
 0x6b2   : > { %3290 = vmatprep.mubr.bf16.mxu0 %v21387_v3 }
 0x6b9   : > { %3291 = vmatmul.mubr.bf16.gmra.mxu0 %v21385_v11 }
 0x6ba   : > { %3298 = vmatprep.mubr.bf16.mxu0 %v21390_v14 }
 0x6c1   : > { %3299 = vmatmul.mubr.bf16.gmra.mxu0 %v21388_v19 }
 0x6c2   : > { %3306 = vmatprep.mubr.bf16.mxu0 %v21393_v63 }
 0x6c9   : > { %3307 = vmatmul.mubr.bf16.gmra.mxu0 %v21391_v50 }
 0x711   : > { %v20865_v7 = vpop.f32.mrf.mxu0 }
 0x712   : > { %v2723_v13 = vadd.f32 %v20865_v7, %v24274_v36 }
 0x713   : > { %v2690_v12 = vpop.f32.mrf.mxu0 }
 0x714   : > { %v2721_v24 = vadd.f32 %v2690_v12, %v24276_v38 }
 0x715   : > { %v20866_v39 = vpop.f32.mrf.mxu0 }
 0x716   : > { %v2724_v0 = vadd.f32 %v20866_v39, %v24278_v26 }
 0x717   : > { %v24405_v57 = vpop.f32.mrf.mxu0 }
 0x721   : > { %v20869_v41 = vpop.f32.mrf.mxu0 }
 0x722   : > { %v2727_v42 = vadd.f32 %v20869_v41, %v24282_v44 }
 0x723   : > { %v2706_v45 = vpop.f32.mrf.mxu0 }
 0x724   : > { %v2725_v46 = vadd.f32 %v2706_v45, %v24284_v34 }
 0x725   : > { %v20870_v10 = vpop.f32.mrf.mxu0 }
 0x726   : > { %v2728_v52 = vadd.f32 %v20870_v10, %v24286_v35  ;;  %v21399_v10 = vld [vmem:[%s29595_s3 + $0x150] sm:$0xff]  }
 0x727   : > { %v24410_v30 = vpop.f32.mrf.mxu0 }
 0x731   : > { %v20881_v36 = vpop.f32.mrf.mxu0 }
 0x732   : > { %v24412_v33 = vadd.f32 %v20881_v36, %v2723_v13 }
 0x733   : > { %v2926_v38 = vpop.f32.mrf.mxu0 }
 0x734   : > { %v24414_v5 = vadd.f32 %v2926_v38, %v2721_v24  ;;  %v21400_v38 = vld [vmem:[%s29595_s3 + $0x148] sm:$0xff]  }
 0x735   : > { %v20882_v26 = vpop.f32.mrf.mxu0 }
 0x736   : > { %v24416_v8 = vadd.f32 %v20882_v26, %v2724_v0 }
 0x737   : > { %v24418_v3 = vpop.f32.mrf.mxu0 }
 0x741   : > { %v20885_v44 = vpop.f32.mrf.mxu0 }
 0x742   : > { %v24420_v11 = vadd.f32 %v20885_v44, %v2727_v42 }
 0x743   : > { %v2942_v34 = vpop.f32.mrf.mxu0 }
 0x744   : > { %v24422_v14 = vadd.f32 %v2942_v34, %v2725_v46 }
 0x745   : > { %v20886_v35 = vpop.f32.mrf.mxu0 }
 0x746   : > { %v24424_v19 = vadd.f32 %v20886_v35, %v2728_v52 }
 0x747   : > { %v24426_v63 = vpop.f32.mrf.mxu0 }
 0x751   : > { %v20295_v50 = vpop.f32.mrf.mxu0 }
 0x753   : > { %v20296_v29 = vpop.f32.mrf.mxu0 }
 0x754   : > { %v20297_v4 = vadd.f32 %v20296_v29, %v20295_v50  ;;  %v21401_v29 = vld [vmem:[%s29595_s3 + $0x140] sm:$0xff]  }
 0x755   : > { %v20298_v32 = vpop.f32.mrf.mxu0 }
 0x757   : > { %v20299_v20 = vpop.f32.mrf.mxu0 }
 0x758   : > { %v20300_v7 = vadd.f32 %v20299_v20, %v20298_v32 }
 0x759   : > { %v20301_v13 = vpop.f32.mrf.mxu0 }
 0x75a   : > { %v3079_v12 = vpack.c.bf16 %v20300_v7, %v20297_v4 }
 0x75b   : > { %v20302_v24 = vpop.f32.mrf.mxu0 }
 0x75c   : > { %20895 = vmatprep.mubr.msk.bf16.mxu1 %vm1134_vm0, %v3079_v12  ;;  %v20303_v41 = vadd.f32 %v20302_v24, %v20301_v13 }
 0x75d   : > { %v20304_v39 = vpop.f32.mrf.mxu0 }
 0x75f   : > { %v20305_v0 = vpop.f32.mrf.mxu0 }
 0x760   : > { %v20306_v42 = vadd.f32 %v20305_v0, %v20304_v39 }
 0x761   : > { %v20307_v45 = vpop.f32.mrf.mxu0 }
 0x762   : > { %v3080_v46 = vpack.c.bf16 %v20306_v42, %v20303_v41 }
 0x763   : > { %v20308_v52 = vpop.f32.mrf.mxu0 }
 0x764   : > { %20896 = vmatmul.mubr.msk.bf16.vlgmr.msra.gmra.mxu1 %vm1134_vm0, %v3080_v46  ;;  %v20309_v44 = vadd.f32 %v20308_v52, %v20307_v45 }
 0x765   : > { %20904 = vmatpush3.bf16.msra.mxu1 %v21398_v21  ;;  %v20310_v36 = vpop.f32.mrf.mxu0 }
 0x766   : > { %20905 = vmatprep.subr.bf16.mxu1 %v21399_v10 }
 0x767   : > { %v20311_v26 = vpop.f32.mrf.mxu0 }
 0x768   : > { %v20312_v34 = vadd.f32 %v20311_v26, %v20310_v36 }
 0x769   : > { %20906 = vmatpush3.bf16.msra.mxu1 %v21399_v10  ;;  %v20313_v35 = vpop.f32.mrf.mxu0 }
 0x76a   : > { %v3081_v50 = vpack.c.bf16 %v20312_v34, %v20309_v44  ;;  %20907 = vmatprep.subr.bf16.mxu1 %v21400_v38 }
 0x76b   : > { %v20314_v32 = vpop.f32.mrf.mxu0 }
 0x76c   : > { %20899 = vmatprep.mubr.msk.bf16.mxu1 %vm1134_vm0, %v3081_v50  ;;  %v20315_v4 = vadd.f32 %v20314_v32, %v20313_v35 }
 0x76d   : > { %20908 = vmatpush3.bf16.msra.mxu1 %v21400_v38  ;;  %v20316_v21 = vpop.f32.mrf.mxu0 }
 0x76e   : > { %20909 = vmatprep.subr.bf16.mxu1 %v21401_v29 }
 0x76f   : > { %v20317_v20 = vpop.f32.mrf.mxu0 }
 0x770   : > { %v20318_v7 = vadd.f32 %v20317_v20, %v20316_v21 }
 0x771   : > { %20910 = vmatpush3.bf16.msra.mxu1 %v21401_v29  ;;  %v20343_v13 = vpop.f32.mrf.mxu0 }
 0x772   : > { %v3082_v12 = vpack.c.bf16 %v20318_v7, %v20315_v4  ;;  %20375 = vmatprep.subr.bf16.mxu1 %v23657_v49 }
 0x773   : > { %v20344_v24 = vpop.f32.mrf.mxu0 }
 0x774   : > { %20900 = vmatmul.mubr.msk.bf16.gmra.mxu1 %vm1134_vm0, %v3082_v12  ;;  %v20345_v41 = vadd.f32 %v20344_v24, %v20343_v13 }
 0x775   : > { %v20346_v39 = vpop.f32.mrf.mxu0 }
 0x777   : > { %v20347_v0 = vpop.f32.mrf.mxu0 }
 0x778   : > { %v20348_v42 = vadd.f32 %v20347_v0, %v20346_v39  ;;  %v21404_v0 = vld [vmem:[%s29598_s6 + $0x2c4] ss:$8 sps:$4 sm:$0xff]  }
 0x779   : > { %v20349_v45 = vpop.f32.mrf.mxu0 }
 0x77a   : > { %v3315_v46 = vpack.c.bf16 %v20348_v42, %v20345_v41  ;;  %v21402_v42 = vld [vmem:[%s29598_s6 + $0x2c0] ss:$8 sps:$4 sm:$0xff]  }
 0x77b   : > { %v20350_v10 = vpop.f32.mrf.mxu0 }
 0x77c   : > { %20911 = vmatprep.mubr.msk.bf16.mxu1 %vm1134_vm0, %v3315_v46  ;;  %v20351_v38 = vadd.f32 %v20350_v10, %v20349_v45  ;;  %v21407_v45 = vld [vmem:[%s29598_s6 + $0x2d4] ss:$8 sps:$4 sm:$0xff]   ;;  %v21405_v46 = vld [vmem:[%s29598_s6 + $0x2d0] ss:$8 sps:$4 sm:$0xff]   ;;  %v21410_v10 = vld [vmem:[%s29598_s6 + $0x2e4] ss:$8 sps:$4 sm:$0xff]  }
 0x77d   : > { %v20352_v52 = vpop.f32.mrf.mxu0 }
 0x77f   : > { %v20353_v36 = vpop.f32.mrf.mxu0 }
 0x780   : > { %v20354_v26 = vadd.f32 %v20353_v36, %v20352_v52  ;;  %v21408_v52 = vld [vmem:[%s29598_s6 + $0x2e0] ss:$8 sps:$4 sm:$0xff]   ;;  %v21413_v36 = vld [vmem:[%s29598_s6 + $0x2f4] ss:$8 sps:$4 sm:$0xff]  }
 0x781   : > { %v20355_v44 = vpop.f32.mrf.mxu0 }
 0x782   : > { %v3316_v34 = vpack.c.bf16 %v20354_v26, %v20351_v38  ;;  %v21411_v38 = vld [vmem:[%s29598_s6 + $0x2f0] ss:$8 sps:$4 sm:$0xff]   ;;  %v21416_v26 = vld [vmem:[%s29598_s6 + $0x304] ss:$8 sps:$4 sm:$0xff]  }
 0x783   : > { %v20356_v35 = vpop.f32.mrf.mxu0 }
 0x784   : > { %20912 = vmatmul.mubr.msk.bf16.vlgmr.msra.gmra.mxu1 %vm1134_vm0, %v3316_v34  ;;  %v20357_v29 = vadd.f32 %v20356_v35, %v20355_v44  ;;  %v21414_v44 = vld [vmem:[%s29598_s6 + $0x300] ss:$8 sps:$4 sm:$0xff]   ;;  %v21419_v34 = vld [vmem:[%s29598_s6 + $0x314] ss:$8 sps:$4 sm:$0xff]   ;;  %v21417_v35 = vld [vmem:[%s29598_s6 + $0x310] ss:$8 sps:$4 sm:$0xff]  }
 0x785   : > { %20376 = vmatpush3.bf16.msra.mxu1 %v23655_v47  ;;  %v20358_v50 = vpop.f32.mrf.mxu0 }
 0x786   : > { %20377 = vmatprep.subr.bf16.mxu1 %v23663_v58 }
 0x787   : > { %v20359_v32 = vpop.f32.mrf.mxu0 }
 0x788   : > { %v20360_v21 = vadd.f32 %v20359_v32, %v20358_v50  ;;  %v21422_v50 = vld [vmem:[%s29598_s6 + $0x324] ss:$8 sps:$4 sm:$0xff]   ;;  %v21425_v32 = vld [vmem:[%s29598_s6 + $0x334] ss:$8 sps:$4 sm:$0xff]  }
 0x789   : > { %20378 = vmatpush3.bf16.msra.mxu1 %v23674_v6  ;;  %v20361_v20 = vpop.f32.mrf.mxu0 }
 0x78a   : > { %v3317_v4 = vpack.c.bf16 %v20360_v21, %v20357_v29  ;;  %20379 = vmatprep.subr.bf16.mxu1 %v23680_v15  ;;  %v21420_v29 = vld [vmem:[%s29598_s6 + $0x320] ss:$8 sps:$4 sm:$0xff]   ;;  %v21423_v21 = vld [vmem:[%s29598_s6 + $0x330] ss:$8 sps:$4 sm:$0xff]  }
 0x78b   : > { %v20362_v7 = vpop.f32.mrf.mxu0 }
 0x78c   : > { %20915 = vmatprep.mubr.msk.bf16.mxu1 %vm1134_vm0, %v3317_v4  ;;  %v20363_v12 = vadd.f32 %v20362_v7, %v20361_v20  ;;  %v21426_v20 = vld [vmem:[%s29595_s3 + $0x178] sm:$0xff]   ;;  %v21427_v4 = vld [vmem:[%s29595_s3 + $0x170] sm:$0xff]   ;;  %v21428_v7 = vld [vmem:[%s29595_s3 + $0x168] sm:$0xff]  }
 0x78d   : > { %20380 = vmatpush3.bf16.msra.mxu1 %v23691_v9  ;;  %v20364_v13 = vpop.f32.mrf.mxu0  ;;  %20919 = vmatprep.subr.bf16.mxu0 %v21426_v20 }
 0x78e   : > { %20381 = vmatprep.subr.bf16.mxu1 %v23697_v23  ;;  %20920 = vmatpush3.bf16.msra.mxu0 %v21426_v20 }
 0x78f   : > { %v20365_v24 = vpop.f32.mrf.mxu0  ;;  %20921 = vmatprep.subr.bf16.mxu0 %v21427_v4 }
 0x790   : > { %v20366_v39 = vadd.f32 %v20365_v24, %v20364_v13  ;;  %v21429_v13 = vld [vmem:[%s29595_s3 + $0x160] sm:$0xff]  }
 0x791   : > { %20382 = vmatpush3.bf16.msra.mxu1 %v23708_v48 }
 0x792   : > { %v3318_v41 = vpack.c.bf16 %v20366_v39, %v20363_v12  ;;  %20383 = vmatprep.subr.bf16.mxu1 %v23712_v31  ;;  %20922 = vmatpush3.bf16.msra.mxu0 %v21427_v4  ;;  %v21430_v12 = vld [vmem:[%s29595_s3 + $0x198] sm:$0xff]  }
 0x793   : > { %20923 = vmatprep.subr.bf16.mxu0 %v21428_v7 }
 0x794   : > { %20916 = vmatmul.mubr.msk.bf16.gmra.mxu1 %vm1134_vm0, %v3318_v41 }
 0x795   : > { %20384 = vmatpush3.bf16.msra.mxu1 %v23612_v53  ;;  %3518 = vmatprep.mubr.bf16.mxu1 %v21404_v0 }
 0x796   : > { %20385 = vmatprep.subr.bf16.mxu1 %v23722_v40  ;;  %20924 = vmatpush3.bf16.msra.mxu0 %v21428_v7 }
 0x797   : > { %20925 = vmatprep.subr.bf16.mxu0 %v21429_v13 }
 0x799   : > { %20386 = vmatpush3.bf16.msra.mxu1 %v23728_v62 }
 0x79a   : > { %20387 = vmatprep.subr.bf16.mxu1 %v23730_v51  ;;  %20926 = vmatpush3.bf16.msra.mxu0 %v21429_v13 }
 0x79b   : > { %20935 = vmatprep.subr.bf16.mxu0 %v21430_v12 }
 0x79d   : > { %20388 = vmatpush3.bf16.msra.mxu1 %v23605_v43 }
 0x79e   : > { %20389 = vmatprep.subr.bf16.mxu1 %v23734_v55 }
 0x7a1   : > { %20390 = vmatpush3.bf16.msra.mxu1 %v23741_v60 }
 0x7a2   : > { %20423 = vmatprep.subr.bf16.mxu1 %v23657_v49 }
 0x7a4   : > { %3519 = vmatmul.mubr.bf16.vlgmr.msra.gmra.mxu1 %v21402_v42 }
 0x7a5   : > { %20424 = vmatpush3.bf16.msra.mxu1 %v23655_v47  ;;  %3526 = vmatprep.mubr.bf16.mxu1 %v21407_v45 }
 0x7a6   : > { %20425 = vmatprep.subr.bf16.mxu1 %v23663_v58 }
 0x7a9   : > { %20426 = vmatpush3.bf16.msra.mxu1 %v23674_v6 }
 0x7aa   : > { %20427 = vmatprep.subr.bf16.mxu1 %v23680_v15 }
 0x7ac   : > { %3527 = vmatmul.mubr.bf16.gmra.mxu1 %v21405_v46 }
 0x7ad   : > { %20428 = vmatpush3.bf16.msra.mxu1 %v23691_v9  ;;  %3534 = vmatprep.mubr.bf16.mxu1 %v21410_v10 }
 0x7ae   : > { %20429 = vmatprep.subr.bf16.mxu1 %v23697_v23 }
 0x7b1   : > { %20430 = vmatpush3.bf16.msra.mxu1 %v23708_v48 }
 0x7b2   : > { %20431 = vmatprep.subr.bf16.mxu1 %v23712_v31 }
 0x7b4   : > { %3535 = vmatmul.mubr.bf16.gmra.mxu1 %v21408_v52 }
 0x7b5   : > { %20432 = vmatpush3.bf16.msra.mxu1 %v23612_v53  ;;  %3542 = vmatprep.mubr.bf16.mxu1 %v21413_v36 }
 0x7b6   : > { %20433 = vmatprep.subr.bf16.mxu1 %v23722_v40 }
 0x7b9   : > { %20434 = vmatpush3.bf16.msra.mxu1 %v23728_v62 }
 0x7ba   : > { %20435 = vmatprep.subr.bf16.mxu1 %v23730_v51 }
 0x7bc   : > { %3543 = vmatmul.mubr.bf16.gmra.mxu1 %v21411_v38 }
 0x7bd   : > { %20436 = vmatpush3.bf16.msra.mxu1 %v23605_v43  ;;  %3754 = vmatprep.mubr.bf16.mxu1 %v21416_v26 }
 0x7be   : > { %20437 = vmatprep.subr.bf16.mxu1 %v23734_v55 }
 0x7c1   : > { %20438 = vmatpush3.bf16.msra.mxu1 %v23741_v60 }
 0x7c4   : > { %3755 = vmatmul.mubr.bf16.vlgmr.msra.gmra.mxu1 %v21414_v44 }
 0x7c5   : > { %3762 = vmatprep.mubr.bf16.mxu1 %v21419_v34 }
 0x7cc   : > { %3763 = vmatmul.mubr.bf16.gmra.mxu1 %v21417_v35 }
 0x7cd   : > { %3770 = vmatprep.mubr.bf16.mxu1 %v21422_v50 }
 0x7d4   : > { %3771 = vmatmul.mubr.bf16.gmra.mxu1 %v21420_v29 }
 0x7d5   : > { %3778 = vmatprep.mubr.bf16.mxu1 %v21425_v32 }
 0x7dc   : > { %3779 = vmatmul.mubr.bf16.gmra.mxu1 %v21423_v21 }
 0x824   : > { %v20897_v24 = vpop.f32.mrf.mxu1 }
 0x825   : > { %v3195_v39 = vadd.f32 %v20897_v24, %v24412_v33 }
 0x826   : > { %v3162_v0 = vpop.f32.mrf.mxu1 }
 0x827   : > { %v3193_v41 = vadd.f32 %v3162_v0, %v24414_v5 }
 0x828   : > { %v20898_v42 = vpop.f32.mrf.mxu1 }
 0x829   : > { %v3196_v45 = vadd.f32 %v20898_v42, %v24416_v8 }
 0x82a   : > { %v24543_v46 = vpop.f32.mrf.mxu1 }
 0x834   : > { %v20901_v10 = vpop.f32.mrf.mxu1 }
 0x835   : > { %v3199_v52 = vadd.f32 %v20901_v10, %v24420_v11 }
 0x836   : > { %v3178_v36 = vpop.f32.mrf.mxu1 }
 0x837   : > { %v3197_v38 = vadd.f32 %v3178_v36, %v24422_v14 }
 0x838   : > { %v20902_v26 = vpop.f32.mrf.mxu1 }
 0x839   : > { %v3200_v44 = vadd.f32 %v20902_v26, %v24424_v19 }
 0x83a   : > { %v24548_v34 = vpop.f32.mrf.mxu1 }
 0x844   : > { %v20913_v33 = vpop.f32.mrf.mxu1 }
 0x845   : > { %v24550_v35 = vadd.f32 %v20913_v33, %v3195_v39 }
 0x846   : > { %v3398_v5 = vpop.f32.mrf.mxu1 }
 0x847   : > { %v24552_v50 = vadd.f32 %v3398_v5, %v3193_v41 }
 0x848   : > { %v20914_v8 = vpop.f32.mrf.mxu1 }
 0x849   : > { %v24554_v29 = vadd.f32 %v20914_v8, %v3196_v45  ;;  %v21431_v8 = vld [vmem:[%s29595_s3 + $0x190] sm:$0xff]  }
 0x84a   : > { %v24556_v32 = vpop.f32.mrf.mxu1 }
 0x854   : > { %v20917_v11 = vpop.f32.mrf.mxu1 }
 0x855   : > { %v24558_v21 = vadd.f32 %v20917_v11, %v3199_v52 }
 0x856   : > { %v3414_v14 = vpop.f32.mrf.mxu1 }
 0x857   : > { %v24560_v20 = vadd.f32 %v3414_v14, %v3197_v38 }
 0x858   : > { %v20918_v19 = vpop.f32.mrf.mxu1 }
 0x859   : > { %v24562_v4 = vadd.f32 %v20918_v19, %v3200_v44  ;;  %v21432_v19 = vld [vmem:[%s29595_s3 + $0x188] sm:$0xff]  }
 0x85a   : > { %v24564_v7 = vpop.f32.mrf.mxu1 }
 0x864   : > { %v20391_v13 = vpop.f32.mrf.mxu1 }
 0x866   : > { %v20392_v24 = vpop.f32.mrf.mxu1 }
 0x867   : > { %v20393_v41 = vadd.f32 %v20392_v24, %v20391_v13 }
 0x868   : > { %v20394_v39 = vpop.f32.mrf.mxu1 }
 0x86a   : > { %v20395_v0 = vpop.f32.mrf.mxu1 }
 0x86b   : > { %v20396_v42 = vadd.f32 %v20395_v0, %v20394_v39 }
 0x86c   : > { %v20397_v45 = vpop.f32.mrf.mxu1 }
 0x86d   : > { %v3551_v10 = vpack.c.bf16 %v20396_v42, %v20393_v41  ;;  %v21433_v42 = vld [vmem:[%s29595_s3 + $0x180] sm:$0xff]  }
 0x86e   : > { %v20398_v36 = vpop.f32.mrf.mxu1 }
 0x86f   : > { %20927 = vmatprep.mubr.msk.bf16.mxu0 %vm1134_vm0, %v3551_v10  ;;  %v20399_v38 = vadd.f32 %v20398_v36, %v20397_v45 }
 0x870   : > { %v20400_v52 = vpop.f32.mrf.mxu1 }
 0x872   : > { %v20401_v26 = vpop.f32.mrf.mxu1 }
 0x873   : > { %v20402_v33 = vadd.f32 %v20401_v26, %v20400_v52 }
 0x874   : > { %v20403_v5 = vpop.f32.mrf.mxu1 }
 0x875   : > { %v3552_v44 = vpack.c.bf16 %v20402_v33, %v20399_v38 }
 0x876   : > { %v20404_v11 = vpop.f32.mrf.mxu1 }
 0x877   : > { %20928 = vmatmul.mubr.msk.bf16.vlgmr.msra.gmra.mxu0 %vm1134_vm0, %v3552_v44  ;;  %v20405_v24 = vadd.f32 %v20404_v11, %v20403_v5 }
 0x878   : > { %20936 = vmatpush3.bf16.msra.mxu0 %v21430_v12  ;;  %v20406_v14 = vpop.f32.mrf.mxu1 }
 0x879   : > { %20937 = vmatprep.subr.bf16.mxu0 %v21431_v8 }
 0x87a   : > { %v20407_v13 = vpop.f32.mrf.mxu1 }
 0x87b   : > { %v20408_v39 = vadd.f32 %v20407_v13, %v20406_v14 }
 0x87c   : > { %20938 = vmatpush3.bf16.msra.mxu0 %v21431_v8  ;;  %v20409_v0 = vpop.f32.mrf.mxu1 }
 0x87d   : > { %v3553_v41 = vpack.c.bf16 %v20408_v39, %v20405_v24  ;;  %20939 = vmatprep.subr.bf16.mxu0 %v21432_v19 }
 0x87e   : > { %v20410_v45 = vpop.f32.mrf.mxu1 }
 0x87f   : > { %20931 = vmatprep.mubr.msk.bf16.mxu0 %vm1134_vm0, %v3553_v41  ;;  %v20411_v36 = vadd.f32 %v20410_v45, %v20409_v0 }
 0x880   : > { %20940 = vmatpush3.bf16.msra.mxu0 %v21432_v19  ;;  %v20412_v12 = vpop.f32.mrf.mxu1 }
 0x881   : > { %20941 = vmatprep.subr.bf16.mxu0 %v21433_v42 }
 0x882   : > { %v20413_v10 = vpop.f32.mrf.mxu1 }
 0x883   : > { %v20414_v52 = vadd.f32 %v20413_v10, %v20412_v12 }
 0x884   : > { %20942 = vmatpush3.bf16.msra.mxu0 %v21433_v42  ;;  %v20439_v26 = vpop.f32.mrf.mxu1 }
 0x885   : > { %v3554_v38 = vpack.c.bf16 %v20414_v52, %v20411_v36  ;;  %20471 = vmatprep.subr.bf16.mxu0 %v23657_v49 }
 0x886   : > { %v20440_v33 = vpop.f32.mrf.mxu1 }
 0x887   : > { %20932 = vmatmul.mubr.msk.bf16.gmra.mxu0 %vm1134_vm0, %v3554_v38  ;;  %v20441_v8 = vadd.f32 %v20440_v33, %v20439_v26 }
 0x888   : > { %v20442_v5 = vpop.f32.mrf.mxu1 }
 0x88a   : > { %v20443_v44 = vpop.f32.mrf.mxu1 }
 0x88b   : > { %v20444_v11 = vadd.f32 %v20443_v44, %v20442_v5 }
 0x88c   : > { %v20445_v14 = vpop.f32.mrf.mxu1 }
 0x88d   : > { %v3787_v13 = vpack.c.bf16 %v20444_v11, %v20441_v8 }
 0x88e   : > { %v20446_v19 = vpop.f32.mrf.mxu1 }
 0x88f   : > { %20943 = vmatprep.mubr.msk.bf16.mxu0 %vm1134_vm0, %v3787_v13  ;;  %v20447_v0 = vadd.f32 %v20446_v19, %v20445_v14  ;;  %v21436_v13 = vld [vmem:[%s29598_s6 + $0x344] ss:$8 sps:$4 sm:$0xff]  }
 0x890   : > { %v20448_v24 = vpop.f32.mrf.mxu1 }
 0x892   : > { %v20449_v39 = vpop.f32.mrf.mxu1 }
 0x893   : > { %v20450_v41 = vadd.f32 %v20449_v39, %v20448_v24  ;;  %v21434_v24 = vld [vmem:[%s29598_s6 + $0x340] ss:$8 sps:$4 sm:$0xff]   ;;  %v21439_v39 = vld [vmem:[%s29598_s6 + $0x354] ss:$8 sps:$4 sm:$0xff]  }
 0x894   : > { %v20451_v42 = vpop.f32.mrf.mxu1 }
 0x895   : > { %v3788_v45 = vpack.c.bf16 %v20450_v41, %v20447_v0  ;;  %v21437_v0 = vld [vmem:[%s29598_s6 + $0x350] ss:$8 sps:$4 sm:$0xff]   ;;  %v21442_v41 = vld [vmem:[%s29598_s6 + $0x364] ss:$8 sps:$4 sm:$0xff]  }
 0x896   : > { %v20452_v12 = vpop.f32.mrf.mxu1 }
 0x897   : > { %20944 = vmatmul.mubr.msk.bf16.vlgmr.msra.gmra.mxu0 %vm1134_vm0, %v3788_v45  ;;  %v20453_v36 = vadd.f32 %v20452_v12, %v20451_v42  ;;  %v21440_v42 = vld [vmem:[%s29598_s6 + $0x360] ss:$8 sps:$4 sm:$0xff]   ;;  %v21445_v45 = vld [vmem:[%s29598_s6 + $0x374] ss:$8 sps:$4 sm:$0xff]   ;;  %v21443_v12 = vld [vmem:[%s29598_s6 + $0x370] ss:$8 sps:$4 sm:$0xff]  }
 0x898   : > { %20472 = vmatpush3.bf16.msra.mxu0 %v23655_v47  ;;  %v20454_v10 = vpop.f32.mrf.mxu1 }
 0x899   : > { %20473 = vmatprep.subr.bf16.mxu0 %v23663_v58 }
 0x89a   : > { %v20455_v52 = vpop.f32.mrf.mxu1 }
 0x89b   : > { %v20456_v26 = vadd.f32 %v20455_v52, %v20454_v10  ;;  %v21448_v10 = vld [vmem:[%s29598_s6 + $0x384] ss:$8 sps:$4 sm:$0xff]   ;;  %v21451_v52 = vld [vmem:[%s29598_s6 + $0x394] ss:$8 sps:$4 sm:$0xff]  }
 0x89c   : > { %20474 = vmatpush3.bf16.msra.mxu0 %v23674_v6  ;;  %v20457_v38 = vpop.f32.mrf.mxu1 }
 0x89d   : > { %v3789_v33 = vpack.c.bf16 %v20456_v26, %v20453_v36  ;;  %20475 = vmatprep.subr.bf16.mxu0 %v23680_v15  ;;  %v21446_v36 = vld [vmem:[%s29598_s6 + $0x380] ss:$8 sps:$4 sm:$0xff]   ;;  %v21449_v26 = vld [vmem:[%s29598_s6 + $0x390] ss:$8 sps:$4 sm:$0xff]  }
 0x89e   : > { %v20458_v5 = vpop.f32.mrf.mxu1 }
 0x89f   : > { %20947 = vmatprep.mubr.msk.bf16.mxu0 %vm1134_vm0, %v3789_v33  ;;  %v20459_v8 = vadd.f32 %v20458_v5, %v20457_v38  ;;  %v21454_v38 = vld [vmem:[%s29598_s6 + $0x3a4] ss:$8 sps:$4 sm:$0xff]   ;;  %v21452_v33 = vld [vmem:[%s29598_s6 + $0x3a0] ss:$8 sps:$4 sm:$0xff]   ;;  %v21457_v5 = vld [vmem:[%s29598_s6 + $0x3b4] ss:$8 sps:$4 sm:$0xff]  }
 0x8a0   : > { %20476 = vmatpush3.bf16.msra.mxu0 %v23691_v9  ;;  %v20460_v44 = vpop.f32.mrf.mxu1 }
 0x8a1   : > { %20477 = vmatprep.subr.bf16.mxu0 %v23697_v23 }
 0x8a2   : > { %v20461_v11 = vpop.f32.mrf.mxu1 }
 0x8a3   : > { %v20462_v14 = vadd.f32 %v20461_v11, %v20460_v44  ;;  %v21455_v44 = vld [vmem:[%s29598_s6 + $0x3b0] ss:$8 sps:$4 sm:$0xff]  }
 0x8a4   : > { %20478 = vmatpush3.bf16.msra.mxu0 %v23708_v48  ;;  %v21459_v11 = vld [vmem:[%s29595_s3 + $0x1b0] sm:$0xff]  }
 0x8a5   : > { %v3790_v19 = vpack.c.bf16 %v20462_v14, %v20459_v8  ;;  %20479 = vmatprep.subr.bf16.mxu0 %v23712_v31  ;;  %v21458_v8 = vld [vmem:[%s29595_s3 + $0x1b8] sm:$0xff]   ;;  %v21460_v14 = vld [vmem:[%s29595_s3 + $0x1a8] sm:$0xff]  }
 0x8a6   : > { %20951 = vmatprep.subr.bf16.mxu1 %v21458_v8 }
 0x8a7   : > { %20948 = vmatmul.mubr.msk.bf16.gmra.mxu0 %vm1134_vm0, %v3790_v19  ;;  %20952 = vmatpush3.bf16.msra.mxu1 %v21458_v8  ;;  %v21462_v19 = vld [vmem:[%s29595_s3 + $0x1d8] sm:$0xff]  }
 0x8a8   : > { %20480 = vmatpush3.bf16.msra.mxu0 %v23612_v53  ;;  %3990 = vmatprep.mubr.bf16.mxu0 %v21436_v13  ;;  %v21461_v13 = vld [vmem:[%s29595_s3 + $0x1a0] sm:$0xff]  }
 0x8a9   : > { %20481 = vmatprep.subr.bf16.mxu0 %v23722_v40  ;;  %20953 = vmatprep.subr.bf16.mxu1 %v21459_v11 }
 0x8ab   : > { %20954 = vmatpush3.bf16.msra.mxu1 %v21459_v11 }
 0x8ac   : > { %20482 = vmatpush3.bf16.msra.mxu0 %v23728_v62  ;;  %20955 = vmatprep.subr.bf16.mxu1 %v21460_v14 }
 0x8ad   : > { %20483 = vmatprep.subr.bf16.mxu0 %v23730_v51 }
 0x8af   : > { %20956 = vmatpush3.bf16.msra.mxu1 %v21460_v14 }
 0x8b0   : > { %20484 = vmatpush3.bf16.msra.mxu0 %v23605_v43  ;;  %20957 = vmatprep.subr.bf16.mxu1 %v21461_v13 }
 0x8b1   : > { %20485 = vmatprep.subr.bf16.mxu0 %v23734_v55 }
 0x8b3   : > { %20958 = vmatpush3.bf16.msra.mxu1 %v21461_v13 }
 0x8b4   : > { %20486 = vmatpush3.bf16.msra.mxu0 %v23741_v60  ;;  %20967 = vmatprep.subr.bf16.mxu1 %v21462_v19 }
 0x8b5   : > { %20519 = vmatprep.subr.bf16.mxu0 %v23657_v49 }
 0x8b7   : > { %3991 = vmatmul.mubr.bf16.vlgmr.msra.gmra.mxu0 %v21434_v24 }
 0x8b8   : > { %20520 = vmatpush3.bf16.msra.mxu0 %v23655_v47  ;;  %3998 = vmatprep.mubr.bf16.mxu0 %v21439_v39 }
 0x8b9   : > { %20521 = vmatprep.subr.bf16.mxu0 %v23663_v58 }
 0x8bc   : > { %20522 = vmatpush3.bf16.msra.mxu0 %v23674_v6 }
 0x8bd   : > { %20523 = vmatprep.subr.bf16.mxu0 %v23680_v15 }
 0x8bf   : > { %3999 = vmatmul.mubr.bf16.gmra.mxu0 %v21437_v0 }
 0x8c0   : > { %20524 = vmatpush3.bf16.msra.mxu0 %v23691_v9  ;;  %4006 = vmatprep.mubr.bf16.mxu0 %v21442_v41 }
 0x8c1   : > { %20525 = vmatprep.subr.bf16.mxu0 %v23697_v23 }
 0x8c4   : > { %20526 = vmatpush3.bf16.msra.mxu0 %v23708_v48 }
 0x8c5   : > { %20527 = vmatprep.subr.bf16.mxu0 %v23712_v31 }
 0x8c7   : > { %4007 = vmatmul.mubr.bf16.gmra.mxu0 %v21440_v42 }
 0x8c8   : > { %20528 = vmatpush3.bf16.msra.mxu0 %v23612_v53  ;;  %4014 = vmatprep.mubr.bf16.mxu0 %v21445_v45 }
 0x8c9   : > { %20529 = vmatprep.subr.bf16.mxu0 %v23722_v40 }
 0x8cc   : > { %20530 = vmatpush3.bf16.msra.mxu0 %v23728_v62 }
 0x8cd   : > { %20531 = vmatprep.subr.bf16.mxu0 %v23730_v51 }
 0x8cf   : > { %4015 = vmatmul.mubr.bf16.gmra.mxu0 %v21443_v12 }
 0x8d0   : > { %20532 = vmatpush3.bf16.msra.mxu0 %v23605_v43  ;;  %4226 = vmatprep.mubr.bf16.mxu0 %v21448_v10 }
 0x8d1   : > { %20533 = vmatprep.subr.bf16.mxu0 %v23734_v55 }
 0x8d4   : > { %20534 = vmatpush3.bf16.msra.mxu0 %v23741_v60 }
 0x8d7   : > { %4227 = vmatmul.mubr.bf16.vlgmr.msra.gmra.mxu0 %v21446_v36 }
 0x8d8   : > { %4234 = vmatprep.mubr.bf16.mxu0 %v21451_v52 }
 0x8df   : > { %4235 = vmatmul.mubr.bf16.gmra.mxu0 %v21449_v26 }
 0x8e0   : > { %4242 = vmatprep.mubr.bf16.mxu0 %v21454_v38 }
 0x8e7   : > { %4243 = vmatmul.mubr.bf16.gmra.mxu0 %v21452_v33 }
 0x8e8   : > { %4250 = vmatprep.mubr.bf16.mxu0 %v21457_v5 }
 0x8ef   : > { %4251 = vmatmul.mubr.bf16.gmra.mxu0 %v21455_v44 }
 0x937   : > { %v20929_v24 = vpop.f32.mrf.mxu0 }
 0x938   : > { %v3667_v39 = vadd.f32 %v20929_v24, %v24550_v35 }
 0x939   : > { %v3634_v0 = vpop.f32.mrf.mxu0 }
 0x93a   : > { %v3665_v41 = vadd.f32 %v3634_v0, %v24552_v50 }
 0x93b   : > { %v20930_v42 = vpop.f32.mrf.mxu0 }
 0x93c   : > { %v3668_v45 = vadd.f32 %v20930_v42, %v24554_v29 }
 0x93d   : > { %v24681_v12 = vpop.f32.mrf.mxu0 }
 0x947   : > { %v20933_v10 = vpop.f32.mrf.mxu0 }
 0x948   : > { %v3671_v36 = vadd.f32 %v20933_v10, %v24558_v21 }
 0x949   : > { %v3650_v52 = vpop.f32.mrf.mxu0 }
 0x94a   : > { %v3669_v26 = vadd.f32 %v3650_v52, %v24560_v20 }
 0x94b   : > { %v20934_v38 = vpop.f32.mrf.mxu0 }
 0x94c   : > { %v3672_v33 = vadd.f32 %v20934_v38, %v24562_v4 }
 0x94d   : > { %v24686_v5 = vpop.f32.mrf.mxu0 }
 0x94e   : > { %29604 = vst [vmem:[#allocation3_spill] sm:$0xff] %v24686_v5 }
 0x957   : > { %v20945_v35 = vpop.f32.mrf.mxu0 }
 0x958   : > { %v24688_v44 = vadd.f32 %v20945_v35, %v3667_v39 }
 0x959   : > { %v3870_v50 = vpop.f32.mrf.mxu0 }
 0x95a   : > { %v24690_v8 = vadd.f32 %v3870_v50, %v3665_v41 }
 0x95b   : > { %v20946_v29 = vpop.f32.mrf.mxu0 }
 0x95c   : > { %v24692_v11 = vadd.f32 %v20946_v29, %v3668_v45 }
 0x95d   : > { %v24694_v14 = vpop.f32.mrf.mxu0 }
 0x967   : > { %v20949_v21 = vpop.f32.mrf.mxu0 }
 0x968   : > { %v24696_v13 = vadd.f32 %v20949_v21, %v3671_v36 }
 0x969   : > { %v3886_v20 = vpop.f32.mrf.mxu0 }
 0x96a   : > { %v24698_v24 = vadd.f32 %v3886_v20, %v3669_v26 }
 0x96b   : > { %v20950_v4 = vpop.f32.mrf.mxu0 }
 0x96c   : > { %v24700_v0 = vadd.f32 %v20950_v4, %v3672_v33  ;;  %v21463_v4 = vld [vmem:[%s29595_s3 + $0x1d0] sm:$0xff]  }
 0x96d   : > { %v24702_v42 = vpop.f32.mrf.mxu0 }
 0x96e   : > { %29605 = vst [vmem:[#allocation4_spill] sm:$0xff] %v24702_v42 }
 0x977   : > { %v20487_v39 = vpop.f32.mrf.mxu0 }
 0x979   : > { %v20488_v10 = vpop.f32.mrf.mxu0 }
 0x97a   : > { %v20489_v38 = vadd.f32 %v20488_v10, %v20487_v39  ;;  %v21464_v10 = vld [vmem:[%s29595_s3 + $0x1c8] sm:$0xff]  }
 0x97b   : > { %v20490_v41 = vpop.f32.mrf.mxu0 }
 0x97d   : > { %v20491_v52 = vpop.f32.mrf.mxu0 }
 0x97e   : > { %v20492_v45 = vadd.f32 %v20491_v52, %v20490_v41 }
 0x97f   : > { %v20493_v35 = vpop.f32.mrf.mxu0 }
 0x980   : > { %v4023_v50 = vpack.c.bf16 %v20492_v45, %v20489_v38 }
 0x981   : > { %v20494_v29 = vpop.f32.mrf.mxu0 }
 0x982   : > { %20959 = vmatprep.mubr.msk.bf16.mxu1 %vm1134_vm0, %v4023_v50  ;;  %v20495_v26 = vadd.f32 %v20494_v29, %v20493_v35  ;;  %v21465_v50 = vld [vmem:[%s29595_s3 + $0x1c0] sm:$0xff]  }
 0x983   : > { %v20496_v36 = vpop.f32.mrf.mxu0 }
 0x985   : > { %v20497_v21 = vpop.f32.mrf.mxu0 }
 0x986   : > { %v20498_v20 = vadd.f32 %v20497_v21, %v20496_v36 }
 0x987   : > { %v20499_v5 = vpop.f32.mrf.mxu0 }
 0x988   : > { %v4024_v33 = vpack.c.bf16 %v20498_v20, %v20495_v26 }
 0x989   : > { %v20500_v42 = vpop.f32.mrf.mxu0 }
 0x98a   : > { %20960 = vmatmul.mubr.msk.bf16.vlgmr.msra.gmra.mxu1 %vm1134_vm0, %v4024_v33  ;;  %v20501_v52 = vadd.f32 %v20500_v42, %v20499_v5 }
 0x98b   : > { %20968 = vmatpush3.bf16.msra.mxu1 %v21462_v19  ;;  %v20502_v39 = vpop.f32.mrf.mxu0 }
 0x98c   : > { %20969 = vmatprep.subr.bf16.mxu1 %v21463_v4 }
 0x98d   : > { %v20503_v41 = vpop.f32.mrf.mxu0 }
 0x98e   : > { %v20504_v38 = vadd.f32 %v20503_v41, %v20502_v39 }
 0x98f   : > { %20970 = vmatpush3.bf16.msra.mxu1 %v21463_v4  ;;  %v20505_v45 = vpop.f32.mrf.mxu0 }
 0x990   : > { %v4025_v35 = vpack.c.bf16 %v20504_v38, %v20501_v52  ;;  %20971 = vmatprep.subr.bf16.mxu1 %v21464_v10 }
 0x991   : > { %v20506_v29 = vpop.f32.mrf.mxu0 }
 0x992   : > { %20963 = vmatprep.mubr.msk.bf16.mxu1 %vm1134_vm0, %v4025_v35  ;;  %v20507_v21 = vadd.f32 %v20506_v29, %v20505_v45 }
 0x993   : > { %20972 = vmatpush3.bf16.msra.mxu1 %v21464_v10  ;;  %v20508_v19 = vpop.f32.mrf.mxu0 }
 0x994   : > { %20973 = vmatprep.subr.bf16.mxu1 %v21465_v50 }
 0x995   : > { %v20509_v36 = vpop.f32.mrf.mxu0 }
 0x996   : > { %v20510_v26 = vadd.f32 %v20509_v36, %v20508_v19 }
 0x997   : > { %20974 = vmatpush3.bf16.msra.mxu1 %v21465_v50  ;;  %v20535_v5 = vpop.f32.mrf.mxu0 }
 0x998   : > { %v4026_v42 = vpack.c.bf16 %v20510_v26, %v20507_v21  ;;  %20567 = vmatprep.subr.bf16.mxu1 %v23657_v49 }
 0x999   : > { %v20536_v20 = vpop.f32.mrf.mxu0 }
 0x99a   : > { %20964 = vmatmul.mubr.msk.bf16.gmra.mxu1 %vm1134_vm0, %v4026_v42  ;;  %v20537_v39 = vadd.f32 %v20536_v20, %v20535_v5 }
 0x99b   : > { %v20538_v33 = vpop.f32.mrf.mxu0 }
 0x99d   : > { %v20539_v4 = vpop.f32.mrf.mxu0 }
 0x99e   : > { %v20540_v41 = vadd.f32 %v20539_v4, %v20538_v33 }
 0x99f   : > { %v20541_v52 = vpop.f32.mrf.mxu0 }
 0x9a0   : > { %v4259_v38 = vpack.c.bf16 %v20540_v41, %v20537_v39 }
 0x9a1   : > { %v20542_v10 = vpop.f32.mrf.mxu0 }
 0x9a2   : > { %20975 = vmatprep.mubr.msk.bf16.mxu1 %vm1134_vm0, %v4259_v38  ;;  %v20543_v29 = vadd.f32 %v20542_v10, %v20541_v52 }
 0x9a3   : > { %v20544_v35 = vpop.f32.mrf.mxu0 }
 0x9a5   : > { %v20545_v45 = vpop.f32.mrf.mxu0 }
 0x9a6   : > { %v20546_v50 = vadd.f32 %v20545_v45, %v20544_v35 }
 0x9a7   : > { %v20547_v19 = vpop.f32.mrf.mxu0 }
 0x9a8   : > { %v4260_v36 = vpack.c.bf16 %v20546_v50, %v20543_v29 }
 0x9a9   : > { %v20548_v21 = vpop.f32.mrf.mxu0 }
 0x9aa   : > { %20976 = vmatmul.mubr.msk.bf16.vlgmr.msra.gmra.mxu1 %vm1134_vm0, %v4260_v36  ;;  %v20549_v26 = vadd.f32 %v20548_v21, %v20547_v19 }
 0x9ab   : > { %20568 = vmatpush3.bf16.msra.mxu1 %v23655_v47  ;;  %v20550_v49 = vpop.f32.mrf.mxu0 }
 0x9ac   : > { %20569 = vmatprep.subr.bf16.mxu1 %v23663_v58  ;;  %v21468_v58 = vld [vmem:[%s29598_s6 + $0x3c4] ss:$8 sps:$4 sm:$0xff]  }
 0x9ad   : > { %v20551_v5 = vpop.f32.mrf.mxu0 }
 0x9ae   : > { %v20552_v42 = vadd.f32 %v20551_v5, %v20550_v49 }
 0x9af   : > { %20570 = vmatpush3.bf16.msra.mxu1 %v23674_v6  ;;  %v20553_v20 = vpop.f32.mrf.mxu0 }
 0x9b0   : > { %v4261_v33 = vpack.c.bf16 %v20552_v42, %v20549_v26  ;;  %20571 = vmatprep.subr.bf16.mxu1 %v23680_v15  ;;  %v21466_v15 = vld [vmem:[%s29598_s6 + $0x3c0] ss:$8 sps:$4 sm:$0xff]  }
 0x9b1   : > { %v20554_v4 = vpop.f32.mrf.mxu0 }
 0x9b2   : > { %20979 = vmatprep.mubr.msk.bf16.mxu1 %vm1134_vm0, %v4261_v33  ;;  %v20555_v41 = vadd.f32 %v20554_v4, %v20553_v20 }
 0x9b3   : > { %20572 = vmatpush3.bf16.msra.mxu1 %v23691_v9  ;;  %v20556_v39 = vpop.f32.mrf.mxu0  ;;  %v21469_v9 = vld [vmem:[%s29598_s6 + $0x3d0] ss:$8 sps:$4 sm:$0xff]  }
 0x9b4   : > { %20573 = vmatprep.subr.bf16.mxu1 %v23697_v23  ;;  %v21472_v23 = vld [vmem:[%s29598_s6 + $0x3e0] ss:$8 sps:$4 sm:$0xff]  }
 0x9b5   : > { %v20557_v47 = vpop.f32.mrf.mxu0 }
 0x9b6   : > { %v20558_v52 = vadd.f32 %v20557_v47, %v20556_v39 }
 0x9b7   : > { %20574 = vmatpush3.bf16.msra.mxu1 %v23708_v48  ;;  %v21477_v48 = vld [vmem:[%s29598_s6 + $0x3f4] ss:$8 sps:$4 sm:$0xff]  }
 0x9b8   : > { %v4262_v6 = vpack.c.bf16 %v20558_v52, %v20555_v41  ;;  %20575 = vmatprep.subr.bf16.mxu1 %v23712_v31  ;;  %v21475_v31 = vld [vmem:[%s29598_s6 + $0x3f0] ss:$8 sps:$4 sm:$0xff]  }
 0x9ba   : > { %20980 = vmatmul.mubr.msk.bf16.gmra.mxu1 %vm1134_vm0, %v4262_v6 }
 0x9bb   : > { %20576 = vmatpush3.bf16.msra.mxu1 %v23612_v53  ;;  %4462 = vmatprep.mubr.bf16.mxu1 %v21468_v58  ;;  %v21471_v53 = vld [vmem:[%s29598_s6 + $0x3d4] ss:$8 sps:$4 sm:$0xff]  }
 0x9bc   : > { %20577 = vmatprep.subr.bf16.mxu1 %v23722_v40  ;;  %v21478_v40 = vld [vmem:[%s29595_s3 + $0x1f8] sm:$0xff]  }
 0x9bd   : > { %20983 = vmatprep.subr.bf16.mxu0 %v21478_v40 }
 0x9be   : > { %20984 = vmatpush3.bf16.msra.mxu0 %v21478_v40 }
 0x9bf   : > { %20578 = vmatpush3.bf16.msra.mxu1 %v23728_v62  ;;  %v21479_v62 = vld [vmem:[%s29595_s3 + $0x1f0] sm:$0xff]  }
 0x9c0   : > { %20579 = vmatprep.subr.bf16.mxu1 %v23730_v51  ;;  %20985 = vmatprep.subr.bf16.mxu0 %v21479_v62  ;;  %v21480_v51 = vld [vmem:[%s29595_s3 + $0x1e8] sm:$0xff]  }
 0x9c2   : > { %20986 = vmatpush3.bf16.msra.mxu0 %v21479_v62 }
 0x9c3   : > { %20580 = vmatpush3.bf16.msra.mxu1 %v23605_v43  ;;  %v21474_v43 = vld [vmem:[%s29598_s6 + $0x3e4] ss:$8 sps:$4 sm:$0xff]   ;;  %20987 = vmatprep.subr.bf16.mxu0 %v21480_v51 }
 0x9c4   : > { %20581 = vmatprep.subr.bf16.mxu1 %v23734_v55  ;;  %v21481_v55 = vld [vmem:[%s29595_s3 + $0x1e0] sm:$0xff]  }
 0x9c6   : > { %20988 = vmatpush3.bf16.msra.mxu0 %v21480_v51 }
 0x9c7   : > { %20582 = vmatpush3.bf16.msra.mxu1 %v23741_v60  ;;  %20989 = vmatprep.subr.bf16.mxu0 %v21481_v55 }
 0x9ca   : > { %4463 = vmatmul.mubr.bf16.vlgmr.msra.gmra.mxu1 %v21466_v15  ;;  %20990 = vmatpush3.bf16.msra.mxu0 %v21481_v55 }
 0x9cb   : > { %4470 = vmatprep.mubr.bf16.mxu1 %v21471_v53 }
 0x9d2   : > { %4471 = vmatmul.mubr.bf16.gmra.mxu1 %v21469_v9 }
 0x9d3   : > { %4478 = vmatprep.mubr.bf16.mxu1 %v21474_v43 }
 0x9da   : > { %4479 = vmatmul.mubr.bf16.gmra.mxu1 %v21472_v23 }
 0x9db   : > { %4486 = vmatprep.mubr.bf16.mxu1 %v21477_v48 }
 0x9e2   : > { %4487 = vmatmul.mubr.bf16.gmra.mxu1 %v21475_v31 }
 0xa4a   : > { %v20961_v60 = vpop.f32.mrf.mxu1 }
 0xa4b   : > { %v4139_v38 = vadd.f32 %v20961_v60, %v24688_v44 }
 0xa4c   : > { %v4106_v10 = vpop.f32.mrf.mxu1 }
 0xa4d   : > { %v4137_v35 = vadd.f32 %v4106_v10, %v24690_v8 }
 0xa4e   : > { %v20962_v45 = vpop.f32.mrf.mxu1 }
 0xa4f   : > { %v4140_v29 = vadd.f32 %v20962_v45, %v24692_v11 }
 0xa50   : > { %v24776_v50 = vpop.f32.mrf.mxu1 }
 0xa5a   : > { %v20965_v19 = vpop.f32.mrf.mxu1 }
 0xa5b   : > { %v4143_v36 = vadd.f32 %v20965_v19, %v24696_v13 }
 0xa5c   : > { %v4122_v21 = vpop.f32.mrf.mxu1 }
 0xa5d   : > { %v4141_v49 = vadd.f32 %v4122_v21, %v24698_v24 }
 0xa5e   : > { %v20966_v26 = vpop.f32.mrf.mxu1 }
 0xa5f   : > { %v4144_v5 = vadd.f32 %v20966_v26, %v24700_v0 }
 0xa60   : > { %v24781_v42 = vpop.f32.mrf.mxu1 }
 0xa6a   : > { %v20977_v44 = vpop.f32.mrf.mxu1 }
 0xa6b   : > { %v24783_v20 = vadd.f32 %v20977_v44, %v4139_v38 }
 0xa6c   : > { %v4342_v8 = vpop.f32.mrf.mxu1 }
 0xa6d   : > { %v24785_v33 = vadd.f32 %v4342_v8, %v4137_v35 }
 0xa6e   : > { %v20978_v11 = vpop.f32.mrf.mxu1 }
 0xa6f   : > { %v24787_v4 = vadd.f32 %v20978_v11, %v4140_v29 }
 0xa70   : > { %v24789_v39 = vpop.f32.mrf.mxu1 }
 0xa7a   : > { %v20981_v13 = vpop.f32.mrf.mxu1 }
 0xa7b   : > { %v24791_v41 = vadd.f32 %v20981_v13, %v4143_v36 }
 0xa7c   : > { %v4358_v24 = vpop.f32.mrf.mxu1 }
 0xa7d   : > { %v24793_v47 = vadd.f32 %v4358_v24, %v4141_v49  ;;  %v23456_v24 = vmov 0.0  }
 0xa7e   : > { %v20982_v0 = vpop.f32.mrf.mxu1  ;;  %20999 = vmatprep.subr.bf16.mxu0 %v23456_v24  ;;  %21011 = vmatprep.subr.bf16.mxu1 %v23456_v24 }
 0xa7f   : > { %v24795_v52 = vadd.f32 %v20982_v0, %v4144_v5  ;;  %21019 = vmatprep.mubr.msk.bf16.mxu1 %vm23457_vm1, %v23456_v24  ;;  %v1286_v0 = vadd.f32 %v23880_v59, %v23882_v56 }
 0xa80   : > { %v24797_v58 = vpop.f32.mrf.mxu1 }
 0xa8a   : > { %v20583_v6 = vpop.f32.mrf.mxu1 }
 0xa8c   : > { %v20584_v15 = vpop.f32.mrf.mxu1 }
 0xa8d   : > { %v20585_v43 = vadd.f32 %v20584_v15, %v20583_v6  ;;  %v1542_v6 = vadd.f32 %v24001_v28, %v1286_v0 }
 0xa8e   : > { %v20586_v53 = vpop.f32.mrf.mxu1 }
 0xa8f   : > { %v1778_v15 = vadd.f32 %v24129_v18, %v1542_v6 }
 0xa90   : > { %v20587_v9 = vpop.f32.mrf.mxu1 }
 0xa91   : > { %v20588_v23 = vadd.f32 %v20587_v9, %v20586_v53  ;;  %v2014_v53 = vadd.f32 %v24142_v22, %v1778_v15 }
 0xa92   : > { %v20589_v48 = vpop.f32.mrf.mxu1 }
 0xa93   : > { %v4495_v31 = vpack.c.bf16 %v20588_v23, %v20585_v43  ;;  %v2250_v9 = vadd.f32 %v24267_v16, %v2014_v53 }
 0xa94   : > { %v20590_v40 = vpop.f32.mrf.mxu1 }
 0xa95   : > { %20991 = vmatprep.mubr.msk.bf16.mxu0 %vm1134_vm0, %v4495_v31  ;;  %v20591_v55 = vadd.f32 %v20590_v40, %v20589_v48  ;;  %v2486_v43 = vadd.f32 %v24280_v27, %v2250_v9  ;;  %v1302_v31 = vadd.f32 %v23990_v2, %v23890_v1 }
 0xa96   : > { %v20592_v62 = vpop.f32.mrf.mxu1 }
 0xa97   : > { %v2722_v23 = vadd.f32 %v24405_v57, %v2486_v43  ;;  %v1546_v59 = vadd.f32 %v24012_v54, %v1302_v31 }
 0xa98   : > { %v20593_v51 = vpop.f32.mrf.mxu1 }
 0xa99   : > { %v20594_v60 = vadd.f32 %v20593_v51, %v20592_v62  ;;  %v2958_v48 = vadd.f32 %v24418_v3, %v2722_v23  ;;  %v1782_v28 = vadd.f32 %v24134_v17, %v1546_v59 }
 0xa9a   : > { %v20595_v38 = vpop.f32.mrf.mxu1 }
 0xa9b   : > { %v4496_v10 = vpack.c.bf16 %v20594_v60, %v20591_v55  ;;  %v3194_v40 = vadd.f32 %v24543_v46, %v2958_v48  ;;  %v2018_v22 = vadd.f32 %v24150_v25, %v1782_v28 }
 0xa9c   : > { %v20596_v35 = vpop.f32.mrf.mxu1 }
 0xa9d   : > { %20992 = vmatmul.mubr.msk.bf16.vlgmr.msra.gmra.mxu0 %vm1134_vm0, %v4496_v10  ;;  %v20597_v19 = vadd.f32 %v20596_v35, %v20595_v38  ;;  %v3430_v56 = vadd.f32 %v24556_v32, %v3194_v40  ;;  %v2254_v57 = vadd.f32 %v24272_v61, %v2018_v22  ;;  %v29606_v38 = vld [vmem:[#allocation3_spill] sm:$0xff] }
 0xa9e   : > { %v20598_v45 = vpop.f32.mrf.mxu1 }
 0xa9f   : > { %v3666_v18 = vadd.f32 %v24681_v12, %v3430_v56  ;;  %v2490_v2 = vadd.f32 %v24288_v37, %v2254_v57 }
 0xaa0   : > { %v20599_v29 = vpop.f32.mrf.mxu1 }
 0xaa1   : > { %v20600_v36 = vadd.f32 %v20599_v29, %v20598_v45  ;;  %v3902_v27 = vadd.f32 %v24694_v14, %v3666_v18  ;;  %v2726_v17 = vadd.f32 %v24410_v30, %v2490_v2  ;;  %v29607_v29 = vld [vmem:[#allocation4_spill] sm:$0xff] }
 0xaa2   : > { %v20601_v21 = vpop.f32.mrf.mxu1 }
 0xaa3   : > { %v4497_v49 = vpack.c.bf16 %v20600_v36, %v20597_v19  ;;  %v4138_v1 = vadd.f32 %v24776_v50, %v3902_v27  ;;  %v2962_v61 = vadd.f32 %v24426_v63, %v2726_v17 }
 0xaa4   : > { %v20602_v26 = vpop.f32.mrf.mxu1 }
 0xaa5   : > { %20995 = vmatprep.mubr.msk.bf16.mxu0 %vm1134_vm0, %v4497_v49  ;;  %v20603_v8 = vadd.f32 %v20602_v26, %v20601_v21  ;;  %v4374_v54 = vadd.f32 %v24789_v39, %v4138_v1  ;;  %v3198_v39 = vadd.f32 %v24548_v34, %v2962_v61 }
 0xaa6   : > { %v20604_v5 = vpop.f32.mrf.mxu1 }
 0xaa7   : > { %v3434_v51 = vadd.f32 %v24564_v7, %v3198_v39 }
 0xaa8   : > { %v20605_v44 = vpop.f32.mrf.mxu1 }
 0xaa9   : > { %v20606_v11 = vadd.f32 %v20605_v44, %v20604_v5  ;;  %v3670_v10 = vadd.f32 %v29606_v38, %v3434_v51 }
 0xaab   : > { %v4498_v13 = vpack.c.bf16 %v20606_v11, %v20603_v8  ;;  %v3906_v34 = vadd.f32 %v29607_v29, %v3670_v10 }
 0xaad   : > { %20996 = vmatmul.mubr.msk.bf16.gmra.mxu0 %vm1134_vm0, %v4498_v13  ;;  %v4142_v36 = vadd.f32 %v24781_v42, %v3906_v34 }
 0xaae   : > { %21007 = vmatprep.mubr.msk.bf16.mxu0 %vm23457_vm1, %v23456_v24 }
 0xaaf   : > { %v4378_v7 = vadd.f32 %v24797_v58, %v4142_v36 }
 0xb5d   : > { %v20993_v16 = vpop.f32.mrf.mxu0 }
 0xb5e   : > { %v24836_v25 = vadd.f32 %v20993_v16, %v24783_v20 }
 0xb5f   : > { %v4578_v3 = vpop.f32.mrf.mxu0 }
 0xb60   : > { %v24832_v32 = vadd.f32 %v4578_v3, %v24785_v33  ;;  %v4634_v20 = vmul.f32 %v24836_v25, %v24836_v25 }
 0xb61   : > { %v20994_v46 = vpop.f32.mrf.mxu0 }
 0xb62   : > { %v4632_v50 = vmul.f32 %v24832_v32, %v24832_v32  ;;  %v24844_v37 = vadd.f32 %v20994_v46, %v24787_v4 }
 0xb63   : > { %v4581_v12 = vpop.f32.mrf.mxu0 }
 0xb64   : > { %v24838_v14 = vadd.f32 %v4581_v12, %v4374_v54  ;;  %v4635_v4 = vmul.f32 %v24844_v37, %v24844_v37 }
 0xb66   : > { %v4617_v33 = vadd.f32 %v24838_v14, %v24832_v32  ;;  %v4633_v30 = vmul.f32 %v24838_v14, %v24838_v14 }
 0xb68   : > { %v4618_v62 = vadd.f32 %v4617_v33, %v24836_v25  ;;  %v4640_v63 = vadd.f32 %v4633_v30, %v4632_v50 }
 0xb6a   : > { %v4641_v55 = vadd.f32 %v4640_v63, %v4634_v20  ;;  %v4619_v60 = vadd.f32 %v4618_v62, %v24844_v37 }
 0xb6c   : > { %v4642_v35 = vadd.f32 %v4641_v55, %v4635_v4 }
 0xb6d   : > { %v20997_v45 = vpop.f32.mrf.mxu0 }
 0xb6e   : > { %v4615_v8 = vadd.f32 %v20997_v45, %v24791_v41 }
 0xb6f   : > { %v4594_v19 = vpop.f32.mrf.mxu0 }
 0xb70   : > { %v4613_v21 = vadd.f32 %v4594_v19, %v24793_v47  ;;  %v4638_v53 = vmul.f32 %v4615_v8, %v4615_v8 }
 0xb71   : > { %v20998_v49 = vpop.f32.mrf.mxu0 }
 0xb72   : > { %v4620_v26 = vadd.f32 %v4619_v60, %v4613_v21  ;;  %v4636_v5 = vmul.f32 %v4613_v21, %v4613_v21  ;;  %v4616_v0 = vadd.f32 %v20998_v49, %v24795_v52 }
 0xb73   : > { %v4597_v44 = vpop.f32.mrf.mxu0 }
 0xb74   : > { %v4643_v11 = vadd.f32 %v4642_v35, %v4636_v5  ;;  %v4614_v13 = vadd.f32 %v4597_v44, %v4378_v7  ;;  %v4639_v42 = vmul.f32 %v4616_v0, %v4616_v0 }
 0xb76   : > { %v4621_v6 = vadd.f32 %v4620_v26, %v4614_v13  ;;  %v4637_v15 = vmul.f32 %v4614_v13, %v4614_v13 }
 0xb78   : > { %v4622_v9 = vadd.f32 %v4621_v6, %v4615_v8  ;;  %v4644_v43 = vadd.f32 %v4643_v11, %v4637_v15  ;;  %v21486_v15 = vld [vmem:[%s29596_s4 + $0xf4] ss:$8 sps:$4 sm:$0xff]  }
 0xb7a   : > { %v4623_v23 = vadd.f32 %v4622_v9, %v4616_v0  ;;  %v4645_v47 = vadd.f32 %v4644_v43, %v4638_v53  ;;  %v21489_v53 = vld [vmem:[%s29596_s4 + $0x74] ss:$8 sps:$4 sm:$0xff]   ;;  %v21482_v9 = vld [vmem:[%s29599_s7 + $0x8] sm:$0xff]   ;;  %v21483_v43 = vld [vmem:[%s29599_s7] sm:$0xff]  }
 0xb7c   : > { %v4624_v48 = vrot.slane %v4623_v23, 4  ;;  %v4646_v31 = vadd.f32 %v4645_v47, %v4639_v42  ;;  %v21484_v42 = vld [vmem:[%s29596_s4 + $0xf0] ss:$8 sps:$4 sm:$0xff]   ;;  %v21492_v47 = vld [vmem:[%s29596_s4 + $0xe4] ss:$8 sps:$4 sm:$0xff]  }
 0xb7e   : > { %v4625_v58 = vadd.f32 %v4624_v48, %v4623_v23  ;;  %v4647_v40 = vrot.slane %v4646_v31, 4  ;;  %v21487_v23 = vld [vmem:[%s29596_s4 + $0x70] ss:$8 sps:$4 sm:$0xff]   ;;  %v21495_v48 = vld [vmem:[%s29596_s4 + $0x64] ss:$8 sps:$4 sm:$0xff]  }
 0xb80   : > { %v4626_v59 = vrot.slane %v4625_v58, 2  ;;  %v4648_v56 = vadd.f32 %v4647_v40, %v4646_v31  ;;  %v21490_v31 = vld [vmem:[%s29596_s4 + $0xe0] ss:$8 sps:$4 sm:$0xff]   ;;  %v21498_v40 = vld [vmem:[%s29596_s4 + $0xd4] ss:$8 sps:$4 sm:$0xff]  }
 0xb82   : > { %v4627_v28 = vadd.f32 %v4626_v59, %v4625_v58  ;;  %v4649_v41 = vrot.slane %v4648_v56, 2  ;;  %v21493_v58 = vld [vmem:[%s29596_s4 + $0x60] ss:$8 sps:$4 sm:$0xff]   ;;  %v21501_v59 = vld [vmem:[%s29596_s4 + $0x54] ss:$8 sps:$4 sm:$0xff]  }
 0xb84   : > { %v4628_v18 = vrot.slane %v4627_v28, 1  ;;  %v4650_v22 = vadd.f32 %v4649_v41, %v4648_v56  ;;  %v21496_v56 = vld [vmem:[%s29596_s4 + $0xd0] ss:$8 sps:$4 sm:$0xff]   ;;  %v21504_v41 = vld [vmem:[%s29596_s4 + $0xc4] ss:$8 sps:$4 sm:$0xff]  }
 0xb86   : > { %v4629_v16 = vadd.f32 %v4628_v18, %v4627_v28  ;;  %v4651_v52 = vrot.slane %v4650_v22, 1  ;;  %v21499_v28 = vld [vmem:[%s29596_s4 + $0x50] ss:$8 sps:$4 sm:$0xff]   ;;  %v21507_v18 = vld [vmem:[%s29596_s4 + $0x44] ss:$8 sps:$4 sm:$0xff]  }
 0xb88   : > { %v4631_v27 = vmul.f32 0.015625, %v4629_v16  ;;  %v4652_v57 = vadd.f32 %v4651_v52, %v4650_v22  ;;  %v21502_v22 = vld [vmem:[%s29596_s4 + $0xc0] ss:$8 sps:$4 sm:$0xff]   ;;  %v21510_v52 = vld [vmem:[%s29596_s4 + $0xb4] ss:$8 sps:$4 sm:$0xff]  }
 0xb89   : > { %v21505_v16 = vld [vmem:[%s29596_s4 + $0x40] ss:$8 sps:$4 sm:$0xff]  }
 0xb8a   : > { %v4653_v3 = vmul.f32 0.015625, %v4652_v57  ;;  %v4654_v1 = vmul.f32 %v4631_v27, %v4631_v27  ;;  %v4657_v2 = vsub.f32 %v24832_v32, %v4631_v27  ;;  %v4659_v46 = vsub.f32 %v24836_v25, %v4631_v27  ;;  %v21508_v57 = vld [vmem:[%s29596_s4 + $0xb0] ss:$8 sps:$4 sm:$0xff]  }
 0xb8b   : > { %v4660_v54 = vsub.f32 %v24844_v37, %v4631_v27  ;;  %v4661_v17 = vsub.f32 %v4613_v21, %v4631_v27  ;;  %v4663_v61 = vsub.f32 %v4615_v8, %v4631_v27  ;;  %v4664_v50 = vsub.f32 %v4616_v0, %v4631_v27 }
 0xb8c   : > { %v4655_v12 = vsub.f32 %v4653_v3, %v4654_v1  ;;  %v4658_v39 = vsub.f32 %v24838_v14, %v4631_v27  ;;  %v4662_v62 = vsub.f32 %v4614_v13, %v4631_v27  ;;  %v21513_v27 = vld [vmem:[%s29596_s4 + $0x34] ss:$8 sps:$4 sm:$0xff]   ;;  %v21511_v3 = vld [vmem:[%s29596_s4 + $0x30] ss:$8 sps:$4 sm:$0xff]   ;;  %v21516_v1 = vld [vmem:[%s29596_s4 + $0xa4] ss:$8 sps:$4 sm:$0xff]  }
 0xb8e   : > { %v4656_v33 = vmax.f32 %v4655_v12, 0.0  ;;  %v21520_v12 = vld [vmem:[%s29596_s4 + $0x90] ss:$8 sps:$4 sm:$0xff]  }
 0xb90   : > { %v4665_v30 = vadd.f32 1e-05, %v4656_v33  ;;  %v21528_v33 = vld [vmem:[%s29596_s4 + $0x84] ss:$8 sps:$4 sm:$0xff]  }
 0xb92   : > { %23434 = vrsqrt.f32 %v4665_v30  ;;  %v21526_v30 = vld [vmem:[%s29596_s4 + $0x80] ss:$8 sps:$4 sm:$0xff]  }
 0xb9f   : > { %v23435_v20 = vpop.eup %23434 }
 0xba0   : > { %v4667_v63 = vmul.f32 %v23435_v20, %v4657_v2  ;;  %v4668_v51 = vmul.f32 %v23435_v20, %v4658_v39  ;;  %v4669_v4 = vmul.f32 %v23435_v20, %v4659_v46  ;;  %v4670_v55 = vmul.f32 %v23435_v20, %v4660_v54  ;;  %v21519_v2 = vld [vmem:[%s29596_s4 + $0x24] ss:$8 sps:$4 sm:$0xff]   ;;  %v21514_v46 = vld [vmem:[%s29596_s4 + $0xa0] ss:$8 sps:$4 sm:$0xff]  }
 0xba1   : > { %v4671_v32 = vmul.f32 %v23435_v20, %v4661_v17  ;;  %v4672_v60 = vmul.f32 %v23435_v20, %v4662_v62  ;;  %v4673_v25 = vmul.f32 %v23435_v20, %v4663_v61  ;;  %v4674_v38 = vmul.f32 %v23435_v20, %v4664_v50  ;;  %v21517_v54 = vld [vmem:[%s29596_s4 + $0x20] ss:$8 sps:$4 sm:$0xff]   ;;  %v21522_v17 = vld [vmem:[%s29596_s4 + $0x94] ss:$8 sps:$4 sm:$0xff]   ;;  %v21523_v50 = vld [vmem:[%s29596_s4 + $0x10] ss:$8 sps:$4 sm:$0xff]  }
 0xba2   : > { %vm4675_vm2 = vcmp.ge.f32.partialorder %v4667_v63, 0.0  ;;  %vm4676_vm3 = vcmp.ge.f32.partialorder %v4668_v51, 0.0  ;;  %vm4677_vm4 = vcmp.ge.f32.partialorder %v4669_v4, 0.0  ;;  %vm4678_vm5 = vcmp.ge.f32.partialorder %v4670_v55, 0.0  ;;  %v21525_v61 = vld [vmem:[%s29596_s4 + $0x14] ss:$8 sps:$4 sm:$0xff]  }
 0xba3   : > { %vm4679_vm6 = vcmp.ge.f32.partialorder %v4671_v32, 0.0  ;;  %vm4680_vm7 = vcmp.ge.f32.partialorder %v4672_v60, 0.0  ;;  %vm4681_vm8 = vcmp.ge.f32.partialorder %v4673_v25, 0.0  ;;  %vm4682_vm9 = vcmp.ge.f32.partialorder %v4674_v38, 0.0  ;;  %v21531_v39 = vld [vmem:[%s29596_s4 + $0x4] ss:$8 sps:$4 sm:$0xff]  }
 0xba4   : > { %v4683_v37 = vmul.f32 0.2, %v4667_v63  ;;  %v4684_v14 = vmul.f32 0.2, %v4668_v51  ;;  %v4685_v10 = vmul.f32 0.2, %v4669_v4 }
 0xba5   : > { %v4686_v35 = vmul.f32 0.2, %v4670_v55  ;;  %v4687_v45 = vmul.f32 0.2, %v4671_v32  ;;  %v4688_v29 = vmul.f32 0.2, %v4672_v60 }
 0xba6   : > { %v4689_v34 = vmul.f32 0.2, %v4673_v25  ;;  %v4690_v19 = vmul.f32 0.2, %v4674_v38  ;;  %v4691_v36 = vsel %vm4675_vm2, %v4667_v63, %v4683_v37  ;;  %v4692_v21 = vsel %vm4676_vm3, %v4668_v51, %v4684_v14  ;;  %v21529_v20 = vld [vmem:[%s29596_s4] ss:$8 sps:$4 sm:$0xff]  }
 0xba7   : > { %v4693_v49 = vsel %vm4677_vm4, %v4669_v4, %v4685_v10  ;;  %v4694_v7 = vsel %vm4678_vm5, %v4670_v55, %v4686_v35  ;;  %v4695_v26 = vsel %vm4679_vm6, %v4671_v32, %v4687_v45  ;;  %v4696_v5 = vsel %vm4680_vm7, %v4672_v60, %v4688_v29  ;;  %v21536_v63 = vld [vmem:[%s29596_s4 + $0x174] ss:$8 sps:$4 sm:$0xff]   ;;  %v21534_v14 = vld [vmem:[%s29596_s4 + $0x170] ss:$8 sps:$4 sm:$0xff]   ;;  %v21539_v45 = vld [vmem:[%s29596_s4 + $0x164] ss:$8 sps:$4 sm:$0xff]  }
 0xba8   : > { %v4697_v44 = vsel %vm4681_vm8, %v4673_v25, %v4689_v34  ;;  %v4698_v8 = vsel %vm4682_vm9, %v4674_v38, %v4690_v19  ;;  %v24877_v11 = vpack.c.bf16 %v4692_v21, %v4691_v36  ;;  %v24879_v13 = vpack.c.bf16 %v4694_v7, %v4693_v49  ;;  %v21537_v29 = vld [vmem:[%s29596_s4 + $0x160] ss:$8 sps:$4 sm:$0xff]   ;;  %v21542_v34 = vld [vmem:[%s29596_s4 + $0x154] ss:$8 sps:$4 sm:$0xff]   ;;  %v21540_v19 = vld [vmem:[%s29596_s4 + $0x150] ss:$8 sps:$4 sm:$0xff]  }
 0xba9   : > { %v24881_v0 = vpack.c.bf16 %v4696_v5, %v4695_v26  ;;  %v24883_v6 = vpack.c.bf16 %v4698_v8, %v4697_v44  ;;  %v23458_v62 = vmov 0   ;;  %v21545_v36 = vld [vmem:[%s29596_s4 + $0x144] ss:$8 sps:$4 sm:$0xff]   ;;  %v21543_v21 = vld [vmem:[%s29596_s4 + $0x140] ss:$8 sps:$4 sm:$0xff]   ;;  %v21532_v49 = vld [vmem:[%s29599_s7 + $0x10] sm:$0xff]  }
 0xbaa   : > { %v21533_v7 = vld [vmem:[%s29599_s7 + $0x18] sm:$0xff]   ;;  %vm16639_vm8 = vcmask 0  }
 0xbab   : > { %21000 = vmatpush3.bf16.msra.mxu0 %v24883_v6  ;;  %21012 = vmatpush3.bf16.msra.mxu1 %v24883_v6  ;;  %v21546_v26 = vld [vmem:[%s29596_s4 + $0x130] ss:$8 sps:$4 sm:$0xff]   ;;  %v21548_v5 = vld [vmem:[%s29596_s4 + $0x134] ss:$8 sps:$4 sm:$0xff]  }
 0xbac   : > { %21001 = vmatprep.subr.bf16.mxu0 %v23456_v24  ;;  %21013 = vmatprep.subr.bf16.mxu1 %v23456_v24  ;;  %v21549_v44 = vld [vmem:[%s29596_s4 + $0x1f0] ss:$8 sps:$4 sm:$0xff]   ;;  %v21551_v8 = vld [vmem:[%s29596_s4 + $0x1f4] ss:$8 sps:$4 sm:$0xff]  }
 0xbaf   : > { %21002 = vmatpush3.bf16.msra.mxu0 %v24881_v0  ;;  %21014 = vmatpush3.bf16.msra.mxu1 %v24881_v0 }
 0xbb0   : > { %21003 = vmatprep.subr.bf16.mxu0 %v23456_v24  ;;  %21015 = vmatprep.subr.bf16.mxu1 %v23456_v24 }
 0xbb3   : > { %21004 = vmatpush3.bf16.msra.mxu0 %v24879_v13  ;;  %21016 = vmatpush3.bf16.msra.mxu1 %v24879_v13 }
 0xbb4   : > { %21005 = vmatprep.subr.bf16.mxu0 %v23456_v24  ;;  %21017 = vmatprep.subr.bf16.mxu1 %v23456_v24 }
 0xbb7   : > { %21006 = vmatpush3.bf16.msra.mxu0 %v24877_v11  ;;  %21018 = vmatpush3.bf16.msra.mxu1 %v24877_v11 }
 0xbb8   : > { %4921 = vmatprep.subr.bf16.mxu0 %v21486_v15  ;;  %5044 = vmatprep.subr.bf16.mxu1 %v21489_v53  ;;  %v21552_v15 = vld [vmem:[%s29596_s4 + $0x120] ss:$8 sps:$4 sm:$0xff]   ;;  %v21554_v53 = vld [vmem:[%s29596_s4 + $0x124] ss:$8 sps:$4 sm:$0xff]  }
 0xbba   : > { %21020 = vmatmul.mubr.msk.bf16.vlgmr.msra.gmra.mxu1 %vm1134_vm0, %v21482_v9  ;;  %21008 = vmatmul.mubr.msk.bf16.vlgmr.msra.gmra.mxu0 %vm1134_vm0, %v21483_v43  ;;  %v21555_v9 = vld [vmem:[%s29596_s4 + $0x1e0] ss:$8 sps:$4 sm:$0xff]   ;;  %v21557_v43 = vld [vmem:[%s29596_s4 + $0x1e4] ss:$8 sps:$4 sm:$0xff]  }
 0xbbb   : > { %4922 = vmatpush1.bf16.msra.mxu0 %v21484_v42  ;;  %5045 = vmatpush1.bf16.msra.mxu1 %v21487_v23  ;;  %v21560_v42 = vld [vmem:[%s29596_s4 + $0x114] ss:$8 sps:$4 sm:$0xff]  }
 0xbbc   : > { %4923 = vmatprep.subr.bf16.mxu0 %v21492_v47  ;;  %5046 = vmatprep.subr.bf16.mxu1 %v21495_v48  ;;  %v21563_v23 = vld [vmem:[%s29596_s4 + $0x1d4] ss:$8 sps:$4 sm:$0xff]   ;;  %v21558_v47 = vld [vmem:[%s29596_s4 + $0x110] ss:$8 sps:$4 sm:$0xff]  }
 0xbbd   : > { %4953 = vmatprep.mubr.bf16.mxu0 %v23458_v62  ;;  %5076 = vmatprep.mubr.bf16.mxu1 %v23458_v62  ;;  %v21561_v48 = vld [vmem:[%s29596_s4 + $0x1d0] ss:$8 sps:$4 sm:$0xff]  }
 0xbbf   : > { %4924 = vmatpush1.bf16.msra.mxu0 %v21490_v31  ;;  %5047 = vmatpush1.bf16.msra.mxu1 %v21493_v58  ;;  %v21566_v31 = vld [vmem:[%s29596_s4 + $0x104] ss:$8 sps:$4 sm:$0xff]  }
 0xbc0   : > { %4925 = vmatprep.subr.bf16.mxu0 %v21498_v40  ;;  %5048 = vmatprep.subr.bf16.mxu1 %v21501_v59  ;;  %v21569_v58 = vld [vmem:[%s29596_s4 + $0x1c4] ss:$8 sps:$4 sm:$0xff]   ;;  %v21564_v40 = vld [vmem:[%s29596_s4 + $0x100] ss:$8 sps:$4 sm:$0xff]  }
 0xbc1   : > { %v21567_v59 = vld [vmem:[%s29596_s4 + $0x1c0] ss:$8 sps:$4 sm:$0xff]  }
 0xbc3   : > { %4926 = vmatpush1.bf16.msra.mxu0 %v21496_v56  ;;  %5049 = vmatpush1.bf16.msra.mxu1 %v21499_v28  ;;  %v21572_v56 = vld [vmem:[%s29596_s4 + $0x1b4] ss:$8 sps:$4 sm:$0xff]   ;;  %v21570_v28 = vld [vmem:[%s29596_s4 + $0x1b0] ss:$8 sps:$4 sm:$0xff]  }
 0xbc4   : > { %4927 = vmatprep.subr.bf16.mxu0 %v21504_v41  ;;  %5050 = vmatprep.subr.bf16.mxu1 %v21507_v18  ;;  %v21573_v41 = vld [vmem:[%s29596_s4 + $0x1a0] ss:$8 sps:$4 sm:$0xff]   ;;  %v21575_v18 = vld [vmem:[%s29596_s4 + $0x1a4] ss:$8 sps:$4 sm:$0xff]  }
 0xbc7   : > { %4928 = vmatpush1.bf16.msra.mxu0 %v21502_v22  ;;  %5051 = vmatpush1.bf16.msra.mxu1 %v21505_v16  ;;  %v21576_v22 = vld [vmem:[%s29596_s4 + $0x190] ss:$8 sps:$4 sm:$0xff]   ;;  %v21578_v16 = vld [vmem:[%s29596_s4 + $0x194] ss:$8 sps:$4 sm:$0xff]  }
 0xbc8   : > { %4929 = vmatprep.subr.bf16.mxu0 %v21510_v52  ;;  %5052 = vmatprep.subr.bf16.mxu1 %v21513_v27  ;;  %v21581_v52 = vld [vmem:[%s29596_s4 + $0x184] ss:$8 sps:$4 sm:$0xff]   ;;  %v21579_v27 = vld [vmem:[%s29596_s4 + $0x180] ss:$8 sps:$4 sm:$0xff]  }
 0xbcb   : > { %4930 = vmatpush1.bf16.msra.mxu0 %v21508_v57  ;;  %5053 = vmatpush1.bf16.msra.mxu1 %v21511_v3 }
 0xbcc   : > { %4931 = vmatprep.subr.bf16.mxu0 %v21516_v1  ;;  %5054 = vmatprep.subr.bf16.mxu1 %v21519_v2 }
 0xbcf   : > { %4932 = vmatpush1.bf16.msra.mxu0 %v21514_v46  ;;  %5055 = vmatpush1.bf16.msra.mxu1 %v21517_v54 }
 0xbd0   : > { %4933 = vmatprep.subr.bf16.mxu0 %v21522_v17  ;;  %5056 = vmatprep.subr.bf16.mxu1 %v21525_v61 }
 0xbd3   : > { %4934 = vmatpush1.bf16.msra.mxu0 %v21520_v12  ;;  %5057 = vmatpush1.bf16.msra.mxu1 %v21523_v50 }
 0xbd4   : > { %4935 = vmatprep.subr.bf16.mxu0 %v21528_v33  ;;  %5058 = vmatprep.subr.bf16.mxu1 %v21531_v39 }
 0xbd7   : > { %4936 = vmatpush1.bf16.msra.mxu0 %v21526_v30  ;;  %5059 = vmatpush1.bf16.msra.mxu1 %v21529_v20 }
 0xbd8   : > { %21023 = vmatprep.subr.bf16.mxu0 %v23456_v24  ;;  %5237 = vmatprep.subr.bf16.mxu1 %v21536_v63 }
 0xc7a   : > { %v4816_v51 = vpop.f32.mrf.mxu1  ;;  %v4747_v4 = vpop.f32.mrf.mxu0 }
 0xc7c   : > { %v21021_v55 = vpop.f32.mrf.mxu1  ;;  %v21009_v32 = vpop.f32.mrf.mxu0 }
 0xc7d   : > { %v21582_v32 = vld [vmem:[%s29599_s7 + $0x20] sm:$0xff]  }
 0xc7e   : > { %v4819_v60 = vpop.f32.mrf.mxu1  ;;  %v4750_v25 = vpop.f32.mrf.mxu0 }
 0xc7f   : > { %v4823_v38 = vpack.c.bf16 %v4819_v60, %v4816_v51  ;;  %v4754_v37 = vpack.c.bf16 %v4750_v25, %v4747_v4  ;;  %v21586_v4 = vld [vmem:[%s29596_s4 + $0x274] ss:$8 sps:$4 sm:$0xff]  }
 0xc80   : > { %v21022_v10 = vpop.f32.mrf.mxu1  ;;  %v21010_v35 = vpop.f32.mrf.mxu0 }
 0xc81   : > { %4954 = vmatmul.mubr.bf16.vlgmr.msra.gmra.mxu0 %v4823_v38  ;;  %5077 = vmatmul.mubr.bf16.vlgmr.msra.gmra.mxu1 %v4754_v37  ;;  %v21584_v38 = vld [vmem:[%s29596_s4 + $0x270] ss:$8 sps:$4 sm:$0xff]   ;;  %v21587_v10 = vld [vmem:[%s29596_s4 + $0x260] ss:$8 sps:$4 sm:$0xff]   ;;  %v21592_v35 = vld [vmem:[%s29596_s4 + $0x254] ss:$8 sps:$4 sm:$0xff]  }
 0xc82   : > { %21024 = vmatpush3.bf16.msra.mxu0 %v24883_v6  ;;  %21031 = vmatprep.mubr.msk.bf16.mxu0 %vm23457_vm1, %v23456_v24 }
 0xc83   : > { %21025 = vmatprep.subr.bf16.mxu0 %v23456_v24  ;;  %5238 = vmatpush1.bf16.msra.mxu1 %v21534_v14  ;;  %v21589_v14 = vld [vmem:[%s29596_s4 + $0x264] ss:$8 sps:$4 sm:$0xff]  }
 0xc84   : > { %5239 = vmatprep.subr.bf16.mxu1 %v21539_v45  ;;  %5269 = vmatprep.mubr.bf16.mxu1 %v23458_v62  ;;  %v21590_v45 = vld [vmem:[%s29596_s4 + $0x250] ss:$8 sps:$4 sm:$0xff]  }
 0xc86   : > { %21026 = vmatpush3.bf16.msra.mxu0 %v24881_v0 }
 0xc87   : > { %21027 = vmatprep.subr.bf16.mxu0 %v23456_v24  ;;  %5240 = vmatpush1.bf16.msra.mxu1 %v21537_v29  ;;  %v21583_v29 = vld [vmem:[%s29599_s7 + $0x28] sm:$0xff]  }
 0xc88   : > { %5241 = vmatprep.subr.bf16.mxu1 %v21542_v34  ;;  %v21595_v34 = vld [vmem:[%s29596_s4 + $0x244] ss:$8 sps:$4 sm:$0xff]  }
 0xc8a   : > { %21028 = vmatpush3.bf16.msra.mxu0 %v24879_v13 }
 0xc8b   : > { %21029 = vmatprep.subr.bf16.mxu0 %v23456_v24  ;;  %5242 = vmatpush1.bf16.msra.mxu1 %v21540_v19  ;;  %v21593_v19 = vld [vmem:[%s29596_s4 + $0x240] ss:$8 sps:$4 sm:$0xff]  }
 0xc8c   : > { %5243 = vmatprep.subr.bf16.mxu1 %v21545_v36  ;;  %v21598_v36 = vld [vmem:[%s29596_s4 + $0x234] ss:$8 sps:$4 sm:$0xff]  }
 0xc8e   : > { %21030 = vmatpush3.bf16.msra.mxu0 %v24877_v11 }
 0xc8f   : > { %21035 = vmatprep.subr.bf16.mxu0 %v23456_v24  ;;  %5244 = vmatpush1.bf16.msra.mxu1 %v21543_v21  ;;  %v21601_v21 = vld [vmem:[%s29596_s4 + $0x2f4] ss:$8 sps:$4 sm:$0xff]  }
 0xc90   : > { %5245 = vmatprep.subr.bf16.mxu1 %v21548_v5  ;;  %v21604_v5 = vld [vmem:[%s29596_s4 + $0x224] ss:$8 sps:$4 sm:$0xff]  }
 0xc91   : > { %21032 = vmatmul.mubr.msk.bf16.vlgmr.msra.gmra.mxu0 %vm1134_vm0, %v21532_v49  ;;  %v21596_v49 = vld [vmem:[%s29596_s4 + $0x230] ss:$8 sps:$4 sm:$0xff]  }
 0xc92   : > { %21036 = vmatpush3.bf16.msra.mxu0 %v24883_v6  ;;  %21043 = vmatprep.mubr.msk.bf16.mxu0 %vm23457_vm1, %v23456_v24 }
 0xc93   : > { %21037 = vmatprep.subr.bf16.mxu0 %v23456_v24  ;;  %5246 = vmatpush1.bf16.msra.mxu1 %v21546_v26  ;;  %v21602_v26 = vld [vmem:[%s29596_s4 + $0x220] ss:$8 sps:$4 sm:$0xff]  }
 0xc94   : > { %5247 = vmatprep.subr.bf16.mxu1 %v21554_v53  ;;  %v21613_v53 = vld [vmem:[%s29596_s4 + $0x2d4] ss:$8 sps:$4 sm:$0xff]  }
 0xc96   : > { %21038 = vmatpush3.bf16.msra.mxu0 %v24881_v0 }
 0xc97   : > { %21039 = vmatprep.subr.bf16.mxu0 %v23456_v24  ;;  %5248 = vmatpush1.bf16.msra.mxu1 %v21552_v15  ;;  %v21610_v15 = vld [vmem:[%s29596_s4 + $0x214] ss:$8 sps:$4 sm:$0xff]  }
 0xc98   : > { %5249 = vmatprep.subr.bf16.mxu1 %v21560_v42  ;;  %v21616_v42 = vld [vmem:[%s29596_s4 + $0x204] ss:$8 sps:$4 sm:$0xff]  }
 0xc9a   : > { %21040 = vmatpush3.bf16.msra.mxu0 %v24879_v13 }
 0xc9b   : > { %21041 = vmatprep.subr.bf16.mxu0 %v23456_v24  ;;  %5250 = vmatpush1.bf16.msra.mxu1 %v21558_v47  ;;  %v21614_v47 = vld [vmem:[%s29596_s4 + $0x200] ss:$8 sps:$4 sm:$0xff]  }
 0xc9c   : > { %5251 = vmatprep.subr.bf16.mxu1 %v21566_v31  ;;  %v21622_v31 = vld [vmem:[%s29596_s4 + $0x2b4] ss:$8 sps:$4 sm:$0xff]  }
 0xc9e   : > { %21042 = vmatpush3.bf16.msra.mxu0 %v24877_v11 }
 0xc9f   : > { %5434 = vmatprep.subr.bf16.mxu0 %v21551_v8  ;;  %5252 = vmatpush1.bf16.msra.mxu1 %v21564_v40  ;;  %v21607_v8 = vld [vmem:[%s29596_s4 + $0x2e4] ss:$8 sps:$4 sm:$0xff]   ;;  %v21623_v40 = vld [vmem:[%s29596_s4 + $0x2a0] ss:$8 sps:$4 sm:$0xff]  }
 0xca0   : > { %21047 = vmatprep.subr.bf16.mxu1 %v23456_v24 }
 0xca1   : > { %21044 = vmatmul.mubr.msk.bf16.vlgmr.msra.gmra.mxu0 %vm1134_vm0, %v21533_v7  ;;  %v21599_v7 = vld [vmem:[%s29596_s4 + $0x2f0] ss:$8 sps:$4 sm:$0xff]  }
 0xca2   : > { %5466 = vmatprep.mubr.bf16.mxu0 %v23458_v62  ;;  %5435 = vmatpush1.bf16.msra.mxu0 %v21549_v44  ;;  %v21605_v44 = vld [vmem:[%s29596_s4 + $0x2e0] ss:$8 sps:$4 sm:$0xff]  }
 0xca3   : > { %5436 = vmatprep.subr.bf16.mxu0 %v21557_v43  ;;  %v21611_v43 = vld [vmem:[%s29596_s4 + $0x2d0] ss:$8 sps:$4 sm:$0xff]  }
 0xca6   : > { %5437 = vmatpush1.bf16.msra.mxu0 %v21555_v9  ;;  %v21608_v9 = vld [vmem:[%s29596_s4 + $0x210] ss:$8 sps:$4 sm:$0xff]  }
 0xca7   : > { %5438 = vmatprep.subr.bf16.mxu0 %v21563_v23  ;;  %v21619_v23 = vld [vmem:[%s29596_s4 + $0x2c4] ss:$8 sps:$4 sm:$0xff]  }
 0xcaa   : > { %5439 = vmatpush1.bf16.msra.mxu0 %v21561_v48  ;;  %v21617_v48 = vld [vmem:[%s29596_s4 + $0x2c0] ss:$8 sps:$4 sm:$0xff]  }
 0xcab   : > { %5440 = vmatprep.subr.bf16.mxu0 %v21569_v58  ;;  %v21620_v58 = vld [vmem:[%s29596_s4 + $0x2b0] ss:$8 sps:$4 sm:$0xff]  }
 0xcae   : > { %5441 = vmatpush1.bf16.msra.mxu0 %v21567_v59  ;;  %v21625_v59 = vld [vmem:[%s29596_s4 + $0x2a4] ss:$8 sps:$4 sm:$0xff]  }
 0xcaf   : > { %5442 = vmatprep.subr.bf16.mxu0 %v21572_v56  ;;  %v21626_v56 = vld [vmem:[%s29596_s4 + $0x290] ss:$8 sps:$4 sm:$0xff]  }
 0xcb2   : > { %5443 = vmatpush1.bf16.msra.mxu0 %v21570_v28  ;;  %v21628_v28 = vld [vmem:[%s29596_s4 + $0x294] ss:$8 sps:$4 sm:$0xff]  }
 0xcb3   : > { %5444 = vmatprep.subr.bf16.mxu0 %v21575_v18  ;;  %v21629_v18 = vld [vmem:[%s29596_s4 + $0x280] ss:$8 sps:$4 sm:$0xff]  }
 0xcb6   : > { %5445 = vmatpush1.bf16.msra.mxu0 %v21573_v41  ;;  %v21631_v41 = vld [vmem:[%s29596_s4 + $0x284] ss:$8 sps:$4 sm:$0xff]  }
 0xcb7   : > { %5446 = vmatprep.subr.bf16.mxu0 %v21578_v16 }
 0xcba   : > { %5447 = vmatpush1.bf16.msra.mxu0 %v21576_v22 }
 0xcbb   : > { %5448 = vmatprep.subr.bf16.mxu0 %v21581_v52 }
 0xcbe   : > { %5449 = vmatpush1.bf16.msra.mxu0 %v21579_v27 }
 0xcbf   : > { %21059 = vmatprep.subr.bf16.mxu0 %v23456_v24 }
 0xd41   : > { %v4955_v57 = vpop.f32.mrf.mxu0  ;;  %v5078_v3 = vpop.f32.mrf.mxu1 }
 0xd42   : > { %v25133_v1 = vadd.f32 %v5078_v3, %v4955_v57 }
 0xd43   : > { %v4957_v2 = vpop.f32.mrf.mxu0  ;;  %v5080_v46 = vpop.f32.mrf.mxu1 }
 0xd44   : > { %v25135_v54 = vadd.f32 %v5080_v46, %v4957_v2 }
 0xd45   : > { %v4959_v17 = vpop.f32.mrf.mxu0  ;;  %v5082_v12 = vpop.f32.mrf.mxu1 }
 0xd46   : > { %v25137_v61 = vadd.f32 %v5082_v12, %v4959_v17 }
 0xd47   : > { %v25139_v50 = vpop.f32.mrf.mxu0  ;;  %v25267_v22 = vpop.f32.mrf.mxu1 }
 0xd51   : > { %v5132_v33 = vpop.f32.mrf.mxu0 }
 0xd53   : > { %v21033_v30 = vpop.f32.mrf.mxu0 }
 0xd55   : > { %v5135_v39 = vpop.f32.mrf.mxu0 }
 0xd56   : > { %v5139_v20 = vpack.c.bf16 %v5135_v39, %v5132_v33 }
 0xd57   : > { %v21034_v63 = vpop.f32.mrf.mxu0 }
 0xd58   : > { %5270 = vmatmul.mubr.bf16.vlgmr.msra.gmra.mxu1 %v5139_v20 }
 0xd59   : > { %21048 = vmatpush3.bf16.msra.mxu1 %v24883_v6  ;;  %21055 = vmatprep.mubr.msk.bf16.mxu1 %vm23457_vm1, %v23456_v24 }
 0xd5a   : > { %21049 = vmatprep.subr.bf16.mxu1 %v23456_v24 }
 0xd5d   : > { %21050 = vmatpush3.bf16.msra.mxu1 %v24881_v0 }
 0xd5e   : > { %21051 = vmatprep.subr.bf16.mxu1 %v23456_v24 }
 0xd61   : > { %21052 = vmatpush3.bf16.msra.mxu1 %v24879_v13  ;;  %v5329_v51 = vpop.f32.mrf.mxu0 }
 0xd62   : > { %21053 = vmatprep.subr.bf16.mxu1 %v23456_v24 }
 0xd63   : > { %v21045_v55 = vpop.f32.mrf.mxu0 }
 0xd65   : > { %21054 = vmatpush3.bf16.msra.mxu1 %v24877_v11  ;;  %v5332_v60 = vpop.f32.mrf.mxu0 }
 0xd66   : > { %v5336_v25 = vpack.c.bf16 %v5332_v60, %v5329_v51  ;;  %5631 = vmatprep.subr.bf16.mxu1 %v21586_v4 }
 0xd67   : > { %v21046_v37 = vpop.f32.mrf.mxu0 }
 0xd68   : > { %21056 = vmatmul.mubr.msk.bf16.vlgmr.msra.gmra.mxu1 %vm1134_vm0, %v21582_v32  ;;  %5467 = vmatmul.mubr.bf16.vlgmr.msra.gmra.mxu0 %v5336_v25  ;;  %v21636_v32 = vld [vmem:[%s29596_s4 + $0x374] ss:$8 sps:$4 sm:$0xff]  }
 0xd69   : > { %21060 = vmatpush3.bf16.msra.mxu0 %v24883_v6  ;;  %21067 = vmatprep.mubr.msk.bf16.mxu0 %vm23457_vm1, %v23456_v24  ;;  %v21632_v25 = vld [vmem:[%s29599_s7 + $0x30] sm:$0xff]  }
 0xd6a   : > { %21061 = vmatprep.subr.bf16.mxu0 %v23456_v24  ;;  %5632 = vmatpush1.bf16.msra.mxu1 %v21584_v38 }
 0xd6b   : > { %5633 = vmatprep.subr.bf16.mxu1 %v21589_v14  ;;  %5663 = vmatprep.mubr.bf16.mxu1 %v23458_v62  ;;  %v21634_v14 = vld [vmem:[%s29596_s4 + $0x370] ss:$8 sps:$4 sm:$0xff]  }
 0xd6d   : > { %21062 = vmatpush3.bf16.msra.mxu0 %v24881_v0 }
 0xd6e   : > { %21063 = vmatprep.subr.bf16.mxu0 %v23456_v24  ;;  %5634 = vmatpush1.bf16.msra.mxu1 %v21587_v10 }
 0xd6f   : > { %5635 = vmatprep.subr.bf16.mxu1 %v21592_v35  ;;  %v21639_v35 = vld [vmem:[%s29596_s4 + $0x364] ss:$8 sps:$4 sm:$0xff]  }
 0xd71   : > { %21064 = vmatpush3.bf16.msra.mxu0 %v24879_v13 }
 0xd72   : > { %21065 = vmatprep.subr.bf16.mxu0 %v23456_v24  ;;  %5636 = vmatpush1.bf16.msra.mxu1 %v21590_v45  ;;  %v21637_v45 = vld [vmem:[%s29596_s4 + $0x360] ss:$8 sps:$4 sm:$0xff]  }
 0xd73   : > { %5637 = vmatprep.subr.bf16.mxu1 %v21595_v34  ;;  %v21640_v34 = vld [vmem:[%s29596_s4 + $0x350] ss:$8 sps:$4 sm:$0xff]  }
 0xd75   : > { %21066 = vmatpush3.bf16.msra.mxu0 %v24877_v11 }
 0xd76   : > { %5638 = vmatpush1.bf16.msra.mxu1 %v21593_v19  ;;  %5828 = vmatprep.subr.bf16.mxu0 %v21601_v21  ;;  %v21633_v19 = vld [vmem:[%s29599_s7 + $0x38] sm:$0xff]   ;;  %v21643_v21 = vld [vmem:[%s29596_s4 + $0x340] ss:$8 sps:$4 sm:$0xff]  }
 0xd77   : > { %5639 = vmatprep.subr.bf16.mxu1 %v21598_v36  ;;  %v21645_v36 = vld [vmem:[%s29596_s4 + $0x344] ss:$8 sps:$4 sm:$0xff]  }
 0xd78   : > { %21068 = vmatmul.mubr.msk.bf16.vlgmr.msra.gmra.mxu0 %vm1134_vm0, %v21583_v29  ;;  %v21642_v29 = vld [vmem:[%s29596_s4 + $0x354] ss:$8 sps:$4 sm:$0xff]  }
 0xd79   : > { %5860 = vmatprep.mubr.bf16.mxu0 %v23458_v62  ;;  %5829 = vmatpush1.bf16.msra.mxu0 %v21599_v7  ;;  %v21651_v7 = vld [vmem:[%s29596_s4 + $0x3f4] ss:$8 sps:$4 sm:$0xff]  }
 0xd7a   : > { %5640 = vmatpush1.bf16.msra.mxu1 %v21596_v49  ;;  %5830 = vmatprep.subr.bf16.mxu0 %v21607_v8  ;;  %v21648_v49 = vld [vmem:[%s29596_s4 + $0x334] ss:$8 sps:$4 sm:$0xff]   ;;  %v21654_v8 = vld [vmem:[%s29596_s4 + $0x324] ss:$8 sps:$4 sm:$0xff]  }
 0xd7b   : > { %5641 = vmatprep.subr.bf16.mxu1 %v21604_v5  ;;  %v21649_v5 = vld [vmem:[%s29596_s4 + $0x3f0] ss:$8 sps:$4 sm:$0xff]  }
 0xd7d   : > { %5831 = vmatpush1.bf16.msra.mxu0 %v21605_v44  ;;  %v21652_v44 = vld [vmem:[%s29596_s4 + $0x320] ss:$8 sps:$4 sm:$0xff]  }
 0xd7e   : > { %5642 = vmatpush1.bf16.msra.mxu1 %v21602_v26  ;;  %5832 = vmatprep.subr.bf16.mxu0 %v21613_v53  ;;  %v21646_v26 = vld [vmem:[%s29596_s4 + $0x330] ss:$8 sps:$4 sm:$0xff]   ;;  %v21657_v53 = vld [vmem:[%s29596_s4 + $0x3e4] ss:$8 sps:$4 sm:$0xff]  }
 0xd7f   : > { %5643 = vmatprep.subr.bf16.mxu1 %v21610_v15  ;;  %v21655_v15 = vld [vmem:[%s29596_s4 + $0x3e0] ss:$8 sps:$4 sm:$0xff]  }
 0xd81   : > { %5833 = vmatpush1.bf16.msra.mxu0 %v21611_v43  ;;  %v21663_v43 = vld [vmem:[%s29596_s4 + $0x3d4] ss:$8 sps:$4 sm:$0xff]  }
 0xd82   : > { %5644 = vmatpush1.bf16.msra.mxu1 %v21608_v9  ;;  %5834 = vmatprep.subr.bf16.mxu0 %v21619_v23  ;;  %v21660_v9 = vld [vmem:[%s29596_s4 + $0x314] ss:$8 sps:$4 sm:$0xff]   ;;  %v21661_v23 = vld [vmem:[%s29596_s4 + $0x3d0] ss:$8 sps:$4 sm:$0xff]  }
 0xd83   : > { %5645 = vmatprep.subr.bf16.mxu1 %v21616_v42  ;;  %v21658_v42 = vld [vmem:[%s29596_s4 + $0x310] ss:$8 sps:$4 sm:$0xff]  }
 0xd85   : > { %5835 = vmatpush1.bf16.msra.mxu0 %v21617_v48  ;;  %v21669_v48 = vld [vmem:[%s29596_s4 + $0x3c4] ss:$8 sps:$4 sm:$0xff]  }
 0xd86   : > { %5646 = vmatpush1.bf16.msra.mxu1 %v21614_v47  ;;  %5836 = vmatprep.subr.bf16.mxu0 %v21622_v31  ;;  %v21666_v47 = vld [vmem:[%s29596_s4 + $0x304] ss:$8 sps:$4 sm:$0xff]   ;;  %v21664_v31 = vld [vmem:[%s29596_s4 + $0x300] ss:$8 sps:$4 sm:$0xff]  }
 0xd87   : > { %21071 = vmatprep.subr.bf16.mxu1 %v23456_v24 }
 0xd89   : > { %5837 = vmatpush1.bf16.msra.mxu0 %v21620_v58  ;;  %v21667_v58 = vld [vmem:[%s29596_s4 + $0x3c0] ss:$8 sps:$4 sm:$0xff]  }
 0xd8a   : > { %5838 = vmatprep.subr.bf16.mxu0 %v21625_v59  ;;  %v21670_v59 = vld [vmem:[%s29596_s4 + $0x3b0] ss:$8 sps:$4 sm:$0xff]  }
 0xd8d   : > { %5839 = vmatpush1.bf16.msra.mxu0 %v21623_v40  ;;  %v21672_v40 = vld [vmem:[%s29596_s4 + $0x3b4] ss:$8 sps:$4 sm:$0xff]  }
 0xd8e   : > { %5840 = vmatprep.subr.bf16.mxu0 %v21628_v28  ;;  %v21675_v28 = vld [vmem:[%s29596_s4 + $0x3a4] ss:$8 sps:$4 sm:$0xff]  }
 0xd91   : > { %5841 = vmatpush1.bf16.msra.mxu0 %v21626_v56  ;;  %v21673_v56 = vld [vmem:[%s29596_s4 + $0x3a0] ss:$8 sps:$4 sm:$0xff]  }
 0xd92   : > { %5842 = vmatprep.subr.bf16.mxu0 %v21631_v41  ;;  %v21676_v41 = vld [vmem:[%s29596_s4 + $0x390] ss:$8 sps:$4 sm:$0xff]  }
 0xd95   : > { %5843 = vmatpush1.bf16.msra.mxu0 %v21629_v18  ;;  %v21678_v18 = vld [vmem:[%s29596_s4 + $0x394] ss:$8 sps:$4 sm:$0xff]  }
 0xd96   : > { %21083 = vmatprep.subr.bf16.mxu0 %v23456_v24 }
 0xe18   : > { %v5271_v16 = vpop.f32.mrf.mxu1 }
 0xe19   : > { %v5280_v52 = vadd.f32 %v5271_v16, %v25133_v1  ;;  %v21681_v16 = vld [vmem:[%s29596_s4 + $0x384] ss:$8 sps:$4 sm:$0xff]  }
 0xe1a   : > { %v5273_v27 = vpop.f32.mrf.mxu1 }
 0xe1b   : > { %v5281_v57 = vadd.f32 %v5273_v27, %v25135_v54 }
 0xe1c   : > { %v5275_v3 = vpop.f32.mrf.mxu1 }
 0xe1d   : > { %v5282_v2 = vadd.f32 %v5275_v3, %v25137_v61 }
 0xe1e   : > { %v25272_v46 = vpop.f32.mrf.mxu1 }
 0xe28   : > { %v5526_v17 = vpop.f32.mrf.mxu1  ;;  %v5468_v12 = vpop.f32.mrf.mxu0 }
 0xe29   : > { %v25274_v33 = vadd.f32 %v5468_v12, %v5280_v52  ;;  %v21679_v52 = vld [vmem:[%s29596_s4 + $0x380] ss:$8 sps:$4 sm:$0xff]  }
 0xe2a   : > { %v21057_v30 = vpop.f32.mrf.mxu1  ;;  %v5470_v39 = vpop.f32.mrf.mxu0 }
 0xe2b   : > { %v25276_v20 = vadd.f32 %v5470_v39, %v5281_v57 }
 0xe2c   : > { %v5529_v63 = vpop.f32.mrf.mxu1  ;;  %v5472_v51 = vpop.f32.mrf.mxu0 }
 0xe2d   : > { %v5533_v4 = vpack.c.bf16 %v5529_v63, %v5526_v17  ;;  %v25278_v1 = vadd.f32 %v5472_v51, %v5282_v2 }
 0xe2e   : > { %v21058_v55 = vpop.f32.mrf.mxu1  ;;  %v25286_v54 = vpop.f32.mrf.mxu0 }
 0xe2f   : > { %5664 = vmatmul.mubr.bf16.vlgmr.msra.gmra.mxu1 %v5533_v4 }
 0xe30   : > { %21072 = vmatpush3.bf16.msra.mxu1 %v24883_v6  ;;  %21079 = vmatprep.mubr.msk.bf16.mxu1 %vm23457_vm1, %v23456_v24 }
 0xe31   : > { %21073 = vmatprep.subr.bf16.mxu1 %v23456_v24 }
 0xe34   : > { %21074 = vmatpush3.bf16.msra.mxu1 %v24881_v0 }
 0xe35   : > { %21075 = vmatprep.subr.bf16.mxu1 %v23456_v24 }
 0xe38   : > { %21076 = vmatpush3.bf16.msra.mxu1 %v24879_v13  ;;  %v5723_v61 = vpop.f32.mrf.mxu0 }
 0xe39   : > { %21077 = vmatprep.subr.bf16.mxu1 %v23456_v24 }
 0xe3a   : > { %v21069_v60 = vpop.f32.mrf.mxu0 }
 0xe3c   : > { %21078 = vmatpush3.bf16.msra.mxu1 %v24877_v11  ;;  %v5726_v38 = vpop.f32.mrf.mxu0 }
 0xe3d   : > { %v5730_v37 = vpack.c.bf16 %v5726_v38, %v5723_v61  ;;  %6025 = vmatprep.subr.bf16.mxu1 %v21636_v32 }
 0xe3e   : > { %v21070_v10 = vpop.f32.mrf.mxu0 }
 0xe3f   : > { %21080 = vmatmul.mubr.msk.bf16.vlgmr.msra.gmra.mxu1 %vm1134_vm0, %v21632_v25  ;;  %5861 = vmatmul.mubr.bf16.vlgmr.msra.gmra.mxu0 %v5730_v37  ;;  %v21686_v37 = vld [vmem:[%s29596_s4 + $0x474] ss:$8 sps:$4 sm:$0xff]   ;;  %v21682_v10 = vld [vmem:[%s29599_s7 + $0x40] sm:$0xff]  }
 0xe40   : > { %21084 = vmatpush3.bf16.msra.mxu0 %v24883_v6  ;;  %21091 = vmatprep.mubr.msk.bf16.mxu0 %vm23457_vm1, %v23456_v24 }
 0xe41   : > { %21085 = vmatprep.subr.bf16.mxu0 %v23456_v24  ;;  %6026 = vmatpush1.bf16.msra.mxu1 %v21634_v14 }
 0xe42   : > { %6027 = vmatprep.subr.bf16.mxu1 %v21639_v35  ;;  %6057 = vmatprep.mubr.bf16.mxu1 %v23458_v62 }
 0xe44   : > { %21086 = vmatpush3.bf16.msra.mxu0 %v24881_v0 }
 0xe45   : > { %21087 = vmatprep.subr.bf16.mxu0 %v23456_v24  ;;  %6028 = vmatpush1.bf16.msra.mxu1 %v21637_v45 }
 0xe46   : > { %6029 = vmatprep.subr.bf16.mxu1 %v21642_v29  ;;  %v21684_v29 = vld [vmem:[%s29596_s4 + $0x470] ss:$8 sps:$4 sm:$0xff]  }
 0xe48   : > { %21088 = vmatpush3.bf16.msra.mxu0 %v24879_v13 }
 0xe49   : > { %21089 = vmatprep.subr.bf16.mxu0 %v23456_v24  ;;  %6030 = vmatpush1.bf16.msra.mxu1 %v21640_v34 }
 0xe4a   : > { %6031 = vmatprep.subr.bf16.mxu1 %v21645_v36  ;;  %v21687_v36 = vld [vmem:[%s29596_s4 + $0x460] ss:$8 sps:$4 sm:$0xff]  }
 0xe4c   : > { %21090 = vmatpush3.bf16.msra.mxu0 %v24877_v11 }
 0xe4d   : > { %6032 = vmatpush1.bf16.msra.mxu1 %v21643_v21  ;;  %6222 = vmatprep.subr.bf16.mxu0 %v21651_v7  ;;  %v21692_v21 = vld [vmem:[%s29596_s4 + $0x454] ss:$8 sps:$4 sm:$0xff]   ;;  %v21683_v7 = vld [vmem:[%s29599_s7 + $0x48] sm:$0xff]  }
 0xe4e   : > { %6033 = vmatprep.subr.bf16.mxu1 %v21648_v49  ;;  %v21690_v49 = vld [vmem:[%s29596_s4 + $0x450] ss:$8 sps:$4 sm:$0xff]  }
 0xe4f   : > { %21092 = vmatmul.mubr.msk.bf16.vlgmr.msra.gmra.mxu0 %vm1134_vm0, %v21633_v19  ;;  %v21689_v19 = vld [vmem:[%s29596_s4 + $0x464] ss:$8 sps:$4 sm:$0xff]  }
 0xe50   : > { %6254 = vmatprep.mubr.bf16.mxu0 %v23458_v62  ;;  %6223 = vmatpush1.bf16.msra.mxu0 %v21649_v5  ;;  %v21693_v5 = vld [vmem:[%s29596_s4 + $0x440] ss:$8 sps:$4 sm:$0xff]  }
 0xe51   : > { %6034 = vmatpush1.bf16.msra.mxu1 %v21646_v26  ;;  %6224 = vmatprep.subr.bf16.mxu0 %v21657_v53  ;;  %v21695_v26 = vld [vmem:[%s29596_s4 + $0x444] ss:$8 sps:$4 sm:$0xff]   ;;  %v21699_v53 = vld [vmem:[%s29596_s4 + $0x4f0] ss:$8 sps:$4 sm:$0xff]  }
 0xe52   : > { %6035 = vmatprep.subr.bf16.mxu1 %v21654_v8  ;;  %v21701_v8 = vld [vmem:[%s29596_s4 + $0x4f4] ss:$8 sps:$4 sm:$0xff]  }
 0xe54   : > { %6225 = vmatpush1.bf16.msra.mxu0 %v21655_v15  ;;  %v21696_v15 = vld [vmem:[%s29596_s4 + $0x430] ss:$8 sps:$4 sm:$0xff]  }
 0xe55   : > { %6036 = vmatpush1.bf16.msra.mxu1 %v21652_v44  ;;  %6226 = vmatprep.subr.bf16.mxu0 %v21663_v43  ;;  %v21698_v44 = vld [vmem:[%s29596_s4 + $0x434] ss:$8 sps:$4 sm:$0xff]   ;;  %v21704_v43 = vld [vmem:[%s29596_s4 + $0x424] ss:$8 sps:$4 sm:$0xff]  }
 0xe56   : > { %6037 = vmatprep.subr.bf16.mxu1 %v21660_v9  ;;  %v21702_v9 = vld [vmem:[%s29596_s4 + $0x420] ss:$8 sps:$4 sm:$0xff]  }
 0xe58   : > { %6227 = vmatpush1.bf16.msra.mxu0 %v21661_v23  ;;  %v21707_v23 = vld [vmem:[%s29596_s4 + $0x4e4] ss:$8 sps:$4 sm:$0xff]  }
 0xe59   : > { %6038 = vmatpush1.bf16.msra.mxu1 %v21658_v42  ;;  %6228 = vmatprep.subr.bf16.mxu0 %v21669_v48  ;;  %v21705_v42 = vld [vmem:[%s29596_s4 + $0x4e0] ss:$8 sps:$4 sm:$0xff]   ;;  %v21713_v48 = vld [vmem:[%s29596_s4 + $0x4d4] ss:$8 sps:$4 sm:$0xff]  }
 0xe5a   : > { %6039 = vmatprep.subr.bf16.mxu1 %v21666_v47  ;;  %v21710_v47 = vld [vmem:[%s29596_s4 + $0x414] ss:$8 sps:$4 sm:$0xff]  }
 0xe5c   : > { %6229 = vmatpush1.bf16.msra.mxu0 %v21667_v58  ;;  %v21711_v58 = vld [vmem:[%s29596_s4 + $0x4d0] ss:$8 sps:$4 sm:$0xff]  }
 0xe5d   : > { %6040 = vmatpush1.bf16.msra.mxu1 %v21664_v31  ;;  %6230 = vmatprep.subr.bf16.mxu0 %v21672_v40  ;;  %v21708_v31 = vld [vmem:[%s29596_s4 + $0x410] ss:$8 sps:$4 sm:$0xff]   ;;  %v21716_v40 = vld [vmem:[%s29596_s4 + $0x404] ss:$8 sps:$4 sm:$0xff]  }
 0xe5e   : > { %21095 = vmatprep.subr.bf16.mxu1 %v23456_v24 }
 0xe60   : > { %6231 = vmatpush1.bf16.msra.mxu0 %v21670_v59  ;;  %v21719_v59 = vld [vmem:[%s29596_s4 + $0x4c4] ss:$8 sps:$4 sm:$0xff]  }
 0xe61   : > { %6232 = vmatprep.subr.bf16.mxu0 %v21675_v28  ;;  %v21717_v28 = vld [vmem:[%s29596_s4 + $0x4c0] ss:$8 sps:$4 sm:$0xff]  }
 0xe64   : > { %6233 = vmatpush1.bf16.msra.mxu0 %v21673_v56  ;;  %v21714_v56 = vld [vmem:[%s29596_s4 + $0x400] ss:$8 sps:$4 sm:$0xff]  }
 0xe65   : > { %6234 = vmatprep.subr.bf16.mxu0 %v21678_v18  ;;  %v21720_v18 = vld [vmem:[%s29596_s4 + $0x4b0] ss:$8 sps:$4 sm:$0xff]  }
 0xe68   : > { %6235 = vmatpush1.bf16.msra.mxu0 %v21676_v41  ;;  %v21722_v41 = vld [vmem:[%s29596_s4 + $0x4b4] ss:$8 sps:$4 sm:$0xff]  }
 0xe69   : > { %6236 = vmatprep.subr.bf16.mxu0 %v21681_v16  ;;  %v21723_v16 = vld [vmem:[%s29596_s4 + $0x4a0] ss:$8 sps:$4 sm:$0xff]  }
 0xe6c   : > { %6237 = vmatpush1.bf16.msra.mxu0 %v21679_v52  ;;  %v21725_v52 = vld [vmem:[%s29596_s4 + $0x4a4] ss:$8 sps:$4 sm:$0xff]  }
 0xe6d   : > { %21107 = vmatprep.subr.bf16.mxu0 %v23456_v24 }
 0xeef   : > { %v5665_v27 = vpop.f32.mrf.mxu1 }
 0xef0   : > { %v5674_v57 = vadd.f32 %v5665_v27, %v25274_v33  ;;  %v21726_v27 = vld [vmem:[%s29596_s4 + $0x490] ss:$8 sps:$4 sm:$0xff]  }
 0xef1   : > { %v5667_v3 = vpop.f32.mrf.mxu1 }
 0xef2   : > { %v5675_v2 = vadd.f32 %v5667_v3, %v25276_v20  ;;  %v21731_v3 = vld [vmem:[%s29596_s4 + $0x484] ss:$8 sps:$4 sm:$0xff]  }
 0xef3   : > { %v5669_v17 = vpop.f32.mrf.mxu1 }
 0xef4   : > { %v5676_v12 = vadd.f32 %v5669_v17, %v25278_v1 }
 0xef5   : > { %v25411_v30 = vpop.f32.mrf.mxu1 }
 0xeff   : > { %v5920_v39 = vpop.f32.mrf.mxu1  ;;  %v5862_v63 = vpop.f32.mrf.mxu0 }
 0xf00   : > { %v25413_v51 = vadd.f32 %v5862_v63, %v5674_v57  ;;  %v21728_v57 = vld [vmem:[%s29596_s4 + $0x494] ss:$8 sps:$4 sm:$0xff]  }
 0xf01   : > { %v21081_v4 = vpop.f32.mrf.mxu1  ;;  %v5864_v55 = vpop.f32.mrf.mxu0 }
 0xf02   : > { %v25415_v61 = vadd.f32 %v5864_v55, %v5675_v2  ;;  %v21729_v2 = vld [vmem:[%s29596_s4 + $0x480] ss:$8 sps:$4 sm:$0xff]  }
 0xf03   : > { %v5923_v32 = vpop.f32.mrf.mxu1  ;;  %v5866_v60 = vpop.f32.mrf.mxu0 }
 0xf04   : > { %v5927_v25 = vpack.c.bf16 %v5923_v32, %v5920_v39  ;;  %v25417_v33 = vadd.f32 %v5866_v60, %v5676_v12 }
 0xf05   : > { %v21082_v38 = vpop.f32.mrf.mxu1  ;;  %v25425_v20 = vpop.f32.mrf.mxu0 }
 0xf06   : > { %6058 = vmatmul.mubr.bf16.vlgmr.msra.gmra.mxu1 %v5927_v25 }
 0xf07   : > { %21096 = vmatpush3.bf16.msra.mxu1 %v24883_v6  ;;  %21103 = vmatprep.mubr.msk.bf16.mxu1 %vm23457_vm1, %v23456_v24 }
 0xf08   : > { %21097 = vmatprep.subr.bf16.mxu1 %v23456_v24 }
 0xf0b   : > { %21098 = vmatpush3.bf16.msra.mxu1 %v24881_v0 }
 0xf0c   : > { %21099 = vmatprep.subr.bf16.mxu1 %v23456_v24 }
 0xf0f   : > { %21100 = vmatpush3.bf16.msra.mxu1 %v24879_v13  ;;  %v6117_v1 = vpop.f32.mrf.mxu0 }
 0xf10   : > { %21101 = vmatprep.subr.bf16.mxu1 %v23456_v24 }
 0xf11   : > { %v21093_v14 = vpop.f32.mrf.mxu0 }
 0xf13   : > { %21102 = vmatpush3.bf16.msra.mxu1 %v24877_v11  ;;  %v6120_v35 = vpop.f32.mrf.mxu0 }
 0xf14   : > { %v6124_v45 = vpack.c.bf16 %v6120_v35, %v6117_v1  ;;  %6419 = vmatprep.subr.bf16.mxu1 %v21686_v37 }
 0xf15   : > { %v21094_v34 = vpop.f32.mrf.mxu0 }
 0xf16   : > { %21104 = vmatmul.mubr.msk.bf16.vlgmr.msra.gmra.mxu1 %vm1134_vm0, %v21682_v10  ;;  %6255 = vmatmul.mubr.bf16.vlgmr.msra.gmra.mxu0 %v6124_v45  ;;  %v21736_v34 = vld [vmem:[%s29596_s4 + $0x574] ss:$8 sps:$4 sm:$0xff]  }
 0xf17   : > { %21108 = vmatpush3.bf16.msra.mxu0 %v24883_v6  ;;  %21115 = vmatprep.mubr.msk.bf16.mxu0 %vm23457_vm1, %v23456_v24 }
 0xf18   : > { %21109 = vmatprep.subr.bf16.mxu0 %v23456_v24  ;;  %6420 = vmatpush1.bf16.msra.mxu1 %v21684_v29 }
 0xf19   : > { %6421 = vmatprep.subr.bf16.mxu1 %v21689_v19  ;;  %6451 = vmatprep.mubr.bf16.mxu1 %v23458_v62 }
 0xf1b   : > { %21110 = vmatpush3.bf16.msra.mxu0 %v24881_v0 }
 0xf1c   : > { %21111 = vmatprep.subr.bf16.mxu0 %v23456_v24  ;;  %6422 = vmatpush1.bf16.msra.mxu1 %v21687_v36  ;;  %v21732_v36 = vld [vmem:[%s29599_s7 + $0x50] sm:$0xff]  }
 0xf1d   : > { %6423 = vmatprep.subr.bf16.mxu1 %v21692_v21 }
 0xf1f   : > { %21112 = vmatpush3.bf16.msra.mxu0 %v24879_v13 }
 0xf20   : > { %21113 = vmatprep.subr.bf16.mxu0 %v23456_v24  ;;  %6424 = vmatpush1.bf16.msra.mxu1 %v21690_v49 }
 0xf21   : > { %6425 = vmatprep.subr.bf16.mxu1 %v21695_v26 }
 0xf23   : > { %21114 = vmatpush3.bf16.msra.mxu0 %v24877_v11 }
 0xf24   : > { %6426 = vmatpush1.bf16.msra.mxu1 %v21693_v5  ;;  %6616 = vmatprep.subr.bf16.mxu0 %v21701_v8  ;;  %v21739_v5 = vld [vmem:[%s29596_s4 + $0x564] ss:$8 sps:$4 sm:$0xff]   ;;  %v21742_v8 = vld [vmem:[%s29596_s4 + $0x554] ss:$8 sps:$4 sm:$0xff]  }
 0xf25   : > { %6427 = vmatprep.subr.bf16.mxu1 %v21698_v44  ;;  %v21737_v44 = vld [vmem:[%s29596_s4 + $0x560] ss:$8 sps:$4 sm:$0xff]  }
 0xf26   : > { %21116 = vmatmul.mubr.msk.bf16.vlgmr.msra.gmra.mxu0 %vm1134_vm0, %v21683_v7  ;;  %v21734_v7 = vld [vmem:[%s29596_s4 + $0x570] ss:$8 sps:$4 sm:$0xff]  }
 0xf27   : > { %6648 = vmatprep.mubr.bf16.mxu0 %v23458_v62  ;;  %6617 = vmatpush1.bf16.msra.mxu0 %v21699_v53  ;;  %v21733_v53 = vld [vmem:[%s29599_s7 + $0x58] sm:$0xff]  }
 0xf28   : > { %6428 = vmatpush1.bf16.msra.mxu1 %v21696_v15  ;;  %6618 = vmatprep.subr.bf16.mxu0 %v21707_v23  ;;  %v21740_v15 = vld [vmem:[%s29596_s4 + $0x550] ss:$8 sps:$4 sm:$0xff]   ;;  %v21751_v23 = vld [vmem:[%s29596_s4 + $0x5f4] ss:$8 sps:$4 sm:$0xff]  }
 0xf29   : > { %6429 = vmatprep.subr.bf16.mxu1 %v21704_v43  ;;  %v21743_v43 = vld [vmem:[%s29596_s4 + $0x540] ss:$8 sps:$4 sm:$0xff]  }
 0xf2b   : > { %6619 = vmatpush1.bf16.msra.mxu0 %v21705_v42  ;;  %v21748_v42 = vld [vmem:[%s29596_s4 + $0x534] ss:$8 sps:$4 sm:$0xff]  }
 0xf2c   : > { %6430 = vmatpush1.bf16.msra.mxu1 %v21702_v9  ;;  %6620 = vmatprep.subr.bf16.mxu0 %v21713_v48  ;;  %v21745_v9 = vld [vmem:[%s29596_s4 + $0x544] ss:$8 sps:$4 sm:$0xff]   ;;  %v21749_v48 = vld [vmem:[%s29596_s4 + $0x5f0] ss:$8 sps:$4 sm:$0xff]  }
 0xf2d   : > { %6431 = vmatprep.subr.bf16.mxu1 %v21710_v47  ;;  %v21746_v47 = vld [vmem:[%s29596_s4 + $0x530] ss:$8 sps:$4 sm:$0xff]  }
 0xf2f   : > { %6621 = vmatpush1.bf16.msra.mxu0 %v21711_v58  ;;  %v21754_v58 = vld [vmem:[%s29596_s4 + $0x524] ss:$8 sps:$4 sm:$0xff]  }
 0xf30   : > { %6432 = vmatpush1.bf16.msra.mxu1 %v21708_v31  ;;  %6622 = vmatprep.subr.bf16.mxu0 %v21719_v59  ;;  %v21752_v31 = vld [vmem:[%s29596_s4 + $0x520] ss:$8 sps:$4 sm:$0xff]   ;;  %v21757_v59 = vld [vmem:[%s29596_s4 + $0x5e4] ss:$8 sps:$4 sm:$0xff]  }
 0xf31   : > { %6433 = vmatprep.subr.bf16.mxu1 %v21716_v40  ;;  %v21755_v40 = vld [vmem:[%s29596_s4 + $0x5e0] ss:$8 sps:$4 sm:$0xff]  }
 0xf33   : > { %6623 = vmatpush1.bf16.msra.mxu0 %v21717_v28  ;;  %v21763_v28 = vld [vmem:[%s29596_s4 + $0x5d4] ss:$8 sps:$4 sm:$0xff]  }
 0xf34   : > { %6434 = vmatpush1.bf16.msra.mxu1 %v21714_v56  ;;  %6624 = vmatprep.subr.bf16.mxu0 %v21722_v41  ;;  %v21760_v56 = vld [vmem:[%s29596_s4 + $0x514] ss:$8 sps:$4 sm:$0xff]   ;;  %v21758_v41 = vld [vmem:[%s29596_s4 + $0x510] ss:$8 sps:$4 sm:$0xff]  }
 0xf35   : > { %21119 = vmatprep.subr.bf16.mxu1 %v23456_v24 }
 0xf37   : > { %6625 = vmatpush1.bf16.msra.mxu0 %v21720_v18  ;;  %v21761_v18 = vld [vmem:[%s29596_s4 + $0x5d0] ss:$8 sps:$4 sm:$0xff]  }
 0xf38   : > { %6626 = vmatprep.subr.bf16.mxu0 %v21725_v52  ;;  %v21769_v52 = vld [vmem:[%s29596_s4 + $0x5c4] ss:$8 sps:$4 sm:$0xff]  }
 0xf3b   : > { %6627 = vmatpush1.bf16.msra.mxu0 %v21723_v16  ;;  %v21766_v16 = vld [vmem:[%s29596_s4 + $0x504] ss:$8 sps:$4 sm:$0xff]  }
 0xf3c   : > { %6628 = vmatprep.subr.bf16.mxu0 %v21728_v57  ;;  %v21767_v57 = vld [vmem:[%s29596_s4 + $0x5c0] ss:$8 sps:$4 sm:$0xff]  }
 0xf3f   : > { %6629 = vmatpush1.bf16.msra.mxu0 %v21726_v27  ;;  %v21764_v27 = vld [vmem:[%s29596_s4 + $0x500] ss:$8 sps:$4 sm:$0xff]  }
 0xf40   : > { %6630 = vmatprep.subr.bf16.mxu0 %v21731_v3  ;;  %v21772_v3 = vld [vmem:[%s29596_s4 + $0x5b4] ss:$8 sps:$4 sm:$0xff]  }
 0xf43   : > { %6631 = vmatpush1.bf16.msra.mxu0 %v21729_v2  ;;  %v21770_v2 = vld [vmem:[%s29596_s4 + $0x5b0] ss:$8 sps:$4 sm:$0xff]  }
 0xf44   : > { %21131 = vmatprep.subr.bf16.mxu0 %v23456_v24 }
 0xfc6   : > { %v6059_v17 = vpop.f32.mrf.mxu1 }
 0xfc7   : > { %v6068_v12 = vadd.f32 %v6059_v17, %v25413_v51  ;;  %v21773_v17 = vld [vmem:[%s29596_s4 + $0x5a0] ss:$8 sps:$4 sm:$0xff]  }
 0xfc8   : > { %v6061_v39 = vpop.f32.mrf.mxu1 }
 0xfc9   : > { %v6069_v63 = vadd.f32 %v6061_v39, %v25415_v61  ;;  %v21776_v39 = vld [vmem:[%s29596_s4 + $0x590] ss:$8 sps:$4 sm:$0xff]  }
 0xfca   : > { %v6063_v4 = vpop.f32.mrf.mxu1 }
 0xfcb   : > { %v6070_v55 = vadd.f32 %v6063_v4, %v25417_v33  ;;  %v21781_v4 = vld [vmem:[%s29596_s4 + $0x584] ss:$8 sps:$4 sm:$0xff]  }
 0xfcc   : > { %v25550_v32 = vpop.f32.mrf.mxu1 }
 0xfd6   : > { %v6314_v60 = vpop.f32.mrf.mxu1  ;;  %v6256_v25 = vpop.f32.mrf.mxu0 }
 0xfd7   : > { %v25552_v38 = vadd.f32 %v6256_v25, %v6068_v12  ;;  %v21775_v12 = vld [vmem:[%s29596_s4 + $0x5a4] ss:$8 sps:$4 sm:$0xff]  }
 0xfd8   : > { %v21105_v1 = vpop.f32.mrf.mxu1  ;;  %v6258_v37 = vpop.f32.mrf.mxu0 }
 0xfd9   : > { %v25554_v14 = vadd.f32 %v6258_v37, %v6069_v63  ;;  %v21778_v63 = vld [vmem:[%s29596_s4 + $0x594] ss:$8 sps:$4 sm:$0xff]  }
 0xfda   : > { %v6317_v10 = vpop.f32.mrf.mxu1  ;;  %v6260_v35 = vpop.f32.mrf.mxu0 }
 0xfdb   : > { %v6321_v45 = vpack.c.bf16 %v6317_v10, %v6314_v60  ;;  %v25556_v51 = vadd.f32 %v6260_v35, %v6070_v55  ;;  %v21779_v55 = vld [vmem:[%s29596_s4 + $0x580] ss:$8 sps:$4 sm:$0xff]  }
 0xfdc   : > { %v21106_v29 = vpop.f32.mrf.mxu1  ;;  %v25564_v61 = vpop.f32.mrf.mxu0 }
 0xfdd   : > { %6452 = vmatmul.mubr.bf16.vlgmr.msra.gmra.mxu1 %v6321_v45 }
 0xfde   : > { %21120 = vmatpush3.bf16.msra.mxu1 %v24883_v6  ;;  %21127 = vmatprep.mubr.msk.bf16.mxu1 %vm23457_vm1, %v23456_v24 }
 0xfdf   : > { %21121 = vmatprep.subr.bf16.mxu1 %v23456_v24 }
 0xfe2   : > { %21122 = vmatpush3.bf16.msra.mxu1 %v24881_v0 }
 0xfe3   : > { %21123 = vmatprep.subr.bf16.mxu1 %v23456_v24 }
 0xfe6   : > { %21124 = vmatpush3.bf16.msra.mxu1 %v24879_v13  ;;  %v6511_v33 = vpop.f32.mrf.mxu0 }
 0xfe7   : > { %21125 = vmatprep.subr.bf16.mxu1 %v23456_v24 }
 0xfe8   : > { %v21117_v19 = vpop.f32.mrf.mxu0 }
 0xfea   : > { %21126 = vmatpush3.bf16.msra.mxu1 %v24877_v11  ;;  %v6514_v21 = vpop.f32.mrf.mxu0 }
 0xfeb   : > { %v6518_v49 = vpack.c.bf16 %v6514_v21, %v6511_v33  ;;  %6813 = vmatprep.subr.bf16.mxu1 %v21736_v34 }
 0xfec   : > { %v21118_v26 = vpop.f32.mrf.mxu0 }
 0xfed   : > { %21128 = vmatmul.mubr.msk.bf16.vlgmr.msra.gmra.mxu1 %vm1134_vm0, %v21732_v36  ;;  %6649 = vmatmul.mubr.bf16.vlgmr.msra.gmra.mxu0 %v6518_v49 }
 0xfee   : > { %21132 = vmatpush3.bf16.msra.mxu0 %v24883_v6  ;;  %21139 = vmatprep.mubr.msk.bf16.mxu0 %vm23457_vm1, %v23456_v24 }
 0xfef   : > { %21133 = vmatprep.subr.bf16.mxu0 %v23456_v24  ;;  %6814 = vmatpush1.bf16.msra.mxu1 %v21734_v7 }
 0xff0   : > { %6815 = vmatprep.subr.bf16.mxu1 %v21739_v5  ;;  %6845 = vmatprep.mubr.bf16.mxu1 %v23458_v62 }
 0xff2   : > { %21134 = vmatpush3.bf16.msra.mxu0 %v24881_v0 }
 0xff3   : > { %21135 = vmatprep.subr.bf16.mxu0 %v23456_v24  ;;  %6816 = vmatpush1.bf16.msra.mxu1 %v21737_v44  ;;  %v21786_v44 = vld [vmem:[%s29596_s4 + $0x674] ss:$8 sps:$4 sm:$0xff]  }
 0xff4   : > { %6817 = vmatprep.subr.bf16.mxu1 %v21742_v8 }
 0xff6   : > { %21136 = vmatpush3.bf16.msra.mxu0 %v24879_v13 }
 0xff7   : > { %21137 = vmatprep.subr.bf16.mxu0 %v23456_v24  ;;  %6818 = vmatpush1.bf16.msra.mxu1 %v21740_v15  ;;  %v21782_v15 = vld [vmem:[%s29599_s7 + $0x60] sm:$0xff]  }
 0xff8   : > { %6819 = vmatprep.subr.bf16.mxu1 %v21745_v9 }
 0xffa   : > { %21138 = vmatpush3.bf16.msra.mxu0 %v24877_v11 }
 0xffb   : > { %6820 = vmatpush1.bf16.msra.mxu1 %v21743_v43  ;;  %7010 = vmatprep.subr.bf16.mxu0 %v21751_v23  ;;  %v21784_v43 = vld [vmem:[%s29596_s4 + $0x670] ss:$8 sps:$4 sm:$0xff]   ;;  %v21789_v23 = vld [vmem:[%s29596_s4 + $0x664] ss:$8 sps:$4 sm:$0xff]  }
 0xffc   : > { %6821 = vmatprep.subr.bf16.mxu1 %v21748_v42 }
 0xffd   : > { %21140 = vmatmul.mubr.msk.bf16.vlgmr.msra.gmra.mxu0 %vm1134_vm0, %v21733_v53 }
 0xffe   : > { %7042 = vmatprep.mubr.bf16.mxu0 %v23458_v62  ;;  %7011 = vmatpush1.bf16.msra.mxu0 %v21749_v48  ;;  %v21792_v48 = vld [vmem:[%s29596_s4 + $0x654] ss:$8 sps:$4 sm:$0xff]  }
 0xfff   : > { %6822 = vmatpush1.bf16.msra.mxu1 %v21746_v47  ;;  %7012 = vmatprep.subr.bf16.mxu0 %v21757_v59  ;;  %v21787_v47 = vld [vmem:[%s29596_s4 + $0x660] ss:$8 sps:$4 sm:$0xff]  }
0x1000   : > { %6823 = vmatprep.subr.bf16.mxu1 %v21754_v58  ;;  %v21783_v58 = vld [vmem:[%s29599_s7 + $0x68] sm:$0xff]  }
0x1001   : > { %v21793_v59 = vld [vmem:[%s29596_s4 + $0x640] ss:$8 sps:$4 sm:$0xff]  }
0x1002   : > { %7013 = vmatpush1.bf16.msra.mxu0 %v21755_v40  ;;  %v21795_v40 = vld [vmem:[%s29596_s4 + $0x644] ss:$8 sps:$4 sm:$0xff]  }
0x1003   : > { %6824 = vmatpush1.bf16.msra.mxu1 %v21752_v31  ;;  %7014 = vmatprep.subr.bf16.mxu0 %v21763_v28  ;;  %v21790_v31 = vld [vmem:[%s29596_s4 + $0x650] ss:$8 sps:$4 sm:$0xff]   ;;  %v21801_v28 = vld [vmem:[%s29596_s4 + $0x6f4] ss:$8 sps:$4 sm:$0xff]  }
0x1004   : > { %6825 = vmatprep.subr.bf16.mxu1 %v21760_v56  ;;  %v21798_v56 = vld [vmem:[%s29596_s4 + $0x634] ss:$8 sps:$4 sm:$0xff]  }
0x1006   : > { %7015 = vmatpush1.bf16.msra.mxu0 %v21761_v18  ;;  %v21799_v18 = vld [vmem:[%s29596_s4 + $0x6f0] ss:$8 sps:$4 sm:$0xff]  }
0x1007   : > { %6826 = vmatpush1.bf16.msra.mxu1 %v21758_v41  ;;  %7016 = vmatprep.subr.bf16.mxu0 %v21769_v52  ;;  %v21796_v41 = vld [vmem:[%s29596_s4 + $0x630] ss:$8 sps:$4 sm:$0xff]   ;;  %v21804_v52 = vld [vmem:[%s29596_s4 + $0x624] ss:$8 sps:$4 sm:$0xff]  }
0x1008   : > { %6827 = vmatprep.subr.bf16.mxu1 %v21766_v16  ;;  %v21802_v16 = vld [vmem:[%s29596_s4 + $0x620] ss:$8 sps:$4 sm:$0xff]  }
0x100a   : > { %7017 = vmatpush1.bf16.msra.mxu0 %v21767_v57  ;;  %v21807_v57 = vld [vmem:[%s29596_s4 + $0x6e4] ss:$8 sps:$4 sm:$0xff]  }
0x100b   : > { %6828 = vmatpush1.bf16.msra.mxu1 %v21764_v27  ;;  %7018 = vmatprep.subr.bf16.mxu0 %v21772_v3  ;;  %v21805_v27 = vld [vmem:[%s29596_s4 + $0x6e0] ss:$8 sps:$4 sm:$0xff]   ;;  %v21810_v3 = vld [vmem:[%s29596_s4 + $0x614] ss:$8 sps:$4 sm:$0xff]  }
0x100c   : > { %21143 = vmatprep.subr.bf16.mxu1 %v23456_v24 }
0x100e   : > { %7019 = vmatpush1.bf16.msra.mxu0 %v21770_v2  ;;  %v21813_v2 = vld [vmem:[%s29596_s4 + $0x6d4] ss:$8 sps:$4 sm:$0xff]  }
0x100f   : > { %7020 = vmatprep.subr.bf16.mxu0 %v21775_v12  ;;  %v21811_v12 = vld [vmem:[%s29596_s4 + $0x6d0] ss:$8 sps:$4 sm:$0xff]  }
0x1012   : > { %7021 = vmatpush1.bf16.msra.mxu0 %v21773_v17  ;;  %v21808_v17 = vld [vmem:[%s29596_s4 + $0x610] ss:$8 sps:$4 sm:$0xff]  }
0x1013   : > { %7022 = vmatprep.subr.bf16.mxu0 %v21778_v63  ;;  %v21819_v63 = vld [vmem:[%s29596_s4 + $0x6c4] ss:$8 sps:$4 sm:$0xff]  }
0x1016   : > { %7023 = vmatpush1.bf16.msra.mxu0 %v21776_v39  ;;  %v21816_v39 = vld [vmem:[%s29596_s4 + $0x604] ss:$8 sps:$4 sm:$0xff]  }
0x1017   : > { %7024 = vmatprep.subr.bf16.mxu0 %v21781_v4  ;;  %v21814_v4 = vld [vmem:[%s29596_s4 + $0x600] ss:$8 sps:$4 sm:$0xff]  }
0x101a   : > { %7025 = vmatpush1.bf16.msra.mxu0 %v21779_v55  ;;  %v21817_v55 = vld [vmem:[%s29596_s4 + $0x6c0] ss:$8 sps:$4 sm:$0xff]  }
0x101b   : > { %21155 = vmatprep.subr.bf16.mxu0 %v23456_v24 }
0x109d   : > { %v6453_v60 = vpop.f32.mrf.mxu1 }
0x109e   : > { %v6462_v25 = vadd.f32 %v6453_v60, %v25552_v38  ;;  %v21822_v60 = vld [vmem:[%s29596_s4 + $0x6b4] ss:$8 sps:$4 sm:$0xff]  }
0x109f   : > { %v6455_v1 = vpop.f32.mrf.mxu1 }
0x10a0   : > { %v6463_v37 = vadd.f32 %v6455_v1, %v25554_v14  ;;  %v21823_v1 = vld [vmem:[%s29596_s4 + $0x6a0] ss:$8 sps:$4 sm:$0xff]  }
0x10a1   : > { %v6457_v10 = vpop.f32.mrf.mxu1 }
0x10a2   : > { %v6464_v35 = vadd.f32 %v6457_v10, %v25556_v51  ;;  %v21826_v10 = vld [vmem:[%s29596_s4 + $0x690] ss:$8 sps:$4 sm:$0xff]  }
0x10a3   : > { %v25689_v45 = vpop.f32.mrf.mxu1 }
0x10ad   : > { %v6708_v29 = vpop.f32.mrf.mxu1  ;;  %v6650_v33 = vpop.f32.mrf.mxu0 }
0x10ae   : > { %v25691_v34 = vadd.f32 %v6650_v33, %v6462_v25  ;;  %v21820_v25 = vld [vmem:[%s29596_s4 + $0x6b0] ss:$8 sps:$4 sm:$0xff]   ;;  %v21829_v33 = vld [vmem:[%s29596_s4 + $0x680] ss:$8 sps:$4 sm:$0xff]  }
0x10af   : > { %v21129_v19 = vpop.f32.mrf.mxu1  ;;  %v6652_v36 = vpop.f32.mrf.mxu0 }
0x10b0   : > { %v25693_v21 = vadd.f32 %v6652_v36, %v6463_v37  ;;  %v21825_v37 = vld [vmem:[%s29596_s4 + $0x6a4] ss:$8 sps:$4 sm:$0xff]  }
0x10b1   : > { %v6711_v49 = vpop.f32.mrf.mxu1  ;;  %v6654_v7 = vpop.f32.mrf.mxu0 }
0x10b2   : > { %v6715_v26 = vpack.c.bf16 %v6711_v49, %v6708_v29  ;;  %v25695_v38 = vadd.f32 %v6654_v7, %v6464_v35  ;;  %v21828_v35 = vld [vmem:[%s29596_s4 + $0x694] ss:$8 sps:$4 sm:$0xff]   ;;  %v21831_v29 = vld [vmem:[%s29596_s4 + $0x684] ss:$8 sps:$4 sm:$0xff]  }
0x10b3   : > { %v21130_v5 = vpop.f32.mrf.mxu1  ;;  %v25703_v14 = vpop.f32.mrf.mxu0 }
0x10b4   : > { %6846 = vmatmul.mubr.bf16.vlgmr.msra.gmra.mxu1 %v6715_v26 }
0x10b5   : > { %21144 = vmatpush3.bf16.msra.mxu1 %v24883_v6  ;;  %21151 = vmatprep.mubr.msk.bf16.mxu1 %vm23457_vm1, %v23456_v24 }
0x10b6   : > { %21145 = vmatprep.subr.bf16.mxu1 %v23456_v24 }
0x10b9   : > { %21146 = vmatpush3.bf16.msra.mxu1 %v24881_v0 }
0x10ba   : > { %21147 = vmatprep.subr.bf16.mxu1 %v23456_v24 }
0x10bd   : > { %21148 = vmatpush3.bf16.msra.mxu1 %v24879_v13  ;;  %v6905_v51 = vpop.f32.mrf.mxu0 }
0x10be   : > { %21149 = vmatprep.subr.bf16.mxu1 %v23456_v24 }
0x10bf   : > { %v21141_v8 = vpop.f32.mrf.mxu0 }
0x10c1   : > { %21150 = vmatpush3.bf16.msra.mxu1 %v24877_v11  ;;  %v6908_v53 = vpop.f32.mrf.mxu0 }
0x10c2   : > { %v6912_v9 = vpack.c.bf16 %v6908_v53, %v6905_v51  ;;  %7207 = vmatprep.subr.bf16.mxu1 %v21786_v44 }
0x10c3   : > { %v21142_v42 = vpop.f32.mrf.mxu0 }
0x10c4   : > { %21152 = vmatmul.mubr.msk.bf16.vlgmr.msra.gmra.mxu1 %vm1134_vm0, %v21782_v15  ;;  %7043 = vmatmul.mubr.bf16.vlgmr.msra.gmra.mxu0 %v6912_v9 }
0x10c5   : > { %21156 = vmatpush3.bf16.msra.mxu0 %v24883_v6  ;;  %21163 = vmatprep.mubr.msk.bf16.mxu0 %vm23457_vm1, %v23456_v24 }
0x10c6   : > { %21157 = vmatprep.subr.bf16.mxu0 %v23456_v24  ;;  %7208 = vmatpush1.bf16.msra.mxu1 %v21784_v43 }
0x10c7   : > { %7209 = vmatprep.subr.bf16.mxu1 %v21789_v23  ;;  %7239 = vmatprep.mubr.bf16.mxu1 %v23458_v62 }
0x10c9   : > { %21158 = vmatpush3.bf16.msra.mxu0 %v24881_v0 }
0x10ca   : > { %21159 = vmatprep.subr.bf16.mxu0 %v23456_v24  ;;  %7210 = vmatpush1.bf16.msra.mxu1 %v21787_v47 }
0x10cb   : > { %7211 = vmatprep.subr.bf16.mxu1 %v21792_v48 }
0x10cd   : > { %21160 = vmatpush3.bf16.msra.mxu0 %v24879_v13 }
0x10ce   : > { %21161 = vmatprep.subr.bf16.mxu0 %v23456_v24  ;;  %7212 = vmatpush1.bf16.msra.mxu1 %v21790_v31  ;;  %v21836_v31 = vld [vmem:[%s29596_s4 + $0x774] ss:$8 sps:$4 sm:$0xff]  }
0x10cf   : > { %7213 = vmatprep.subr.bf16.mxu1 %v21795_v40  ;;  %v21832_v40 = vld [vmem:[%s29599_s7 + $0x70] sm:$0xff]  }
0x10d1   : > { %21162 = vmatpush3.bf16.msra.mxu0 %v24877_v11 }
0x10d2   : > { %7214 = vmatpush1.bf16.msra.mxu1 %v21793_v59  ;;  %7404 = vmatprep.subr.bf16.mxu0 %v21801_v28  ;;  %v21834_v28 = vld [vmem:[%s29596_s4 + $0x770] ss:$8 sps:$4 sm:$0xff]  }
0x10d3   : > { %7215 = vmatprep.subr.bf16.mxu1 %v21798_v56 }
0x10d4   : > { %21164 = vmatmul.mubr.msk.bf16.vlgmr.msra.gmra.mxu0 %vm1134_vm0, %v21783_v58 }
0x10d5   : > { %7436 = vmatprep.mubr.bf16.mxu0 %v23458_v62  ;;  %7405 = vmatpush1.bf16.msra.mxu0 %v21799_v18  ;;  %v21839_v18 = vld [vmem:[%s29596_s4 + $0x764] ss:$8 sps:$4 sm:$0xff]  }
0x10d6   : > { %7216 = vmatpush1.bf16.msra.mxu1 %v21796_v41  ;;  %7406 = vmatprep.subr.bf16.mxu0 %v21807_v57  ;;  %v21846_v57 = vld [vmem:[%s29596_s4 + $0x730] ss:$8 sps:$4 sm:$0xff]  }
0x10d7   : > { %7217 = vmatprep.subr.bf16.mxu1 %v21804_v52  ;;  %v21842_v52 = vld [vmem:[%s29596_s4 + $0x754] ss:$8 sps:$4 sm:$0xff]  }
0x10d9   : > { %7407 = vmatpush1.bf16.msra.mxu0 %v21805_v27  ;;  %v21833_v27 = vld [vmem:[%s29599_s7 + $0x78] sm:$0xff]  }
0x10da   : > { %7218 = vmatpush1.bf16.msra.mxu1 %v21802_v16  ;;  %7408 = vmatprep.subr.bf16.mxu0 %v21813_v2  ;;  %v21837_v16 = vld [vmem:[%s29596_s4 + $0x760] ss:$8 sps:$4 sm:$0xff]   ;;  %v21854_v2 = vld [vmem:[%s29596_s4 + $0x724] ss:$8 sps:$4 sm:$0xff]  }
0x10db   : > { %7219 = vmatprep.subr.bf16.mxu1 %v21810_v3  ;;  %v21849_v3 = vld [vmem:[%s29596_s4 + $0x7f0] ss:$8 sps:$4 sm:$0xff]  }
0x10dd   : > { %7409 = vmatpush1.bf16.msra.mxu0 %v21811_v12  ;;  %v21855_v12 = vld [vmem:[%s29596_s4 + $0x7e0] ss:$8 sps:$4 sm:$0xff]  }
0x10de   : > { %7220 = vmatpush1.bf16.msra.mxu1 %v21808_v17  ;;  %7410 = vmatprep.subr.bf16.mxu0 %v21819_v63  ;;  %v21852_v17 = vld [vmem:[%s29596_s4 + $0x720] ss:$8 sps:$4 sm:$0xff]   ;;  %v21860_v63 = vld [vmem:[%s29596_s4 + $0x714] ss:$8 sps:$4 sm:$0xff]  }
0x10df   : > { %7221 = vmatprep.subr.bf16.mxu1 %v21816_v39  ;;  %v21857_v39 = vld [vmem:[%s29596_s4 + $0x7e4] ss:$8 sps:$4 sm:$0xff]  }
0x10e1   : > { %7411 = vmatpush1.bf16.msra.mxu0 %v21817_v55  ;;  %v21858_v55 = vld [vmem:[%s29596_s4 + $0x710] ss:$8 sps:$4 sm:$0xff]  }
0x10e2   : > { %7222 = vmatpush1.bf16.msra.mxu1 %v21814_v4  ;;  %7412 = vmatprep.subr.bf16.mxu0 %v21822_v60  ;;  %v21863_v4 = vld [vmem:[%s29596_s4 + $0x7d4] ss:$8 sps:$4 sm:$0xff]   ;;  %v21861_v60 = vld [vmem:[%s29596_s4 + $0x7d0] ss:$8 sps:$4 sm:$0xff]  }
0x10e3   : > { %21167 = vmatprep.subr.bf16.mxu1 %v23456_v24 }
0x10e5   : > { %7413 = vmatpush1.bf16.msra.mxu0 %v21820_v25  ;;  %v21866_v25 = vld [vmem:[%s29596_s4 + $0x704] ss:$8 sps:$4 sm:$0xff]  }
0x10e6   : > { %7414 = vmatprep.subr.bf16.mxu0 %v21825_v37  ;;  %v21864_v37 = vld [vmem:[%s29596_s4 + $0x700] ss:$8 sps:$4 sm:$0xff]  }
0x10e9   : > { %7415 = vmatpush1.bf16.msra.mxu0 %v21823_v1  ;;  %v21869_v1 = vld [vmem:[%s29596_s4 + $0x7c4] ss:$8 sps:$4 sm:$0xff]  }
0x10ea   : > { %7416 = vmatprep.subr.bf16.mxu0 %v21828_v35  ;;  %v21872_v35 = vld [vmem:[%s29596_s4 + $0x7b4] ss:$8 sps:$4 sm:$0xff]  }
0x10ed   : > { %7417 = vmatpush1.bf16.msra.mxu0 %v21826_v10  ;;  %v21867_v10 = vld [vmem:[%s29596_s4 + $0x7c0] ss:$8 sps:$4 sm:$0xff]  }
0x10ee   : > { %7418 = vmatprep.subr.bf16.mxu0 %v21831_v29  ;;  %v21870_v29 = vld [vmem:[%s29596_s4 + $0x7b0] ss:$8 sps:$4 sm:$0xff]  }
0x10f1   : > { %7419 = vmatpush1.bf16.msra.mxu0 %v21829_v33  ;;  %v21875_v33 = vld [vmem:[%s29596_s4 + $0x7a4] ss:$8 sps:$4 sm:$0xff]  }
0x10f2   : > { %21179 = vmatprep.subr.bf16.mxu0 %v23456_v24 }
0x1174   : > { %v6847_v19 = vpop.f32.mrf.mxu1 }
0x1175   : > { %v6856_v36 = vadd.f32 %v6847_v19, %v25691_v34  ;;  %v21873_v19 = vld [vmem:[%s29596_s4 + $0x7a0] ss:$8 sps:$4 sm:$0xff]  }
0x1176   : > { %v6849_v49 = vpop.f32.mrf.mxu1 }
0x1177   : > { %v6857_v7 = vadd.f32 %v6849_v49, %v25693_v21  ;;  %v21876_v49 = vld [vmem:[%s29596_s4 + $0x790] ss:$8 sps:$4 sm:$0xff]  }
0x1178   : > { %v6851_v26 = vpop.f32.mrf.mxu1 }
0x1179   : > { %v6858_v5 = vadd.f32 %v6851_v26, %v25695_v38  ;;  %v21879_v26 = vld [vmem:[%s29596_s4 + $0x780] ss:$8 sps:$4 sm:$0xff]  }
0x117a   : > { %v25828_v51 = vpop.f32.mrf.mxu1 }
0x1184   : > { %v7102_v44 = vpop.f32.mrf.mxu1  ;;  %v7044_v8 = vpop.f32.mrf.mxu0 }
0x1185   : > { %v25830_v15 = vadd.f32 %v7044_v8, %v6856_v36  ;;  %v21878_v36 = vld [vmem:[%s29596_s4 + $0x794] ss:$8 sps:$4 sm:$0xff]  }
0x1186   : > { %v21153_v53 = vpop.f32.mrf.mxu1  ;;  %v7046_v9 = vpop.f32.mrf.mxu0 }
0x1187   : > { %v25832_v43 = vadd.f32 %v7046_v9, %v6857_v7  ;;  %v21881_v7 = vld [vmem:[%s29596_s4 + $0x784] ss:$8 sps:$4 sm:$0xff]  }
0x1188   : > { %v7105_v42 = vpop.f32.mrf.mxu1  ;;  %v7048_v23 = vpop.f32.mrf.mxu0 }
0x1189   : > { %v7109_v47 = vpack.c.bf16 %v7105_v42, %v7102_v44  ;;  %v25834_v34 = vadd.f32 %v7048_v23, %v6858_v5  ;;  %v5085_v5 = vadd.f32 %v25267_v22, %v25139_v50 }
0x118a   : > { %v21154_v48 = vpop.f32.mrf.mxu1  ;;  %v25842_v21 = vpop.f32.mrf.mxu0 }
0x118b   : > { %7240 = vmatmul.mubr.bf16.vlgmr.msra.gmra.mxu1 %v7109_v47  ;;  %v5283_v8 = vadd.f32 %v25272_v46, %v5085_v5 }
0x118c   : > { %21168 = vmatpush3.bf16.msra.mxu1 %v24883_v6  ;;  %21175 = vmatprep.mubr.msk.bf16.mxu1 %vm23457_vm1, %v23456_v24 }
0x118d   : > { %21169 = vmatprep.subr.bf16.mxu1 %v23456_v24  ;;  %v5480_v42 = vadd.f32 %v25286_v54, %v5283_v8 }
0x118f   : > { %v5677_v48 = vadd.f32 %v25411_v30, %v5480_v42 }
0x1190   : > { %21170 = vmatpush3.bf16.msra.mxu1 %v24881_v0 }
0x1191   : > { %21171 = vmatprep.subr.bf16.mxu1 %v23456_v24 }
0x1194   : > { %21172 = vmatpush3.bf16.msra.mxu1 %v24879_v13  ;;  %v7299_v38 = vpop.f32.mrf.mxu0 }
0x1195   : > { %21173 = vmatprep.subr.bf16.mxu1 %v23456_v24 }
0x1196   : > { %v21165_v58 = vpop.f32.mrf.mxu0 }
0x1198   : > { %21174 = vmatpush3.bf16.msra.mxu1 %v24877_v11  ;;  %v7302_v59 = vpop.f32.mrf.mxu0 }
0x1199   : > { %v7306_v56 = vpack.c.bf16 %v7302_v59, %v7299_v38  ;;  %7601 = vmatprep.subr.bf16.mxu1 %v21836_v31  ;;  %v5874_v31 = vadd.f32 %v25425_v20, %v5677_v48 }
0x119a   : > { %v21166_v41 = vpop.f32.mrf.mxu0 }
0x119b   : > { %21176 = vmatmul.mubr.msk.bf16.vlgmr.msra.gmra.mxu1 %vm1134_vm0, %v21832_v40  ;;  %7437 = vmatmul.mubr.bf16.vlgmr.msra.gmra.mxu0 %v7306_v56  ;;  %v6071_v58 = vadd.f32 %v25550_v32, %v5874_v31 }
0x119c   : > { %21180 = vmatpush3.bf16.msra.mxu0 %v24883_v6  ;;  %21187 = vmatprep.mubr.msk.bf16.mxu0 %vm23457_vm1, %v23456_v24  ;;  %v21840_v6 = vld [vmem:[%s29596_s4 + $0x750] ss:$8 sps:$4 sm:$0xff]  }
0x119d   : > { %21181 = vmatprep.subr.bf16.mxu0 %v23456_v24  ;;  %7602 = vmatpush1.bf16.msra.mxu1 %v21834_v28  ;;  %v6268_v50 = vadd.f32 %v25564_v61, %v6071_v58 }
0x119e   : > { %7603 = vmatprep.subr.bf16.mxu1 %v21839_v18  ;;  %7633 = vmatprep.mubr.bf16.mxu1 %v23458_v62 }
0x119f   : > { %v6465_v22 = vadd.f32 %v25689_v45, %v6268_v50 }
0x11a0   : > { %21182 = vmatpush3.bf16.msra.mxu0 %v24881_v0  ;;  %v21845_v0 = vld [vmem:[%s29596_s4 + $0x744] ss:$8 sps:$4 sm:$0xff]  }
0x11a1   : > { %21183 = vmatprep.subr.bf16.mxu0 %v23456_v24  ;;  %7604 = vmatpush1.bf16.msra.mxu1 %v21837_v16 }
0x11a2   : > { %7605 = vmatprep.subr.bf16.mxu1 %v21842_v52 }
0x11a4   : > { %21184 = vmatpush3.bf16.msra.mxu0 %v24879_v13  ;;  %v21843_v13 = vld [vmem:[%s29596_s4 + $0x740] ss:$8 sps:$4 sm:$0xff]  }
0x11a5   : > { %21185 = vmatprep.subr.bf16.mxu0 %v23456_v24  ;;  %7606 = vmatpush1.bf16.msra.mxu1 %v21840_v6  ;;  %v21848_v24 = vld [vmem:[%s29596_s4 + $0x734] ss:$8 sps:$4 sm:$0xff]  }
0x11a6   : > { %7607 = vmatprep.subr.bf16.mxu1 %v21845_v0  ;;  %v21887_v0 = vld [vmem:[%s29597_s5 + $0x2e8] ss:$16 sps:$4 sm:$0xff]  }
0x11a8   : > { %21186 = vmatpush3.bf16.msra.mxu0 %v24877_v11  ;;  %v21851_v11 = vld [vmem:[%s29596_s4 + $0x7f4] ss:$8 sps:$4 sm:$0xff]  }
0x11a9   : > { %7608 = vmatpush1.bf16.msra.mxu1 %v21843_v13  ;;  %7798 = vmatprep.subr.bf16.mxu0 %v21851_v11  ;;  %v21889_v13 = vld [vmem:[%s29597_s5 + $0x2ec] ss:$16 sps:$4 sm:$0xff]   ;;  %v21893_v11 = vld [vmem:[%s29597_s5 + $0x2c8] ss:$16 sps:$4 sm:$0xff]  }
0x11aa   : > { %7609 = vmatprep.subr.bf16.mxu1 %v21848_v24  ;;  %v21895_v24 = vld [vmem:[%s29597_s5 + $0x2cc] ss:$16 sps:$4 sm:$0xff]  }
0x11ab   : > { %21188 = vmatmul.mubr.msk.bf16.vlgmr.msra.gmra.mxu0 %vm1134_vm0, %v21833_v27 }
0x11ac   : > { %7830 = vmatprep.mubr.bf16.mxu0 %v23458_v62  ;;  %7799 = vmatpush1.bf16.msra.mxu0 %v21849_v3  ;;  %v21899_v3 = vld [vmem:[%s29597_s5 + $0x2a8] ss:$16 sps:$4 sm:$0xff]  }
0x11ad   : > { %7610 = vmatpush1.bf16.msra.mxu1 %v21846_v57  ;;  %7800 = vmatprep.subr.bf16.mxu0 %v21857_v39  ;;  %v21901_v57 = vld [vmem:[%s29597_s5 + $0x2ac] ss:$16 sps:$4 sm:$0xff]   ;;  %v21911_v39 = vld [vmem:[%s29597_s5 + $0x268] ss:$16 sps:$4 sm:$0xff]  }
0x11ae   : > { %7611 = vmatprep.subr.bf16.mxu1 %v21854_v2  ;;  %v21907_v2 = vld [vmem:[%s29597_s5 + $0x28c] ss:$16 sps:$4 sm:$0xff]  }
0x11b0   : > { %7801 = vmatpush1.bf16.msra.mxu0 %v21855_v12  ;;  %v21913_v12 = vld [vmem:[%s29597_s5 + $0x26c] ss:$16 sps:$4 sm:$0xff]  }
0x11b1   : > { %7612 = vmatpush1.bf16.msra.mxu1 %v21852_v17  ;;  %7802 = vmatprep.subr.bf16.mxu0 %v21863_v4  ;;  %v21905_v17 = vld [vmem:[%s29597_s5 + $0x288] ss:$16 sps:$4 sm:$0xff]  }
0x11b2   : > { %7613 = vmatprep.subr.bf16.mxu1 %v21860_v63  ;;  %v21919_v63 = vld [vmem:[%s29597_s5 + $0x24c] ss:$16 sps:$4 sm:$0xff]   ;;  %v21917_v4 = vld [vmem:[%s29597_s5 + $0x248] ss:$16 sps:$4 sm:$0xff]  }
0x11b4   : > { %7803 = vmatpush1.bf16.msra.mxu0 %v21861_v60  ;;  %v21923_v60 = vld [vmem:[%s29597_s5 + $0x228] ss:$16 sps:$4 sm:$0xff]  }
0x11b5   : > { %7614 = vmatpush1.bf16.msra.mxu1 %v21858_v55  ;;  %7804 = vmatprep.subr.bf16.mxu0 %v21869_v1  ;;  %v21925_v55 = vld [vmem:[%s29597_s5 + $0x22c] ss:$16 sps:$4 sm:$0xff]   ;;  %v21929_v1 = vld [vmem:[%s29597_s5 + $0x208] ss:$16 sps:$4 sm:$0xff]  }
0x11b6   : > { %7615 = vmatprep.subr.bf16.mxu1 %v21866_v25  ;;  %v21931_v25 = vld [vmem:[%s29597_s5 + $0x20c] ss:$16 sps:$4 sm:$0xff]  }
0x11b8   : > { %7805 = vmatpush1.bf16.msra.mxu0 %v21867_v10  ;;  %v21935_v10 = vld [vmem:[%s29597_s5 + $0x3e8] ss:$16 sps:$4 sm:$0xff]  }
0x11b9   : > { %7616 = vmatpush1.bf16.msra.mxu1 %v21864_v37  ;;  %7806 = vmatprep.subr.bf16.mxu0 %v21872_v35  ;;  %v21937_v37 = vld [vmem:[%s29597_s5 + $0x3ec] ss:$16 sps:$4 sm:$0xff]  }
0x11ba   : > { %v21943_v35 = vld [vmem:[%s29597_s5 + $0x3cc] ss:$16 sps:$4 sm:$0xff]  }
0x11bc   : > { %7807 = vmatpush1.bf16.msra.mxu0 %v21870_v29  ;;  %v21941_v29 = vld [vmem:[%s29597_s5 + $0x3c8] ss:$16 sps:$4 sm:$0xff]  }
0x11bd   : > { %7808 = vmatprep.subr.bf16.mxu0 %v21875_v33  ;;  %v21949_v33 = vld [vmem:[%s29597_s5 + $0x3ac] ss:$16 sps:$4 sm:$0xff]  }
0x11c0   : > { %7809 = vmatpush1.bf16.msra.mxu0 %v21873_v19  ;;  %v21947_v19 = vld [vmem:[%s29597_s5 + $0x3a8] ss:$16 sps:$4 sm:$0xff]  }
0x11c1   : > { %7810 = vmatprep.subr.bf16.mxu0 %v21878_v36  ;;  %v21955_v36 = vld [vmem:[%s29597_s5 + $0x38c] ss:$16 sps:$4 sm:$0xff]  }
0x11c4   : > { %7811 = vmatpush1.bf16.msra.mxu0 %v21876_v49  ;;  %v21953_v49 = vld [vmem:[%s29597_s5 + $0x388] ss:$16 sps:$4 sm:$0xff]  }
0x11c5   : > { %7812 = vmatprep.subr.bf16.mxu0 %v21881_v7 }
0x11c8   : > { %7813 = vmatpush1.bf16.msra.mxu0 %v21879_v26 }
0x11c9   : > { %8518 = vmatprep.subr.bf16.mxu0 %v21889_v13 }
0x124b   : > { %v7241_v44 = vpop.f32.mrf.mxu1 }
0x124c   : > { %v7250_v53 = vadd.f32 %v7241_v44, %v25830_v15  ;;  %v6662_v15 = vadd.f32 %v25703_v14, %v6465_v22 }
0x124d   : > { %v7243_v9 = vpop.f32.mrf.mxu1 }
0x124e   : > { %v7251_v23 = vadd.f32 %v7243_v9, %v25832_v43  ;;  %v6859_v43 = vadd.f32 %v25828_v51, %v6662_v15 }
0x124f   : > { %v7245_v47 = vpop.f32.mrf.mxu1 }
0x1250   : > { %v7252_v38 = vadd.f32 %v7245_v47, %v25834_v34  ;;  %v7056_v34 = vadd.f32 %v25842_v21, %v6859_v43 }
0x1251   : > { %v7247_v46 = vpop.f32.mrf.mxu1 }
0x1252   : > { %v7253_v61 = vadd.f32 %v7247_v46, %v7056_v34 }
0x125b   : > { %v7496_v40 = vpop.f32.mrf.mxu1  ;;  %v7438_v54 = vpop.f32.mrf.mxu0 }
0x125c   : > { %v25976_v59 = vadd.f32 %v7438_v54, %v7250_v53 }
0x125d   : > { %v21177_v30 = vpop.f32.mrf.mxu1  ;;  %v7440_v56 = vpop.f32.mrf.mxu0 }
0x125e   : > { %v25979_v20 = vadd.f32 %v7440_v56, %v7251_v23 }
0x125f   : > { %v7499_v32 = vpop.f32.mrf.mxu1  ;;  %v7442_v28 = vpop.f32.mrf.mxu0 }
0x1260   : > { %v7503_v41 = vpack.c.bf16 %v7499_v32, %v7496_v40  ;;  %v25981_v45 = vadd.f32 %v7442_v28, %v7252_v38 }
0x1261   : > { %v7444_v18 = vpop.f32.mrf.mxu0  ;;  %v21178_v14 = vpop.f32.mrf.mxu1 }
0x1262   : > { %v25983_v16 = vadd.f32 %v7444_v18, %v7253_v61  ;;  %7634 = vmatmul.mubr.bf16.vlgmr.msra.gmra.mxu1 %v7503_v41 }
0x1263   : > { %7957 = vmatprep.mubr.bf16.mxu1 %v23458_v62 }
0x126b   : > { %v7693_v51 = vpop.f32.mrf.mxu0 }
0x126d   : > { %v21189_v52 = vpop.f32.mrf.mxu0 }
0x126f   : > { %v7696_v6 = vpop.f32.mrf.mxu0 }
0x1270   : > { %v7700_v27 = vpack.c.bf16 %v7696_v6, %v7693_v51 }
0x1271   : > { %v21190_v21 = vpop.f32.mrf.mxu0 }
0x1272   : > { %7831 = vmatmul.mubr.bf16.vlgmr.msra.gmra.mxu0 %v7700_v27 }
0x1273   : > { %8519 = vmatpush1.bf16.msra.mxu0 %v21887_v0 }
0x1274   : > { %8520 = vmatprep.subr.bf16.mxu0 %v21895_v24 }
0x1277   : > { %8521 = vmatpush1.bf16.msra.mxu0 %v21893_v11 }
0x1278   : > { %8522 = vmatprep.subr.bf16.mxu0 %v21901_v57 }
0x127b   : > { %8523 = vmatpush1.bf16.msra.mxu0 %v21899_v3 }
0x127c   : > { %8524 = vmatprep.subr.bf16.mxu0 %v21907_v2 }
0x127f   : > { %8525 = vmatpush1.bf16.msra.mxu0 %v21905_v17 }
0x1280   : > { %8526 = vmatprep.subr.bf16.mxu0 %v21913_v12 }
0x1283   : > { %8527 = vmatpush1.bf16.msra.mxu0 %v21911_v39 }
0x1284   : > { %8528 = vmatprep.subr.bf16.mxu0 %v21919_v63 }
0x1287   : > { %8529 = vmatpush1.bf16.msra.mxu0 %v21917_v4 }
0x1288   : > { %8530 = vmatprep.subr.bf16.mxu0 %v21925_v55 }
0x128b   : > { %8531 = vmatpush1.bf16.msra.mxu0 %v21923_v60 }
0x128c   : > { %8532 = vmatprep.subr.bf16.mxu0 %v21931_v25 }
0x128f   : > { %8533 = vmatpush1.bf16.msra.mxu0 %v21929_v1 }
0x1290   : > { %8534 = vmatprep.subr.bf16.mxu0 %v21937_v37 }
0x1293   : > { %8535 = vmatpush2.bf16.msra.mxu0 %v21935_v10 }
0x1294   : > { %8536 = vmatprep.subr.bf16.mxu0 %v21943_v35 }
0x1297   : > { %8537 = vmatpush2.bf16.msra.mxu0 %v21941_v29 }
0x1298   : > { %8538 = vmatprep.subr.bf16.mxu0 %v21949_v33 }
0x129b   : > { %8539 = vmatpush2.bf16.msra.mxu0 %v21947_v19 }
0x129c   : > { %8540 = vmatprep.subr.bf16.mxu0 %v21955_v36 }
0x129f   : > { %8541 = vmatpush2.bf16.msra.mxu0 %v21953_v49 }
0x1322   : > { %v7635_v7 = vpop.f32.mrf.mxu1 }
0x1323   : > { %v7644_v8 = vadd.f32 %v7635_v7, %v25976_v59 }
0x1324   : > { %v7637_v26 = vpop.f32.mrf.mxu1 }
0x1325   : > { %v7645_v53 = vadd.f32 %v7637_v26, %v25979_v20 }
0x1326   : > { %v7639_v5 = vpop.f32.mrf.mxu1 }
0x1327   : > { %v7646_v23 = vadd.f32 %v7639_v5, %v25981_v45 }
0x1328   : > { %v7641_v9 = vpop.f32.mrf.mxu1 }
0x1329   : > { %v7647_v31 = vadd.f32 %v7641_v9, %v25983_v16 }
0x1332   : > { %v7832_v44 = vpop.f32.mrf.mxu0 }
0x1333   : > { %v7841_v47 = vadd.f32 %v7832_v44, %v7644_v8 }
0x1334   : > { %v7834_v42 = vpop.f32.mrf.mxu0 }
0x1335   : > { %v26061_v48 = vadd.f32 %v7834_v42, %v7645_v53  ;;  %v7862_v22 = vmul.f32 %v7841_v47, %v7841_v47 }
0x1336   : > { %v7836_v38 = vpop.f32.mrf.mxu0 }
0x1337   : > { %v7843_v58 = vadd.f32 %v7836_v38, %v7646_v23  ;;  %v7863_v54 = vmul.f32 %v26061_v48, %v26061_v48 }
0x1338   : > { %v7838_v50 = vpop.f32.mrf.mxu0 }
0x1339   : > { %v7845_v46 = vadd.f32 %v7843_v58, %v7841_v47  ;;  %v7864_v15 = vmul.f32 %v7843_v58, %v7843_v58  ;;  %v7844_v40 = vadd.f32 %v7838_v50, %v7647_v31 }
0x133b   : > { %v7846_v43 = vrot.slane %v7845_v46, 4  ;;  %v7866_v59 = vadd.f32 %v7864_v15, %v7862_v22  ;;  %v7852_v30 = vadd.f32 %v7844_v40, %v26061_v48  ;;  %v7865_v56 = vmul.f32 %v7844_v40, %v7844_v40  ;;  %v21882_v15 = vld [vmem:[%s29600_s8] sm:$0x1f]  }
0x133d   : > { %v7847_v34 = vadd.f32 %v7846_v43, %v7845_v46  ;;  %v7867_v20 = vrot.slane %v7866_v59, 4  ;;  %v7853_v32 = vrot.slane %v7852_v30, 4  ;;  %v7873_v28 = vadd.f32 %v7865_v56, %v7863_v54  ;;  %v21883_v54 = vld [vmem:[%s29600_s8 + $0x8] sm:$0x1f]   ;;  %v21884_v43 = vld [vmem:[%s29597_s5 + $0x2e0] ss:$16 sps:$4 sm:$0xff]  }
0x133e   : > { %v21898_v56 = vld [vmem:[%s29597_s5 + $0x2a4] ss:$16 sps:$4 sm:$0xff]  }
0x133f   : > { %v7848_v61 = vrot.slane %v7847_v34, 2  ;;  %v7868_v41 = vadd.f32 %v7867_v20, %v7866_v59  ;;  %v7854_v45 = vadd.f32 %v7853_v32, %v7852_v30  ;;  %v7874_v18 = vrot.slane %v7873_v28, 4  ;;  %v21892_v59 = vld [vmem:[%s29597_s5 + $0x2c4] ss:$16 sps:$4 sm:$0xff]   ;;  %v21890_v30 = vld [vmem:[%s29597_s5 + $0x2c0] ss:$16 sps:$4 sm:$0xff]  }
0x1340   : > { %v21904_v20 = vld [vmem:[%s29597_s5 + $0x284] ss:$16 sps:$4 sm:$0xff]   ;;  %v21902_v32 = vld [vmem:[%s29597_s5 + $0x280] ss:$16 sps:$4 sm:$0xff]  }
0x1341   : > { %v7849_v14 = vadd.f32 %v7848_v61, %v7847_v34  ;;  %v7869_v16 = vrot.slane %v7868_v41, 2  ;;  %v7855_v51 = vrot.slane %v7854_v45, 2  ;;  %v7875_v52 = vadd.f32 %v7874_v18, %v7873_v28  ;;  %v21896_v34 = vld [vmem:[%s29597_s5 + $0x2a0] ss:$16 sps:$4 sm:$0xff]   ;;  %v21910_v28 = vld [vmem:[%s29597_s5 + $0x264] ss:$16 sps:$4 sm:$0xff]  }
0x1342   : > { %v21908_v61 = vld [vmem:[%s29597_s5 + $0x260] ss:$16 sps:$4 sm:$0xff]   ;;  %v21922_v18 = vld [vmem:[%s29597_s5 + $0x224] ss:$16 sps:$4 sm:$0xff]  }
0x1343   : > { %v7850_v6 = vrot.slane %v7849_v14, 1  ;;  %v7870_v27 = vadd.f32 %v7869_v16, %v7868_v41  ;;  %v7856_v21 = vadd.f32 %v7855_v51, %v7854_v45  ;;  %v7876_v0 = vrot.slane %v7875_v52, 2  ;;  %v21916_v41 = vld [vmem:[%s29597_s5 + $0x244] ss:$16 sps:$4 sm:$0xff]   ;;  %v21914_v45 = vld [vmem:[%s29597_s5 + $0x240] ss:$16 sps:$4 sm:$0xff]  }
0x1344   : > { %v21928_v16 = vld [vmem:[%s29597_s5 + $0x204] ss:$16 sps:$4 sm:$0xff]   ;;  %v21926_v51 = vld [vmem:[%s29597_s5 + $0x200] ss:$16 sps:$4 sm:$0xff]  }
0x1345   : > { %v7851_v13 = vadd.f32 %v7850_v6, %v7849_v14  ;;  %v7871_v24 = vrot.slane %v7870_v27, 1  ;;  %v7857_v11 = vrot.slane %v7856_v21, 1  ;;  %v7877_v57 = vadd.f32 %v7876_v0, %v7875_v52  ;;  %v21920_v14 = vld [vmem:[%s29597_s5 + $0x220] ss:$16 sps:$4 sm:$0xff]   ;;  %v21934_v52 = vld [vmem:[%s29597_s5 + $0x3e4] ss:$16 sps:$4 sm:$0xff]  }
0x1346   : > { %v21932_v6 = vld [vmem:[%s29597_s5 + $0x3e0] ss:$16 sps:$4 sm:$0xff]   ;;  %v21946_v0 = vld [vmem:[%s29597_s5 + $0x3a4] ss:$16 sps:$4 sm:$0xff]  }
0x1347   : > { %v7860_v3 = vmul.f32 0.0625, %v7851_v13  ;;  %v7872_v2 = vadd.f32 %v7871_v24, %v7870_v27  ;;  %v7858_v17 = vadd.f32 %v7857_v11, %v7856_v21  ;;  %v7878_v12 = vrot.slane %v7877_v57, 1  ;;  %v21940_v27 = vld [vmem:[%s29597_s5 + $0x3c4] ss:$16 sps:$4 sm:$0xff]   ;;  %v21938_v21 = vld [vmem:[%s29597_s5 + $0x3c0] ss:$16 sps:$4 sm:$0xff]  }
0x1348   : > { %v21944_v13 = vld [vmem:[%s29597_s5 + $0x3a0] ss:$16 sps:$4 sm:$0xff]   ;;  %v21952_v24 = vld [vmem:[%s29597_s5 + $0x384] ss:$16 sps:$4 sm:$0xff]  }
0x1349   : > { %v7880_v39 = vmul.f32 0.0625, %v7872_v2  ;;  %v7882_v63 = vmul.f32 %v7860_v3, %v7860_v3  ;;  %v7888_v4 = vsub.f32 %v7841_v47, %v7860_v3  ;;  %v7890_v55 = vsub.f32 %v7843_v58, %v7860_v3  ;;  %v21950_v11 = vld [vmem:[%s29597_s5 + $0x380] ss:$16 sps:$4 sm:$0xff]   ;;  %v21961_v3 = vld [vmem:[%s29597_s5 + $0x36c] ss:$16 sps:$4 sm:$0xff]  }
0x134a   : > { %v7861_v60 = vmul.f32 0.0625, %v7858_v17  ;;  %v7879_v25 = vadd.f32 %v7878_v12, %v7877_v57  ;;  %v21958_v57 = vld [vmem:[%s29597_s5 + $0x364] ss:$16 sps:$4 sm:$0xff]   ;;  %v21956_v2 = vld [vmem:[%s29597_s5 + $0x360] ss:$16 sps:$4 sm:$0xff]   ;;  %8542 = vmatprep.subr.bf16.mxu0 %v21961_v3 }
0x134b   : > { %v7884_v1 = vsub.f32 %v7880_v39, %v7882_v63  ;;  %v21959_v17 = vld [vmem:[%s29597_s5 + $0x368] ss:$16 sps:$4 sm:$0xff]   ;;  %v21964_v12 = vld [vmem:[%s29597_s5 + $0x344] ss:$16 sps:$4 sm:$0xff]   ;;  %v21967_v39 = vld [vmem:[%s29597_s5 + $0x34c] ss:$16 sps:$4 sm:$0xff]  }
0x134c   : > { %v7881_v37 = vmul.f32 0.0625, %v7879_v25  ;;  %v7883_v10 = vmul.f32 %v7861_v60, %v7861_v60  ;;  %v7889_v35 = vsub.f32 %v26061_v48, %v7861_v60  ;;  %v7891_v29 = vsub.f32 %v7844_v40, %v7861_v60  ;;  %v21886_v40 = vld [vmem:[%s29597_s5 + $0x2e4] ss:$16 sps:$4 sm:$0xff]   ;;  %8543 = vmatpush2.bf16.msra.mxu0 %v21959_v17  ;;  %v21962_v63 = vld [vmem:[%s29597_s5 + $0x340] ss:$16 sps:$4 sm:$0xff]  }
0x134d   : > { %v7886_v33 = vmax.f32 %v7884_v1, 0.0  ;;  %8544 = vmatprep.subr.bf16.mxu0 %v21967_v39  ;;  %v21973_v60 = vld [vmem:[%s29597_s5 + $0x32c] ss:$16 sps:$4 sm:$0xff]   ;;  %v21968_v25 = vld [vmem:[%s29597_s5 + $0x320] ss:$16 sps:$4 sm:$0xff]  }
0x134e   : > { %v7885_v19 = vsub.f32 %v7881_v37, %v7883_v10  ;;  %v21971_v1 = vld [vmem:[%s29597_s5 + $0x328] ss:$16 sps:$4 sm:$0xff]   ;;  %v21976_v37 = vld [vmem:[%s29597_s5 + $0x304] ss:$16 sps:$4 sm:$0xff]   ;;  %v21979_v10 = vld [vmem:[%s29597_s5 + $0x30c] ss:$16 sps:$4 sm:$0xff]  }
0x134f   : > { %v7892_v36 = vadd.f32 1e-05, %v7886_v33  ;;  %v21982_v33 = vld [vmem:[%s29597_s5 + $0xe4] ss:$16 sps:$4 sm:$0xff]   ;;  %v22028_v3 = vld [vmem:[%s29597_s5 + $0x1e0] ss:$16 sps:$4 sm:$0xff]  }
0x1350   : > { %v7887_v49 = vmax.f32 %v7885_v19, 0.0  ;;  %v21985_v19 = vld [vmem:[%s29597_s5 + $0xec] ss:$16 sps:$4 sm:$0xff]   ;;  %v22036_v17 = vld [vmem:[%s29597_s5 + $0x1c4] ss:$16 sps:$4 sm:$0xff]  }
0x1351   : > { %23436 = vrsqrt.f32 %v7892_v36  ;;  %v22034_v39 = vld [vmem:[%s29597_s5 + $0x1c0] ss:$16 sps:$4 sm:$0xff]  }
0x1352   : > { %v7893_v7 = vadd.f32 1e-05, %v7887_v49 }
0x1354   : > { %23438 = vrsqrt.f32 %v7893_v7 }
0x135e   : > { %v23437_v26 = vpop.eup %23436 }
0x135f   : > { %v7896_v5 = vmul.f32 %v23437_v26, %v7888_v4  ;;  %v7898_v44 = vmul.f32 %v23437_v26, %v7890_v55  ;;  %v21965_v4 = vld [vmem:[%s29597_s5 + $0x348] ss:$16 sps:$4 sm:$0xff]   ;;  %v21970_v55 = vld [vmem:[%s29597_s5 + $0x324] ss:$16 sps:$4 sm:$0xff]  }
0x1360   : > { %8545 = vmatpush2.bf16.msra.mxu0 %v21965_v4  ;;  %v22042_v4 = vld [vmem:[%s29597_s5 + $0x1a4] ss:$16 sps:$4 sm:$0xff]  }
0x1361   : > { %v23439_v8 = vpop.eup %23438  ;;  %vm7900_vm10 = vcmp.ge.f32.partialorder %v7896_v5, 0.0  ;;  %vm7902_vm11 = vcmp.ge.f32.partialorder %v7898_v44, 0.0  ;;  %v7904_v53 = vmul.f32 0.2, %v7896_v5  ;;  %v7906_v9 = vmul.f32 0.2, %v7898_v44  ;;  %8546 = vmatprep.subr.bf16.mxu0 %v21973_v60 }
0x1362   : > { %v7897_v42 = vmul.f32 %v23439_v8, %v7889_v35  ;;  %v7899_v23 = vmul.f32 %v23439_v8, %v7891_v29  ;;  %v21974_v35 = vld [vmem:[%s29597_s5 + $0x300] ss:$16 sps:$4 sm:$0xff]   ;;  %v21977_v29 = vld [vmem:[%s29597_s5 + $0x308] ss:$16 sps:$4 sm:$0xff]  }
0x1363   : > { %v7908_v47 = vsel %vm7900_vm10, %v7896_v5, %v7904_v53  ;;  %v7910_v48 = vsel %vm7902_vm11, %v7898_v44, %v7906_v9  ;;  %v22040_v60 = vld [vmem:[%s29597_s5 + $0x1a0] ss:$16 sps:$4 sm:$0xff]  }
0x1364   : > { %v26068_v38 = vpack.c.bf16 %v7910_v48, %v7908_v47  ;;  %vm7901_vm12 = vcmp.ge.f32.partialorder %v7897_v42, 0.0  ;;  %vm7903_vm13 = vcmp.ge.f32.partialorder %v7899_v23, 0.0  ;;  %v7905_v31 = vmul.f32 0.2, %v7897_v42  ;;  %8547 = vmatpush2.bf16.msra.mxu0 %v21971_v1  ;;  %v21983_v47 = vld [vmem:[%s29597_s5 + $0xe8] ss:$16 sps:$4 sm:$0xff]  }
0x1365   : > { %v7907_v58 = vmul.f32 0.2, %v7899_v23  ;;  %8548 = vmatprep.subr.bf16.mxu0 %v21979_v10  ;;  %v22048_v1 = vld [vmem:[%s29597_s5 + $0x184] ss:$16 sps:$4 sm:$0xff]   ;;  %v22046_v10 = vld [vmem:[%s29597_s5 + $0x180] ss:$16 sps:$4 sm:$0xff]  }
0x1366   : > { %v7909_v50 = vsel %vm7901_vm12, %v7897_v42, %v7905_v31  ;;  %v21988_v31 = vld [vmem:[%s29597_s5 + $0xc4] ss:$16 sps:$4 sm:$0xff]  }
0x1367   : > { %v7911_v22 = vsel %vm7903_vm13, %v7899_v23, %v7907_v58  ;;  %v21980_v23 = vld [vmem:[%s29597_s5 + $0xe0] ss:$16 sps:$4 sm:$0xff]   ;;  %v21991_v58 = vld [vmem:[%s29597_s5 + $0xcc] ss:$16 sps:$4 sm:$0xff]  }
0x1368   : > { %v26070_v46 = vpack.c.bf16 %v7911_v22, %v7909_v50  ;;  %8549 = vmatpush2.bf16.msra.mxu0 %v21977_v29  ;;  %v21986_v22 = vld [vmem:[%s29597_s5 + $0xc0] ss:$16 sps:$4 sm:$0xff]   ;;  %v22054_v29 = vld [vmem:[%s29597_s5 + $0x164] ss:$16 sps:$4 sm:$0xff]  }
0x1369   : > { %8924 = vmatprep.subr.bf16.mxu0 %v21985_v19  ;;  %v22052_v19 = vld [vmem:[%s29597_s5 + $0x160] ss:$16 sps:$4 sm:$0xff]  }
0x136a   : > { %7939 = vmatprep.subr.bf16.mxu1 %v26070_v46 }
0x136b   : > { %7940 = vmatpush1.bf16.msra.mxu1 %v26068_v38 }
0x136c   : > { %8059 = vmatprep.subr.bf16.mxu1 %v26070_v46 }
0x136e   : > { %17775 = vmatmul.mubr.msk.bf16.vlgmr.msra.gmra.mxu1 %vm7921_vm14, %v21882_v15  ;;  %v21989_v15 = vld [vmem:[%s29597_s5 + $0xc8] ss:$16 sps:$4 sm:$0xff]  }
0x136f   : > { %8060 = vmatpush1.bf16.msra.mxu1 %v26068_v38  ;;  %8077 = vmatprep.mubr.bf16.mxu1 %v23458_v62 }
0x1370   : > { %8475 = vmatprep.subr.bf16.mxu1 %v21886_v40  ;;  %v21994_v40 = vld [vmem:[%s29597_s5 + $0xa4] ss:$16 sps:$4 sm:$0xff]  }
0x1376   : > { %17779 = vmatmul.mubr.msk.bf16.vlgmr.msra.gmra.mxu1 %vm7921_vm14, %v21883_v54  ;;  %v21997_v54 = vld [vmem:[%s29597_s5 + $0xac] ss:$16 sps:$4 sm:$0xff]  }
0x1377   : > { %8476 = vmatpush1.bf16.msra.mxu1 %v21884_v43  ;;  %v21992_v43 = vld [vmem:[%s29597_s5 + $0xa0] ss:$16 sps:$4 sm:$0xff]  }
0x1378   : > { %8477 = vmatprep.subr.bf16.mxu1 %v21892_v59  ;;  %v21995_v59 = vld [vmem:[%s29597_s5 + $0xa8] ss:$16 sps:$4 sm:$0xff]  }
0x137b   : > { %8478 = vmatpush1.bf16.msra.mxu1 %v21890_v30  ;;  %v22000_v30 = vld [vmem:[%s29597_s5 + $0x84] ss:$16 sps:$4 sm:$0xff]  }
0x137c   : > { %8479 = vmatprep.subr.bf16.mxu1 %v21898_v56  ;;  %v22003_v56 = vld [vmem:[%s29597_s5 + $0x8c] ss:$16 sps:$4 sm:$0xff]  }
0x137f   : > { %8480 = vmatpush1.bf16.msra.mxu1 %v21896_v34  ;;  %v21998_v34 = vld [vmem:[%s29597_s5 + $0x80] ss:$16 sps:$4 sm:$0xff]  }
0x1380   : > { %8481 = vmatprep.subr.bf16.mxu1 %v21904_v20  ;;  %v22001_v20 = vld [vmem:[%s29597_s5 + $0x88] ss:$16 sps:$4 sm:$0xff]  }
0x1383   : > { %8482 = vmatpush1.bf16.msra.mxu1 %v21902_v32  ;;  %v22006_v32 = vld [vmem:[%s29597_s5 + $0x64] ss:$16 sps:$4 sm:$0xff]  }
0x1384   : > { %8483 = vmatprep.subr.bf16.mxu1 %v21910_v28  ;;  %v22009_v28 = vld [vmem:[%s29597_s5 + $0x6c] ss:$16 sps:$4 sm:$0xff]  }
0x1387   : > { %8484 = vmatpush1.bf16.msra.mxu1 %v21908_v61  ;;  %v22004_v61 = vld [vmem:[%s29597_s5 + $0x60] ss:$16 sps:$4 sm:$0xff]  }
0x1388   : > { %8485 = vmatprep.subr.bf16.mxu1 %v21916_v41  ;;  %v22007_v41 = vld [vmem:[%s29597_s5 + $0x68] ss:$16 sps:$4 sm:$0xff]  }
0x138b   : > { %8486 = vmatpush1.bf16.msra.mxu1 %v21914_v45  ;;  %v22012_v45 = vld [vmem:[%s29597_s5 + $0x44] ss:$16 sps:$4 sm:$0xff]  }
0x138c   : > { %8487 = vmatprep.subr.bf16.mxu1 %v21922_v18  ;;  %v22015_v18 = vld [vmem:[%s29597_s5 + $0x4c] ss:$16 sps:$4 sm:$0xff]  }
0x138f   : > { %8488 = vmatpush1.bf16.msra.mxu1 %v21920_v14  ;;  %v22010_v14 = vld [vmem:[%s29597_s5 + $0x40] ss:$16 sps:$4 sm:$0xff]  }
0x1390   : > { %8489 = vmatprep.subr.bf16.mxu1 %v21928_v16  ;;  %v22013_v16 = vld [vmem:[%s29597_s5 + $0x48] ss:$16 sps:$4 sm:$0xff]  }
0x1393   : > { %8490 = vmatpush1.bf16.msra.mxu1 %v21926_v51  ;;  %v22018_v51 = vld [vmem:[%s29597_s5 + $0x24] ss:$16 sps:$4 sm:$0xff]  }
0x1394   : > { %8491 = vmatprep.subr.bf16.mxu1 %v21934_v52  ;;  %v22021_v52 = vld [vmem:[%s29597_s5 + $0x2c] ss:$16 sps:$4 sm:$0xff]  }
0x1397   : > { %8492 = vmatpush2.bf16.msra.mxu1 %v21932_v6  ;;  %v22016_v6 = vld [vmem:[%s29597_s5 + $0x20] ss:$16 sps:$4 sm:$0xff]  }
0x1398   : > { %8493 = vmatprep.subr.bf16.mxu1 %v21940_v27  ;;  %v22019_v27 = vld [vmem:[%s29597_s5 + $0x28] ss:$16 sps:$4 sm:$0xff]  }
0x139b   : > { %8494 = vmatpush2.bf16.msra.mxu1 %v21938_v21  ;;  %v22024_v21 = vld [vmem:[%s29597_s5 + $0x4] ss:$16 sps:$4 sm:$0xff]  }
0x139c   : > { %8495 = vmatprep.subr.bf16.mxu1 %v21946_v0  ;;  %v22027_v0 = vld [vmem:[%s29597_s5 + $0xc] ss:$16 sps:$4 sm:$0xff]  }
0x139f   : > { %8496 = vmatpush2.bf16.msra.mxu1 %v21944_v13  ;;  %v22022_v13 = vld [vmem:[%s29597_s5] ss:$16 sps:$4 sm:$0xff]  }
0x13a0   : > { %8497 = vmatprep.subr.bf16.mxu1 %v21952_v24  ;;  %v22025_v24 = vld [vmem:[%s29597_s5 + $0x8] ss:$16 sps:$4 sm:$0xff]  }
0x13a3   : > { %8498 = vmatpush2.bf16.msra.mxu1 %v21950_v11  ;;  %v22030_v11 = vld [vmem:[%s29597_s5 + $0x1e4] ss:$16 sps:$4 sm:$0xff]  }
0x13a4   : > { %8499 = vmatprep.subr.bf16.mxu1 %v21958_v57  ;;  %v22033_v57 = vld [vmem:[%s29597_s5 + $0x1ec] ss:$16 sps:$4 sm:$0xff]  }
0x13a7   : > { %8500 = vmatpush2.bf16.msra.mxu1 %v21956_v2  ;;  %v22031_v2 = vld [vmem:[%s29597_s5 + $0x1e8] ss:$16 sps:$4 sm:$0xff]  }
0x13a8   : > { %8501 = vmatprep.subr.bf16.mxu1 %v21964_v12  ;;  %v22039_v12 = vld [vmem:[%s29597_s5 + $0x1cc] ss:$16 sps:$4 sm:$0xff]  }
0x13ab   : > { %8502 = vmatpush2.bf16.msra.mxu1 %v21962_v63  ;;  %v22037_v63 = vld [vmem:[%s29597_s5 + $0x1c8] ss:$16 sps:$4 sm:$0xff]  }
0x13ac   : > { %8503 = vmatprep.subr.bf16.mxu1 %v21970_v55  ;;  %v22045_v55 = vld [vmem:[%s29597_s5 + $0x1ac] ss:$16 sps:$4 sm:$0xff]  }
0x13af   : > { %8504 = vmatpush2.bf16.msra.mxu1 %v21968_v25  ;;  %v22043_v25 = vld [vmem:[%s29597_s5 + $0x1a8] ss:$16 sps:$4 sm:$0xff]  }
0x13b0   : > { %8505 = vmatprep.subr.bf16.mxu1 %v21976_v37  ;;  %v22051_v37 = vld [vmem:[%s29597_s5 + $0x18c] ss:$16 sps:$4 sm:$0xff]  }
0x13b3   : > { %8506 = vmatpush2.bf16.msra.mxu1 %v21974_v35  ;;  %v22049_v35 = vld [vmem:[%s29597_s5 + $0x188] ss:$16 sps:$4 sm:$0xff]  }
0x13b4   : > { %8881 = vmatprep.subr.bf16.mxu1 %v21982_v33  ;;  %v22057_v33 = vld [vmem:[%s29597_s5 + $0x16c] ss:$16 sps:$4 sm:$0xff]  }
0x142e   : > { %v7959_v36 = vpop.f32.mrf.mxu1 }
0x1430   : > { %v7961_v49 = vpop.f32.mrf.mxu1 }
0x1432   : > { %v7963_v7 = vpop.f32.mrf.mxu1 }
0x1433   : > { %v26211_v26 = vpack.c.bf16 %v7963_v7, %v7959_v36  ;;  %v22055_v36 = vld [vmem:[%s29597_s5 + $0x168] ss:$16 sps:$4 sm:$0xff]   ;;  %v22063_v7 = vld [vmem:[%s29597_s5 + $0x14c] ss:$16 sps:$4 sm:$0xff]  }
0x1434   : > { %v7965_v5 = vpop.f32.mrf.mxu1 }
0x1435   : > { %v7969_v50 = vpack.c.bf16 %v7965_v5, %v7961_v49  ;;  %v22060_v49 = vld [vmem:[%s29597_s5 + $0x144] ss:$16 sps:$4 sm:$0xff]   ;;  %v22058_v5 = vld [vmem:[%s29597_s5 + $0x140] ss:$16 sps:$4 sm:$0xff]  }
0x1436   : > { %v8079_v44 = vpop.f32.mrf.mxu1 }
0x1438   : > { %v8081_v8 = vpop.f32.mrf.mxu1 }
0x143a   : > { %v8083_v53 = vpop.f32.mrf.mxu1 }
0x143b   : > { %v8088_v48 = vpack.c.bf16 %v8083_v53, %v8079_v44  ;;  %v22061_v44 = vld [vmem:[%s29597_s5 + $0x148] ss:$16 sps:$4 sm:$0xff]   ;;  %v22069_v53 = vld [vmem:[%s29597_s5 + $0x12c] ss:$16 sps:$4 sm:$0xff]  }
0x143c   : > { %v8085_v9 = vpop.f32.mrf.mxu1 }
0x143d   : > { %v8089_v42 = vpack.c.bf16 %v8085_v9, %v8081_v8  ;;  %v22066_v8 = vld [vmem:[%s29597_s5 + $0x124] ss:$16 sps:$4 sm:$0xff]   ;;  %v22064_v9 = vld [vmem:[%s29597_s5 + $0x120] ss:$16 sps:$4 sm:$0xff]  }
0x143f   : > { %8507 = vmatprep.mubr.bf16.mxu1 %v8089_v42  ;;  %8550 = vmatprep.mubr.bf16.mxu0 %v8089_v42  ;;  %v22067_v42 = vld [vmem:[%s29597_s5 + $0x128] ss:$16 sps:$4 sm:$0xff]  }
0x1440   : > { %8508 = vmatmul.mubr.bf16.vlgmr.msra.gmra.mxu1 %v8088_v48  ;;  %8551 = vmatmul.mubr.bf16.vlgmr.msra.gmra.mxu0 %v8088_v48  ;;  %v22070_v48 = vld [vmem:[%s29597_s5 + $0x100] ss:$16 sps:$4 sm:$0xff]  }
0x1441   : > { %8882 = vmatpush1.bf16.msra.mxu1 %v21980_v23  ;;  %8925 = vmatpush1.bf16.msra.mxu0 %v21983_v47  ;;  %v22072_v23 = vld [vmem:[%s29597_s5 + $0x104] ss:$16 sps:$4 sm:$0xff]   ;;  %v22075_v47 = vld [vmem:[%s29597_s5 + $0x10c] ss:$16 sps:$4 sm:$0xff]  }
0x1442   : > { %8913 = vmatprep.mubr.bf16.mxu1 %v7969_v50  ;;  %8956 = vmatprep.mubr.bf16.mxu0 %v7969_v50  ;;  %v22079_v50 = vld [vmem:[%s29600_s8 + $0x10] sm:$0x1f]  }
0x1443   : > { %8883 = vmatprep.subr.bf16.mxu1 %v21988_v31  ;;  %8926 = vmatprep.subr.bf16.mxu0 %v21991_v58  ;;  %v22073_v31 = vld [vmem:[%s29597_s5 + $0x108] ss:$16 sps:$4 sm:$0xff]   ;;  %v22078_v58 = vld [vmem:[%s29597_s5 + $0x4e4] ss:$16 sps:$4 sm:$0xff]  }
0x1445   : > { %8884 = vmatpush1.bf16.msra.mxu1 %v21986_v22  ;;  %8927 = vmatpush1.bf16.msra.mxu0 %v21989_v15  ;;  %v22076_v22 = vld [vmem:[%s29597_s5 + $0x4e0] ss:$16 sps:$4 sm:$0xff]   ;;  %v22082_v15 = vld [vmem:[%s29597_s5 + $0x4c4] ss:$16 sps:$4 sm:$0xff]  }
0x1446   : > { %8885 = vmatprep.subr.bf16.mxu1 %v21994_v40  ;;  %8928 = vmatprep.subr.bf16.mxu0 %v21997_v54  ;;  %v22127_v40 = vld [vmem:[%s29597_s5 + $0x4ec] ss:$16 sps:$4 sm:$0xff]  }
0x1447   : > { %v22130_v54 = vld [vmem:[%s29597_s5 + $0x4cc] ss:$16 sps:$4 sm:$0xff]  }
0x1449   : > { %8886 = vmatpush1.bf16.msra.mxu1 %v21992_v43  ;;  %8929 = vmatpush1.bf16.msra.mxu0 %v21995_v59  ;;  %v22080_v43 = vld [vmem:[%s29597_s5 + $0x4c0] ss:$16 sps:$4 sm:$0xff]   ;;  %v22128_v59 = vld [vmem:[%s29597_s5 + $0x4c8] ss:$16 sps:$4 sm:$0xff]  }
0x144a   : > { %8887 = vmatprep.subr.bf16.mxu1 %v22000_v30  ;;  %8930 = vmatprep.subr.bf16.mxu0 %v22003_v56  ;;  %v22085_v30 = vld [vmem:[%s29597_s5 + $0x4a4] ss:$16 sps:$4 sm:$0xff]   ;;  %v22133_v56 = vld [vmem:[%s29597_s5 + $0x4ac] ss:$16 sps:$4 sm:$0xff]  }
0x144d   : > { %8888 = vmatpush1.bf16.msra.mxu1 %v21998_v34  ;;  %8931 = vmatpush1.bf16.msra.mxu0 %v22001_v20  ;;  %v22083_v34 = vld [vmem:[%s29597_s5 + $0x4a0] ss:$16 sps:$4 sm:$0xff]   ;;  %v22131_v20 = vld [vmem:[%s29597_s5 + $0x4a8] ss:$16 sps:$4 sm:$0xff]  }
0x144e   : > { %8889 = vmatprep.subr.bf16.mxu1 %v22006_v32  ;;  %8932 = vmatprep.subr.bf16.mxu0 %v22009_v28  ;;  %v22088_v32 = vld [vmem:[%s29597_s5 + $0x484] ss:$16 sps:$4 sm:$0xff]   ;;  %v22136_v28 = vld [vmem:[%s29597_s5 + $0x48c] ss:$16 sps:$4 sm:$0xff]  }
0x1451   : > { %8890 = vmatpush1.bf16.msra.mxu1 %v22004_v61  ;;  %8933 = vmatpush1.bf16.msra.mxu0 %v22007_v41  ;;  %v22086_v61 = vld [vmem:[%s29597_s5 + $0x480] ss:$16 sps:$4 sm:$0xff]   ;;  %v22134_v41 = vld [vmem:[%s29597_s5 + $0x488] ss:$16 sps:$4 sm:$0xff]  }
0x1452   : > { %8891 = vmatprep.subr.bf16.mxu1 %v22012_v45  ;;  %8934 = vmatprep.subr.bf16.mxu0 %v22015_v18  ;;  %v22091_v45 = vld [vmem:[%s29597_s5 + $0x464] ss:$16 sps:$4 sm:$0xff]   ;;  %v22139_v18 = vld [vmem:[%s29597_s5 + $0x46c] ss:$16 sps:$4 sm:$0xff]  }
0x1455   : > { %8892 = vmatpush1.bf16.msra.mxu1 %v22010_v14  ;;  %8935 = vmatpush1.bf16.msra.mxu0 %v22013_v16  ;;  %v22089_v14 = vld [vmem:[%s29597_s5 + $0x460] ss:$16 sps:$4 sm:$0xff]   ;;  %v22137_v16 = vld [vmem:[%s29597_s5 + $0x468] ss:$16 sps:$4 sm:$0xff]  }
0x1456   : > { %8893 = vmatprep.subr.bf16.mxu1 %v22018_v51  ;;  %8936 = vmatprep.subr.bf16.mxu0 %v22021_v52  ;;  %v22094_v51 = vld [vmem:[%s29597_s5 + $0x444] ss:$16 sps:$4 sm:$0xff]   ;;  %v22142_v52 = vld [vmem:[%s29597_s5 + $0x44c] ss:$16 sps:$4 sm:$0xff]  }
0x1459   : > { %8894 = vmatpush1.bf16.msra.mxu1 %v22016_v6  ;;  %8937 = vmatpush1.bf16.msra.mxu0 %v22019_v27  ;;  %v22092_v6 = vld [vmem:[%s29597_s5 + $0x440] ss:$16 sps:$4 sm:$0xff]   ;;  %v22140_v27 = vld [vmem:[%s29597_s5 + $0x448] ss:$16 sps:$4 sm:$0xff]  }
0x145a   : > { %8895 = vmatprep.subr.bf16.mxu1 %v22024_v21  ;;  %8938 = vmatprep.subr.bf16.mxu0 %v22027_v0  ;;  %v22097_v21 = vld [vmem:[%s29597_s5 + $0x424] ss:$16 sps:$4 sm:$0xff]   ;;  %v22145_v0 = vld [vmem:[%s29597_s5 + $0x42c] ss:$16 sps:$4 sm:$0xff]  }
0x145d   : > { %8896 = vmatpush1.bf16.msra.mxu1 %v22022_v13  ;;  %8939 = vmatpush1.bf16.msra.mxu0 %v22025_v24  ;;  %v22095_v13 = vld [vmem:[%s29597_s5 + $0x420] ss:$16 sps:$4 sm:$0xff]   ;;  %v22143_v24 = vld [vmem:[%s29597_s5 + $0x428] ss:$16 sps:$4 sm:$0xff]  }
0x145e   : > { %8897 = vmatprep.subr.bf16.mxu1 %v22030_v11  ;;  %8940 = vmatprep.subr.bf16.mxu0 %v22033_v57  ;;  %v22100_v11 = vld [vmem:[%s29597_s5 + $0x404] ss:$16 sps:$4 sm:$0xff]   ;;  %v22148_v57 = vld [vmem:[%s29597_s5 + $0x40c] ss:$16 sps:$4 sm:$0xff]  }
0x1461   : > { %8898 = vmatpush2.bf16.msra.mxu1 %v22028_v3  ;;  %8941 = vmatpush2.bf16.msra.mxu0 %v22031_v2  ;;  %v22098_v3 = vld [vmem:[%s29597_s5 + $0x400] ss:$16 sps:$4 sm:$0xff]   ;;  %v22146_v2 = vld [vmem:[%s29597_s5 + $0x408] ss:$16 sps:$4 sm:$0xff]  }
0x1462   : > { %8899 = vmatprep.subr.bf16.mxu1 %v22036_v17  ;;  %8942 = vmatprep.subr.bf16.mxu0 %v22039_v12  ;;  %v22103_v17 = vld [vmem:[%s29597_s5 + $0x5e4] ss:$16 sps:$4 sm:$0xff]   ;;  %v22151_v12 = vld [vmem:[%s29597_s5 + $0x5ec] ss:$16 sps:$4 sm:$0xff]  }
0x1465   : > { %8900 = vmatpush2.bf16.msra.mxu1 %v22034_v39  ;;  %8943 = vmatpush2.bf16.msra.mxu0 %v22037_v63  ;;  %v22101_v39 = vld [vmem:[%s29597_s5 + $0x5e0] ss:$16 sps:$4 sm:$0xff]   ;;  %v22149_v63 = vld [vmem:[%s29597_s5 + $0x5e8] ss:$16 sps:$4 sm:$0xff]  }
0x1466   : > { %8901 = vmatprep.subr.bf16.mxu1 %v22042_v4  ;;  %8944 = vmatprep.subr.bf16.mxu0 %v22045_v55  ;;  %v22106_v4 = vld [vmem:[%s29597_s5 + $0x5c4] ss:$16 sps:$4 sm:$0xff]   ;;  %v22154_v55 = vld [vmem:[%s29597_s5 + $0x5cc] ss:$16 sps:$4 sm:$0xff]  }
0x1469   : > { %8902 = vmatpush2.bf16.msra.mxu1 %v22040_v60  ;;  %8945 = vmatpush2.bf16.msra.mxu0 %v22043_v25  ;;  %v22104_v60 = vld [vmem:[%s29597_s5 + $0x5c0] ss:$16 sps:$4 sm:$0xff]   ;;  %v22152_v25 = vld [vmem:[%s29597_s5 + $0x5c8] ss:$16 sps:$4 sm:$0xff]  }
0x146a   : > { %8903 = vmatprep.subr.bf16.mxu1 %v22048_v1  ;;  %8946 = vmatprep.subr.bf16.mxu0 %v22051_v37  ;;  %v22109_v1 = vld [vmem:[%s29597_s5 + $0x5a4] ss:$16 sps:$4 sm:$0xff]   ;;  %v22157_v37 = vld [vmem:[%s29597_s5 + $0x5ac] ss:$16 sps:$4 sm:$0xff]  }
0x146d   : > { %8904 = vmatpush2.bf16.msra.mxu1 %v22046_v10  ;;  %8947 = vmatpush2.bf16.msra.mxu0 %v22049_v35  ;;  %v22107_v10 = vld [vmem:[%s29597_s5 + $0x5a0] ss:$16 sps:$4 sm:$0xff]   ;;  %v22155_v35 = vld [vmem:[%s29597_s5 + $0x5a8] ss:$16 sps:$4 sm:$0xff]  }
0x146e   : > { %8905 = vmatprep.subr.bf16.mxu1 %v22054_v29  ;;  %8948 = vmatprep.subr.bf16.mxu0 %v22057_v33  ;;  %v22112_v29 = vld [vmem:[%s29597_s5 + $0x584] ss:$16 sps:$4 sm:$0xff]   ;;  %v22160_v33 = vld [vmem:[%s29597_s5 + $0x58c] ss:$16 sps:$4 sm:$0xff]  }
0x1471   : > { %8906 = vmatpush2.bf16.msra.mxu1 %v22052_v19  ;;  %8949 = vmatpush2.bf16.msra.mxu0 %v22055_v36  ;;  %v22110_v19 = vld [vmem:[%s29597_s5 + $0x580] ss:$16 sps:$4 sm:$0xff]   ;;  %v22158_v36 = vld [vmem:[%s29597_s5 + $0x588] ss:$16 sps:$4 sm:$0xff]  }
0x1472   : > { %8907 = vmatprep.subr.bf16.mxu1 %v22060_v49  ;;  %8950 = vmatprep.subr.bf16.mxu0 %v22063_v7  ;;  %v22115_v49 = vld [vmem:[%s29597_s5 + $0x564] ss:$16 sps:$4 sm:$0xff]   ;;  %v22113_v7 = vld [vmem:[%s29597_s5 + $0x560] ss:$16 sps:$4 sm:$0xff]  }
0x1475   : > { %8908 = vmatpush2.bf16.msra.mxu1 %v22058_v5  ;;  %8951 = vmatpush2.bf16.msra.mxu0 %v22061_v44  ;;  %v22118_v5 = vld [vmem:[%s29597_s5 + $0x544] ss:$16 sps:$4 sm:$0xff]   ;;  %v22116_v44 = vld [vmem:[%s29597_s5 + $0x540] ss:$16 sps:$4 sm:$0xff]  }
0x1476   : > { %8909 = vmatprep.subr.bf16.mxu1 %v22066_v8  ;;  %8952 = vmatprep.subr.bf16.mxu0 %v22069_v53  ;;  %v22121_v8 = vld [vmem:[%s29597_s5 + $0x524] ss:$16 sps:$4 sm:$0xff]   ;;  %v22119_v53 = vld [vmem:[%s29597_s5 + $0x520] ss:$16 sps:$4 sm:$0xff]  }
0x1479   : > { %8910 = vmatpush2.bf16.msra.mxu1 %v22064_v9  ;;  %8953 = vmatpush2.bf16.msra.mxu0 %v22067_v42  ;;  %v22124_v9 = vld [vmem:[%s29597_s5 + $0x504] ss:$16 sps:$4 sm:$0xff]   ;;  %v22163_v42 = vld [vmem:[%s29597_s5 + $0x56c] ss:$16 sps:$4 sm:$0xff]  }
0x147a   : > { %8911 = vmatprep.subr.bf16.mxu1 %v22072_v23  ;;  %8954 = vmatprep.subr.bf16.mxu0 %v22075_v47  ;;  %v22122_v23 = vld [vmem:[%s29597_s5 + $0x500] ss:$16 sps:$4 sm:$0xff]   ;;  %v22161_v47 = vld [vmem:[%s29597_s5 + $0x568] ss:$16 sps:$4 sm:$0xff]  }
0x147d   : > { %8912 = vmatpush2.bf16.msra.mxu1 %v22070_v48  ;;  %8955 = vmatpush2.bf16.msra.mxu0 %v22073_v31  ;;  %v22166_v48 = vld [vmem:[%s29597_s5 + $0x54c] ss:$16 sps:$4 sm:$0xff]   ;;  %v22164_v31 = vld [vmem:[%s29597_s5 + $0x548] ss:$16 sps:$4 sm:$0xff]  }
0x147e   : > { %8992 = vmatprep.subr.bf16.mxu1 %v26070_v46  ;;  %9451 = vmatprep.subr.bf16.mxu0 %v22127_v40 }
0x1480   : > { %8914 = vmatmul.mubr.bf16.vlgmr.msra.gmra.mxu1 %v26211_v26  ;;  %8957 = vmatmul.mubr.bf16.vlgmr.msra.gmra.mxu0 %v26211_v26  ;;  %v22125_v26 = vld [vmem:[%s29597_s5 + $0x4e8] ss:$16 sps:$4 sm:$0xff]  }
0x1481   : > { %8993 = vmatpush1.bf16.msra.mxu1 %v26068_v38  ;;  %9010 = vmatprep.mubr.bf16.mxu1 %v23458_v62 }
0x1482   : > { %9408 = vmatprep.subr.bf16.mxu1 %v22078_v58  ;;  %9452 = vmatpush1.bf16.msra.mxu0 %v22125_v26  ;;  %v22167_v58 = vld [vmem:[%s29597_s5 + $0x528] ss:$16 sps:$4 sm:$0xff]   ;;  %v22175_v26 = vld [vmem:[%s29597_s5 + $0x6e4] ss:$16 sps:$4 sm:$0xff]  }
0x1483   : > { %9453 = vmatprep.subr.bf16.mxu0 %v22130_v54 }
0x1486   : > { %9454 = vmatpush1.bf16.msra.mxu0 %v22128_v59 }
0x1487   : > { %9455 = vmatprep.subr.bf16.mxu0 %v22133_v56 }
0x1488   : > { %17975 = vmatmul.mubr.msk.bf16.vlgmr.msra.gmra.mxu1 %vm7921_vm14, %v22079_v50  ;;  %v22169_v50 = vld [vmem:[%s29597_s5 + $0x52c] ss:$16 sps:$4 sm:$0xff]  }
0x1489   : > { %9409 = vmatpush1.bf16.msra.mxu1 %v22076_v22  ;;  %v22172_v22 = vld [vmem:[%s29597_s5 + $0x50c] ss:$16 sps:$4 sm:$0xff]  }
0x148a   : > { %9410 = vmatprep.subr.bf16.mxu1 %v22082_v15  ;;  %9456 = vmatpush1.bf16.msra.mxu0 %v22131_v20  ;;  %v22170_v15 = vld [vmem:[%s29597_s5 + $0x508] ss:$16 sps:$4 sm:$0xff]  }
0x148b   : > { %9457 = vmatprep.subr.bf16.mxu0 %v22136_v28 }
0x148d   : > { %9411 = vmatpush1.bf16.msra.mxu1 %v22080_v43 }
0x148e   : > { %9412 = vmatprep.subr.bf16.mxu1 %v22085_v30  ;;  %9458 = vmatpush1.bf16.msra.mxu0 %v22134_v41 }
0x148f   : > { %9459 = vmatprep.subr.bf16.mxu0 %v22139_v18 }
0x1491   : > { %9413 = vmatpush1.bf16.msra.mxu1 %v22083_v34 }
0x1492   : > { %9414 = vmatprep.subr.bf16.mxu1 %v22088_v32  ;;  %9460 = vmatpush1.bf16.msra.mxu0 %v22137_v16 }
0x1493   : > { %9461 = vmatprep.subr.bf16.mxu0 %v22142_v52 }
0x1495   : > { %9415 = vmatpush1.bf16.msra.mxu1 %v22086_v61 }
0x1496   : > { %9416 = vmatprep.subr.bf16.mxu1 %v22091_v45  ;;  %9462 = vmatpush1.bf16.msra.mxu0 %v22140_v27 }
0x1497   : > { %9463 = vmatprep.subr.bf16.mxu0 %v22145_v0 }
0x1499   : > { %9417 = vmatpush1.bf16.msra.mxu1 %v22089_v14 }
0x149a   : > { %9418 = vmatprep.subr.bf16.mxu1 %v22094_v51  ;;  %9464 = vmatpush1.bf16.msra.mxu0 %v22143_v24 }
0x149b   : > { %9465 = vmatprep.subr.bf16.mxu0 %v22148_v57 }
0x149d   : > { %9419 = vmatpush1.bf16.msra.mxu1 %v22092_v6 }
0x149e   : > { %9420 = vmatprep.subr.bf16.mxu1 %v22097_v21  ;;  %9466 = vmatpush1.bf16.msra.mxu0 %v22146_v2  ;;  %v22173_v2 = vld [vmem:[%s29597_s5 + $0x6e0] ss:$16 sps:$4 sm:$0xff]  }
0x149f   : > { %9467 = vmatprep.subr.bf16.mxu0 %v22151_v12  ;;  %v22178_v12 = vld [vmem:[%s29597_s5 + $0x6c4] ss:$16 sps:$4 sm:$0xff]  }
0x14a1   : > { %9421 = vmatpush1.bf16.msra.mxu1 %v22095_v13 }
0x14a2   : > { %9422 = vmatprep.subr.bf16.mxu1 %v22100_v11  ;;  %9468 = vmatpush2.bf16.msra.mxu0 %v22149_v63  ;;  %v22176_v63 = vld [vmem:[%s29597_s5 + $0x6c0] ss:$16 sps:$4 sm:$0xff]  }
0x14a3   : > { %9469 = vmatprep.subr.bf16.mxu0 %v22154_v55  ;;  %v22182_v55 = vld [vmem:[%s29600_s8 + $0x18] sm:$0x1f]  }
0x14a5   : > { %9423 = vmatpush1.bf16.msra.mxu1 %v22098_v3 }
0x14a6   : > { %9424 = vmatprep.subr.bf16.mxu1 %v22103_v17  ;;  %9470 = vmatpush2.bf16.msra.mxu0 %v22152_v25  ;;  %v22222_v25 = vld [vmem:[%s29597_s5 + $0x6e8] ss:$16 sps:$4 sm:$0xff]  }
0x14a7   : > { %9471 = vmatprep.subr.bf16.mxu0 %v22157_v37  ;;  %v22227_v37 = vld [vmem:[%s29597_s5 + $0x6cc] ss:$16 sps:$4 sm:$0xff]  }
0x14a9   : > { %9425 = vmatpush2.bf16.msra.mxu1 %v22101_v39  ;;  %v22224_v39 = vld [vmem:[%s29597_s5 + $0x6ec] ss:$16 sps:$4 sm:$0xff]  }
0x14aa   : > { %9426 = vmatprep.subr.bf16.mxu1 %v22106_v4  ;;  %9472 = vmatpush2.bf16.msra.mxu0 %v22155_v35  ;;  %v22181_v4 = vld [vmem:[%s29597_s5 + $0x6a4] ss:$16 sps:$4 sm:$0xff]   ;;  %v22225_v35 = vld [vmem:[%s29597_s5 + $0x6c8] ss:$16 sps:$4 sm:$0xff]  }
0x14ab   : > { %9473 = vmatprep.subr.bf16.mxu0 %v22160_v33  ;;  %v22230_v33 = vld [vmem:[%s29597_s5 + $0x6ac] ss:$16 sps:$4 sm:$0xff]  }
0x14ad   : > { %9427 = vmatpush2.bf16.msra.mxu1 %v22104_v60  ;;  %v22179_v60 = vld [vmem:[%s29597_s5 + $0x6a0] ss:$16 sps:$4 sm:$0xff]  }
0x14ae   : > { %9428 = vmatprep.subr.bf16.mxu1 %v22109_v1  ;;  %9474 = vmatpush2.bf16.msra.mxu0 %v22158_v36  ;;  %v22185_v1 = vld [vmem:[%s29597_s5 + $0x684] ss:$16 sps:$4 sm:$0xff]   ;;  %v22228_v36 = vld [vmem:[%s29597_s5 + $0x6a8] ss:$16 sps:$4 sm:$0xff]  }
0x14af   : > { %9475 = vmatprep.subr.bf16.mxu0 %v22163_v42  ;;  %v22234_v42 = vld [vmem:[%s29597_s5 + $0x668] ss:$16 sps:$4 sm:$0xff]  }
0x14b1   : > { %9429 = vmatpush2.bf16.msra.mxu1 %v22107_v10  ;;  %v22183_v10 = vld [vmem:[%s29597_s5 + $0x680] ss:$16 sps:$4 sm:$0xff]  }
0x14b2   : > { %9430 = vmatprep.subr.bf16.mxu1 %v22112_v29  ;;  %9476 = vmatpush2.bf16.msra.mxu0 %v22161_v47  ;;  %v22188_v29 = vld [vmem:[%s29597_s5 + $0x664] ss:$16 sps:$4 sm:$0xff]   ;;  %v22239_v47 = vld [vmem:[%s29597_s5 + $0x64c] ss:$16 sps:$4 sm:$0xff]  }
0x14b3   : > { %9477 = vmatprep.subr.bf16.mxu0 %v22166_v48  ;;  %v22195_v48 = vld [vmem:[%s29597_s5 + $0x600] ss:$16 sps:$4 sm:$0xff]  }
0x14b5   : > { %9431 = vmatpush2.bf16.msra.mxu1 %v22110_v19  ;;  %v22186_v19 = vld [vmem:[%s29597_s5 + $0x660] ss:$16 sps:$4 sm:$0xff]  }
0x14b6   : > { %9432 = vmatprep.subr.bf16.mxu1 %v22115_v49  ;;  %9478 = vmatpush2.bf16.msra.mxu0 %v22164_v31  ;;  %v22191_v49 = vld [vmem:[%s29597_s5 + $0x644] ss:$16 sps:$4 sm:$0xff]   ;;  %v22237_v31 = vld [vmem:[%s29597_s5 + $0x648] ss:$16 sps:$4 sm:$0xff]  }
0x14b7   : > { %9479 = vmatprep.subr.bf16.mxu0 %v22169_v50  ;;  %v22242_v50 = vld [vmem:[%s29597_s5 + $0x62c] ss:$16 sps:$4 sm:$0xff]  }
0x14b9   : > { %9433 = vmatpush2.bf16.msra.mxu1 %v22113_v7  ;;  %v22233_v7 = vld [vmem:[%s29597_s5 + $0x68c] ss:$16 sps:$4 sm:$0xff]  }
0x14ba   : > { %9434 = vmatprep.subr.bf16.mxu1 %v22118_v5  ;;  %9480 = vmatpush2.bf16.msra.mxu0 %v22167_v58  ;;  %v22189_v5 = vld [vmem:[%s29597_s5 + $0x640] ss:$16 sps:$4 sm:$0xff]   ;;  %v22200_v58 = vld [vmem:[%s29597_s5 + $0x7e4] ss:$16 sps:$4 sm:$0xff]  }
0x14bb   : > { %9481 = vmatprep.subr.bf16.mxu0 %v22172_v22  ;;  %v22198_v22 = vld [vmem:[%s29597_s5 + $0x7e0] ss:$16 sps:$4 sm:$0xff]  }
0x14bd   : > { %9435 = vmatpush2.bf16.msra.mxu1 %v22116_v44  ;;  %v22231_v44 = vld [vmem:[%s29597_s5 + $0x688] ss:$16 sps:$4 sm:$0xff]  }
0x14be   : > { %9436 = vmatprep.subr.bf16.mxu1 %v22121_v8  ;;  %9482 = vmatpush2.bf16.msra.mxu0 %v22170_v15  ;;  %v22194_v8 = vld [vmem:[%s29597_s5 + $0x624] ss:$16 sps:$4 sm:$0xff]   ;;  %v22240_v15 = vld [vmem:[%s29597_s5 + $0x628] ss:$16 sps:$4 sm:$0xff]  }
0x14bf   : > { %9943 = vmatprep.subr.bf16.mxu0 %v22175_v26  ;;  %v22203_v26 = vld [vmem:[%s29597_s5 + $0x7c4] ss:$16 sps:$4 sm:$0xff]  }
0x14c1   : > { %9437 = vmatpush2.bf16.msra.mxu1 %v22119_v53  ;;  %v22236_v53 = vld [vmem:[%s29597_s5 + $0x66c] ss:$16 sps:$4 sm:$0xff]  }
0x14c2   : > { %9438 = vmatprep.subr.bf16.mxu1 %v22124_v9  ;;  %v22192_v9 = vld [vmem:[%s29597_s5 + $0x620] ss:$16 sps:$4 sm:$0xff]  }
0x14c5   : > { %9439 = vmatpush2.bf16.msra.mxu1 %v22122_v23  ;;  %v22197_v23 = vld [vmem:[%s29597_s5 + $0x604] ss:$16 sps:$4 sm:$0xff]  }
0x14c6   : > { %9527 = vmatprep.subr.bf16.mxu1 %v26070_v46 }
0x1500   : > { %v8509_v40 = vpop.f32.mrf.mxu1  ;;  %v8552_v54 = vpop.f32.mrf.mxu0 }
0x1502   : > { %v8511_v43 = vpop.f32.mrf.mxu1  ;;  %v8554_v59 = vpop.f32.mrf.mxu0 }
0x1504   : > { %v8513_v30 = vpop.f32.mrf.mxu1  ;;  %v8556_v56 = vpop.f32.mrf.mxu0 }
0x1506   : > { %v8515_v34 = vpop.f32.mrf.mxu1  ;;  %v26604_v20 = vpop.f32.mrf.mxu0 }
0x1540   : > { %v8915_v32 = vpop.f32.mrf.mxu1  ;;  %v8958_v28 = vpop.f32.mrf.mxu0 }
0x1541   : > { %v26606_v61 = vadd.f32 %v8915_v32, %v8509_v40  ;;  %v26608_v41 = vadd.f32 %v8958_v28, %v8552_v54  ;;  %v22245_v40 = vld [vmem:[%s29597_s5 + $0x60c] ss:$16 sps:$4 sm:$0xff]   ;;  %v22201_v54 = vld [vmem:[%s29597_s5 + $0x7c0] ss:$16 sps:$4 sm:$0xff]   ;;  %v22209_v32 = vld [vmem:[%s29597_s5 + $0x784] ss:$16 sps:$4 sm:$0xff]  }
0x1542   : > { %v8917_v45 = vpop.f32.mrf.mxu1  ;;  %v8960_v18 = vpop.f32.mrf.mxu0  ;;  %v22251_v28 = vld [vmem:[%s29597_s5 + $0x7cc] ss:$16 sps:$4 sm:$0xff]  }
0x1543   : > { %v26610_v14 = vadd.f32 %v8917_v45, %v8511_v43  ;;  %v26612_v16 = vadd.f32 %v8960_v18, %v8554_v59  ;;  %v22243_v43 = vld [vmem:[%s29597_s5 + $0x608] ss:$16 sps:$4 sm:$0xff]   ;;  %v22206_v59 = vld [vmem:[%s29597_s5 + $0x7a4] ss:$16 sps:$4 sm:$0xff]   ;;  %v22207_v45 = vld [vmem:[%s29597_s5 + $0x780] ss:$16 sps:$4 sm:$0xff]  }
0x1544   : > { %v8919_v51 = vpop.f32.mrf.mxu1  ;;  %v8962_v52 = vpop.f32.mrf.mxu0  ;;  %v22249_v18 = vld [vmem:[%s29597_s5 + $0x7c8] ss:$16 sps:$4 sm:$0xff]  }
0x1545   : > { %v26614_v6 = vadd.f32 %v8919_v51, %v8513_v30  ;;  %v26616_v27 = vadd.f32 %v8962_v52, %v8556_v56  ;;  %v22248_v30 = vld [vmem:[%s29597_s5 + $0x7ec] ss:$16 sps:$4 sm:$0xff]   ;;  %v22204_v56 = vld [vmem:[%s29597_s5 + $0x7a0] ss:$16 sps:$4 sm:$0xff]   ;;  %v22212_v51 = vld [vmem:[%s29597_s5 + $0x764] ss:$16 sps:$4 sm:$0xff]  }
0x1546   : > { %v8921_v21 = vpop.f32.mrf.mxu1  ;;  %v22254_v52 = vld [vmem:[%s29597_s5 + $0x7ac] ss:$16 sps:$4 sm:$0xff]  }
0x1547   : > { %v26618_v0 = vadd.f32 %v8921_v21, %v8515_v34  ;;  %v22246_v34 = vld [vmem:[%s29597_s5 + $0x7e8] ss:$16 sps:$4 sm:$0xff]   ;;  %v22210_v21 = vld [vmem:[%s29597_s5 + $0x760] ss:$16 sps:$4 sm:$0xff]  }
0x1548   : > { %v9012_v13 = vpop.f32.mrf.mxu1 }
0x154a   : > { %v9014_v24 = vpop.f32.mrf.mxu1 }
0x154c   : > { %v9016_v11 = vpop.f32.mrf.mxu1 }
0x154d   : > { %v9021_v17 = vpack.c.bf16 %v9016_v11, %v9012_v13  ;;  %v22252_v13 = vld [vmem:[%s29597_s5 + $0x7a8] ss:$16 sps:$4 sm:$0xff]   ;;  %v22257_v11 = vld [vmem:[%s29597_s5 + $0x78c] ss:$16 sps:$4 sm:$0xff]  }
0x154e   : > { %v9018_v57 = vpop.f32.mrf.mxu1 }
0x154f   : > { %v9022_v3 = vpack.c.bf16 %v9018_v57, %v9014_v24  ;;  %v22215_v24 = vld [vmem:[%s29597_s5 + $0x744] ss:$16 sps:$4 sm:$0xff]   ;;  %v22213_v57 = vld [vmem:[%s29597_s5 + $0x740] ss:$16 sps:$4 sm:$0xff]  }
0x1551   : > { %9440 = vmatprep.mubr.bf16.mxu1 %v9022_v3  ;;  %9483 = vmatprep.mubr.bf16.mxu0 %v9022_v3  ;;  %v22255_v3 = vld [vmem:[%s29597_s5 + $0x788] ss:$16 sps:$4 sm:$0xff]  }
0x1552   : > { %9441 = vmatmul.mubr.bf16.vlgmr.msra.gmra.mxu1 %v9021_v17  ;;  %9484 = vmatmul.mubr.bf16.vlgmr.msra.gmra.mxu0 %v9021_v17  ;;  %v22216_v17 = vld [vmem:[%s29597_s5 + $0x720] ss:$16 sps:$4 sm:$0xff]  }
0x1553   : > { %9528 = vmatpush1.bf16.msra.mxu1 %v26068_v38  ;;  %9944 = vmatpush1.bf16.msra.mxu0 %v22173_v2  ;;  %v22218_v2 = vld [vmem:[%s29597_s5 + $0x724] ss:$16 sps:$4 sm:$0xff]  }
0x1554   : > { %9945 = vmatprep.subr.bf16.mxu0 %v22178_v12  ;;  %9545 = vmatprep.mubr.bf16.mxu1 %v23458_v62  ;;  %v22221_v12 = vld [vmem:[%s29597_s5 + $0x704] ss:$16 sps:$4 sm:$0xff]  }
0x1555   : > { %9986 = vmatprep.subr.bf16.mxu1 %v22224_v39  ;;  %v22219_v39 = vld [vmem:[%s29597_s5 + $0x700] ss:$16 sps:$4 sm:$0xff]  }
0x1557   : > { %9946 = vmatpush1.bf16.msra.mxu0 %v22176_v63  ;;  %v22260_v63 = vld [vmem:[%s29597_s5 + $0x76c] ss:$16 sps:$4 sm:$0xff]  }
0x1558   : > { %9947 = vmatprep.subr.bf16.mxu0 %v22181_v4  ;;  %v22258_v4 = vld [vmem:[%s29597_s5 + $0x768] ss:$16 sps:$4 sm:$0xff]  }
0x155a   : > { %18107 = vmatmul.mubr.msk.bf16.vlgmr.msra.gmra.mxu1 %vm7921_vm14, %v22182_v55  ;;  %v22263_v55 = vld [vmem:[%s29597_s5 + $0x74c] ss:$16 sps:$4 sm:$0xff]  }
0x155b   : > { %9948 = vmatpush1.bf16.msra.mxu0 %v22179_v60  ;;  %9987 = vmatpush1.bf16.msra.mxu1 %v22222_v25  ;;  %v22261_v60 = vld [vmem:[%s29597_s5 + $0x748] ss:$16 sps:$4 sm:$0xff]  }
0x155c   : > { %9949 = vmatprep.subr.bf16.mxu0 %v22185_v1  ;;  %9988 = vmatprep.subr.bf16.mxu1 %v22227_v37  ;;  %v22264_v25 = vld [vmem:[%s29597_s5 + $0x728] ss:$16 sps:$4 sm:$0xff]   ;;  %v22266_v1 = vld [vmem:[%s29597_s5 + $0x72c] ss:$16 sps:$4 sm:$0xff]  }
0x155d   : > { %v22269_v37 = vld [vmem:[%s29597_s5 + $0x70c] ss:$16 sps:$4 sm:$0xff]  }
0x155f   : > { %9950 = vmatpush1.bf16.msra.mxu0 %v22183_v10  ;;  %9989 = vmatpush1.bf16.msra.mxu1 %v22225_v35  ;;  %v22267_v10 = vld [vmem:[%s29597_s5 + $0x708] ss:$16 sps:$4 sm:$0xff]   ;;  %v22272_v35 = vld [vmem:[%s29597_s5 + $0x8e4] ss:$16 sps:$4 sm:$0xff]  }
0x1560   : > { %9951 = vmatprep.subr.bf16.mxu0 %v22188_v29  ;;  %9990 = vmatprep.subr.bf16.mxu1 %v22230_v33  ;;  %v26819_v29 = vpop.f32.mrf.mxu0 }
0x1563   : > { %9952 = vmatpush1.bf16.msra.mxu0 %v22186_v19  ;;  %9991 = vmatpush1.bf16.msra.mxu1 %v22228_v36 }
0x1564   : > { %9953 = vmatprep.subr.bf16.mxu0 %v22191_v49  ;;  %9992 = vmatprep.subr.bf16.mxu1 %v22233_v7 }
0x1567   : > { %9954 = vmatpush1.bf16.msra.mxu0 %v22189_v5  ;;  %9993 = vmatpush1.bf16.msra.mxu1 %v22231_v44 }
0x1568   : > { %9955 = vmatprep.subr.bf16.mxu0 %v22194_v8  ;;  %9994 = vmatprep.subr.bf16.mxu1 %v22236_v53 }
0x156b   : > { %9956 = vmatpush1.bf16.msra.mxu0 %v22192_v9  ;;  %9995 = vmatpush1.bf16.msra.mxu1 %v22234_v42 }
0x156c   : > { %9957 = vmatprep.subr.bf16.mxu0 %v22197_v23  ;;  %9996 = vmatprep.subr.bf16.mxu1 %v22239_v47 }
0x156f   : > { %9958 = vmatpush1.bf16.msra.mxu0 %v22195_v48  ;;  %9997 = vmatpush1.bf16.msra.mxu1 %v22237_v31 }
0x1570   : > { %9959 = vmatprep.subr.bf16.mxu0 %v22200_v58  ;;  %9998 = vmatprep.subr.bf16.mxu1 %v22242_v50 }
0x1573   : > { %9960 = vmatpush2.bf16.msra.mxu0 %v22198_v22  ;;  %9999 = vmatpush1.bf16.msra.mxu1 %v22240_v15  ;;  %v22278_v22 = vld [vmem:[%s29597_s5 + $0x8a4] ss:$16 sps:$4 sm:$0xff]  }
0x1574   : > { %9961 = vmatprep.subr.bf16.mxu0 %v22203_v26  ;;  %10000 = vmatprep.subr.bf16.mxu1 %v22245_v40  ;;  %v22279_v15 = vld [vmem:[%s29600_s8 + $0x20] sm:$0x1f]   ;;  %v22319_v40 = vld [vmem:[%s29597_s5 + $0x8e8] ss:$16 sps:$4 sm:$0xff]  }
0x1575   : > { %v22276_v26 = vld [vmem:[%s29597_s5 + $0x8a0] ss:$16 sps:$4 sm:$0xff]  }
0x1577   : > { %9962 = vmatpush2.bf16.msra.mxu0 %v22201_v54  ;;  %10001 = vmatpush1.bf16.msra.mxu1 %v22243_v43  ;;  %v22282_v54 = vld [vmem:[%s29597_s5 + $0x884] ss:$16 sps:$4 sm:$0xff]   ;;  %v22324_v43 = vld [vmem:[%s29597_s5 + $0x8cc] ss:$16 sps:$4 sm:$0xff]  }
0x1578   : > { %9963 = vmatprep.subr.bf16.mxu0 %v22206_v59  ;;  %10002 = vmatprep.subr.bf16.mxu1 %v22248_v30  ;;  %v22280_v59 = vld [vmem:[%s29597_s5 + $0x880] ss:$16 sps:$4 sm:$0xff]   ;;  %v22322_v30 = vld [vmem:[%s29597_s5 + $0x8c8] ss:$16 sps:$4 sm:$0xff]  }
0x157b   : > { %9964 = vmatpush2.bf16.msra.mxu0 %v22204_v56  ;;  %10003 = vmatpush2.bf16.msra.mxu1 %v22246_v34  ;;  %v22285_v56 = vld [vmem:[%s29597_s5 + $0x864] ss:$16 sps:$4 sm:$0xff]   ;;  %v22327_v34 = vld [vmem:[%s29597_s5 + $0x8ac] ss:$16 sps:$4 sm:$0xff]  }
0x157c   : > { %9965 = vmatprep.subr.bf16.mxu0 %v22209_v32  ;;  %10004 = vmatprep.subr.bf16.mxu1 %v22251_v28  ;;  %v22283_v32 = vld [vmem:[%s29597_s5 + $0x860] ss:$16 sps:$4 sm:$0xff]   ;;  %v22325_v28 = vld [vmem:[%s29597_s5 + $0x8a8] ss:$16 sps:$4 sm:$0xff]  }
0x157f   : > { %9966 = vmatpush2.bf16.msra.mxu0 %v22207_v45  ;;  %10005 = vmatpush2.bf16.msra.mxu1 %v22249_v18  ;;  %v22288_v45 = vld [vmem:[%s29597_s5 + $0x844] ss:$16 sps:$4 sm:$0xff]   ;;  %v22330_v18 = vld [vmem:[%s29597_s5 + $0x88c] ss:$16 sps:$4 sm:$0xff]  }
0x1580   : > { %9967 = vmatprep.subr.bf16.mxu0 %v22212_v51  ;;  %10006 = vmatprep.subr.bf16.mxu1 %v22254_v52  ;;  %v22286_v51 = vld [vmem:[%s29597_s5 + $0x840] ss:$16 sps:$4 sm:$0xff]   ;;  %v22328_v52 = vld [vmem:[%s29597_s5 + $0x888] ss:$16 sps:$4 sm:$0xff]  }
0x1583   : > { %9968 = vmatpush2.bf16.msra.mxu0 %v22210_v21  ;;  %10007 = vmatpush2.bf16.msra.mxu1 %v22252_v13  ;;  %v22291_v21 = vld [vmem:[%s29597_s5 + $0x824] ss:$16 sps:$4 sm:$0xff]   ;;  %v22333_v13 = vld [vmem:[%s29597_s5 + $0x86c] ss:$16 sps:$4 sm:$0xff]  }
0x1584   : > { %9969 = vmatprep.subr.bf16.mxu0 %v22215_v24  ;;  %10008 = vmatprep.subr.bf16.mxu1 %v22257_v11  ;;  %v22289_v24 = vld [vmem:[%s29597_s5 + $0x820] ss:$16 sps:$4 sm:$0xff]   ;;  %v22331_v11 = vld [vmem:[%s29597_s5 + $0x868] ss:$16 sps:$4 sm:$0xff]  }
0x1587   : > { %9970 = vmatpush2.bf16.msra.mxu0 %v22213_v57  ;;  %10009 = vmatpush2.bf16.msra.mxu1 %v22255_v3  ;;  %v22294_v57 = vld [vmem:[%s29597_s5 + $0x804] ss:$16 sps:$4 sm:$0xff]   ;;  %v22336_v3 = vld [vmem:[%s29597_s5 + $0x84c] ss:$16 sps:$4 sm:$0xff]  }
0x1588   : > { %9971 = vmatprep.subr.bf16.mxu0 %v22218_v2  ;;  %10010 = vmatprep.subr.bf16.mxu1 %v22260_v63  ;;  %v22292_v2 = vld [vmem:[%s29597_s5 + $0x800] ss:$16 sps:$4 sm:$0xff]  }
0x1589   : > { %v22295_v63 = vld [vmem:[%s29597_s5 + $0x9e0] ss:$16 sps:$4 sm:$0xff]  }
0x158b   : > { %9972 = vmatpush2.bf16.msra.mxu0 %v22216_v17  ;;  %10011 = vmatpush2.bf16.msra.mxu1 %v22258_v4  ;;  %v22334_v17 = vld [vmem:[%s29597_s5 + $0x848] ss:$16 sps:$4 sm:$0xff]  }
0x158c   : > { %9973 = vmatprep.subr.bf16.mxu0 %v22221_v12  ;;  %10012 = vmatprep.subr.bf16.mxu1 %v22263_v55  ;;  %v22297_v12 = vld [vmem:[%s29597_s5 + $0x9e4] ss:$16 sps:$4 sm:$0xff]   ;;  %v22337_v4 = vld [vmem:[%s29597_s5 + $0x828] ss:$16 sps:$4 sm:$0xff]  }
0x158d   : > { %v22300_v55 = vld [vmem:[%s29597_s5 + $0x9c4] ss:$16 sps:$4 sm:$0xff]  }
0x158f   : > { %9974 = vmatpush2.bf16.msra.mxu0 %v22219_v39  ;;  %10013 = vmatpush2.bf16.msra.mxu1 %v22261_v60  ;;  %v22339_v39 = vld [vmem:[%s29597_s5 + $0x82c] ss:$16 sps:$4 sm:$0xff]  }
0x1590   : > { %10062 = vmatprep.subr.bf16.mxu0 %v26070_v46  ;;  %10014 = vmatprep.subr.bf16.mxu1 %v22266_v1  ;;  %v22342_v60 = vld [vmem:[%s29597_s5 + $0x80c] ss:$16 sps:$4 sm:$0xff]   ;;  %v22340_v1 = vld [vmem:[%s29597_s5 + $0x808] ss:$16 sps:$4 sm:$0xff]  }
0x1593   : > { %10015 = vmatpush2.bf16.msra.mxu1 %v22264_v25  ;;  %v22298_v25 = vld [vmem:[%s29597_s5 + $0x9c0] ss:$16 sps:$4 sm:$0xff]  }
0x1594   : > { %10016 = vmatprep.subr.bf16.mxu1 %v22269_v37  ;;  %v22303_v37 = vld [vmem:[%s29597_s5 + $0x9a4] ss:$16 sps:$4 sm:$0xff]  }
0x1597   : > { %10017 = vmatpush2.bf16.msra.mxu1 %v22267_v10  ;;  %v22345_v10 = vld [vmem:[%s29597_s5 + $0x9ec] ss:$16 sps:$4 sm:$0xff]  }
0x1598   : > { %10478 = vmatprep.subr.bf16.mxu1 %v22272_v35  ;;  %v22301_v35 = vld [vmem:[%s29597_s5 + $0x9a0] ss:$16 sps:$4 sm:$0xff]  }
0x1612   : > { %v9442_v33 = vpop.f32.mrf.mxu1  ;;  %v9485_v19 = vpop.f32.mrf.mxu0 }
0x1613   : > { %v26822_v36 = vadd.f32 %v9442_v33, %v26606_v61  ;;  %v26825_v49 = vadd.f32 %v9485_v19, %v26608_v41  ;;  %v22343_v33 = vld [vmem:[%s29597_s5 + $0x9e8] ss:$16 sps:$4 sm:$0xff]   ;;  %v22306_v19 = vld [vmem:[%s29597_s5 + $0x984] ss:$16 sps:$4 sm:$0xff]  }
0x1614   : > { %v9444_v7 = vpop.f32.mrf.mxu1  ;;  %v9487_v5 = vpop.f32.mrf.mxu0 }
0x1615   : > { %v26828_v44 = vadd.f32 %v9444_v7, %v26610_v14  ;;  %v26831_v8 = vadd.f32 %v9487_v5, %v26612_v16  ;;  %v22270_v16 = vld [vmem:[%s29597_s5 + $0x8e0] ss:$16 sps:$4 sm:$0xff]   ;;  %v22348_v7 = vld [vmem:[%s29597_s5 + $0x9cc] ss:$16 sps:$4 sm:$0xff]  }
0x1616   : > { %v9446_v53 = vpop.f32.mrf.mxu1  ;;  %v9489_v9 = vpop.f32.mrf.mxu0  ;;  %v22304_v5 = vld [vmem:[%s29597_s5 + $0x980] ss:$16 sps:$4 sm:$0xff]  }
0x1617   : > { %v26834_v42 = vadd.f32 %v9446_v53, %v26614_v6  ;;  %v26837_v23 = vadd.f32 %v9489_v9, %v26616_v27  ;;  %v22275_v6 = vld [vmem:[%s29597_s5 + $0x8c4] ss:$16 sps:$4 sm:$0xff]   ;;  %v22321_v27 = vld [vmem:[%s29597_s5 + $0x8ec] ss:$16 sps:$4 sm:$0xff]   ;;  %v22346_v53 = vld [vmem:[%s29597_s5 + $0x9c8] ss:$16 sps:$4 sm:$0xff]  }
0x1618   : > { %v9448_v61 = vpop.f32.mrf.mxu1  ;;  %v22309_v9 = vld [vmem:[%s29597_s5 + $0x964] ss:$16 sps:$4 sm:$0xff]  }
0x1619   : > { %v26840_v41 = vadd.f32 %v9448_v61, %v26618_v0  ;;  %v22273_v0 = vld [vmem:[%s29597_s5 + $0x8c0] ss:$16 sps:$4 sm:$0xff]   ;;  %v22351_v61 = vld [vmem:[%s29597_s5 + $0x9ac] ss:$16 sps:$4 sm:$0xff]  }
0x161a   : > { %v9547_v47 = vpop.f32.mrf.mxu1 }
0x161c   : > { %v9549_v48 = vpop.f32.mrf.mxu1 }
0x161e   : > { %v9551_v31 = vpop.f32.mrf.mxu1 }
0x161f   : > { %v9556_v50 = vpack.c.bf16 %v9551_v31, %v9547_v47  ;;  %v22307_v47 = vld [vmem:[%s29597_s5 + $0x960] ss:$16 sps:$4 sm:$0xff]   ;;  %v22312_v31 = vld [vmem:[%s29597_s5 + $0x944] ss:$16 sps:$4 sm:$0xff]  }
0x1620   : > { %v9553_v14 = vpop.f32.mrf.mxu1 }
0x1621   : > { %v9557_v58 = vpack.c.bf16 %v9553_v14, %v9549_v48  ;;  %v22349_v48 = vld [vmem:[%s29597_s5 + $0x9a8] ss:$16 sps:$4 sm:$0xff]   ;;  %v22354_v14 = vld [vmem:[%s29597_s5 + $0x98c] ss:$16 sps:$4 sm:$0xff]  }
0x1623   : > { %9975 = vmatprep.mubr.bf16.mxu0 %v9557_v58  ;;  %10018 = vmatprep.mubr.bf16.mxu1 %v9557_v58  ;;  %v22310_v58 = vld [vmem:[%s29597_s5 + $0x940] ss:$16 sps:$4 sm:$0xff]  }
0x1624   : > { %9976 = vmatmul.mubr.bf16.vlgmr.msra.gmra.mxu0 %v9556_v50  ;;  %10019 = vmatmul.mubr.bf16.vlgmr.msra.gmra.mxu1 %v9556_v50  ;;  %v22315_v50 = vld [vmem:[%s29597_s5 + $0x924] ss:$16 sps:$4 sm:$0xff]  }
0x1625   : > { %10063 = vmatpush1.bf16.msra.mxu0 %v26068_v38  ;;  %10479 = vmatpush1.bf16.msra.mxu1 %v22270_v16  ;;  %v22352_v16 = vld [vmem:[%s29597_s5 + $0x988] ss:$16 sps:$4 sm:$0xff]  }
0x1626   : > { %10480 = vmatprep.subr.bf16.mxu1 %v22275_v6  ;;  %10080 = vmatprep.mubr.bf16.mxu0 %v23458_v62  ;;  %v22313_v6 = vld [vmem:[%s29597_s5 + $0x920] ss:$16 sps:$4 sm:$0xff]  }
0x1627   : > { %10521 = vmatprep.subr.bf16.mxu0 %v22321_v27  ;;  %v22318_v27 = vld [vmem:[%s29597_s5 + $0x904] ss:$16 sps:$4 sm:$0xff]  }
0x1629   : > { %10481 = vmatpush1.bf16.msra.mxu1 %v22273_v0  ;;  %v22316_v0 = vld [vmem:[%s29597_s5 + $0x900] ss:$16 sps:$4 sm:$0xff]  }
0x162a   : > { %10482 = vmatprep.subr.bf16.mxu1 %v22278_v22  ;;  %v22357_v22 = vld [vmem:[%s29597_s5 + $0x96c] ss:$16 sps:$4 sm:$0xff]  }
0x162c   : > { %18239 = vmatmul.mubr.msk.bf16.vlgmr.msra.gmra.mxu0 %vm7921_vm14, %v22279_v15  ;;  %v22355_v15 = vld [vmem:[%s29597_s5 + $0x968] ss:$16 sps:$4 sm:$0xff]  }
0x162d   : > { %10483 = vmatpush1.bf16.msra.mxu1 %v22276_v26  ;;  %10522 = vmatpush1.bf16.msra.mxu0 %v22319_v40  ;;  %v22360_v26 = vld [vmem:[%s29597_s5 + $0x94c] ss:$16 sps:$4 sm:$0xff]   ;;  %v22358_v40 = vld [vmem:[%s29597_s5 + $0x948] ss:$16 sps:$4 sm:$0xff]  }
0x162e   : > { %10484 = vmatprep.subr.bf16.mxu1 %v22282_v54  ;;  %10523 = vmatprep.subr.bf16.mxu0 %v22324_v43  ;;  %v22361_v54 = vld [vmem:[%s29597_s5 + $0x928] ss:$16 sps:$4 sm:$0xff]   ;;  %v22363_v43 = vld [vmem:[%s29597_s5 + $0x92c] ss:$16 sps:$4 sm:$0xff]  }
0x1631   : > { %10485 = vmatpush1.bf16.msra.mxu1 %v22280_v59  ;;  %10524 = vmatpush1.bf16.msra.mxu0 %v22322_v30  ;;  %v22366_v59 = vld [vmem:[%s29597_s5 + $0x90c] ss:$16 sps:$4 sm:$0xff]   ;;  %v22364_v30 = vld [vmem:[%s29597_s5 + $0x908] ss:$16 sps:$4 sm:$0xff]  }
0x1632   : > { %10486 = vmatprep.subr.bf16.mxu1 %v22285_v56  ;;  %10525 = vmatprep.subr.bf16.mxu0 %v22327_v34  ;;  %v22369_v56 = vld [vmem:[%s29597_s5 + $0xae4] ss:$16 sps:$4 sm:$0xff]   ;;  %v27041_v34 = vpop.f32.mrf.mxu0 }
0x1635   : > { %10487 = vmatpush1.bf16.msra.mxu1 %v22283_v32  ;;  %10526 = vmatpush1.bf16.msra.mxu0 %v22325_v28 }
0x1636   : > { %10488 = vmatprep.subr.bf16.mxu1 %v22288_v45  ;;  %10527 = vmatprep.subr.bf16.mxu0 %v22330_v18 }
0x1639   : > { %10489 = vmatpush1.bf16.msra.mxu1 %v22286_v51  ;;  %10528 = vmatpush1.bf16.msra.mxu0 %v22328_v52 }
0x163a   : > { %10490 = vmatprep.subr.bf16.mxu1 %v22291_v21  ;;  %10529 = vmatprep.subr.bf16.mxu0 %v22333_v13 }
0x163d   : > { %10491 = vmatpush1.bf16.msra.mxu1 %v22289_v24  ;;  %10530 = vmatpush1.bf16.msra.mxu0 %v22331_v11 }
0x163e   : > { %10492 = vmatprep.subr.bf16.mxu1 %v22294_v57  ;;  %10531 = vmatprep.subr.bf16.mxu0 %v22336_v3 }
0x1641   : > { %10493 = vmatpush1.bf16.msra.mxu1 %v22292_v2  ;;  %10532 = vmatpush1.bf16.msra.mxu0 %v22334_v17 }
0x1642   : > { %10494 = vmatprep.subr.bf16.mxu1 %v22297_v12  ;;  %10533 = vmatprep.subr.bf16.mxu0 %v22339_v39 }
0x1645   : > { %10495 = vmatpush2.bf16.msra.mxu1 %v22295_v63  ;;  %10534 = vmatpush1.bf16.msra.mxu0 %v22337_v4  ;;  %v22375_v4 = vld [vmem:[%s29597_s5 + $0xaa4] ss:$16 sps:$4 sm:$0xff]  }
0x1646   : > { %10496 = vmatprep.subr.bf16.mxu1 %v22300_v55  ;;  %10535 = vmatprep.subr.bf16.mxu0 %v22342_v60  ;;  %v22376_v55 = vld [vmem:[%s29600_s8 + $0x28] sm:$0x1f]   ;;  %v22373_v60 = vld [vmem:[%s29597_s5 + $0xaa0] ss:$16 sps:$4 sm:$0xff]  }
0x1649   : > { %10497 = vmatpush2.bf16.msra.mxu1 %v22298_v25  ;;  %10536 = vmatpush1.bf16.msra.mxu0 %v22340_v1  ;;  %v22416_v25 = vld [vmem:[%s29597_s5 + $0xae8] ss:$16 sps:$4 sm:$0xff]   ;;  %v22379_v1 = vld [vmem:[%s29597_s5 + $0xa84] ss:$16 sps:$4 sm:$0xff]  }
0x164a   : > { %10498 = vmatprep.subr.bf16.mxu1 %v22303_v37  ;;  %10537 = vmatprep.subr.bf16.mxu0 %v22345_v10  ;;  %v22421_v37 = vld [vmem:[%s29597_s5 + $0xacc] ss:$16 sps:$4 sm:$0xff]   ;;  %v22377_v10 = vld [vmem:[%s29597_s5 + $0xa80] ss:$16 sps:$4 sm:$0xff]  }
0x164d   : > { %10499 = vmatpush2.bf16.msra.mxu1 %v22301_v35  ;;  %10538 = vmatpush2.bf16.msra.mxu0 %v22343_v33  ;;  %v22419_v35 = vld [vmem:[%s29597_s5 + $0xac8] ss:$16 sps:$4 sm:$0xff]   ;;  %v22382_v33 = vld [vmem:[%s29597_s5 + $0xa64] ss:$16 sps:$4 sm:$0xff]  }
0x164e   : > { %10500 = vmatprep.subr.bf16.mxu1 %v22306_v19  ;;  %10539 = vmatprep.subr.bf16.mxu0 %v22348_v7  ;;  %v22424_v19 = vld [vmem:[%s29597_s5 + $0xaac] ss:$16 sps:$4 sm:$0xff]   ;;  %v22380_v7 = vld [vmem:[%s29597_s5 + $0xa60] ss:$16 sps:$4 sm:$0xff]  }
0x1651   : > { %10501 = vmatpush2.bf16.msra.mxu1 %v22304_v5  ;;  %10540 = vmatpush2.bf16.msra.mxu0 %v22346_v53  ;;  %v22422_v5 = vld [vmem:[%s29597_s5 + $0xaa8] ss:$16 sps:$4 sm:$0xff]   ;;  %v22385_v53 = vld [vmem:[%s29597_s5 + $0xa44] ss:$16 sps:$4 sm:$0xff]  }
0x1652   : > { %10502 = vmatprep.subr.bf16.mxu1 %v22309_v9  ;;  %10541 = vmatprep.subr.bf16.mxu0 %v22351_v61  ;;  %v22427_v9 = vld [vmem:[%s29597_s5 + $0xa8c] ss:$16 sps:$4 sm:$0xff]   ;;  %v22383_v61 = vld [vmem:[%s29597_s5 + $0xa40] ss:$16 sps:$4 sm:$0xff]  }
0x1655   : > { %10503 = vmatpush2.bf16.msra.mxu1 %v22307_v47  ;;  %10542 = vmatpush2.bf16.msra.mxu0 %v22349_v48  ;;  %v22425_v47 = vld [vmem:[%s29597_s5 + $0xa88] ss:$16 sps:$4 sm:$0xff]   ;;  %v22388_v48 = vld [vmem:[%s29597_s5 + $0xa24] ss:$16 sps:$4 sm:$0xff]  }
0x1656   : > { %10504 = vmatprep.subr.bf16.mxu1 %v22312_v31  ;;  %10543 = vmatprep.subr.bf16.mxu0 %v22354_v14  ;;  %v22430_v31 = vld [vmem:[%s29597_s5 + $0xa6c] ss:$16 sps:$4 sm:$0xff]   ;;  %v22386_v14 = vld [vmem:[%s29597_s5 + $0xa20] ss:$16 sps:$4 sm:$0xff]  }
0x1659   : > { %10505 = vmatpush2.bf16.msra.mxu1 %v22310_v58  ;;  %10544 = vmatpush2.bf16.msra.mxu0 %v22352_v16  ;;  %v22428_v58 = vld [vmem:[%s29597_s5 + $0xa68] ss:$16 sps:$4 sm:$0xff]   ;;  %v22391_v16 = vld [vmem:[%s29597_s5 + $0xa04] ss:$16 sps:$4 sm:$0xff]  }
0x165a   : > { %10506 = vmatprep.subr.bf16.mxu1 %v22315_v50  ;;  %10545 = vmatprep.subr.bf16.mxu0 %v22357_v22  ;;  %v22433_v50 = vld [vmem:[%s29597_s5 + $0xa4c] ss:$16 sps:$4 sm:$0xff]  }
0x165b   : > { %v22436_v22 = vld [vmem:[%s29597_s5 + $0xa2c] ss:$16 sps:$4 sm:$0xff]  }
0x165d   : > { %10507 = vmatpush2.bf16.msra.mxu1 %v22313_v6  ;;  %10546 = vmatpush2.bf16.msra.mxu0 %v22355_v15  ;;  %v22389_v6 = vld [vmem:[%s29597_s5 + $0xa00] ss:$16 sps:$4 sm:$0xff]  }
0x165e   : > { %10508 = vmatprep.subr.bf16.mxu1 %v22318_v27  ;;  %10547 = vmatprep.subr.bf16.mxu0 %v22360_v26  ;;  %v22431_v27 = vld [vmem:[%s29597_s5 + $0xa48] ss:$16 sps:$4 sm:$0xff]   ;;  %v22392_v15 = vld [vmem:[%s29597_s5 + $0xbe0] ss:$16 sps:$4 sm:$0xff]  }
0x165f   : > { %v22434_v26 = vld [vmem:[%s29597_s5 + $0xa28] ss:$16 sps:$4 sm:$0xff]  }
0x1661   : > { %10509 = vmatpush2.bf16.msra.mxu1 %v22316_v0  ;;  %10548 = vmatpush2.bf16.msra.mxu0 %v22358_v40  ;;  %v22394_v0 = vld [vmem:[%s29597_s5 + $0xbe4] ss:$16 sps:$4 sm:$0xff]  }
0x1662   : > { %10597 = vmatprep.subr.bf16.mxu1 %v26070_v46  ;;  %10549 = vmatprep.subr.bf16.mxu0 %v22363_v43  ;;  %v22397_v40 = vld [vmem:[%s29597_s5 + $0xbc4] ss:$16 sps:$4 sm:$0xff]   ;;  %v22395_v43 = vld [vmem:[%s29597_s5 + $0xbc0] ss:$16 sps:$4 sm:$0xff]  }
0x1665   : > { %10550 = vmatpush2.bf16.msra.mxu0 %v22361_v54  ;;  %v22439_v54 = vld [vmem:[%s29597_s5 + $0xa0c] ss:$16 sps:$4 sm:$0xff]  }
0x1666   : > { %10551 = vmatprep.subr.bf16.mxu0 %v22366_v59  ;;  %v22437_v59 = vld [vmem:[%s29597_s5 + $0xa08] ss:$16 sps:$4 sm:$0xff]  }
0x1669   : > { %10552 = vmatpush2.bf16.msra.mxu0 %v22364_v30  ;;  %v22400_v30 = vld [vmem:[%s29597_s5 + $0xba4] ss:$16 sps:$4 sm:$0xff]  }
0x166a   : > { %11013 = vmatprep.subr.bf16.mxu0 %v22369_v56  ;;  %v22442_v56 = vld [vmem:[%s29597_s5 + $0xbec] ss:$16 sps:$4 sm:$0xff]  }
0x16e4   : > { %v9977_v32 = vpop.f32.mrf.mxu0  ;;  %v10020_v28 = vpop.f32.mrf.mxu1 }
0x16e5   : > { %v27044_v45 = vadd.f32 %v9977_v32, %v26822_v36  ;;  %v27047_v18 = vadd.f32 %v10020_v28, %v26825_v49  ;;  %v22398_v32 = vld [vmem:[%s29597_s5 + $0xba0] ss:$16 sps:$4 sm:$0xff]   ;;  %v22440_v28 = vld [vmem:[%s29597_s5 + $0xbe8] ss:$16 sps:$4 sm:$0xff]  }
0x16e6   : > { %v9979_v51 = vpop.f32.mrf.mxu0  ;;  %v10022_v52 = vpop.f32.mrf.mxu1 }
0x16e7   : > { %v27050_v21 = vadd.f32 %v9979_v51, %v26828_v44  ;;  %v27053_v13 = vadd.f32 %v10022_v52, %v26831_v8  ;;  %v22367_v8 = vld [vmem:[%s29597_s5 + $0xae0] ss:$16 sps:$4 sm:$0xff]   ;;  %v22403_v51 = vld [vmem:[%s29597_s5 + $0xb84] ss:$16 sps:$4 sm:$0xff]   ;;  %v22445_v52 = vld [vmem:[%s29597_s5 + $0xbcc] ss:$16 sps:$4 sm:$0xff]  }
0x16e8   : > { %v9981_v24 = vpop.f32.mrf.mxu0  ;;  %v10024_v11 = vpop.f32.mrf.mxu1 }
0x16e9   : > { %v27056_v57 = vadd.f32 %v9981_v24, %v26834_v42  ;;  %v27059_v3 = vadd.f32 %v10024_v11, %v26837_v23  ;;  %v22372_v42 = vld [vmem:[%s29597_s5 + $0xac4] ss:$16 sps:$4 sm:$0xff]   ;;  %v22418_v23 = vld [vmem:[%s29597_s5 + $0xaec] ss:$16 sps:$4 sm:$0xff]   ;;  %v22401_v24 = vld [vmem:[%s29597_s5 + $0xb80] ss:$16 sps:$4 sm:$0xff]  }
0x16ea   : > { %v9983_v36 = vpop.f32.mrf.mxu0  ;;  %v22443_v11 = vld [vmem:[%s29597_s5 + $0xbc8] ss:$16 sps:$4 sm:$0xff]  }
0x16eb   : > { %v27062_v49 = vadd.f32 %v9983_v36, %v26840_v41  ;;  %v22370_v41 = vld [vmem:[%s29597_s5 + $0xac0] ss:$16 sps:$4 sm:$0xff]   ;;  %v22406_v36 = vld [vmem:[%s29597_s5 + $0xb64] ss:$16 sps:$4 sm:$0xff]  }
0x16ec   : > { %v10082_v2 = vpop.f32.mrf.mxu0 }
0x16ee   : > { %v10084_v17 = vpop.f32.mrf.mxu0 }
0x16f0   : > { %v10086_v12 = vpop.f32.mrf.mxu0 }
0x16f1   : > { %v10091_v63 = vpack.c.bf16 %v10086_v12, %v10082_v2  ;;  %v22448_v2 = vld [vmem:[%s29597_s5 + $0xbac] ss:$16 sps:$4 sm:$0xff]   ;;  %v22446_v12 = vld [vmem:[%s29597_s5 + $0xba8] ss:$16 sps:$4 sm:$0xff]  }
0x16f2   : > { %v10088_v44 = vpop.f32.mrf.mxu0 }
0x16f3   : > { %v10092_v39 = vpack.c.bf16 %v10088_v44, %v10084_v17  ;;  %v22404_v17 = vld [vmem:[%s29597_s5 + $0xb60] ss:$16 sps:$4 sm:$0xff]   ;;  %v22409_v44 = vld [vmem:[%s29597_s5 + $0xb44] ss:$16 sps:$4 sm:$0xff]  }
0x16f5   : > { %10510 = vmatprep.mubr.bf16.mxu1 %v10092_v39  ;;  %10553 = vmatprep.mubr.bf16.mxu0 %v10092_v39  ;;  %v22451_v39 = vld [vmem:[%s29597_s5 + $0xb8c] ss:$16 sps:$4 sm:$0xff]  }
0x16f6   : > { %10511 = vmatmul.mubr.bf16.vlgmr.msra.gmra.mxu1 %v10091_v63  ;;  %10554 = vmatmul.mubr.bf16.vlgmr.msra.gmra.mxu0 %v10091_v63  ;;  %v22449_v63 = vld [vmem:[%s29597_s5 + $0xb88] ss:$16 sps:$4 sm:$0xff]  }
0x16f7   : > { %10598 = vmatpush1.bf16.msra.mxu1 %v26068_v38  ;;  %11014 = vmatpush1.bf16.msra.mxu0 %v22367_v8  ;;  %v22407_v8 = vld [vmem:[%s29597_s5 + $0xb40] ss:$16 sps:$4 sm:$0xff]  }
0x16f8   : > { %11015 = vmatprep.subr.bf16.mxu0 %v22372_v42  ;;  %10615 = vmatprep.mubr.bf16.mxu1 %v23458_v62  ;;  %v22412_v42 = vld [vmem:[%s29597_s5 + $0xb24] ss:$16 sps:$4 sm:$0xff]  }
0x16f9   : > { %11056 = vmatprep.subr.bf16.mxu1 %v22418_v23  ;;  %v22410_v23 = vld [vmem:[%s29597_s5 + $0xb20] ss:$16 sps:$4 sm:$0xff]  }
0x16fb   : > { %11016 = vmatpush1.bf16.msra.mxu0 %v22370_v41  ;;  %v22415_v41 = vld [vmem:[%s29597_s5 + $0xb04] ss:$16 sps:$4 sm:$0xff]  }
0x16fc   : > { %11017 = vmatprep.subr.bf16.mxu0 %v22375_v4  ;;  %v22413_v4 = vld [vmem:[%s29597_s5 + $0xb00] ss:$16 sps:$4 sm:$0xff]  }
0x16fe   : > { %18371 = vmatmul.mubr.msk.bf16.vlgmr.msra.gmra.mxu1 %vm7921_vm14, %v22376_v55  ;;  %v22454_v55 = vld [vmem:[%s29597_s5 + $0xb6c] ss:$16 sps:$4 sm:$0xff]  }
0x16ff   : > { %11018 = vmatpush1.bf16.msra.mxu0 %v22373_v60  ;;  %11057 = vmatpush1.bf16.msra.mxu1 %v22416_v25  ;;  %v22452_v60 = vld [vmem:[%s29597_s5 + $0xb68] ss:$16 sps:$4 sm:$0xff]   ;;  %v22457_v25 = vld [vmem:[%s29597_s5 + $0xb4c] ss:$16 sps:$4 sm:$0xff]  }
0x1700   : > { %11019 = vmatprep.subr.bf16.mxu0 %v22379_v1  ;;  %11058 = vmatprep.subr.bf16.mxu1 %v22421_v37  ;;  %v22455_v1 = vld [vmem:[%s29597_s5 + $0xb48] ss:$16 sps:$4 sm:$0xff]  }
0x1701   : > { %v22458_v37 = vld [vmem:[%s29597_s5 + $0xb28] ss:$16 sps:$4 sm:$0xff]  }
0x1703   : > { %11020 = vmatpush1.bf16.msra.mxu0 %v22377_v10  ;;  %11059 = vmatpush1.bf16.msra.mxu1 %v22419_v35  ;;  %v22460_v10 = vld [vmem:[%s29597_s5 + $0xb2c] ss:$16 sps:$4 sm:$0xff]  }
0x1704   : > { %11021 = vmatprep.subr.bf16.mxu0 %v22382_v33  ;;  %11060 = vmatprep.subr.bf16.mxu1 %v22424_v19  ;;  %v22463_v35 = vld [vmem:[%s29597_s5 + $0xb0c] ss:$16 sps:$4 sm:$0xff]   ;;  %v22461_v33 = vld [vmem:[%s29597_s5 + $0xb08] ss:$16 sps:$4 sm:$0xff]   ;;  %v22466_v19 = vld [vmem:[%s29597_s5 + $0xce4] ss:$16 sps:$4 sm:$0xff]  }
0x1707   : > { %11022 = vmatpush1.bf16.msra.mxu0 %v22380_v7  ;;  %11061 = vmatpush1.bf16.msra.mxu1 %v22422_v5  ;;  %v27263_v7 = vpop.f32.mrf.mxu1 }
0x1708   : > { %11023 = vmatprep.subr.bf16.mxu0 %v22385_v53  ;;  %11062 = vmatprep.subr.bf16.mxu1 %v22427_v9 }
0x170b   : > { %11024 = vmatpush1.bf16.msra.mxu0 %v22383_v61  ;;  %11063 = vmatpush1.bf16.msra.mxu1 %v22425_v47 }
0x170c   : > { %11025 = vmatprep.subr.bf16.mxu0 %v22388_v48  ;;  %11064 = vmatprep.subr.bf16.mxu1 %v22430_v31 }
0x170f   : > { %11026 = vmatpush1.bf16.msra.mxu0 %v22386_v14  ;;  %11065 = vmatpush1.bf16.msra.mxu1 %v22428_v58 }
0x1710   : > { %11027 = vmatprep.subr.bf16.mxu0 %v22391_v16  ;;  %11066 = vmatprep.subr.bf16.mxu1 %v22433_v50 }
0x1713   : > { %11028 = vmatpush1.bf16.msra.mxu0 %v22389_v6  ;;  %11067 = vmatpush1.bf16.msra.mxu1 %v22431_v27 }
0x1714   : > { %11029 = vmatprep.subr.bf16.mxu0 %v22394_v0  ;;  %11068 = vmatprep.subr.bf16.mxu1 %v22436_v22 }
0x1717   : > { %11030 = vmatpush2.bf16.msra.mxu0 %v22392_v15  ;;  %11069 = vmatpush1.bf16.msra.mxu1 %v22434_v26 }
0x1718   : > { %11031 = vmatprep.subr.bf16.mxu0 %v22397_v40  ;;  %11070 = vmatprep.subr.bf16.mxu1 %v22439_v54  ;;  %v22472_v40 = vld [vmem:[%s29597_s5 + $0xca4] ss:$16 sps:$4 sm:$0xff]  }
0x1719   : > { %v22473_v54 = vld [vmem:[%s29600_s8 + $0x30] sm:$0x1f]  }
0x171b   : > { %11032 = vmatpush2.bf16.msra.mxu0 %v22395_v43  ;;  %11071 = vmatpush1.bf16.msra.mxu1 %v22437_v59  ;;  %v22470_v43 = vld [vmem:[%s29597_s5 + $0xca0] ss:$16 sps:$4 sm:$0xff]   ;;  %v22513_v59 = vld [vmem:[%s29597_s5 + $0xce8] ss:$16 sps:$4 sm:$0xff]  }
0x171c   : > { %11033 = vmatprep.subr.bf16.mxu0 %v22400_v30  ;;  %11072 = vmatprep.subr.bf16.mxu1 %v22442_v56  ;;  %v22476_v30 = vld [vmem:[%s29597_s5 + $0xc84] ss:$16 sps:$4 sm:$0xff]   ;;  %v22518_v56 = vld [vmem:[%s29597_s5 + $0xccc] ss:$16 sps:$4 sm:$0xff]  }
0x171f   : > { %11034 = vmatpush2.bf16.msra.mxu0 %v22398_v32  ;;  %11073 = vmatpush2.bf16.msra.mxu1 %v22440_v28  ;;  %v22474_v32 = vld [vmem:[%s29597_s5 + $0xc80] ss:$16 sps:$4 sm:$0xff]   ;;  %v22516_v28 = vld [vmem:[%s29597_s5 + $0xcc8] ss:$16 sps:$4 sm:$0xff]  }
0x1720   : > { %11035 = vmatprep.subr.bf16.mxu0 %v22403_v51  ;;  %11074 = vmatprep.subr.bf16.mxu1 %v22445_v52  ;;  %v22479_v51 = vld [vmem:[%s29597_s5 + $0xc64] ss:$16 sps:$4 sm:$0xff]   ;;  %v22521_v52 = vld [vmem:[%s29597_s5 + $0xcac] ss:$16 sps:$4 sm:$0xff]  }
0x1723   : > { %11036 = vmatpush2.bf16.msra.mxu0 %v22401_v24  ;;  %11075 = vmatpush2.bf16.msra.mxu1 %v22443_v11  ;;  %v22477_v24 = vld [vmem:[%s29597_s5 + $0xc60] ss:$16 sps:$4 sm:$0xff]   ;;  %v22519_v11 = vld [vmem:[%s29597_s5 + $0xca8] ss:$16 sps:$4 sm:$0xff]  }
0x1724   : > { %11037 = vmatprep.subr.bf16.mxu0 %v22406_v36  ;;  %11076 = vmatprep.subr.bf16.mxu1 %v22448_v2  ;;  %v22482_v36 = vld [vmem:[%s29597_s5 + $0xc44] ss:$16 sps:$4 sm:$0xff]   ;;  %v22524_v2 = vld [vmem:[%s29597_s5 + $0xc8c] ss:$16 sps:$4 sm:$0xff]  }
0x1727   : > { %11038 = vmatpush2.bf16.msra.mxu0 %v22404_v17  ;;  %11077 = vmatpush2.bf16.msra.mxu1 %v22446_v12  ;;  %v22480_v17 = vld [vmem:[%s29597_s5 + $0xc40] ss:$16 sps:$4 sm:$0xff]   ;;  %v22522_v12 = vld [vmem:[%s29597_s5 + $0xc88] ss:$16 sps:$4 sm:$0xff]  }
0x1728   : > { %11039 = vmatprep.subr.bf16.mxu0 %v22409_v44  ;;  %11078 = vmatprep.subr.bf16.mxu1 %v22451_v39  ;;  %v22485_v44 = vld [vmem:[%s29597_s5 + $0xc24] ss:$16 sps:$4 sm:$0xff]   ;;  %v22527_v39 = vld [vmem:[%s29597_s5 + $0xc6c] ss:$16 sps:$4 sm:$0xff]  }
0x172b   : > { %11040 = vmatpush2.bf16.msra.mxu0 %v22407_v8  ;;  %11079 = vmatpush2.bf16.msra.mxu1 %v22449_v63  ;;  %v22483_v8 = vld [vmem:[%s29597_s5 + $0xc20] ss:$16 sps:$4 sm:$0xff]   ;;  %v22525_v63 = vld [vmem:[%s29597_s5 + $0xc68] ss:$16 sps:$4 sm:$0xff]  }
0x172c   : > { %11041 = vmatprep.subr.bf16.mxu0 %v22412_v42  ;;  %11080 = vmatprep.subr.bf16.mxu1 %v22454_v55  ;;  %v22488_v42 = vld [vmem:[%s29597_s5 + $0xc04] ss:$16 sps:$4 sm:$0xff]  }
0x172d   : > { %v22491_v55 = vld [vmem:[%s29597_s5 + $0xde4] ss:$16 sps:$4 sm:$0xff]  }
0x172f   : > { %11042 = vmatpush2.bf16.msra.mxu0 %v22410_v23  ;;  %11081 = vmatpush2.bf16.msra.mxu1 %v22452_v60  ;;  %v22530_v23 = vld [vmem:[%s29597_s5 + $0xc4c] ss:$16 sps:$4 sm:$0xff]  }
0x1730   : > { %11043 = vmatprep.subr.bf16.mxu0 %v22415_v41  ;;  %11082 = vmatprep.subr.bf16.mxu1 %v22457_v25  ;;  %v22486_v41 = vld [vmem:[%s29597_s5 + $0xc00] ss:$16 sps:$4 sm:$0xff]   ;;  %v22533_v60 = vld [vmem:[%s29597_s5 + $0xc2c] ss:$16 sps:$4 sm:$0xff]  }
0x1731   : > { %v22489_v25 = vld [vmem:[%s29597_s5 + $0xde0] ss:$16 sps:$4 sm:$0xff]  }
0x1733   : > { %11044 = vmatpush2.bf16.msra.mxu0 %v22413_v4  ;;  %11083 = vmatpush2.bf16.msra.mxu1 %v22455_v1  ;;  %v22528_v4 = vld [vmem:[%s29597_s5 + $0xc48] ss:$16 sps:$4 sm:$0xff]  }
0x1734   : > { %11132 = vmatprep.subr.bf16.mxu0 %v26070_v46  ;;  %11084 = vmatprep.subr.bf16.mxu1 %v22460_v10  ;;  %v22531_v1 = vld [vmem:[%s29597_s5 + $0xc28] ss:$16 sps:$4 sm:$0xff]   ;;  %v22536_v10 = vld [vmem:[%s29597_s5 + $0xc0c] ss:$16 sps:$4 sm:$0xff]  }
0x1737   : > { %11085 = vmatpush2.bf16.msra.mxu1 %v22458_v37  ;;  %v22494_v37 = vld [vmem:[%s29597_s5 + $0xdc4] ss:$16 sps:$4 sm:$0xff]  }
0x1738   : > { %11086 = vmatprep.subr.bf16.mxu1 %v22463_v35  ;;  %v22492_v35 = vld [vmem:[%s29597_s5 + $0xdc0] ss:$16 sps:$4 sm:$0xff]  }
0x173b   : > { %11087 = vmatpush2.bf16.msra.mxu1 %v22461_v33  ;;  %v22534_v33 = vld [vmem:[%s29597_s5 + $0xc08] ss:$16 sps:$4 sm:$0xff]  }
0x173c   : > { %11548 = vmatprep.subr.bf16.mxu1 %v22466_v19  ;;  %v22497_v19 = vld [vmem:[%s29597_s5 + $0xda4] ss:$16 sps:$4 sm:$0xff]  }
0x17b6   : > { %v10512_v5 = vpop.f32.mrf.mxu1  ;;  %v10555_v53 = vpop.f32.mrf.mxu0 }
0x17b7   : > { %v27266_v9 = vadd.f32 %v10512_v5, %v27044_v45  ;;  %v27269_v61 = vadd.f32 %v10555_v53, %v27047_v18  ;;  %v22539_v5 = vld [vmem:[%s29597_s5 + $0xdec] ss:$16 sps:$4 sm:$0xff]   ;;  %v22495_v53 = vld [vmem:[%s29597_s5 + $0xda0] ss:$16 sps:$4 sm:$0xff]  }
0x17b8   : > { %v10514_v47 = vpop.f32.mrf.mxu1  ;;  %v10557_v48 = vpop.f32.mrf.mxu0 }
0x17b9   : > { %v27272_v31 = vadd.f32 %v10514_v47, %v27050_v21  ;;  %v27275_v14 = vadd.f32 %v10557_v48, %v27053_v13  ;;  %v22464_v13 = vld [vmem:[%s29597_s5 + $0xce0] ss:$16 sps:$4 sm:$0xff]   ;;  %v22537_v47 = vld [vmem:[%s29597_s5 + $0xde8] ss:$16 sps:$4 sm:$0xff]   ;;  %v22500_v48 = vld [vmem:[%s29597_s5 + $0xd84] ss:$16 sps:$4 sm:$0xff]  }
0x17ba   : > { %v10516_v58 = vpop.f32.mrf.mxu1  ;;  %v10559_v16 = vpop.f32.mrf.mxu0 }
0x17bb   : > { %v27278_v50 = vadd.f32 %v10516_v58, %v27056_v57  ;;  %v27281_v6 = vadd.f32 %v10559_v16, %v27059_v3  ;;  %v22469_v57 = vld [vmem:[%s29597_s5 + $0xcc4] ss:$16 sps:$4 sm:$0xff]   ;;  %v22515_v3 = vld [vmem:[%s29597_s5 + $0xcec] ss:$16 sps:$4 sm:$0xff]   ;;  %v22498_v16 = vld [vmem:[%s29597_s5 + $0xd80] ss:$16 sps:$4 sm:$0xff]  }
0x17bc   : > { %v10518_v45 = vpop.f32.mrf.mxu1  ;;  %v22542_v58 = vld [vmem:[%s29597_s5 + $0xdcc] ss:$16 sps:$4 sm:$0xff]  }
0x17bd   : > { %v27284_v18 = vadd.f32 %v10518_v45, %v27062_v49  ;;  %v22467_v49 = vld [vmem:[%s29597_s5 + $0xcc0] ss:$16 sps:$4 sm:$0xff]   ;;  %v22540_v45 = vld [vmem:[%s29597_s5 + $0xdc8] ss:$16 sps:$4 sm:$0xff]  }
0x17be   : > { %v10617_v27 = vpop.f32.mrf.mxu1 }
0x17c0   : > { %v10619_v0 = vpop.f32.mrf.mxu1 }
0x17c2   : > { %v10621_v22 = vpop.f32.mrf.mxu1 }
0x17c3   : > { %v10626_v26 = vpack.c.bf16 %v10621_v22, %v10617_v27  ;;  %v22503_v27 = vld [vmem:[%s29597_s5 + $0xd64] ss:$16 sps:$4 sm:$0xff]   ;;  %v22501_v22 = vld [vmem:[%s29597_s5 + $0xd60] ss:$16 sps:$4 sm:$0xff]  }
0x17c4   : > { %v10623_v21 = vpop.f32.mrf.mxu1 }
0x17c5   : > { %v10627_v15 = vpack.c.bf16 %v10623_v21, %v10619_v0  ;;  %v22545_v0 = vld [vmem:[%s29597_s5 + $0xdac] ss:$16 sps:$4 sm:$0xff]   ;;  %v22543_v21 = vld [vmem:[%s29597_s5 + $0xda8] ss:$16 sps:$4 sm:$0xff]  }
0x17c7   : > { %11045 = vmatprep.mubr.bf16.mxu0 %v10627_v15  ;;  %11088 = vmatprep.mubr.bf16.mxu1 %v10627_v15  ;;  %v22506_v15 = vld [vmem:[%s29597_s5 + $0xd44] ss:$16 sps:$4 sm:$0xff]  }
0x17c8   : > { %11046 = vmatmul.mubr.bf16.vlgmr.msra.gmra.mxu0 %v10626_v26  ;;  %11089 = vmatmul.mubr.bf16.vlgmr.msra.gmra.mxu1 %v10626_v26  ;;  %v22504_v26 = vld [vmem:[%s29597_s5 + $0xd40] ss:$16 sps:$4 sm:$0xff]  }
0x17c9   : > { %11133 = vmatpush1.bf16.msra.mxu0 %v26068_v38  ;;  %11549 = vmatpush1.bf16.msra.mxu1 %v22464_v13  ;;  %v22548_v13 = vld [vmem:[%s29597_s5 + $0xd8c] ss:$16 sps:$4 sm:$0xff]  }
0x17ca   : > { %11550 = vmatprep.subr.bf16.mxu1 %v22469_v57  ;;  %11150 = vmatprep.mubr.bf16.mxu0 %v23458_v62  ;;  %v22546_v57 = vld [vmem:[%s29597_s5 + $0xd88] ss:$16 sps:$4 sm:$0xff]  }
0x17cb   : > { %11591 = vmatprep.subr.bf16.mxu0 %v22515_v3  ;;  %v22509_v3 = vld [vmem:[%s29597_s5 + $0xd24] ss:$16 sps:$4 sm:$0xff]  }
0x17cd   : > { %11551 = vmatpush1.bf16.msra.mxu1 %v22467_v49  ;;  %v22507_v49 = vld [vmem:[%s29597_s5 + $0xd20] ss:$16 sps:$4 sm:$0xff]  }
0x17ce   : > { %11552 = vmatprep.subr.bf16.mxu1 %v22472_v40  ;;  %v22512_v40 = vld [vmem:[%s29597_s5 + $0xd04] ss:$16 sps:$4 sm:$0xff]  }
0x17d0   : > { %18503 = vmatmul.mubr.msk.bf16.vlgmr.msra.gmra.mxu0 %vm7921_vm14, %v22473_v54  ;;  %v22510_v54 = vld [vmem:[%s29597_s5 + $0xd00] ss:$16 sps:$4 sm:$0xff]  }
0x17d1   : > { %11553 = vmatpush1.bf16.msra.mxu1 %v22470_v43  ;;  %11592 = vmatpush1.bf16.msra.mxu0 %v22513_v59  ;;  %v22551_v43 = vld [vmem:[%s29597_s5 + $0xd6c] ss:$16 sps:$4 sm:$0xff]   ;;  %v22549_v59 = vld [vmem:[%s29597_s5 + $0xd68] ss:$16 sps:$4 sm:$0xff]  }
0x17d2   : > { %11554 = vmatprep.subr.bf16.mxu1 %v22476_v30  ;;  %11593 = vmatprep.subr.bf16.mxu0 %v22518_v56  ;;  %v22554_v30 = vld [vmem:[%s29597_s5 + $0xd4c] ss:$16 sps:$4 sm:$0xff]   ;;  %v22552_v56 = vld [vmem:[%s29597_s5 + $0xd48] ss:$16 sps:$4 sm:$0xff]  }
0x17d5   : > { %11555 = vmatpush1.bf16.msra.mxu1 %v22474_v32  ;;  %11594 = vmatpush1.bf16.msra.mxu0 %v22516_v28  ;;  %v22555_v32 = vld [vmem:[%s29597_s5 + $0xd28] ss:$16 sps:$4 sm:$0xff]   ;;  %v22557_v28 = vld [vmem:[%s29597_s5 + $0xd2c] ss:$16 sps:$4 sm:$0xff]  }
0x17d6   : > { %11556 = vmatprep.subr.bf16.mxu1 %v22479_v51  ;;  %11595 = vmatprep.subr.bf16.mxu0 %v22521_v52  ;;  %v22560_v51 = vld [vmem:[%s29597_s5 + $0xd0c] ss:$16 sps:$4 sm:$0xff]   ;;  %v22558_v52 = vld [vmem:[%s29597_s5 + $0xd08] ss:$16 sps:$4 sm:$0xff]  }
0x17d9   : > { %11557 = vmatpush1.bf16.msra.mxu1 %v22477_v24  ;;  %11596 = vmatpush1.bf16.msra.mxu0 %v22519_v11  ;;  %v22563_v24 = vld [vmem:[%s29597_s5 + $0xee4] ss:$16 sps:$4 sm:$0xff]   ;;  %v27485_v11 = vpop.f32.mrf.mxu0 }
0x17da   : > { %11558 = vmatprep.subr.bf16.mxu1 %v22482_v36  ;;  %11597 = vmatprep.subr.bf16.mxu0 %v22524_v2 }
0x17dd   : > { %11559 = vmatpush1.bf16.msra.mxu1 %v22480_v17  ;;  %11598 = vmatpush1.bf16.msra.mxu0 %v22522_v12 }
0x17de   : > { %11560 = vmatprep.subr.bf16.mxu1 %v22485_v44  ;;  %11599 = vmatprep.subr.bf16.mxu0 %v22527_v39 }
0x17e1   : > { %11561 = vmatpush1.bf16.msra.mxu1 %v22483_v8  ;;  %11600 = vmatpush1.bf16.msra.mxu0 %v22525_v63 }
0x17e2   : > { %11562 = vmatprep.subr.bf16.mxu1 %v22488_v42  ;;  %11601 = vmatprep.subr.bf16.mxu0 %v22530_v23 }
0x17e5   : > { %11563 = vmatpush1.bf16.msra.mxu1 %v22486_v41  ;;  %11602 = vmatpush1.bf16.msra.mxu0 %v22528_v4 }
0x17e6   : > { %11564 = vmatprep.subr.bf16.mxu1 %v22491_v55  ;;  %11603 = vmatprep.subr.bf16.mxu0 %v22533_v60 }
0x17e9   : > { %11565 = vmatpush2.bf16.msra.mxu1 %v22489_v25  ;;  %11604 = vmatpush1.bf16.msra.mxu0 %v22531_v1 }
0x17ea   : > { %11566 = vmatprep.subr.bf16.mxu1 %v22494_v37  ;;  %11605 = vmatprep.subr.bf16.mxu0 %v22536_v10  ;;  %v22569_v10 = vld [vmem:[%s29597_s5 + $0xea4] ss:$16 sps:$4 sm:$0xff]  }
0x17ed   : > { %11567 = vmatpush2.bf16.msra.mxu1 %v22492_v35  ;;  %11606 = vmatpush1.bf16.msra.mxu0 %v22534_v33  ;;  %v22570_v35 = vld [vmem:[%s29600_s8 + $0x38] sm:$0x1f]   ;;  %v22567_v33 = vld [vmem:[%s29597_s5 + $0xea0] ss:$16 sps:$4 sm:$0xff]  }
0x17ee   : > { %11568 = vmatprep.subr.bf16.mxu1 %v22497_v19  ;;  %11607 = vmatprep.subr.bf16.mxu0 %v22539_v5  ;;  %v22610_v19 = vld [vmem:[%s29597_s5 + $0xee8] ss:$16 sps:$4 sm:$0xff]   ;;  %v22573_v5 = vld [vmem:[%s29597_s5 + $0xe84] ss:$16 sps:$4 sm:$0xff]  }
0x17f1   : > { %11569 = vmatpush2.bf16.msra.mxu1 %v22495_v53  ;;  %11608 = vmatpush2.bf16.msra.mxu0 %v22537_v47  ;;  %v22615_v53 = vld [vmem:[%s29597_s5 + $0xecc] ss:$16 sps:$4 sm:$0xff]   ;;  %v22571_v47 = vld [vmem:[%s29597_s5 + $0xe80] ss:$16 sps:$4 sm:$0xff]  }
0x17f2   : > { %11570 = vmatprep.subr.bf16.mxu1 %v22500_v48  ;;  %11609 = vmatprep.subr.bf16.mxu0 %v22542_v58  ;;  %v22613_v48 = vld [vmem:[%s29597_s5 + $0xec8] ss:$16 sps:$4 sm:$0xff]   ;;  %v22576_v58 = vld [vmem:[%s29597_s5 + $0xe64] ss:$16 sps:$4 sm:$0xff]  }
0x17f5   : > { %11571 = vmatpush2.bf16.msra.mxu1 %v22498_v16  ;;  %11610 = vmatpush2.bf16.msra.mxu0 %v22540_v45  ;;  %v22618_v16 = vld [vmem:[%s29597_s5 + $0xeac] ss:$16 sps:$4 sm:$0xff]   ;;  %v22574_v45 = vld [vmem:[%s29597_s5 + $0xe60] ss:$16 sps:$4 sm:$0xff]  }
0x17f6   : > { %11572 = vmatprep.subr.bf16.mxu1 %v22503_v27  ;;  %11611 = vmatprep.subr.bf16.mxu0 %v22545_v0  ;;  %v22616_v27 = vld [vmem:[%s29597_s5 + $0xea8] ss:$16 sps:$4 sm:$0xff]   ;;  %v22579_v0 = vld [vmem:[%s29597_s5 + $0xe44] ss:$16 sps:$4 sm:$0xff]  }
0x17f9   : > { %11573 = vmatpush2.bf16.msra.mxu1 %v22501_v22  ;;  %11612 = vmatpush2.bf16.msra.mxu0 %v22543_v21  ;;  %v22621_v22 = vld [vmem:[%s29597_s5 + $0xe8c] ss:$16 sps:$4 sm:$0xff]   ;;  %v22577_v21 = vld [vmem:[%s29597_s5 + $0xe40] ss:$16 sps:$4 sm:$0xff]  }
0x17fa   : > { %11574 = vmatprep.subr.bf16.mxu1 %v22506_v15  ;;  %11613 = vmatprep.subr.bf16.mxu0 %v22548_v13  ;;  %v22619_v15 = vld [vmem:[%s29597_s5 + $0xe88] ss:$16 sps:$4 sm:$0xff]   ;;  %v22582_v13 = vld [vmem:[%s29597_s5 + $0xe24] ss:$16 sps:$4 sm:$0xff]  }
0x17fd   : > { %11575 = vmatpush2.bf16.msra.mxu1 %v22504_v26  ;;  %11614 = vmatpush2.bf16.msra.mxu0 %v22546_v57  ;;  %v22624_v26 = vld [vmem:[%s29597_s5 + $0xe6c] ss:$16 sps:$4 sm:$0xff]   ;;  %v22580_v57 = vld [vmem:[%s29597_s5 + $0xe20] ss:$16 sps:$4 sm:$0xff]  }
0x17fe   : > { %11576 = vmatprep.subr.bf16.mxu1 %v22509_v3  ;;  %11615 = vmatprep.subr.bf16.mxu0 %v22551_v43  ;;  %v22622_v3 = vld [vmem:[%s29597_s5 + $0xe68] ss:$16 sps:$4 sm:$0xff]  }
0x17ff   : > { %v22625_v43 = vld [vmem:[%s29597_s5 + $0xe48] ss:$16 sps:$4 sm:$0xff]  }
0x1801   : > { %11577 = vmatpush2.bf16.msra.mxu1 %v22507_v49  ;;  %11616 = vmatpush2.bf16.msra.mxu0 %v22549_v59  ;;  %v22585_v49 = vld [vmem:[%s29597_s5 + $0xe04] ss:$16 sps:$4 sm:$0xff]  }
0x1802   : > { %11578 = vmatprep.subr.bf16.mxu1 %v22512_v40  ;;  %11617 = vmatprep.subr.bf16.mxu0 %v22554_v30  ;;  %v22627_v40 = vld [vmem:[%s29597_s5 + $0xe4c] ss:$16 sps:$4 sm:$0xff]   ;;  %v22588_v59 = vld [vmem:[%s29597_s5 + $0xfe4] ss:$16 sps:$4 sm:$0xff]  }
0x1803   : > { %v22630_v30 = vld [vmem:[%s29597_s5 + $0xe2c] ss:$16 sps:$4 sm:$0xff]  }
0x1805   : > { %11579 = vmatpush2.bf16.msra.mxu1 %v22510_v54  ;;  %11618 = vmatpush2.bf16.msra.mxu0 %v22552_v56  ;;  %v22583_v54 = vld [vmem:[%s29597_s5 + $0xe00] ss:$16 sps:$4 sm:$0xff]  }
0x1806   : > { %11667 = vmatprep.subr.bf16.mxu1 %v26070_v46  ;;  %11619 = vmatprep.subr.bf16.mxu0 %v22557_v28  ;;  %v22586_v56 = vld [vmem:[%s29597_s5 + $0xfe0] ss:$16 sps:$4 sm:$0xff]   ;;  %v22591_v28 = vld [vmem:[%s29597_s5 + $0xfc4] ss:$16 sps:$4 sm:$0xff]  }
0x1809   : > { %11620 = vmatpush2.bf16.msra.mxu0 %v22555_v32  ;;  %v22628_v32 = vld [vmem:[%s29597_s5 + $0xe28] ss:$16 sps:$4 sm:$0xff]  }
0x180a   : > { %11621 = vmatprep.subr.bf16.mxu0 %v22560_v51  ;;  %v22633_v51 = vld [vmem:[%s29597_s5 + $0xe0c] ss:$16 sps:$4 sm:$0xff]  }
0x180d   : > { %11622 = vmatpush2.bf16.msra.mxu0 %v22558_v52  ;;  %v22589_v52 = vld [vmem:[%s29597_s5 + $0xfc0] ss:$16 sps:$4 sm:$0xff]  }
0x180e   : > { %12083 = vmatprep.subr.bf16.mxu0 %v22563_v24  ;;  %v22631_v24 = vld [vmem:[%s29597_s5 + $0xe08] ss:$16 sps:$4 sm:$0xff]  }
0x1888   : > { %v11047_v36 = vpop.f32.mrf.mxu0  ;;  %v11090_v2 = vpop.f32.mrf.mxu1 }
0x1889   : > { %v27488_v17 = vadd.f32 %v11047_v36, %v27266_v9  ;;  %v27491_v12 = vadd.f32 %v11090_v2, %v27269_v61  ;;  %v22594_v36 = vld [vmem:[%s29597_s5 + $0xfa4] ss:$16 sps:$4 sm:$0xff]   ;;  %v22636_v2 = vld [vmem:[%s29597_s5 + $0xfec] ss:$16 sps:$4 sm:$0xff]  }
0x188a   : > { %v11049_v44 = vpop.f32.mrf.mxu0  ;;  %v11092_v39 = vpop.f32.mrf.mxu1 }
0x188b   : > { %v27494_v8 = vadd.f32 %v11049_v44, %v27272_v31  ;;  %v27497_v63 = vadd.f32 %v11092_v39, %v27275_v14  ;;  %v22561_v14 = vld [vmem:[%s29597_s5 + $0xee0] ss:$16 sps:$4 sm:$0xff]   ;;  %v22634_v39 = vld [vmem:[%s29597_s5 + $0xfe8] ss:$16 sps:$4 sm:$0xff]  }
0x188c   : > { %v11051_v42 = vpop.f32.mrf.mxu0  ;;  %v11094_v23 = vpop.f32.mrf.mxu1  ;;  %v22592_v44 = vld [vmem:[%s29597_s5 + $0xfa0] ss:$16 sps:$4 sm:$0xff]  }
0x188d   : > { %v27500_v41 = vadd.f32 %v11051_v42, %v27278_v50  ;;  %v27503_v4 = vadd.f32 %v11094_v23, %v27281_v6  ;;  %v22566_v50 = vld [vmem:[%s29597_s5 + $0xec4] ss:$16 sps:$4 sm:$0xff]   ;;  %v22612_v6 = vld [vmem:[%s29597_s5 + $0xeec] ss:$16 sps:$4 sm:$0xff]  }
0x188e   : > { %v11053_v9 = vpop.f32.mrf.mxu0  ;;  %v22597_v42 = vld [vmem:[%s29597_s5 + $0xf84] ss:$16 sps:$4 sm:$0xff]   ;;  %v22639_v23 = vld [vmem:[%s29597_s5 + $0xfcc] ss:$16 sps:$4 sm:$0xff]  }
0x188f   : > { %v27506_v61 = vadd.f32 %v11053_v9, %v27284_v18  ;;  %v22564_v18 = vld [vmem:[%s29597_s5 + $0xec0] ss:$16 sps:$4 sm:$0xff]  }
0x1890   : > { %v11152_v55 = vpop.f32.mrf.mxu0  ;;  %v22595_v9 = vld [vmem:[%s29597_s5 + $0xf80] ss:$16 sps:$4 sm:$0xff]  }
0x1892   : > { %v11154_v60 = vpop.f32.mrf.mxu0 }
0x1894   : > { %v11156_v25 = vpop.f32.mrf.mxu0 }
0x1895   : > { %v11161_v37 = vpack.c.bf16 %v11156_v25, %v11152_v55  ;;  %v22637_v55 = vld [vmem:[%s29597_s5 + $0xfc8] ss:$16 sps:$4 sm:$0xff]   ;;  %v22642_v25 = vld [vmem:[%s29597_s5 + $0xfac] ss:$16 sps:$4 sm:$0xff]  }
0x1896   : > { %v11158_v31 = vpop.f32.mrf.mxu0 }
0x1897   : > { %v11162_v1 = vpack.c.bf16 %v11158_v31, %v11154_v60  ;;  %v22600_v60 = vld [vmem:[%s29597_s5 + $0xf64] ss:$16 sps:$4 sm:$0xff]   ;;  %v22598_v31 = vld [vmem:[%s29597_s5 + $0xf60] ss:$16 sps:$4 sm:$0xff]  }
0x1899   : > { %11580 = vmatprep.mubr.bf16.mxu1 %v11162_v1  ;;  %11623 = vmatprep.mubr.bf16.mxu0 %v11162_v1  ;;  %v22640_v1 = vld [vmem:[%s29597_s5 + $0xfa8] ss:$16 sps:$4 sm:$0xff]  }
0x189a   : > { %11581 = vmatmul.mubr.bf16.vlgmr.msra.gmra.mxu1 %v11161_v37  ;;  %11624 = vmatmul.mubr.bf16.vlgmr.msra.gmra.mxu0 %v11161_v37  ;;  %v22645_v37 = vld [vmem:[%s29597_s5 + $0xf8c] ss:$16 sps:$4 sm:$0xff]  }
0x189b   : > { %11668 = vmatpush1.bf16.msra.mxu1 %v26068_v38  ;;  %12084 = vmatpush1.bf16.msra.mxu0 %v22561_v14  ;;  %v22603_v14 = vld [vmem:[%s29597_s5 + $0xf44] ss:$16 sps:$4 sm:$0xff]  }
0x189c   : > { %12085 = vmatprep.subr.bf16.mxu0 %v22566_v50  ;;  %11685 = vmatprep.mubr.bf16.mxu1 %v23458_v62  ;;  %v22601_v50 = vld [vmem:[%s29597_s5 + $0xf40] ss:$16 sps:$4 sm:$0xff]  }
0x189d   : > { %12126 = vmatprep.subr.bf16.mxu1 %v22612_v6  ;;  %v22643_v6 = vld [vmem:[%s29597_s5 + $0xf88] ss:$16 sps:$4 sm:$0xff]  }
0x189f   : > { %12086 = vmatpush1.bf16.msra.mxu0 %v22564_v18  ;;  %v22606_v18 = vld [vmem:[%s29597_s5 + $0xf24] ss:$16 sps:$4 sm:$0xff]  }
0x18a0   : > { %12087 = vmatprep.subr.bf16.mxu0 %v22569_v10  ;;  %v22604_v10 = vld [vmem:[%s29597_s5 + $0xf20] ss:$16 sps:$4 sm:$0xff]  }
0x18a2   : > { %18635 = vmatmul.mubr.msk.bf16.vlgmr.msra.gmra.mxu1 %vm7921_vm14, %v22570_v35  ;;  %v22609_v35 = vld [vmem:[%s29597_s5 + $0xf04] ss:$16 sps:$4 sm:$0xff]  }
0x18a3   : > { %12088 = vmatpush1.bf16.msra.mxu0 %v22567_v33  ;;  %12127 = vmatpush1.bf16.msra.mxu1 %v22610_v19  ;;  %v22607_v33 = vld [vmem:[%s29597_s5 + $0xf00] ss:$16 sps:$4 sm:$0xff]   ;;  %v22648_v19 = vld [vmem:[%s29597_s5 + $0xf6c] ss:$16 sps:$4 sm:$0xff]  }
0x18a4   : > { %12089 = vmatprep.subr.bf16.mxu0 %v22573_v5  ;;  %12128 = vmatprep.subr.bf16.mxu1 %v22615_v53  ;;  %v22646_v5 = vld [vmem:[%s29597_s5 + $0xf68] ss:$16 sps:$4 sm:$0xff]   ;;  %v22651_v53 = vld [vmem:[%s29597_s5 + $0xf4c] ss:$16 sps:$4 sm:$0xff]  }
0x18a7   : > { %12090 = vmatpush1.bf16.msra.mxu0 %v22571_v47  ;;  %12129 = vmatpush1.bf16.msra.mxu1 %v22613_v48  ;;  %v22649_v47 = vld [vmem:[%s29597_s5 + $0xf48] ss:$16 sps:$4 sm:$0xff]  }
0x18a8   : > { %12091 = vmatprep.subr.bf16.mxu0 %v22576_v58  ;;  %12130 = vmatprep.subr.bf16.mxu1 %v22618_v16  ;;  %v22652_v48 = vld [vmem:[%s29597_s5 + $0xf28] ss:$16 sps:$4 sm:$0xff]   ;;  %v22654_v58 = vld [vmem:[%s29597_s5 + $0xf2c] ss:$16 sps:$4 sm:$0xff]  }
0x18a9   : > { %v22657_v16 = vld [vmem:[%s29597_s5 + $0xf0c] ss:$16 sps:$4 sm:$0xff]  }
0x18ab   : > { %12092 = vmatpush1.bf16.msra.mxu0 %v22574_v45  ;;  %12131 = vmatpush1.bf16.msra.mxu1 %v22616_v27  ;;  %v22655_v45 = vld [vmem:[%s29597_s5 + $0xf08] ss:$16 sps:$4 sm:$0xff]   ;;  %v22660_v27 = vld [vmem:[%s29597_s5 + $0x10e4] ss:$16 sps:$4 sm:$0xff]  }
0x18ac   : > { %12093 = vmatprep.subr.bf16.mxu0 %v22579_v0  ;;  %12132 = vmatprep.subr.bf16.mxu1 %v22621_v22  ;;  %v27707_v0 = vpop.f32.mrf.mxu1 }
0x18af   : > { %12094 = vmatpush1.bf16.msra.mxu0 %v22577_v21  ;;  %12133 = vmatpush1.bf16.msra.mxu1 %v22619_v15 }
0x18b0   : > { %12095 = vmatprep.subr.bf16.mxu0 %v22582_v13  ;;  %12134 = vmatprep.subr.bf16.mxu1 %v22624_v26 }
0x18b3   : > { %12096 = vmatpush1.bf16.msra.mxu0 %v22580_v57  ;;  %12135 = vmatpush1.bf16.msra.mxu1 %v22622_v3 }
0x18b4   : > { %12097 = vmatprep.subr.bf16.mxu0 %v22585_v49  ;;  %12136 = vmatprep.subr.bf16.mxu1 %v22627_v40 }
0x18b7   : > { %12098 = vmatpush1.bf16.msra.mxu0 %v22583_v54  ;;  %12137 = vmatpush1.bf16.msra.mxu1 %v22625_v43 }
0x18b8   : > { %12099 = vmatprep.subr.bf16.mxu0 %v22588_v59  ;;  %12138 = vmatprep.subr.bf16.mxu1 %v22630_v30 }
0x18bb   : > { %12100 = vmatpush2.bf16.msra.mxu0 %v22586_v56  ;;  %12139 = vmatpush1.bf16.msra.mxu1 %v22628_v32 }
0x18bc   : > { %12101 = vmatprep.subr.bf16.mxu0 %v22591_v28  ;;  %12140 = vmatprep.subr.bf16.mxu1 %v22633_v51 }
0x18bf   : > { %12102 = vmatpush2.bf16.msra.mxu0 %v22589_v52  ;;  %12141 = vmatpush1.bf16.msra.mxu1 %v22631_v24  ;;  %v22666_v52 = vld [vmem:[%s29597_s5 + $0x10a4] ss:$16 sps:$4 sm:$0xff]  }
0x18c0   : > { %12103 = vmatprep.subr.bf16.mxu0 %v22594_v36  ;;  %12142 = vmatprep.subr.bf16.mxu1 %v22636_v2  ;;  %v22667_v24 = vld [vmem:[%s29600_s8 + $0x40] sm:$0x1f]   ;;  %v22707_v2 = vld [vmem:[%s29597_s5 + $0x10e8] ss:$16 sps:$4 sm:$0xff]  }
0x18c1   : > { %v22664_v36 = vld [vmem:[%s29597_s5 + $0x10a0] ss:$16 sps:$4 sm:$0xff]  }
0x18c3   : > { %12104 = vmatpush2.bf16.msra.mxu0 %v22592_v44  ;;  %12143 = vmatpush2.bf16.msra.mxu1 %v22634_v39  ;;  %v22670_v44 = vld [vmem:[%s29597_s5 + $0x1084] ss:$16 sps:$4 sm:$0xff]   ;;  %v22712_v39 = vld [vmem:[%s29597_s5 + $0x10cc] ss:$16 sps:$4 sm:$0xff]  }
0x18c4   : > { %12105 = vmatprep.subr.bf16.mxu0 %v22597_v42  ;;  %12144 = vmatprep.subr.bf16.mxu1 %v22639_v23  ;;  %v22668_v42 = vld [vmem:[%s29597_s5 + $0x1080] ss:$16 sps:$4 sm:$0xff]   ;;  %v22710_v23 = vld [vmem:[%s29597_s5 + $0x10c8] ss:$16 sps:$4 sm:$0xff]  }
0x18c7   : > { %12106 = vmatpush2.bf16.msra.mxu0 %v22595_v9  ;;  %12145 = vmatpush2.bf16.msra.mxu1 %v22637_v55  ;;  %v22673_v9 = vld [vmem:[%s29597_s5 + $0x1064] ss:$16 sps:$4 sm:$0xff]   ;;  %v22715_v55 = vld [vmem:[%s29597_s5 + $0x10ac] ss:$16 sps:$4 sm:$0xff]  }
0x18c8   : > { %12107 = vmatprep.subr.bf16.mxu0 %v22600_v60  ;;  %12146 = vmatprep.subr.bf16.mxu1 %v22642_v25  ;;  %v22671_v60 = vld [vmem:[%s29597_s5 + $0x1060] ss:$16 sps:$4 sm:$0xff]   ;;  %v22713_v25 = vld [vmem:[%s29597_s5 + $0x10a8] ss:$16 sps:$4 sm:$0xff]  }
0x18cb   : > { %12108 = vmatpush2.bf16.msra.mxu0 %v22598_v31  ;;  %12147 = vmatpush2.bf16.msra.mxu1 %v22640_v1  ;;  %v22676_v31 = vld [vmem:[%s29597_s5 + $0x1044] ss:$16 sps:$4 sm:$0xff]   ;;  %v22718_v1 = vld [vmem:[%s29597_s5 + $0x108c] ss:$16 sps:$4 sm:$0xff]  }
0x18cc   : > { %12109 = vmatprep.subr.bf16.mxu0 %v22603_v14  ;;  %12148 = vmatprep.subr.bf16.mxu1 %v22645_v37  ;;  %v22674_v14 = vld [vmem:[%s29597_s5 + $0x1040] ss:$16 sps:$4 sm:$0xff]   ;;  %v22716_v37 = vld [vmem:[%s29597_s5 + $0x1088] ss:$16 sps:$4 sm:$0xff]  }
0x18cf   : > { %12110 = vmatpush2.bf16.msra.mxu0 %v22601_v50  ;;  %12149 = vmatpush2.bf16.msra.mxu1 %v22643_v6  ;;  %v22679_v50 = vld [vmem:[%s29597_s5 + $0x1024] ss:$16 sps:$4 sm:$0xff]   ;;  %v22721_v6 = vld [vmem:[%s29597_s5 + $0x106c] ss:$16 sps:$4 sm:$0xff]  }
0x18d0   : > { %12111 = vmatprep.subr.bf16.mxu0 %v22606_v18  ;;  %12150 = vmatprep.subr.bf16.mxu1 %v22648_v19  ;;  %v22677_v18 = vld [vmem:[%s29597_s5 + $0x1020] ss:$16 sps:$4 sm:$0xff]  }
0x18d1   : > { %v22680_v19 = vld [vmem:[%s29597_s5 + $0x1000] ss:$16 sps:$4 sm:$0xff]  }
0x18d3   : > { %12112 = vmatpush2.bf16.msra.mxu0 %v22604_v10  ;;  %12151 = vmatpush2.bf16.msra.mxu1 %v22646_v5  ;;  %v22719_v10 = vld [vmem:[%s29597_s5 + $0x1068] ss:$16 sps:$4 sm:$0xff]  }
0x18d4   : > { %12113 = vmatprep.subr.bf16.mxu0 %v22609_v35  ;;  %12152 = vmatprep.subr.bf16.mxu1 %v22651_v53  ;;  %v22682_v35 = vld [vmem:[%s29597_s5 + $0x1004] ss:$16 sps:$4 sm:$0xff]   ;;  %v22722_v5 = vld [vmem:[%s29597_s5 + $0x1048] ss:$16 sps:$4 sm:$0xff]  }
0x18d5   : > { %v22685_v53 = vld [vmem:[%s29597_s5 + $0x11e4] ss:$16 sps:$4 sm:$0xff]  }
0x18d7   : > { %12114 = vmatpush2.bf16.msra.mxu0 %v22607_v33  ;;  %12153 = vmatpush2.bf16.msra.mxu1 %v22649_v47  ;;  %v22724_v33 = vld [vmem:[%s29597_s5 + $0x104c] ss:$16 sps:$4 sm:$0xff]  }
0x18d8   : > { %12202 = vmatprep.subr.bf16.mxu0 %v26070_v46  ;;  %12154 = vmatprep.subr.bf16.mxu1 %v22654_v58  ;;  %v22727_v47 = vld [vmem:[%s29597_s5 + $0x102c] ss:$16 sps:$4 sm:$0xff]   ;;  %v22725_v58 = vld [vmem:[%s29597_s5 + $0x1028] ss:$16 sps:$4 sm:$0xff]  }
0x18db   : > { %12155 = vmatpush2.bf16.msra.mxu1 %v22652_v48  ;;  %v22683_v48 = vld [vmem:[%s29597_s5 + $0x11e0] ss:$16 sps:$4 sm:$0xff]  }
0x18dc   : > { %12156 = vmatprep.subr.bf16.mxu1 %v22657_v16  ;;  %v22688_v16 = vld [vmem:[%s29597_s5 + $0x11c4] ss:$16 sps:$4 sm:$0xff]  }
0x18df   : > { %12157 = vmatpush2.bf16.msra.mxu1 %v22655_v45  ;;  %v22730_v45 = vld [vmem:[%s29597_s5 + $0x100c] ss:$16 sps:$4 sm:$0xff]  }
0x18e0   : > { %12618 = vmatprep.subr.bf16.mxu1 %v22660_v27  ;;  %v22686_v27 = vld [vmem:[%s29597_s5 + $0x11c0] ss:$16 sps:$4 sm:$0xff]  }
0x195a   : > { %v11582_v22 = vpop.f32.mrf.mxu1  ;;  %v11625_v21 = vpop.f32.mrf.mxu0 }
0x195b   : > { %v27710_v15 = vadd.f32 %v11582_v22, %v27488_v17  ;;  %v27713_v13 = vadd.f32 %v11625_v21, %v27491_v12  ;;  %v22728_v22 = vld [vmem:[%s29597_s5 + $0x1008] ss:$16 sps:$4 sm:$0xff]   ;;  %v22691_v21 = vld [vmem:[%s29597_s5 + $0x11a4] ss:$16 sps:$4 sm:$0xff]  }
0x195c   : > { %v11584_v26 = vpop.f32.mrf.mxu1  ;;  %v11627_v57 = vpop.f32.mrf.mxu0 }
0x195d   : > { %v27716_v3 = vadd.f32 %v11584_v26, %v27494_v8  ;;  %v27719_v49 = vadd.f32 %v11627_v57, %v27497_v63  ;;  %v22658_v63 = vld [vmem:[%s29597_s5 + $0x10e0] ss:$16 sps:$4 sm:$0xff]   ;;  %v22733_v26 = vld [vmem:[%s29597_s5 + $0x11ec] ss:$16 sps:$4 sm:$0xff]  }
0x195e   : > { %v11586_v40 = vpop.f32.mrf.mxu1  ;;  %v11629_v54 = vpop.f32.mrf.mxu0  ;;  %v22689_v57 = vld [vmem:[%s29597_s5 + $0x11a0] ss:$16 sps:$4 sm:$0xff]  }
0x195f   : > { %v27722_v43 = vadd.f32 %v11586_v40, %v27500_v41  ;;  %v27725_v59 = vadd.f32 %v11629_v54, %v27503_v4  ;;  %v22663_v41 = vld [vmem:[%s29597_s5 + $0x10c4] ss:$16 sps:$4 sm:$0xff]   ;;  %v22709_v4 = vld [vmem:[%s29597_s5 + $0x10ec] ss:$16 sps:$4 sm:$0xff]   ;;  %v22731_v40 = vld [vmem:[%s29597_s5 + $0x11e8] ss:$16 sps:$4 sm:$0xff]  }
0x1960   : > { %v11588_v17 = vpop.f32.mrf.mxu1  ;;  %v22694_v54 = vld [vmem:[%s29597_s5 + $0x1184] ss:$16 sps:$4 sm:$0xff]  }
0x1961   : > { %v27728_v12 = vadd.f32 %v11588_v17, %v27506_v61  ;;  %v22661_v61 = vld [vmem:[%s29597_s5 + $0x10c0] ss:$16 sps:$4 sm:$0xff]   ;;  %v22736_v17 = vld [vmem:[%s29597_s5 + $0x11cc] ss:$16 sps:$4 sm:$0xff]  }
0x1962   : > { %v11687_v30 = vpop.f32.mrf.mxu1 }
0x1964   : > { %v11689_v56 = vpop.f32.mrf.mxu1 }
0x1966   : > { %v11691_v32 = vpop.f32.mrf.mxu1 }
0x1967   : > { %v11696_v51 = vpack.c.bf16 %v11691_v32, %v11687_v30  ;;  %v22692_v30 = vld [vmem:[%s29597_s5 + $0x1180] ss:$16 sps:$4 sm:$0xff]   ;;  %v22697_v32 = vld [vmem:[%s29597_s5 + $0x1164] ss:$16 sps:$4 sm:$0xff]  }
0x1968   : > { %v11693_v8 = vpop.f32.mrf.mxu1 }
0x1969   : > { %v11697_v28 = vpack.c.bf16 %v11693_v8, %v11689_v56  ;;  %v22734_v56 = vld [vmem:[%s29597_s5 + $0x11c8] ss:$16 sps:$4 sm:$0xff]   ;;  %v22739_v8 = vld [vmem:[%s29597_s5 + $0x11ac] ss:$16 sps:$4 sm:$0xff]  }
0x196b   : > { %12115 = vmatprep.mubr.bf16.mxu0 %v11697_v28  ;;  %12158 = vmatprep.mubr.bf16.mxu1 %v11697_v28  ;;  %v22695_v28 = vld [vmem:[%s29597_s5 + $0x1160] ss:$16 sps:$4 sm:$0xff]  }
0x196c   : > { %12116 = vmatmul.mubr.bf16.vlgmr.msra.gmra.mxu0 %v11696_v51  ;;  %12159 = vmatmul.mubr.bf16.vlgmr.msra.gmra.mxu1 %v11696_v51  ;;  %v22700_v51 = vld [vmem:[%s29597_s5 + $0x1144] ss:$16 sps:$4 sm:$0xff]  }
0x196d   : > { %12203 = vmatpush1.bf16.msra.mxu0 %v26068_v38  ;;  %12619 = vmatpush1.bf16.msra.mxu1 %v22658_v63  ;;  %v22737_v63 = vld [vmem:[%s29597_s5 + $0x11a8] ss:$16 sps:$4 sm:$0xff]  }
0x196e   : > { %12620 = vmatprep.subr.bf16.mxu1 %v22663_v41  ;;  %12220 = vmatprep.mubr.bf16.mxu0 %v23458_v62  ;;  %v22742_v41 = vld [vmem:[%s29597_s5 + $0x118c] ss:$16 sps:$4 sm:$0xff]  }
0x196f   : > { %12661 = vmatprep.subr.bf16.mxu0 %v22709_v4  ;;  %v22698_v4 = vld [vmem:[%s29597_s5 + $0x1140] ss:$16 sps:$4 sm:$0xff]  }
0x1971   : > { %12621 = vmatpush1.bf16.msra.mxu1 %v22661_v61  ;;  %v22740_v61 = vld [vmem:[%s29597_s5 + $0x1188] ss:$16 sps:$4 sm:$0xff]  }
0x1972   : > { %12622 = vmatprep.subr.bf16.mxu1 %v22666_v52  ;;  %v22703_v52 = vld [vmem:[%s29597_s5 + $0x1124] ss:$16 sps:$4 sm:$0xff]  }
0x1974   : > { %18767 = vmatmul.mubr.msk.bf16.vlgmr.msra.gmra.mxu0 %vm7921_vm14, %v22667_v24  ;;  %v22701_v24 = vld [vmem:[%s29597_s5 + $0x1120] ss:$16 sps:$4 sm:$0xff]  }
0x1975   : > { %12623 = vmatpush1.bf16.msra.mxu1 %v22664_v36  ;;  %12662 = vmatpush1.bf16.msra.mxu0 %v22707_v2  ;;  %v22706_v36 = vld [vmem:[%s29597_s5 + $0x1104] ss:$16 sps:$4 sm:$0xff]   ;;  %v22704_v2 = vld [vmem:[%s29597_s5 + $0x1100] ss:$16 sps:$4 sm:$0xff]  }
0x1976   : > { %12624 = vmatprep.subr.bf16.mxu1 %v22670_v44  ;;  %12663 = vmatprep.subr.bf16.mxu0 %v22712_v39  ;;  %v22745_v44 = vld [vmem:[%s29597_s5 + $0x116c] ss:$16 sps:$4 sm:$0xff]   ;;  %v22743_v39 = vld [vmem:[%s29597_s5 + $0x1168] ss:$16 sps:$4 sm:$0xff]  }
0x1979   : > { %12625 = vmatpush1.bf16.msra.mxu1 %v22668_v42  ;;  %12664 = vmatpush1.bf16.msra.mxu0 %v22710_v23  ;;  %v22748_v42 = vld [vmem:[%s29597_s5 + $0x114c] ss:$16 sps:$4 sm:$0xff]   ;;  %v22746_v23 = vld [vmem:[%s29597_s5 + $0x1148] ss:$16 sps:$4 sm:$0xff]  }
0x197a   : > { %12626 = vmatprep.subr.bf16.mxu1 %v22673_v9  ;;  %12665 = vmatprep.subr.bf16.mxu0 %v22715_v55  ;;  %v22749_v9 = vld [vmem:[%s29597_s5 + $0x1128] ss:$16 sps:$4 sm:$0xff]   ;;  %v22751_v55 = vld [vmem:[%s29597_s5 + $0x112c] ss:$16 sps:$4 sm:$0xff]  }
0x197d   : > { %12627 = vmatpush1.bf16.msra.mxu1 %v22671_v60  ;;  %12666 = vmatpush1.bf16.msra.mxu0 %v22713_v25  ;;  %v22754_v60 = vld [vmem:[%s29597_s5 + $0x110c] ss:$16 sps:$4 sm:$0xff]   ;;  %v22752_v25 = vld [vmem:[%s29597_s5 + $0x1108] ss:$16 sps:$4 sm:$0xff]  }
0x197e   : > { %12628 = vmatprep.subr.bf16.mxu1 %v22676_v31  ;;  %12667 = vmatprep.subr.bf16.mxu0 %v22718_v1  ;;  %v22757_v31 = vld [vmem:[%s29597_s5 + $0x12e4] ss:$16 sps:$4 sm:$0xff]   ;;  %v27929_v1 = vpop.f32.mrf.mxu0 }
0x1981   : > { %12629 = vmatpush1.bf16.msra.mxu1 %v22674_v14  ;;  %12668 = vmatpush1.bf16.msra.mxu0 %v22716_v37 }
0x1982   : > { %12630 = vmatprep.subr.bf16.mxu1 %v22679_v50  ;;  %12669 = vmatprep.subr.bf16.mxu0 %v22721_v6 }
0x1985   : > { %12631 = vmatpush1.bf16.msra.mxu1 %v22677_v18  ;;  %12670 = vmatpush1.bf16.msra.mxu0 %v22719_v10 }
0x1986   : > { %12632 = vmatprep.subr.bf16.mxu1 %v22682_v35  ;;  %12671 = vmatprep.subr.bf16.mxu0 %v22724_v33 }
0x1989   : > { %12633 = vmatpush1.bf16.msra.mxu1 %v22680_v19  ;;  %12672 = vmatpush1.bf16.msra.mxu0 %v22722_v5 }
0x198a   : > { %12634 = vmatprep.subr.bf16.mxu1 %v22685_v53  ;;  %12673 = vmatprep.subr.bf16.mxu0 %v22727_v47 }
0x198d   : > { %12635 = vmatpush2.bf16.msra.mxu1 %v22683_v48  ;;  %12674 = vmatpush1.bf16.msra.mxu0 %v22725_v58 }
0x198e   : > { %12636 = vmatprep.subr.bf16.mxu1 %v22688_v16  ;;  %12675 = vmatprep.subr.bf16.mxu0 %v22730_v45 }
0x1991   : > { %12637 = vmatpush2.bf16.msra.mxu1 %v22686_v27  ;;  %12676 = vmatpush1.bf16.msra.mxu0 %v22728_v22  ;;  %v22763_v22 = vld [vmem:[%s29597_s5 + $0x12a4] ss:$16 sps:$4 sm:$0xff]  }
0x1992   : > { %12638 = vmatprep.subr.bf16.mxu1 %v22691_v21  ;;  %12677 = vmatprep.subr.bf16.mxu0 %v22733_v26  ;;  %v22764_v21 = vld [vmem:[%s29600_s8 + $0x48] sm:$0x1f]   ;;  %v22761_v26 = vld [vmem:[%s29597_s5 + $0x12a0] ss:$16 sps:$4 sm:$0xff]  }
0x1995   : > { %12639 = vmatpush2.bf16.msra.mxu1 %v22689_v57  ;;  %12678 = vmatpush2.bf16.msra.mxu0 %v22731_v40  ;;  %v22804_v57 = vld [vmem:[%s29597_s5 + $0x12e8] ss:$16 sps:$4 sm:$0xff]   ;;  %v22767_v40 = vld [vmem:[%s29597_s5 + $0x1284] ss:$16 sps:$4 sm:$0xff]  }
0x1996   : > { %12640 = vmatprep.subr.bf16.mxu1 %v22694_v54  ;;  %12679 = vmatprep.subr.bf16.mxu0 %v22736_v17  ;;  %v22809_v54 = vld [vmem:[%s29597_s5 + $0x12cc] ss:$16 sps:$4 sm:$0xff]   ;;  %v22765_v17 = vld [vmem:[%s29597_s5 + $0x1280] ss:$16 sps:$4 sm:$0xff]  }
0x1999   : > { %12641 = vmatpush2.bf16.msra.mxu1 %v22692_v30  ;;  %12680 = vmatpush2.bf16.msra.mxu0 %v22734_v56  ;;  %v22807_v30 = vld [vmem:[%s29597_s5 + $0x12c8] ss:$16 sps:$4 sm:$0xff]   ;;  %v22770_v56 = vld [vmem:[%s29597_s5 + $0x1264] ss:$16 sps:$4 sm:$0xff]  }
0x199a   : > { %12642 = vmatprep.subr.bf16.mxu1 %v22697_v32  ;;  %12681 = vmatprep.subr.bf16.mxu0 %v22739_v8  ;;  %v22812_v32 = vld [vmem:[%s29597_s5 + $0x12ac] ss:$16 sps:$4 sm:$0xff]   ;;  %v22768_v8 = vld [vmem:[%s29597_s5 + $0x1260] ss:$16 sps:$4 sm:$0xff]  }
0x199d   : > { %12643 = vmatpush2.bf16.msra.mxu1 %v22695_v28  ;;  %12682 = vmatpush2.bf16.msra.mxu0 %v22737_v63  ;;  %v22810_v28 = vld [vmem:[%s29597_s5 + $0x12a8] ss:$16 sps:$4 sm:$0xff]   ;;  %v22773_v63 = vld [vmem:[%s29597_s5 + $0x1244] ss:$16 sps:$4 sm:$0xff]  }
0x199e   : > { %12644 = vmatprep.subr.bf16.mxu1 %v22700_v51  ;;  %12683 = vmatprep.subr.bf16.mxu0 %v22742_v41  ;;  %v22815_v51 = vld [vmem:[%s29597_s5 + $0x128c] ss:$16 sps:$4 sm:$0xff]   ;;  %v22771_v41 = vld [vmem:[%s29597_s5 + $0x1240] ss:$16 sps:$4 sm:$0xff]  }
0x19a1   : > { %12645 = vmatpush2.bf16.msra.mxu1 %v22698_v4  ;;  %12684 = vmatpush2.bf16.msra.mxu0 %v22740_v61  ;;  %v22813_v4 = vld [vmem:[%s29597_s5 + $0x1288] ss:$16 sps:$4 sm:$0xff]   ;;  %v22776_v61 = vld [vmem:[%s29597_s5 + $0x1224] ss:$16 sps:$4 sm:$0xff]  }
0x19a2   : > { %12646 = vmatprep.subr.bf16.mxu1 %v22703_v52  ;;  %12685 = vmatprep.subr.bf16.mxu0 %v22745_v44  ;;  %v22818_v52 = vld [vmem:[%s29597_s5 + $0x126c] ss:$16 sps:$4 sm:$0xff]  }
0x19a3   : > { %v22821_v44 = vld [vmem:[%s29597_s5 + $0x124c] ss:$16 sps:$4 sm:$0xff]  }
0x19a5   : > { %12647 = vmatpush2.bf16.msra.mxu1 %v22701_v24  ;;  %12686 = vmatpush2.bf16.msra.mxu0 %v22743_v39  ;;  %v22774_v24 = vld [vmem:[%s29597_s5 + $0x1220] ss:$16 sps:$4 sm:$0xff]  }
0x19a6   : > { %12648 = vmatprep.subr.bf16.mxu1 %v22706_v36  ;;  %12687 = vmatprep.subr.bf16.mxu0 %v22748_v42  ;;  %v22816_v36 = vld [vmem:[%s29597_s5 + $0x1268] ss:$16 sps:$4 sm:$0xff]   ;;  %v22777_v39 = vld [vmem:[%s29597_s5 + $0x1200] ss:$16 sps:$4 sm:$0xff]  }
0x19a7   : > { %v22819_v42 = vld [vmem:[%s29597_s5 + $0x1248] ss:$16 sps:$4 sm:$0xff]  }
0x19a9   : > { %12649 = vmatpush2.bf16.msra.mxu1 %v22704_v2  ;;  %12688 = vmatpush2.bf16.msra.mxu0 %v22746_v23  ;;  %v22779_v2 = vld [vmem:[%s29597_s5 + $0x1204] ss:$16 sps:$4 sm:$0xff]  }
0x19aa   : > { %12737 = vmatprep.subr.bf16.mxu1 %v26070_v46  ;;  %12689 = vmatprep.subr.bf16.mxu0 %v22751_v55  ;;  %v22782_v23 = vld [vmem:[%s29597_s5 + $0x13e4] ss:$16 sps:$4 sm:$0xff]   ;;  %v22780_v55 = vld [vmem:[%s29597_s5 + $0x13e0] ss:$16 sps:$4 sm:$0xff]  }
0x19ad   : > { %12690 = vmatpush2.bf16.msra.mxu0 %v22749_v9  ;;  %v22824_v9 = vld [vmem:[%s29597_s5 + $0x122c] ss:$16 sps:$4 sm:$0xff]  }
0x19ae   : > { %12691 = vmatprep.subr.bf16.mxu0 %v22754_v60  ;;  %v22822_v60 = vld [vmem:[%s29597_s5 + $0x1228] ss:$16 sps:$4 sm:$0xff]  }
0x19b1   : > { %12692 = vmatpush2.bf16.msra.mxu0 %v22752_v25  ;;  %v22785_v25 = vld [vmem:[%s29597_s5 + $0x13c4] ss:$16 sps:$4 sm:$0xff]  }
0x19b2   : > { %13153 = vmatprep.subr.bf16.mxu0 %v22757_v31  ;;  %v22827_v31 = vld [vmem:[%s29597_s5 + $0x120c] ss:$16 sps:$4 sm:$0xff]  }
0x1a2c   : > { %v12117_v14 = vpop.f32.mrf.mxu0  ;;  %v12160_v37 = vpop.f32.mrf.mxu1 }
0x1a2d   : > { %v27932_v50 = vadd.f32 %v12117_v14, %v27710_v15  ;;  %v27935_v6 = vadd.f32 %v12160_v37, %v27713_v13  ;;  %v22783_v14 = vld [vmem:[%s29597_s5 + $0x13c0] ss:$16 sps:$4 sm:$0xff]   ;;  %v22825_v37 = vld [vmem:[%s29597_s5 + $0x1208] ss:$16 sps:$4 sm:$0xff]  }
0x1a2e   : > { %v12119_v18 = vpop.f32.mrf.mxu0  ;;  %v12162_v10 = vpop.f32.mrf.mxu1 }
0x1a2f   : > { %v27938_v35 = vadd.f32 %v12119_v18, %v27716_v3  ;;  %v27941_v33 = vadd.f32 %v12162_v10, %v27719_v49  ;;  %v22755_v49 = vld [vmem:[%s29597_s5 + $0x12e0] ss:$16 sps:$4 sm:$0xff]   ;;  %v22788_v18 = vld [vmem:[%s29597_s5 + $0x13a4] ss:$16 sps:$4 sm:$0xff]   ;;  %v22830_v10 = vld [vmem:[%s29597_s5 + $0x13ec] ss:$16 sps:$4 sm:$0xff]  }
0x1a30   : > { %v12121_v19 = vpop.f32.mrf.mxu0  ;;  %v12164_v5 = vpop.f32.mrf.mxu1 }
0x1a31   : > { %v27944_v53 = vadd.f32 %v12121_v19, %v27722_v43  ;;  %v27947_v47 = vadd.f32 %v12164_v5, %v27725_v59  ;;  %v22760_v43 = vld [vmem:[%s29597_s5 + $0x12c4] ss:$16 sps:$4 sm:$0xff]   ;;  %v22806_v59 = vld [vmem:[%s29597_s5 + $0x12ec] ss:$16 sps:$4 sm:$0xff]   ;;  %v22786_v19 = vld [vmem:[%s29597_s5 + $0x13a0] ss:$16 sps:$4 sm:$0xff]  }
0x1a32   : > { %v12123_v15 = vpop.f32.mrf.mxu0  ;;  %v22828_v5 = vld [vmem:[%s29597_s5 + $0x13e8] ss:$16 sps:$4 sm:$0xff]  }
0x1a33   : > { %v27950_v13 = vadd.f32 %v12123_v15, %v27728_v12  ;;  %v22758_v12 = vld [vmem:[%s29597_s5 + $0x12c0] ss:$16 sps:$4 sm:$0xff]   ;;  %v22791_v15 = vld [vmem:[%s29597_s5 + $0x1384] ss:$16 sps:$4 sm:$0xff]  }
0x1a34   : > { %v12222_v48 = vpop.f32.mrf.mxu0 }
0x1a36   : > { %v12224_v58 = vpop.f32.mrf.mxu0 }
0x1a38   : > { %v12226_v16 = vpop.f32.mrf.mxu0 }
0x1a39   : > { %v12231_v27 = vpack.c.bf16 %v12226_v16, %v12222_v48  ;;  %v22833_v48 = vld [vmem:[%s29597_s5 + $0x13cc] ss:$16 sps:$4 sm:$0xff]   ;;  %v22831_v16 = vld [vmem:[%s29597_s5 + $0x13c8] ss:$16 sps:$4 sm:$0xff]  }
0x1a3a   : > { %v12228_v3 = vpop.f32.mrf.mxu0 }
0x1a3b   : > { %v12232_v45 = vpack.c.bf16 %v12228_v3, %v12224_v58  ;;  %v22789_v58 = vld [vmem:[%s29597_s5 + $0x1380] ss:$16 sps:$4 sm:$0xff]   ;;  %v22794_v3 = vld [vmem:[%s29597_s5 + $0x1364] ss:$16 sps:$4 sm:$0xff]  }
0x1a3d   : > { %12650 = vmatprep.mubr.bf16.mxu1 %v12232_v45  ;;  %12693 = vmatprep.mubr.bf16.mxu0 %v12232_v45  ;;  %v22836_v45 = vld [vmem:[%s29597_s5 + $0x13ac] ss:$16 sps:$4 sm:$0xff]  }
0x1a3e   : > { %12651 = vmatmul.mubr.bf16.vlgmr.msra.gmra.mxu1 %v12231_v27  ;;  %12694 = vmatmul.mubr.bf16.vlgmr.msra.gmra.mxu0 %v12231_v27  ;;  %v22834_v27 = vld [vmem:[%s29597_s5 + $0x13a8] ss:$16 sps:$4 sm:$0xff]  }
0x1a3f   : > { %12738 = vmatpush1.bf16.msra.mxu1 %v26068_v38  ;;  %13154 = vmatpush1.bf16.msra.mxu0 %v22755_v49  ;;  %v22792_v49 = vld [vmem:[%s29597_s5 + $0x1360] ss:$16 sps:$4 sm:$0xff]  }
0x1a40   : > { %13155 = vmatprep.subr.bf16.mxu0 %v22760_v43  ;;  %12755 = vmatprep.mubr.bf16.mxu1 %v23458_v62  ;;  %v22797_v43 = vld [vmem:[%s29597_s5 + $0x1344] ss:$16 sps:$4 sm:$0xff]  }
0x1a41   : > { %13196 = vmatprep.subr.bf16.mxu1 %v22806_v59  ;;  %v22839_v59 = vld [vmem:[%s29597_s5 + $0x138c] ss:$16 sps:$4 sm:$0xff]  }
0x1a43   : > { %13156 = vmatpush1.bf16.msra.mxu0 %v22758_v12  ;;  %v22795_v12 = vld [vmem:[%s29597_s5 + $0x1340] ss:$16 sps:$4 sm:$0xff]  }
0x1a44   : > { %13157 = vmatprep.subr.bf16.mxu0 %v22763_v22  ;;  %v22837_v22 = vld [vmem:[%s29597_s5 + $0x1388] ss:$16 sps:$4 sm:$0xff]  }
0x1a46   : > { %18899 = vmatmul.mubr.msk.bf16.vlgmr.msra.gmra.mxu1 %vm7921_vm14, %v22764_v21  ;;  %v22800_v21 = vld [vmem:[%s29597_s5 + $0x1324] ss:$16 sps:$4 sm:$0xff]  }
0x1a47   : > { %13158 = vmatpush1.bf16.msra.mxu0 %v22761_v26  ;;  %13197 = vmatpush1.bf16.msra.mxu1 %v22804_v57  ;;  %v22798_v26 = vld [vmem:[%s29597_s5 + $0x1320] ss:$16 sps:$4 sm:$0xff]   ;;  %v22803_v57 = vld [vmem:[%s29597_s5 + $0x1304] ss:$16 sps:$4 sm:$0xff]  }
0x1a48   : > { %13159 = vmatprep.subr.bf16.mxu0 %v22767_v40  ;;  %13198 = vmatprep.subr.bf16.mxu1 %v22809_v54  ;;  %v22801_v40 = vld [vmem:[%s29597_s5 + $0x1300] ss:$16 sps:$4 sm:$0xff]   ;;  %v22842_v54 = vld [vmem:[%s29597_s5 + $0x136c] ss:$16 sps:$4 sm:$0xff]  }
0x1a4b   : > { %13160 = vmatpush1.bf16.msra.mxu0 %v22765_v17  ;;  %13199 = vmatpush1.bf16.msra.mxu1 %v22807_v30  ;;  %v22840_v17 = vld [vmem:[%s29597_s5 + $0x1368] ss:$16 sps:$4 sm:$0xff]   ;;  %v22845_v30 = vld [vmem:[%s29597_s5 + $0x134c] ss:$16 sps:$4 sm:$0xff]  }
0x1a4c   : > { %13161 = vmatprep.subr.bf16.mxu0 %v22770_v56  ;;  %13200 = vmatprep.subr.bf16.mxu1 %v22812_v32  ;;  %v22843_v56 = vld [vmem:[%s29597_s5 + $0x1348] ss:$16 sps:$4 sm:$0xff]  }
0x1a4d   : > { %v22846_v32 = vld [vmem:[%s29597_s5 + $0x1328] ss:$16 sps:$4 sm:$0xff]  }
0x1a4f   : > { %13162 = vmatpush1.bf16.msra.mxu0 %v22768_v8  ;;  %13201 = vmatpush1.bf16.msra.mxu1 %v22810_v28  ;;  %v22848_v8 = vld [vmem:[%s29597_s5 + $0x132c] ss:$16 sps:$4 sm:$0xff]  }
0x1a50   : > { %13163 = vmatprep.subr.bf16.mxu0 %v22773_v63  ;;  %13202 = vmatprep.subr.bf16.mxu1 %v22815_v51  ;;  %v22851_v28 = vld [vmem:[%s29597_s5 + $0x130c] ss:$16 sps:$4 sm:$0xff]   ;;  %v22849_v63 = vld [vmem:[%s29597_s5 + $0x1308] ss:$16 sps:$4 sm:$0xff]   ;;  %v22854_v51 = vld [vmem:[%s29597_s5 + $0x14e4] ss:$16 sps:$4 sm:$0xff]  }
0x1a53   : > { %13164 = vmatpush1.bf16.msra.mxu0 %v22771_v41  ;;  %13203 = vmatpush1.bf16.msra.mxu1 %v22813_v4  ;;  %v28151_v41 = vpop.f32.mrf.mxu1 }
0x1a54   : > { %13165 = vmatprep.subr.bf16.mxu0 %v22776_v61  ;;  %13204 = vmatprep.subr.bf16.mxu1 %v22818_v52 }
0x1a57   : > { %13166 = vmatpush1.bf16.msra.mxu0 %v22774_v24  ;;  %13205 = vmatpush1.bf16.msra.mxu1 %v22816_v36 }
0x1a58   : > { %13167 = vmatprep.subr.bf16.mxu0 %v22779_v2  ;;  %13206 = vmatprep.subr.bf16.mxu1 %v22821_v44 }
0x1a5b   : > { %13168 = vmatpush1.bf16.msra.mxu0 %v22777_v39  ;;  %13207 = vmatpush1.bf16.msra.mxu1 %v22819_v42 }
0x1a5c   : > { %13169 = vmatprep.subr.bf16.mxu0 %v22782_v23  ;;  %13208 = vmatprep.subr.bf16.mxu1 %v22824_v9 }
0x1a5f   : > { %13170 = vmatpush2.bf16.msra.mxu0 %v22780_v55  ;;  %13209 = vmatpush1.bf16.msra.mxu1 %v22822_v60 }
0x1a60   : > { %13171 = vmatprep.subr.bf16.mxu0 %v22785_v25  ;;  %13210 = vmatprep.subr.bf16.mxu1 %v22827_v31 }
0x1a63   : > { %13172 = vmatpush2.bf16.msra.mxu0 %v22783_v14  ;;  %13211 = vmatpush1.bf16.msra.mxu1 %v22825_v37 }
0x1a64   : > { %13173 = vmatprep.subr.bf16.mxu0 %v22788_v18  ;;  %13212 = vmatprep.subr.bf16.mxu1 %v22830_v10  ;;  %v22860_v18 = vld [vmem:[%s29597_s5 + $0x14a4] ss:$16 sps:$4 sm:$0xff]  }
0x1a65   : > { %v22861_v10 = vld [vmem:[%s29600_s8 + $0x50] sm:$0x1f]  }
0x1a67   : > { %13174 = vmatpush2.bf16.msra.mxu0 %v22786_v19  ;;  %13213 = vmatpush2.bf16.msra.mxu1 %v22828_v5  ;;  %v22858_v19 = vld [vmem:[%s29597_s5 + $0x14a0] ss:$16 sps:$4 sm:$0xff]   ;;  %v22901_v5 = vld [vmem:[%s29597_s5 + $0x14e8] ss:$16 sps:$4 sm:$0xff]  }
0x1a68   : > { %13175 = vmatprep.subr.bf16.mxu0 %v22791_v15  ;;  %13214 = vmatprep.subr.bf16.mxu1 %v22833_v48  ;;  %v22864_v15 = vld [vmem:[%s29597_s5 + $0x1484] ss:$16 sps:$4 sm:$0xff]   ;;  %v22906_v48 = vld [vmem:[%s29597_s5 + $0x14cc] ss:$16 sps:$4 sm:$0xff]  }
0x1a6b   : > { %13176 = vmatpush2.bf16.msra.mxu0 %v22789_v58  ;;  %13215 = vmatpush2.bf16.msra.mxu1 %v22831_v16  ;;  %v22862_v58 = vld [vmem:[%s29597_s5 + $0x1480] ss:$16 sps:$4 sm:$0xff]   ;;  %v22904_v16 = vld [vmem:[%s29597_s5 + $0x14c8] ss:$16 sps:$4 sm:$0xff]  }
0x1a6c   : > { %13177 = vmatprep.subr.bf16.mxu0 %v22794_v3  ;;  %13216 = vmatprep.subr.bf16.mxu1 %v22836_v45  ;;  %v22867_v3 = vld [vmem:[%s29597_s5 + $0x1464] ss:$16 sps:$4 sm:$0xff]   ;;  %v22909_v45 = vld [vmem:[%s29597_s5 + $0x14ac] ss:$16 sps:$4 sm:$0xff]  }
0x1a6f   : > { %13178 = vmatpush2.bf16.msra.mxu0 %v22792_v49  ;;  %13217 = vmatpush2.bf16.msra.mxu1 %v22834_v27  ;;  %v22865_v49 = vld [vmem:[%s29597_s5 + $0x1460] ss:$16 sps:$4 sm:$0xff]   ;;  %v22907_v27 = vld [vmem:[%s29597_s5 + $0x14a8] ss:$16 sps:$4 sm:$0xff]  }
0x1a70   : > { %13179 = vmatprep.subr.bf16.mxu0 %v22797_v43  ;;  %13218 = vmatprep.subr.bf16.mxu1 %v22839_v59  ;;  %v22870_v43 = vld [vmem:[%s29597_s5 + $0x1444] ss:$16 sps:$4 sm:$0xff]   ;;  %v22912_v59 = vld [vmem:[%s29597_s5 + $0x148c] ss:$16 sps:$4 sm:$0xff]  }
0x1a73   : > { %13180 = vmatpush2.bf16.msra.mxu0 %v22795_v12  ;;  %13219 = vmatpush2.bf16.msra.mxu1 %v22837_v22  ;;  %v22868_v12 = vld [vmem:[%s29597_s5 + $0x1440] ss:$16 sps:$4 sm:$0xff]   ;;  %v22910_v22 = vld [vmem:[%s29597_s5 + $0x1488] ss:$16 sps:$4 sm:$0xff]  }
0x1a74   : > { %13181 = vmatprep.subr.bf16.mxu0 %v22800_v21  ;;  %13220 = vmatprep.subr.bf16.mxu1 %v22842_v54  ;;  %v22873_v21 = vld [vmem:[%s29597_s5 + $0x1424] ss:$16 sps:$4 sm:$0xff]  }
0x1a75   : > { %v22876_v54 = vld [vmem:[%s29597_s5 + $0x1404] ss:$16 sps:$4 sm:$0xff]  }
0x1a77   : > { %13182 = vmatpush2.bf16.msra.mxu0 %v22798_v26  ;;  %13221 = vmatpush2.bf16.msra.mxu1 %v22840_v17  ;;  %v22915_v26 = vld [vmem:[%s29597_s5 + $0x146c] ss:$16 sps:$4 sm:$0xff]  }
0x1a78   : > { %13183 = vmatprep.subr.bf16.mxu0 %v22803_v57  ;;  %13222 = vmatprep.subr.bf16.mxu1 %v22845_v30  ;;  %v22871_v57 = vld [vmem:[%s29597_s5 + $0x1420] ss:$16 sps:$4 sm:$0xff]   ;;  %v22918_v17 = vld [vmem:[%s29597_s5 + $0x144c] ss:$16 sps:$4 sm:$0xff]  }
0x1a79   : > { %v22874_v30 = vld [vmem:[%s29597_s5 + $0x1400] ss:$16 sps:$4 sm:$0xff]  }
0x1a7b   : > { %13184 = vmatpush2.bf16.msra.mxu0 %v22801_v40  ;;  %13223 = vmatpush2.bf16.msra.mxu1 %v22843_v56  ;;  %v22913_v40 = vld [vmem:[%s29597_s5 + $0x1468] ss:$16 sps:$4 sm:$0xff]  }
0x1a7c   : > { %13272 = vmatprep.subr.bf16.mxu0 %v26070_v46  ;;  %13224 = vmatprep.subr.bf16.mxu1 %v22848_v8  ;;  %v22916_v56 = vld [vmem:[%s29597_s5 + $0x1448] ss:$16 sps:$4 sm:$0xff]   ;;  %v22921_v8 = vld [vmem:[%s29597_s5 + $0x142c] ss:$16 sps:$4 sm:$0xff]  }
0x1a7f   : > { %13225 = vmatpush2.bf16.msra.mxu1 %v22846_v32  ;;  %v22879_v32 = vld [vmem:[%s29597_s5 + $0x15e4] ss:$16 sps:$4 sm:$0xff]  }
0x1a80   : > { %13226 = vmatprep.subr.bf16.mxu1 %v22851_v28  ;;  %v22877_v28 = vld [vmem:[%s29597_s5 + $0x15e0] ss:$16 sps:$4 sm:$0xff]  }
0x1a83   : > { %13227 = vmatpush2.bf16.msra.mxu1 %v22849_v63  ;;  %v22919_v63 = vld [vmem:[%s29597_s5 + $0x1428] ss:$16 sps:$4 sm:$0xff]  }
0x1a84   : > { %13688 = vmatprep.subr.bf16.mxu1 %v22854_v51  ;;  %v22882_v51 = vld [vmem:[%s29597_s5 + $0x15c4] ss:$16 sps:$4 sm:$0xff]  }
0x1afe   : > { %v12652_v4 = vpop.f32.mrf.mxu1  ;;  %v12695_v61 = vpop.f32.mrf.mxu0 }
0x1aff   : > { %v28154_v52 = vadd.f32 %v12652_v4, %v27932_v50  ;;  %v28157_v24 = vadd.f32 %v12695_v61, %v27935_v6  ;;  %v22924_v4 = vld [vmem:[%s29597_s5 + $0x140c] ss:$16 sps:$4 sm:$0xff]   ;;  %v22880_v61 = vld [vmem:[%s29597_s5 + $0x15c0] ss:$16 sps:$4 sm:$0xff]  }
0x1b00   : > { %v12654_v36 = vpop.f32.mrf.mxu1  ;;  %v12697_v2 = vpop.f32.mrf.mxu0 }
0x1b01   : > { %v28160_v44 = vadd.f32 %v12654_v36, %v27938_v35  ;;  %v28163_v39 = vadd.f32 %v12697_v2, %v27941_v33  ;;  %v22852_v33 = vld [vmem:[%s29597_s5 + $0x14e0] ss:$16 sps:$4 sm:$0xff]   ;;  %v22922_v36 = vld [vmem:[%s29597_s5 + $0x1408] ss:$16 sps:$4 sm:$0xff]   ;;  %v22885_v2 = vld [vmem:[%s29597_s5 + $0x15a4] ss:$16 sps:$4 sm:$0xff]  }
0x1b02   : > { %v12656_v42 = vpop.f32.mrf.mxu1  ;;  %v12699_v23 = vpop.f32.mrf.mxu0 }
0x1b03   : > { %v28166_v9 = vadd.f32 %v12656_v42, %v27944_v53  ;;  %v28169_v55 = vadd.f32 %v12699_v23, %v27947_v47  ;;  %v22857_v53 = vld [vmem:[%s29597_s5 + $0x14c4] ss:$16 sps:$4 sm:$0xff]   ;;  %v22903_v47 = vld [vmem:[%s29597_s5 + $0x14ec] ss:$16 sps:$4 sm:$0xff]   ;;  %v22883_v23 = vld [vmem:[%s29597_s5 + $0x15a0] ss:$16 sps:$4 sm:$0xff]  }
0x1b04   : > { %v12658_v50 = vpop.f32.mrf.mxu1  ;;  %v22927_v42 = vld [vmem:[%s29597_s5 + $0x15ec] ss:$16 sps:$4 sm:$0xff]  }
0x1b05   : > { %v28172_v6 = vadd.f32 %v12658_v50, %v27950_v13  ;;  %v22855_v13 = vld [vmem:[%s29597_s5 + $0x14c0] ss:$16 sps:$4 sm:$0xff]   ;;  %v22925_v50 = vld [vmem:[%s29597_s5 + $0x15e8] ss:$16 sps:$4 sm:$0xff]  }
0x1b06   : > { %v12757_v60 = vpop.f32.mrf.mxu1 }
0x1b08   : > { %v12759_v25 = vpop.f32.mrf.mxu1 }
0x1b0a   : > { %v12761_v31 = vpop.f32.mrf.mxu1 }
0x1b0b   : > { %v12766_v37 = vpack.c.bf16 %v12761_v31, %v12757_v60  ;;  %v22888_v60 = vld [vmem:[%s29597_s5 + $0x1584] ss:$16 sps:$4 sm:$0xff]   ;;  %v22886_v31 = vld [vmem:[%s29597_s5 + $0x1580] ss:$16 sps:$4 sm:$0xff]  }
0x1b0c   : > { %v12763_v35 = vpop.f32.mrf.mxu1 }
0x1b0d   : > { %v12767_v14 = vpack.c.bf16 %v12763_v35, %v12759_v25  ;;  %v22930_v25 = vld [vmem:[%s29597_s5 + $0x15cc] ss:$16 sps:$4 sm:$0xff]   ;;  %v22928_v35 = vld [vmem:[%s29597_s5 + $0x15c8] ss:$16 sps:$4 sm:$0xff]  }
0x1b0f   : > { %13185 = vmatprep.mubr.bf16.mxu0 %v12767_v14  ;;  %13228 = vmatprep.mubr.bf16.mxu1 %v12767_v14  ;;  %v22891_v14 = vld [vmem:[%s29597_s5 + $0x1564] ss:$16 sps:$4 sm:$0xff]  }
0x1b10   : > { %13186 = vmatmul.mubr.bf16.vlgmr.msra.gmra.mxu0 %v12766_v37  ;;  %13229 = vmatmul.mubr.bf16.vlgmr.msra.gmra.mxu1 %v12766_v37  ;;  %v22889_v37 = vld [vmem:[%s29597_s5 + $0x1560] ss:$16 sps:$4 sm:$0xff]  }
0x1b11   : > { %13273 = vmatpush1.bf16.msra.mxu0 %v26068_v38  ;;  %13689 = vmatpush1.bf16.msra.mxu1 %v22852_v33  ;;  %v22933_v33 = vld [vmem:[%s29597_s5 + $0x15ac] ss:$16 sps:$4 sm:$0xff]  }
0x1b12   : > { %13690 = vmatprep.subr.bf16.mxu1 %v22857_v53  ;;  %13290 = vmatprep.mubr.bf16.mxu0 %v23458_v62  ;;  %v22931_v53 = vld [vmem:[%s29597_s5 + $0x15a8] ss:$16 sps:$4 sm:$0xff]  }
0x1b13   : > { %13731 = vmatprep.subr.bf16.mxu0 %v22903_v47  ;;  %v22894_v47 = vld [vmem:[%s29597_s5 + $0x1544] ss:$16 sps:$4 sm:$0xff]  }
0x1b15   : > { %13691 = vmatpush1.bf16.msra.mxu1 %v22855_v13  ;;  %v22936_v13 = vld [vmem:[%s29597_s5 + $0x158c] ss:$16 sps:$4 sm:$0xff]  }
0x1b16   : > { %13692 = vmatprep.subr.bf16.mxu1 %v22860_v18  ;;  %v22892_v18 = vld [vmem:[%s29597_s5 + $0x1540] ss:$16 sps:$4 sm:$0xff]  }
0x1b18   : > { %19031 = vmatmul.mubr.msk.bf16.vlgmr.msra.gmra.mxu0 %vm7921_vm14, %v22861_v10  ;;  %v22934_v10 = vld [vmem:[%s29597_s5 + $0x1588] ss:$16 sps:$4 sm:$0xff]  }
0x1b19   : > { %13693 = vmatpush1.bf16.msra.mxu1 %v22858_v19  ;;  %13732 = vmatpush1.bf16.msra.mxu0 %v22901_v5  ;;  %v22897_v19 = vld [vmem:[%s29597_s5 + $0x1524] ss:$16 sps:$4 sm:$0xff]   ;;  %v22895_v5 = vld [vmem:[%s29597_s5 + $0x1520] ss:$16 sps:$4 sm:$0xff]  }
0x1b1a   : > { %13694 = vmatprep.subr.bf16.mxu1 %v22864_v15  ;;  %13733 = vmatprep.subr.bf16.mxu0 %v22906_v48  ;;  %v22900_v15 = vld [vmem:[%s29597_s5 + $0x1504] ss:$16 sps:$4 sm:$0xff]   ;;  %v22898_v48 = vld [vmem:[%s29597_s5 + $0x1500] ss:$16 sps:$4 sm:$0xff]  }
0x1b1d   : > { %13695 = vmatpush1.bf16.msra.mxu1 %v22862_v58  ;;  %13734 = vmatpush1.bf16.msra.mxu0 %v22904_v16  ;;  %v22939_v58 = vld [vmem:[%s29597_s5 + $0x156c] ss:$16 sps:$4 sm:$0xff]   ;;  %v22937_v16 = vld [vmem:[%s29597_s5 + $0x1568] ss:$16 sps:$4 sm:$0xff]  }
0x1b1e   : > { %13696 = vmatprep.subr.bf16.mxu1 %v22867_v3  ;;  %13735 = vmatprep.subr.bf16.mxu0 %v22909_v45  ;;  %v22942_v3 = vld [vmem:[%s29597_s5 + $0x154c] ss:$16 sps:$4 sm:$0xff]   ;;  %v22940_v45 = vld [vmem:[%s29597_s5 + $0x1548] ss:$16 sps:$4 sm:$0xff]  }
0x1b21   : > { %13697 = vmatpush1.bf16.msra.mxu1 %v22865_v49  ;;  %13736 = vmatpush1.bf16.msra.mxu0 %v22907_v27  ;;  %v22943_v49 = vld [vmem:[%s29597_s5 + $0x1528] ss:$16 sps:$4 sm:$0xff]   ;;  %v22945_v27 = vld [vmem:[%s29597_s5 + $0x152c] ss:$16 sps:$4 sm:$0xff]  }
0x1b22   : > { %13698 = vmatprep.subr.bf16.mxu1 %v22870_v43  ;;  %13737 = vmatprep.subr.bf16.mxu0 %v22912_v59  ;;  %v22948_v43 = vld [vmem:[%s29597_s5 + $0x150c] ss:$16 sps:$4 sm:$0xff]   ;;  %v22946_v59 = vld [vmem:[%s29597_s5 + $0x1508] ss:$16 sps:$4 sm:$0xff]  }
0x1b25   : > { %13699 = vmatpush1.bf16.msra.mxu1 %v22868_v12  ;;  %13738 = vmatpush1.bf16.msra.mxu0 %v22910_v22  ;;  %v22951_v12 = vld [vmem:[%s29597_s5 + $0x16e4] ss:$16 sps:$4 sm:$0xff]   ;;  %v28373_v22 = vpop.f32.mrf.mxu0 }
0x1b26   : > { %13700 = vmatprep.subr.bf16.mxu1 %v22873_v21  ;;  %13739 = vmatprep.subr.bf16.mxu0 %v22915_v26 }
0x1b29   : > { %13701 = vmatpush1.bf16.msra.mxu1 %v22871_v57  ;;  %13740 = vmatpush1.bf16.msra.mxu0 %v22913_v40 }
0x1b2a   : > { %13702 = vmatprep.subr.bf16.mxu1 %v22876_v54  ;;  %13741 = vmatprep.subr.bf16.mxu0 %v22918_v17 }
0x1b2d   : > { %13703 = vmatpush1.bf16.msra.mxu1 %v22874_v30  ;;  %13742 = vmatpush1.bf16.msra.mxu0 %v22916_v56 }
0x1b2e   : > { %13704 = vmatprep.subr.bf16.mxu1 %v22879_v32  ;;  %13743 = vmatprep.subr.bf16.mxu0 %v22921_v8 }
0x1b31   : > { %13705 = vmatpush2.bf16.msra.mxu1 %v22877_v28  ;;  %13744 = vmatpush1.bf16.msra.mxu0 %v22919_v63 }
0x1b32   : > { %13706 = vmatprep.subr.bf16.mxu1 %v22882_v51  ;;  %13745 = vmatprep.subr.bf16.mxu0 %v22924_v4 }
0x1b35   : > { %13707 = vmatpush2.bf16.msra.mxu1 %v22880_v61  ;;  %13746 = vmatpush1.bf16.msra.mxu0 %v22922_v36 }
0x1b36   : > { %13708 = vmatprep.subr.bf16.mxu1 %v22885_v2  ;;  %13747 = vmatprep.subr.bf16.mxu0 %v22927_v42  ;;  %v22957_v42 = vld [vmem:[%s29597_s5 + $0x16a4] ss:$16 sps:$4 sm:$0xff]  }
0x1b39   : > { %13709 = vmatpush2.bf16.msra.mxu1 %v22883_v23  ;;  %13748 = vmatpush2.bf16.msra.mxu0 %v22925_v50  ;;  %v22958_v23 = vld [vmem:[%s29600_s8 + $0x58] sm:$0x1f]   ;;  %v22955_v50 = vld [vmem:[%s29597_s5 + $0x16a0] ss:$16 sps:$4 sm:$0xff]  }
0x1b3a   : > { %13710 = vmatprep.subr.bf16.mxu1 %v22888_v60  ;;  %13749 = vmatprep.subr.bf16.mxu0 %v22930_v25  ;;  %v22998_v60 = vld [vmem:[%s29597_s5 + $0x16e8] ss:$16 sps:$4 sm:$0xff]   ;;  %v22961_v25 = vld [vmem:[%s29597_s5 + $0x1684] ss:$16 sps:$4 sm:$0xff]  }
0x1b3d   : > { %13711 = vmatpush2.bf16.msra.mxu1 %v22886_v31  ;;  %13750 = vmatpush2.bf16.msra.mxu0 %v22928_v35  ;;  %v23003_v31 = vld [vmem:[%s29597_s5 + $0x16cc] ss:$16 sps:$4 sm:$0xff]   ;;  %v22959_v35 = vld [vmem:[%s29597_s5 + $0x1680] ss:$16 sps:$4 sm:$0xff]  }
0x1b3e   : > { %13712 = vmatprep.subr.bf16.mxu1 %v22891_v14  ;;  %13751 = vmatprep.subr.bf16.mxu0 %v22933_v33  ;;  %v23001_v14 = vld [vmem:[%s29597_s5 + $0x16c8] ss:$16 sps:$4 sm:$0xff]   ;;  %v22964_v33 = vld [vmem:[%s29597_s5 + $0x1664] ss:$16 sps:$4 sm:$0xff]  }
0x1b41   : > { %13713 = vmatpush2.bf16.msra.mxu1 %v22889_v37  ;;  %13752 = vmatpush2.bf16.msra.mxu0 %v22931_v53  ;;  %v23006_v37 = vld [vmem:[%s29597_s5 + $0x16ac] ss:$16 sps:$4 sm:$0xff]   ;;  %v22962_v53 = vld [vmem:[%s29597_s5 + $0x1660] ss:$16 sps:$4 sm:$0xff]  }
0x1b42   : > { %13714 = vmatprep.subr.bf16.mxu1 %v22894_v47  ;;  %13753 = vmatprep.subr.bf16.mxu0 %v22936_v13  ;;  %v23004_v47 = vld [vmem:[%s29597_s5 + $0x16a8] ss:$16 sps:$4 sm:$0xff]   ;;  %v22967_v13 = vld [vmem:[%s29597_s5 + $0x1644] ss:$16 sps:$4 sm:$0xff]  }
0x1b45   : > { %13715 = vmatpush2.bf16.msra.mxu1 %v22892_v18  ;;  %13754 = vmatpush2.bf16.msra.mxu0 %v22934_v10  ;;  %v23009_v18 = vld [vmem:[%s29597_s5 + $0x168c] ss:$16 sps:$4 sm:$0xff]   ;;  %v22965_v10 = vld [vmem:[%s29597_s5 + $0x1640] ss:$16 sps:$4 sm:$0xff]  }
0x1b46   : > { %13716 = vmatprep.subr.bf16.mxu1 %v22897_v19  ;;  %13755 = vmatprep.subr.bf16.mxu0 %v22939_v58  ;;  %v23007_v19 = vld [vmem:[%s29597_s5 + $0x1688] ss:$16 sps:$4 sm:$0xff]  }
0x1b47   : > { %v23010_v58 = vld [vmem:[%s29597_s5 + $0x1668] ss:$16 sps:$4 sm:$0xff]  }
0x1b49   : > { %13717 = vmatpush2.bf16.msra.mxu1 %v22895_v5  ;;  %13756 = vmatpush2.bf16.msra.mxu0 %v22937_v16  ;;  %v22970_v5 = vld [vmem:[%s29597_s5 + $0x1624] ss:$16 sps:$4 sm:$0xff]  }
0x1b4a   : > { %13718 = vmatprep.subr.bf16.mxu1 %v22900_v15  ;;  %13757 = vmatprep.subr.bf16.mxu0 %v22942_v3  ;;  %v23012_v15 = vld [vmem:[%s29597_s5 + $0x166c] ss:$16 sps:$4 sm:$0xff]   ;;  %v22973_v16 = vld [vmem:[%s29597_s5 + $0x1604] ss:$16 sps:$4 sm:$0xff]  }
0x1b4b   : > { %v23015_v3 = vld [vmem:[%s29597_s5 + $0x164c] ss:$16 sps:$4 sm:$0xff]  }
0x1b4d   : > { %13719 = vmatpush2.bf16.msra.mxu1 %v22898_v48  ;;  %13758 = vmatpush2.bf16.msra.mxu0 %v22940_v45  ;;  %v22968_v48 = vld [vmem:[%s29597_s5 + $0x1620] ss:$16 sps:$4 sm:$0xff]  }
0x1b4e   : > { %13807 = vmatprep.subr.bf16.mxu1 %v26070_v46  ;;  %13759 = vmatprep.subr.bf16.mxu0 %v22945_v27  ;;  %v22971_v45 = vld [vmem:[%s29597_s5 + $0x1600] ss:$16 sps:$4 sm:$0xff]   ;;  %v22976_v27 = vld [vmem:[%s29597_s5 + $0x17e4] ss:$16 sps:$4 sm:$0xff]  }
0x1b51   : > { %13760 = vmatpush2.bf16.msra.mxu0 %v22943_v49  ;;  %v23013_v49 = vld [vmem:[%s29597_s5 + $0x1648] ss:$16 sps:$4 sm:$0xff]  }
0x1b52   : > { %13761 = vmatprep.subr.bf16.mxu0 %v22948_v43  ;;  %v23018_v43 = vld [vmem:[%s29597_s5 + $0x162c] ss:$16 sps:$4 sm:$0xff]  }
0x1b55   : > { %13762 = vmatpush2.bf16.msra.mxu0 %v22946_v59  ;;  %v22974_v59 = vld [vmem:[%s29597_s5 + $0x17e0] ss:$16 sps:$4 sm:$0xff]  }
0x1b56   : > { %14223 = vmatprep.subr.bf16.mxu0 %v22951_v12  ;;  %v23016_v12 = vld [vmem:[%s29597_s5 + $0x1628] ss:$16 sps:$4 sm:$0xff]  }
0x1bd0   : > { %v13187_v21 = vpop.f32.mrf.mxu0  ;;  %v13230_v26 = vpop.f32.mrf.mxu1 }
0x1bd1   : > { %v28376_v57 = vadd.f32 %v13187_v21, %v28154_v52  ;;  %v28379_v40 = vadd.f32 %v13230_v26, %v28157_v24  ;;  %v22979_v21 = vld [vmem:[%s29597_s5 + $0x17c4] ss:$16 sps:$4 sm:$0xff]   ;;  %v23021_v26 = vld [vmem:[%s29597_s5 + $0x160c] ss:$16 sps:$4 sm:$0xff]  }
0x1bd2   : > { %v13189_v54 = vpop.f32.mrf.mxu0  ;;  %v13232_v17 = vpop.f32.mrf.mxu1 }
0x1bd3   : > { %v28382_v30 = vadd.f32 %v13189_v54, %v28160_v44  ;;  %v28385_v56 = vadd.f32 %v13232_v17, %v28163_v39  ;;  %v22949_v39 = vld [vmem:[%s29597_s5 + $0x16e0] ss:$16 sps:$4 sm:$0xff]   ;;  %v23019_v17 = vld [vmem:[%s29597_s5 + $0x1608] ss:$16 sps:$4 sm:$0xff]  }
0x1bd4   : > { %v13191_v32 = vpop.f32.mrf.mxu0  ;;  %v13234_v8 = vpop.f32.mrf.mxu1  ;;  %v22977_v54 = vld [vmem:[%s29597_s5 + $0x17c0] ss:$16 sps:$4 sm:$0xff]  }
0x1bd5   : > { %v28388_v28 = vadd.f32 %v13191_v32, %v28166_v9  ;;  %v28391_v63 = vadd.f32 %v13234_v8, %v28169_v55  ;;  %v22954_v9 = vld [vmem:[%s29597_s5 + $0x16c4] ss:$16 sps:$4 sm:$0xff]   ;;  %v23000_v55 = vld [vmem:[%s29597_s5 + $0x16ec] ss:$16 sps:$4 sm:$0xff]  }
0x1bd6   : > { %v13193_v52 = vpop.f32.mrf.mxu0  ;;  %v22982_v32 = vld [vmem:[%s29597_s5 + $0x17a4] ss:$16 sps:$4 sm:$0xff]   ;;  %v23024_v8 = vld [vmem:[%s29597_s5 + $0x17ec] ss:$16 sps:$4 sm:$0xff]  }
0x1bd7   : > { %v28394_v24 = vadd.f32 %v13193_v52, %v28172_v6  ;;  %v22952_v6 = vld [vmem:[%s29597_s5 + $0x16c0] ss:$16 sps:$4 sm:$0xff]  }
0x1bd8   : > { %v13292_v51 = vpop.f32.mrf.mxu0  ;;  %v22980_v52 = vld [vmem:[%s29597_s5 + $0x17a0] ss:$16 sps:$4 sm:$0xff]  }
0x1bda   : > { %v13294_v4 = vpop.f32.mrf.mxu0 }
0x1bdc   : > { %v13296_v61 = vpop.f32.mrf.mxu0 }
0x1bdd   : > { %v13301_v2 = vpack.c.bf16 %v13296_v61, %v13292_v51  ;;  %v23022_v51 = vld [vmem:[%s29597_s5 + $0x17e8] ss:$16 sps:$4 sm:$0xff]   ;;  %v23027_v61 = vld [vmem:[%s29597_s5 + $0x17cc] ss:$16 sps:$4 sm:$0xff]  }
0x1bde   : > { %v13298_v44 = vpop.f32.mrf.mxu0 }
0x1bdf   : > { %v13302_v36 = vpack.c.bf16 %v13298_v44, %v13294_v4  ;;  %v22985_v4 = vld [vmem:[%s29597_s5 + $0x1784] ss:$16 sps:$4 sm:$0xff]   ;;  %v22983_v44 = vld [vmem:[%s29597_s5 + $0x1780] ss:$16 sps:$4 sm:$0xff]  }
0x1be1   : > { %13720 = vmatprep.mubr.bf16.mxu1 %v13302_v36  ;;  %13763 = vmatprep.mubr.bf16.mxu0 %v13302_v36  ;;  %v23025_v36 = vld [vmem:[%s29597_s5 + $0x17c8] ss:$16 sps:$4 sm:$0xff]  }
0x1be2   : > { %13721 = vmatmul.mubr.bf16.vlgmr.msra.gmra.mxu1 %v13301_v2  ;;  %13764 = vmatmul.mubr.bf16.vlgmr.msra.gmra.mxu0 %v13301_v2  ;;  %v23030_v2 = vld [vmem:[%s29597_s5 + $0x17ac] ss:$16 sps:$4 sm:$0xff]  }
0x1be3   : > { %13808 = vmatpush1.bf16.msra.mxu1 %v26068_v38  ;;  %14224 = vmatpush1.bf16.msra.mxu0 %v22949_v39  ;;  %v22988_v39 = vld [vmem:[%s29597_s5 + $0x1764] ss:$16 sps:$4 sm:$0xff]  }
0x1be4   : > { %14225 = vmatprep.subr.bf16.mxu0 %v22954_v9  ;;  %13825 = vmatprep.mubr.bf16.mxu1 %v23458_v62  ;;  %v22986_v9 = vld [vmem:[%s29597_s5 + $0x1760] ss:$16 sps:$4 sm:$0xff]  }
0x1be5   : > { %14266 = vmatprep.subr.bf16.mxu1 %v23000_v55  ;;  %v23028_v55 = vld [vmem:[%s29597_s5 + $0x17a8] ss:$16 sps:$4 sm:$0xff]  }
0x1be7   : > { %14226 = vmatpush1.bf16.msra.mxu0 %v22952_v6  ;;  %v22991_v6 = vld [vmem:[%s29597_s5 + $0x1744] ss:$16 sps:$4 sm:$0xff]  }
0x1be8   : > { %14227 = vmatprep.subr.bf16.mxu0 %v22957_v42  ;;  %v23033_v42 = vld [vmem:[%s29597_s5 + $0x178c] ss:$16 sps:$4 sm:$0xff]  }
0x1bea   : > { %19163 = vmatmul.mubr.msk.bf16.vlgmr.msra.gmra.mxu1 %vm7921_vm14, %v22958_v23  ;;  %v22989_v23 = vld [vmem:[%s29597_s5 + $0x1740] ss:$16 sps:$4 sm:$0xff]  }
0x1beb   : > { %14228 = vmatpush1.bf16.msra.mxu0 %v22955_v50  ;;  %14267 = vmatpush1.bf16.msra.mxu1 %v22998_v60  ;;  %v23031_v50 = vld [vmem:[%s29597_s5 + $0x1788] ss:$16 sps:$4 sm:$0xff]   ;;  %v22994_v60 = vld [vmem:[%s29597_s5 + $0x1724] ss:$16 sps:$4 sm:$0xff]  }
0x1bec   : > { %14229 = vmatprep.subr.bf16.mxu0 %v22961_v25  ;;  %14268 = vmatprep.subr.bf16.mxu1 %v23003_v31  ;;  %v22992_v25 = vld [vmem:[%s29597_s5 + $0x1720] ss:$16 sps:$4 sm:$0xff]   ;;  %v22997_v31 = vld [vmem:[%s29597_s5 + $0x1704] ss:$16 sps:$4 sm:$0xff]  }
0x1bef   : > { %14230 = vmatpush1.bf16.msra.mxu0 %v22959_v35  ;;  %14269 = vmatpush1.bf16.msra.mxu1 %v23001_v14  ;;  %v22995_v35 = vld [vmem:[%s29597_s5 + $0x1700] ss:$16 sps:$4 sm:$0xff]   ;;  %v23036_v14 = vld [vmem:[%s29597_s5 + $0x176c] ss:$16 sps:$4 sm:$0xff]  }
0x1bf0   : > { %14231 = vmatprep.subr.bf16.mxu0 %v22964_v33  ;;  %14270 = vmatprep.subr.bf16.mxu1 %v23006_v37  ;;  %v23034_v33 = vld [vmem:[%s29597_s5 + $0x1768] ss:$16 sps:$4 sm:$0xff]   ;;  %v23039_v37 = vld [vmem:[%s29597_s5 + $0x174c] ss:$16 sps:$4 sm:$0xff]  }
0x1bf3   : > { %14232 = vmatpush1.bf16.msra.mxu0 %v22962_v53  ;;  %14271 = vmatpush1.bf16.msra.mxu1 %v23004_v47  ;;  %v23037_v53 = vld [vmem:[%s29597_s5 + $0x1748] ss:$16 sps:$4 sm:$0xff]  }
0x1bf4   : > { %14233 = vmatprep.subr.bf16.mxu0 %v22967_v13  ;;  %14272 = vmatprep.subr.bf16.mxu1 %v23009_v18  ;;  %v23040_v47 = vld [vmem:[%s29597_s5 + $0x1728] ss:$16 sps:$4 sm:$0xff]   ;;  %v23042_v13 = vld [vmem:[%s29597_s5 + $0x172c] ss:$16 sps:$4 sm:$0xff]  }
0x1bf5   : > { %v23045_v18 = vld [vmem:[%s29597_s5 + $0x170c] ss:$16 sps:$4 sm:$0xff]  }
0x1bf7   : > { %14234 = vmatpush1.bf16.msra.mxu0 %v22965_v10  ;;  %14273 = vmatpush1.bf16.msra.mxu1 %v23007_v19  ;;  %v23043_v10 = vld [vmem:[%s29597_s5 + $0x1708] ss:$16 sps:$4 sm:$0xff]   ;;  %v23048_v19 = vld [vmem:[%s29597_s5 + $0x18e4] ss:$16 sps:$4 sm:$0xff]  }
0x1bf8   : > { %14235 = vmatprep.subr.bf16.mxu0 %v22970_v5  ;;  %14274 = vmatprep.subr.bf16.mxu1 %v23012_v15  ;;  %v28595_v5 = vpop.f32.mrf.mxu1 }
0x1bfb   : > { %14236 = vmatpush1.bf16.msra.mxu0 %v22968_v48  ;;  %14275 = vmatpush1.bf16.msra.mxu1 %v23010_v58 }
0x1bfc   : > { %14237 = vmatprep.subr.bf16.mxu0 %v22973_v16  ;;  %14276 = vmatprep.subr.bf16.mxu1 %v23015_v3 }
0x1bff   : > { %14238 = vmatpush1.bf16.msra.mxu0 %v22971_v45  ;;  %14277 = vmatpush1.bf16.msra.mxu1 %v23013_v49 }
0x1c00   : > { %14239 = vmatprep.subr.bf16.mxu0 %v22976_v27  ;;  %14278 = vmatprep.subr.bf16.mxu1 %v23018_v43 }
0x1c03   : > { %14240 = vmatpush2.bf16.msra.mxu0 %v22974_v59  ;;  %14279 = vmatpush1.bf16.msra.mxu1 %v23016_v12 }
0x1c04   : > { %14241 = vmatprep.subr.bf16.mxu0 %v22979_v21  ;;  %14280 = vmatprep.subr.bf16.mxu1 %v23021_v26 }
0x1c07   : > { %14242 = vmatpush2.bf16.msra.mxu0 %v22977_v54  ;;  %14281 = vmatpush1.bf16.msra.mxu1 %v23019_v17 }
0x1c08   : > { %14243 = vmatprep.subr.bf16.mxu0 %v22982_v32  ;;  %14282 = vmatprep.subr.bf16.mxu1 %v23024_v8 }
0x1c0b   : > { %14244 = vmatpush2.bf16.msra.mxu0 %v22980_v52  ;;  %14283 = vmatpush2.bf16.msra.mxu1 %v23022_v51  ;;  %v23054_v52 = vld [vmem:[%s29597_s5 + $0x18a4] ss:$16 sps:$4 sm:$0xff]  }
0x1c0c   : > { %14245 = vmatprep.subr.bf16.mxu0 %v22985_v4  ;;  %14284 = vmatprep.subr.bf16.mxu1 %v23027_v61  ;;  %v23055_v51 = vld [vmem:[%s29600_s8 + $0x60] sm:$0x1f]   ;;  %v23095_v61 = vld [vmem:[%s29597_s5 + $0x18e8] ss:$16 sps:$4 sm:$0xff]  }
0x1c0d   : > { %v23052_v4 = vld [vmem:[%s29597_s5 + $0x18a0] ss:$16 sps:$4 sm:$0xff]  }
0x1c0f   : > { %14246 = vmatpush2.bf16.msra.mxu0 %v22983_v44  ;;  %14285 = vmatpush2.bf16.msra.mxu1 %v23025_v36  ;;  %v23058_v44 = vld [vmem:[%s29597_s5 + $0x1884] ss:$16 sps:$4 sm:$0xff]   ;;  %v23100_v36 = vld [vmem:[%s29597_s5 + $0x18cc] ss:$16 sps:$4 sm:$0xff]  }
0x1c10   : > { %14247 = vmatprep.subr.bf16.mxu0 %v22988_v39  ;;  %14286 = vmatprep.subr.bf16.mxu1 %v23030_v2  ;;  %v23056_v39 = vld [vmem:[%s29597_s5 + $0x1880] ss:$16 sps:$4 sm:$0xff]   ;;  %v23098_v2 = vld [vmem:[%s29597_s5 + $0x18c8] ss:$16 sps:$4 sm:$0xff]  }
0x1c13   : > { %14248 = vmatpush2.bf16.msra.mxu0 %v22986_v9  ;;  %14287 = vmatpush2.bf16.msra.mxu1 %v23028_v55  ;;  %v23061_v9 = vld [vmem:[%s29597_s5 + $0x1864] ss:$16 sps:$4 sm:$0xff]   ;;  %v23103_v55 = vld [vmem:[%s29597_s5 + $0x18ac] ss:$16 sps:$4 sm:$0xff]  }
0x1c14   : > { %14249 = vmatprep.subr.bf16.mxu0 %v22991_v6  ;;  %14288 = vmatprep.subr.bf16.mxu1 %v23033_v42  ;;  %v23059_v6 = vld [vmem:[%s29597_s5 + $0x1860] ss:$16 sps:$4 sm:$0xff]   ;;  %v23101_v42 = vld [vmem:[%s29597_s5 + $0x18a8] ss:$16 sps:$4 sm:$0xff]  }
0x1c17   : > { %14250 = vmatpush2.bf16.msra.mxu0 %v22989_v23  ;;  %14289 = vmatpush2.bf16.msra.mxu1 %v23031_v50  ;;  %v23064_v23 = vld [vmem:[%s29597_s5 + $0x1844] ss:$16 sps:$4 sm:$0xff]   ;;  %v23106_v50 = vld [vmem:[%s29597_s5 + $0x188c] ss:$16 sps:$4 sm:$0xff]  }
0x1c18   : > { %14251 = vmatprep.subr.bf16.mxu0 %v22994_v60  ;;  %14290 = vmatprep.subr.bf16.mxu1 %v23036_v14  ;;  %v23062_v60 = vld [vmem:[%s29597_s5 + $0x1840] ss:$16 sps:$4 sm:$0xff]  }
0x1c19   : > { %v23065_v14 = vld [vmem:[%s29597_s5 + $0x1820] ss:$16 sps:$4 sm:$0xff]  }
0x1c1b   : > { %14252 = vmatpush2.bf16.msra.mxu0 %v22992_v25  ;;  %14291 = vmatpush2.bf16.msra.mxu1 %v23034_v33  ;;  %v23104_v25 = vld [vmem:[%s29597_s5 + $0x1888] ss:$16 sps:$4 sm:$0xff]  }
0x1c1c   : > { %14253 = vmatprep.subr.bf16.mxu0 %v22997_v31  ;;  %14292 = vmatprep.subr.bf16.mxu1 %v23039_v37  ;;  %v23067_v31 = vld [vmem:[%s29597_s5 + $0x1824] ss:$16 sps:$4 sm:$0xff]   ;;  %v23107_v33 = vld [vmem:[%s29597_s5 + $0x1868] ss:$16 sps:$4 sm:$0xff]  }
0x1c1d   : > { %v23070_v37 = vld [vmem:[%s29597_s5 + $0x1804] ss:$16 sps:$4 sm:$0xff]  }
0x1c1f   : > { %14254 = vmatpush2.bf16.msra.mxu0 %v22995_v35  ;;  %14293 = vmatpush2.bf16.msra.mxu1 %v23037_v53  ;;  %v23109_v35 = vld [vmem:[%s29597_s5 + $0x186c] ss:$16 sps:$4 sm:$0xff]  }
0x1c20   : > { %14342 = vmatprep.subr.bf16.mxu0 %v26070_v46  ;;  %14294 = vmatprep.subr.bf16.mxu1 %v23042_v13  ;;  %v23112_v53 = vld [vmem:[%s29597_s5 + $0x184c] ss:$16 sps:$4 sm:$0xff]   ;;  %v23110_v13 = vld [vmem:[%s29597_s5 + $0x1848] ss:$16 sps:$4 sm:$0xff]  }
0x1c23   : > { %14295 = vmatpush2.bf16.msra.mxu1 %v23040_v47  ;;  %v23068_v47 = vld [vmem:[%s29597_s5 + $0x1800] ss:$16 sps:$4 sm:$0xff]  }
0x1c24   : > { %14296 = vmatprep.subr.bf16.mxu1 %v23045_v18  ;;  %v23073_v18 = vld [vmem:[%s29597_s5 + $0x19e4] ss:$16 sps:$4 sm:$0xff]  }
0x1c27   : > { %14297 = vmatpush2.bf16.msra.mxu1 %v23043_v10  ;;  %v23115_v10 = vld [vmem:[%s29597_s5 + $0x182c] ss:$16 sps:$4 sm:$0xff]  }
0x1c28   : > { %14758 = vmatprep.subr.bf16.mxu1 %v23048_v19  ;;  %v23071_v19 = vld [vmem:[%s29597_s5 + $0x19e0] ss:$16 sps:$4 sm:$0xff]  }
0x1ca2   : > { %v13722_v15 = vpop.f32.mrf.mxu1  ;;  %v13765_v48 = vpop.f32.mrf.mxu0 }
0x1ca3   : > { %v28598_v58 = vadd.f32 %v13722_v15, %v28376_v57  ;;  %v28601_v16 = vadd.f32 %v13765_v48, %v28379_v40  ;;  %v23113_v15 = vld [vmem:[%s29597_s5 + $0x1828] ss:$16 sps:$4 sm:$0xff]   ;;  %v23076_v48 = vld [vmem:[%s29597_s5 + $0x19c4] ss:$16 sps:$4 sm:$0xff]  }
0x1ca4   : > { %v13724_v3 = vpop.f32.mrf.mxu1  ;;  %v13767_v45 = vpop.f32.mrf.mxu0 }
0x1ca5   : > { %v28604_v49 = vadd.f32 %v13724_v3, %v28382_v30  ;;  %v28607_v27 = vadd.f32 %v13767_v45, %v28385_v56  ;;  %v23046_v56 = vld [vmem:[%s29597_s5 + $0x18e0] ss:$16 sps:$4 sm:$0xff]   ;;  %v23118_v3 = vld [vmem:[%s29597_s5 + $0x180c] ss:$16 sps:$4 sm:$0xff]  }
0x1ca6   : > { %v13726_v43 = vpop.f32.mrf.mxu1  ;;  %v13769_v59 = vpop.f32.mrf.mxu0  ;;  %v23074_v45 = vld [vmem:[%s29597_s5 + $0x19c0] ss:$16 sps:$4 sm:$0xff]  }
0x1ca7   : > { %v28610_v12 = vadd.f32 %v13726_v43, %v28388_v28  ;;  %v28613_v21 = vadd.f32 %v13769_v59, %v28391_v63  ;;  %v23051_v28 = vld [vmem:[%s29597_s5 + $0x18c4] ss:$16 sps:$4 sm:$0xff]   ;;  %v23097_v63 = vld [vmem:[%s29597_s5 + $0x18ec] ss:$16 sps:$4 sm:$0xff]   ;;  %v23116_v43 = vld [vmem:[%s29597_s5 + $0x1808] ss:$16 sps:$4 sm:$0xff]  }
0x1ca8   : > { %v13728_v57 = vpop.f32.mrf.mxu1  ;;  %v23079_v59 = vld [vmem:[%s29597_s5 + $0x19a4] ss:$16 sps:$4 sm:$0xff]  }
0x1ca9   : > { %v28616_v40 = vadd.f32 %v13728_v57, %v28394_v24  ;;  %v23049_v24 = vld [vmem:[%s29597_s5 + $0x18c0] ss:$16 sps:$4 sm:$0xff]   ;;  %v23121_v57 = vld [vmem:[%s29597_s5 + $0x19ec] ss:$16 sps:$4 sm:$0xff]  }
0x1caa   : > { %v13827_v26 = vpop.f32.mrf.mxu1 }
0x1cac   : > { %v13829_v54 = vpop.f32.mrf.mxu1 }
0x1cae   : > { %v13831_v17 = vpop.f32.mrf.mxu1 }
0x1caf   : > { %v13836_v8 = vpack.c.bf16 %v13831_v17, %v13827_v26  ;;  %v23077_v26 = vld [vmem:[%s29597_s5 + $0x19a0] ss:$16 sps:$4 sm:$0xff]   ;;  %v23082_v17 = vld [vmem:[%s29597_s5 + $0x1984] ss:$16 sps:$4 sm:$0xff]  }
0x1cb0   : > { %v13833_v30 = vpop.f32.mrf.mxu1 }
0x1cb1   : > { %v13837_v32 = vpack.c.bf16 %v13833_v30, %v13829_v54  ;;  %v23119_v54 = vld [vmem:[%s29597_s5 + $0x19e8] ss:$16 sps:$4 sm:$0xff]   ;;  %v23124_v30 = vld [vmem:[%s29597_s5 + $0x19cc] ss:$16 sps:$4 sm:$0xff]  }
0x1cb3   : > { %14255 = vmatprep.mubr.bf16.mxu0 %v13837_v32  ;;  %14298 = vmatprep.mubr.bf16.mxu1 %v13837_v32  ;;  %v23080_v32 = vld [vmem:[%s29597_s5 + $0x1980] ss:$16 sps:$4 sm:$0xff]  }
0x1cb4   : > { %14256 = vmatmul.mubr.bf16.vlgmr.msra.gmra.mxu0 %v13836_v8  ;;  %14299 = vmatmul.mubr.bf16.vlgmr.msra.gmra.mxu1 %v13836_v8  ;;  %v23085_v8 = vld [vmem:[%s29597_s5 + $0x1964] ss:$16 sps:$4 sm:$0xff]  }
0x1cb5   : > { %14343 = vmatpush1.bf16.msra.mxu0 %v26068_v38  ;;  %14759 = vmatpush1.bf16.msra.mxu1 %v23046_v56  ;;  %v23122_v56 = vld [vmem:[%s29597_s5 + $0x19c8] ss:$16 sps:$4 sm:$0xff]  }
0x1cb6   : > { %14760 = vmatprep.subr.bf16.mxu1 %v23051_v28  ;;  %14360 = vmatprep.mubr.bf16.mxu0 %v23458_v62  ;;  %v23127_v28 = vld [vmem:[%s29597_s5 + $0x19ac] ss:$16 sps:$4 sm:$0xff]  }
0x1cb7   : > { %14801 = vmatprep.subr.bf16.mxu0 %v23097_v63  ;;  %v23083_v63 = vld [vmem:[%s29597_s5 + $0x1960] ss:$16 sps:$4 sm:$0xff]  }
0x1cb9   : > { %14761 = vmatpush1.bf16.msra.mxu1 %v23049_v24  ;;  %v23125_v24 = vld [vmem:[%s29597_s5 + $0x19a8] ss:$16 sps:$4 sm:$0xff]  }
0x1cba   : > { %14762 = vmatprep.subr.bf16.mxu1 %v23054_v52  ;;  %v23088_v52 = vld [vmem:[%s29597_s5 + $0x1944] ss:$16 sps:$4 sm:$0xff]  }
0x1cbc   : > { %19295 = vmatmul.mubr.msk.bf16.vlgmr.msra.gmra.mxu0 %vm7921_vm14, %v23055_v51  ;;  %v23130_v51 = vld [vmem:[%s29597_s5 + $0x198c] ss:$16 sps:$4 sm:$0xff]  }
0x1cbd   : > { %14763 = vmatpush1.bf16.msra.mxu1 %v23052_v4  ;;  %14802 = vmatpush1.bf16.msra.mxu0 %v23095_v61  ;;  %v23086_v4 = vld [vmem:[%s29597_s5 + $0x1940] ss:$16 sps:$4 sm:$0xff]   ;;  %v23128_v61 = vld [vmem:[%s29597_s5 + $0x1988] ss:$16 sps:$4 sm:$0xff]  }
0x1cbe   : > { %14764 = vmatprep.subr.bf16.mxu1 %v23058_v44  ;;  %14803 = vmatprep.subr.bf16.mxu0 %v23100_v36  ;;  %v23091_v44 = vld [vmem:[%s29597_s5 + $0x1924] ss:$16 sps:$4 sm:$0xff]   ;;  %v23089_v36 = vld [vmem:[%s29597_s5 + $0x1920] ss:$16 sps:$4 sm:$0xff]  }
0x1cc1   : > { %14765 = vmatpush1.bf16.msra.mxu1 %v23056_v39  ;;  %14804 = vmatpush1.bf16.msra.mxu0 %v23098_v2  ;;  %v23094_v39 = vld [vmem:[%s29597_s5 + $0x1904] ss:$16 sps:$4 sm:$0xff]   ;;  %v23092_v2 = vld [vmem:[%s29597_s5 + $0x1900] ss:$16 sps:$4 sm:$0xff]  }
0x1cc2   : > { %14766 = vmatprep.subr.bf16.mxu1 %v23061_v9  ;;  %14805 = vmatprep.subr.bf16.mxu0 %v23103_v55  ;;  %v23133_v9 = vld [vmem:[%s29597_s5 + $0x196c] ss:$16 sps:$4 sm:$0xff]   ;;  %v23131_v55 = vld [vmem:[%s29597_s5 + $0x1968] ss:$16 sps:$4 sm:$0xff]  }
0x1cc5   : > { %14767 = vmatpush1.bf16.msra.mxu1 %v23059_v6  ;;  %14806 = vmatpush1.bf16.msra.mxu0 %v23101_v42  ;;  %v23136_v6 = vld [vmem:[%s29597_s5 + $0x194c] ss:$16 sps:$4 sm:$0xff]   ;;  %v23134_v42 = vld [vmem:[%s29597_s5 + $0x1948] ss:$16 sps:$4 sm:$0xff]  }
0x1cc6   : > { %14768 = vmatprep.subr.bf16.mxu1 %v23064_v23  ;;  %14807 = vmatprep.subr.bf16.mxu0 %v23106_v50  ;;  %v23137_v23 = vld [vmem:[%s29597_s5 + $0x1928] ss:$16 sps:$4 sm:$0xff]   ;;  %v23139_v50 = vld [vmem:[%s29597_s5 + $0x192c] ss:$16 sps:$4 sm:$0xff]  }
0x1cc9   : > { %14769 = vmatpush1.bf16.msra.mxu1 %v23062_v60  ;;  %14808 = vmatpush1.bf16.msra.mxu0 %v23104_v25  ;;  %v23142_v60 = vld [vmem:[%s29597_s5 + $0x190c] ss:$16 sps:$4 sm:$0xff]   ;;  %v23140_v25 = vld [vmem:[%s29597_s5 + $0x1908] ss:$16 sps:$4 sm:$0xff]  }
0x1cca   : > { %14770 = vmatprep.subr.bf16.mxu1 %v23067_v31  ;;  %14809 = vmatprep.subr.bf16.mxu0 %v23109_v35  ;;  %v23145_v31 = vld [vmem:[%s29597_s5 + $0x1ae4] ss:$16 sps:$4 sm:$0xff]   ;;  %v28817_v35 = vpop.f32.mrf.mxu0 }
0x1ccd   : > { %14771 = vmatpush1.bf16.msra.mxu1 %v23065_v14  ;;  %14810 = vmatpush1.bf16.msra.mxu0 %v23107_v33 }
0x1cce   : > { %14772 = vmatprep.subr.bf16.mxu1 %v23070_v37  ;;  %14811 = vmatprep.subr.bf16.mxu0 %v23112_v53 }
0x1cd1   : > { %14773 = vmatpush1.bf16.msra.mxu1 %v23068_v47  ;;  %14812 = vmatpush1.bf16.msra.mxu0 %v23110_v13 }
0x1cd2   : > { %14774 = vmatprep.subr.bf16.mxu1 %v23073_v18  ;;  %14813 = vmatprep.subr.bf16.mxu0 %v23115_v10 }
0x1cd5   : > { %14775 = vmatpush2.bf16.msra.mxu1 %v23071_v19  ;;  %14814 = vmatpush1.bf16.msra.mxu0 %v23113_v15 }
0x1cd6   : > { %14776 = vmatprep.subr.bf16.mxu1 %v23076_v48  ;;  %14815 = vmatprep.subr.bf16.mxu0 %v23118_v3 }
0x1cd9   : > { %14777 = vmatpush2.bf16.msra.mxu1 %v23074_v45  ;;  %14816 = vmatpush1.bf16.msra.mxu0 %v23116_v43 }
0x1cda   : > { %14778 = vmatprep.subr.bf16.mxu1 %v23079_v59  ;;  %14817 = vmatprep.subr.bf16.mxu0 %v23121_v57 }
0x1cdd   : > { %14779 = vmatpush2.bf16.msra.mxu1 %v23077_v26  ;;  %14818 = vmatpush2.bf16.msra.mxu0 %v23119_v54  ;;  %v23151_v54 = vld [vmem:[%s29597_s5 + $0x1aa4] ss:$16 sps:$4 sm:$0xff]  }
0x1cde   : > { %14780 = vmatprep.subr.bf16.mxu1 %v23082_v17  ;;  %14819 = vmatprep.subr.bf16.mxu0 %v23124_v30  ;;  %v23152_v17 = vld [vmem:[%s29600_s8 + $0x68] sm:$0x1f]   ;;  %v23149_v30 = vld [vmem:[%s29597_s5 + $0x1aa0] ss:$16 sps:$4 sm:$0xff]  }
0x1ce1   : > { %14781 = vmatpush2.bf16.msra.mxu1 %v23080_v32  ;;  %14820 = vmatpush2.bf16.msra.mxu0 %v23122_v56  ;;  %v23192_v32 = vld [vmem:[%s29597_s5 + $0x1ae8] ss:$16 sps:$4 sm:$0xff]   ;;  %v23155_v56 = vld [vmem:[%s29597_s5 + $0x1a84] ss:$16 sps:$4 sm:$0xff]  }
0x1ce2   : > { %14782 = vmatprep.subr.bf16.mxu1 %v23085_v8  ;;  %14821 = vmatprep.subr.bf16.mxu0 %v23127_v28  ;;  %v23197_v8 = vld [vmem:[%s29597_s5 + $0x1acc] ss:$16 sps:$4 sm:$0xff]   ;;  %v23153_v28 = vld [vmem:[%s29597_s5 + $0x1a80] ss:$16 sps:$4 sm:$0xff]  }
0x1ce5   : > { %14783 = vmatpush2.bf16.msra.mxu1 %v23083_v63  ;;  %14822 = vmatpush2.bf16.msra.mxu0 %v23125_v24  ;;  %v23195_v63 = vld [vmem:[%s29597_s5 + $0x1ac8] ss:$16 sps:$4 sm:$0xff]   ;;  %v23158_v24 = vld [vmem:[%s29597_s5 + $0x1a64] ss:$16 sps:$4 sm:$0xff]  }
0x1ce6   : > { %14784 = vmatprep.subr.bf16.mxu1 %v23088_v52  ;;  %14823 = vmatprep.subr.bf16.mxu0 %v23130_v51  ;;  %v23200_v52 = vld [vmem:[%s29597_s5 + $0x1aac] ss:$16 sps:$4 sm:$0xff]   ;;  %v23156_v51 = vld [vmem:[%s29597_s5 + $0x1a60] ss:$16 sps:$4 sm:$0xff]  }
0x1ce9   : > { %14785 = vmatpush2.bf16.msra.mxu1 %v23086_v4  ;;  %14824 = vmatpush2.bf16.msra.mxu0 %v23128_v61  ;;  %v23198_v4 = vld [vmem:[%s29597_s5 + $0x1aa8] ss:$16 sps:$4 sm:$0xff]   ;;  %v23161_v61 = vld [vmem:[%s29597_s5 + $0x1a44] ss:$16 sps:$4 sm:$0xff]  }
0x1cea   : > { %14786 = vmatprep.subr.bf16.mxu1 %v23091_v44  ;;  %14825 = vmatprep.subr.bf16.mxu0 %v23133_v9  ;;  %v23203_v44 = vld [vmem:[%s29597_s5 + $0x1a8c] ss:$16 sps:$4 sm:$0xff]  }
0x1ceb   : > { %v23206_v9 = vld [vmem:[%s29597_s5 + $0x1a6c] ss:$16 sps:$4 sm:$0xff]  }
0x1ced   : > { %14787 = vmatpush2.bf16.msra.mxu1 %v23089_v36  ;;  %14826 = vmatpush2.bf16.msra.mxu0 %v23131_v55  ;;  %v23159_v36 = vld [vmem:[%s29597_s5 + $0x1a40] ss:$16 sps:$4 sm:$0xff]  }
0x1cee   : > { %14788 = vmatprep.subr.bf16.mxu1 %v23094_v39  ;;  %14827 = vmatprep.subr.bf16.mxu0 %v23136_v6  ;;  %v23201_v39 = vld [vmem:[%s29597_s5 + $0x1a88] ss:$16 sps:$4 sm:$0xff]   ;;  %v23162_v55 = vld [vmem:[%s29597_s5 + $0x1a20] ss:$16 sps:$4 sm:$0xff]  }
0x1cef   : > { %v23204_v6 = vld [vmem:[%s29597_s5 + $0x1a68] ss:$16 sps:$4 sm:$0xff]  }
0x1cf1   : > { %14789 = vmatpush2.bf16.msra.mxu1 %v23092_v2  ;;  %14828 = vmatpush2.bf16.msra.mxu0 %v23134_v42  ;;  %v23164_v2 = vld [vmem:[%s29597_s5 + $0x1a24] ss:$16 sps:$4 sm:$0xff]  }
0x1cf2   : > { %14877 = vmatprep.subr.bf16.mxu1 %v26070_v46  ;;  %14829 = vmatprep.subr.bf16.mxu0 %v23139_v50  ;;  %v23167_v42 = vld [vmem:[%s29597_s5 + $0x1a04] ss:$16 sps:$4 sm:$0xff]   ;;  %v23165_v50 = vld [vmem:[%s29597_s5 + $0x1a00] ss:$16 sps:$4 sm:$0xff]  }
0x1cf5   : > { %14830 = vmatpush2.bf16.msra.mxu0 %v23137_v23  ;;  %v23209_v23 = vld [vmem:[%s29597_s5 + $0x1a4c] ss:$16 sps:$4 sm:$0xff]  }
0x1cf6   : > { %14831 = vmatprep.subr.bf16.mxu0 %v23142_v60  ;;  %v23207_v60 = vld [vmem:[%s29597_s5 + $0x1a48] ss:$16 sps:$4 sm:$0xff]  }
0x1cf9   : > { %14832 = vmatpush2.bf16.msra.mxu0 %v23140_v25  ;;  %v23170_v25 = vld [vmem:[%s29597_s5 + $0x1be4] ss:$16 sps:$4 sm:$0xff]  }
0x1cfa   : > { %15293 = vmatprep.subr.bf16.mxu0 %v23145_v31  ;;  %v23212_v31 = vld [vmem:[%s29597_s5 + $0x1a2c] ss:$16 sps:$4 sm:$0xff]  }
0x1d74   : > { %v14257_v14 = vpop.f32.mrf.mxu0  ;;  %v14300_v33 = vpop.f32.mrf.mxu1 }
0x1d75   : > { %v28820_v37 = vadd.f32 %v14257_v14, %v28598_v58  ;;  %v28823_v53 = vadd.f32 %v14300_v33, %v28601_v16  ;;  %v23168_v14 = vld [vmem:[%s29597_s5 + $0x1be0] ss:$16 sps:$4 sm:$0xff]   ;;  %v23210_v33 = vld [vmem:[%s29597_s5 + $0x1a28] ss:$16 sps:$4 sm:$0xff]  }
0x1d76   : > { %v14259_v47 = vpop.f32.mrf.mxu0  ;;  %v14302_v13 = vpop.f32.mrf.mxu1 }
0x1d77   : > { %v28826_v18 = vadd.f32 %v14259_v47, %v28604_v49  ;;  %v28829_v10 = vadd.f32 %v14302_v13, %v28607_v27  ;;  %v23143_v27 = vld [vmem:[%s29597_s5 + $0x1ae0] ss:$16 sps:$4 sm:$0xff]   ;;  %v23173_v47 = vld [vmem:[%s29597_s5 + $0x1bc4] ss:$16 sps:$4 sm:$0xff]   ;;  %v23215_v13 = vld [vmem:[%s29597_s5 + $0x1a0c] ss:$16 sps:$4 sm:$0xff]  }
0x1d78   : > { %v14261_v19 = vpop.f32.mrf.mxu0  ;;  %v14304_v15 = vpop.f32.mrf.mxu1 }
0x1d79   : > { %v28832_v48 = vadd.f32 %v14261_v19, %v28610_v12  ;;  %v28835_v3 = vadd.f32 %v14304_v15, %v28613_v21  ;;  %v23148_v12 = vld [vmem:[%s29597_s5 + $0x1ac4] ss:$16 sps:$4 sm:$0xff]   ;;  %v23194_v21 = vld [vmem:[%s29597_s5 + $0x1aec] ss:$16 sps:$4 sm:$0xff]   ;;  %v23171_v19 = vld [vmem:[%s29597_s5 + $0x1bc0] ss:$16 sps:$4 sm:$0xff]  }
0x1d7a   : > { %v14263_v58 = vpop.f32.mrf.mxu0  ;;  %v23213_v15 = vld [vmem:[%s29597_s5 + $0x1a08] ss:$16 sps:$4 sm:$0xff]  }
0x1d7b   : > { %v28838_v16 = vadd.f32 %v14263_v58, %v28616_v40  ;;  %v23146_v40 = vld [vmem:[%s29597_s5 + $0x1ac0] ss:$16 sps:$4 sm:$0xff]   ;;  %v23176_v58 = vld [vmem:[%s29597_s5 + $0x1ba4] ss:$16 sps:$4 sm:$0xff]  }
0x1d7c   : > { %v14362_v45 = vpop.f32.mrf.mxu0 }
0x1d7e   : > { %v14364_v43 = vpop.f32.mrf.mxu0 }
0x1d80   : > { %v14366_v59 = vpop.f32.mrf.mxu0 }
0x1d81   : > { %v14371_v26 = vpack.c.bf16 %v14366_v59, %v14362_v45  ;;  %v23218_v45 = vld [vmem:[%s29597_s5 + $0x1bec] ss:$16 sps:$4 sm:$0xff]   ;;  %v23216_v59 = vld [vmem:[%s29597_s5 + $0x1be8] ss:$16 sps:$4 sm:$0xff]  }
0x1d82   : > { %v14368_v49 = vpop.f32.mrf.mxu0 }
0x1d83   : > { %v14372_v57 = vpack.c.bf16 %v14368_v49, %v14364_v43  ;;  %v23174_v43 = vld [vmem:[%s29597_s5 + $0x1ba0] ss:$16 sps:$4 sm:$0xff]   ;;  %v23179_v49 = vld [vmem:[%s29597_s5 + $0x1b84] ss:$16 sps:$4 sm:$0xff]  }
0x1d85   : > { %14790 = vmatprep.mubr.bf16.mxu1 %v14372_v57  ;;  %14833 = vmatprep.mubr.bf16.mxu0 %v14372_v57  ;;  %v23221_v57 = vld [vmem:[%s29597_s5 + $0x1bcc] ss:$16 sps:$4 sm:$0xff]  }
0x1d86   : > { %14791 = vmatmul.mubr.bf16.vlgmr.msra.gmra.mxu1 %v14371_v26  ;;  %14834 = vmatmul.mubr.bf16.vlgmr.msra.gmra.mxu0 %v14371_v26  ;;  %v23219_v26 = vld [vmem:[%s29597_s5 + $0x1bc8] ss:$16 sps:$4 sm:$0xff]  }
0x1d87   : > { %14878 = vmatpush1.bf16.msra.mxu1 %v26068_v38  ;;  %15294 = vmatpush1.bf16.msra.mxu0 %v23143_v27  ;;  %v23177_v27 = vld [vmem:[%s29597_s5 + $0x1b80] ss:$16 sps:$4 sm:$0xff]  }
0x1d88   : > { %15295 = vmatprep.subr.bf16.mxu0 %v23148_v12  ;;  %14895 = vmatprep.mubr.bf16.mxu1 %v23458_v62  ;;  %v23182_v12 = vld [vmem:[%s29597_s5 + $0x1b64] ss:$16 sps:$4 sm:$0xff]  }
0x1d89   : > { %15336 = vmatprep.subr.bf16.mxu1 %v23194_v21  ;;  %v23224_v21 = vld [vmem:[%s29597_s5 + $0x1bac] ss:$16 sps:$4 sm:$0xff]  }
0x1d8b   : > { %15296 = vmatpush1.bf16.msra.mxu0 %v23146_v40  ;;  %v23180_v40 = vld [vmem:[%s29597_s5 + $0x1b60] ss:$16 sps:$4 sm:$0xff]  }
0x1d8c   : > { %15297 = vmatprep.subr.bf16.mxu0 %v23151_v54  ;;  %v23222_v54 = vld [vmem:[%s29597_s5 + $0x1ba8] ss:$16 sps:$4 sm:$0xff]  }
0x1d8e   : > { %19427 = vmatmul.mubr.msk.bf16.vlgmr.msra.gmra.mxu1 %vm7921_vm14, %v23152_v17  ;;  %v23185_v17 = vld [vmem:[%s29597_s5 + $0x1b44] ss:$16 sps:$4 sm:$0xff]  }
0x1d8f   : > { %15298 = vmatpush1.bf16.msra.mxu0 %v23149_v30  ;;  %15337 = vmatpush1.bf16.msra.mxu1 %v23192_v32  ;;  %v23227_v30 = vld [vmem:[%s29597_s5 + $0x1b8c] ss:$16 sps:$4 sm:$0xff]   ;;  %v23183_v32 = vld [vmem:[%s29597_s5 + $0x1b40] ss:$16 sps:$4 sm:$0xff]  }
0x1d90   : > { %15299 = vmatprep.subr.bf16.mxu0 %v23155_v56  ;;  %15338 = vmatprep.subr.bf16.mxu1 %v23197_v8  ;;  %v23225_v56 = vld [vmem:[%s29597_s5 + $0x1b88] ss:$16 sps:$4 sm:$0xff]   ;;  %v23188_v8 = vld [vmem:[%s29597_s5 + $0x1b24] ss:$16 sps:$4 sm:$0xff]  }
0x1d93   : > { %15300 = vmatpush1.bf16.msra.mxu0 %v23153_v28  ;;  %15339 = vmatpush1.bf16.msra.mxu1 %v23195_v63  ;;  %v23186_v28 = vld [vmem:[%s29597_s5 + $0x1b20] ss:$16 sps:$4 sm:$0xff]   ;;  %v23191_v63 = vld [vmem:[%s29597_s5 + $0x1b04] ss:$16 sps:$4 sm:$0xff]  }
0x1d94   : > { %15301 = vmatprep.subr.bf16.mxu0 %v23158_v24  ;;  %15340 = vmatprep.subr.bf16.mxu1 %v23200_v52  ;;  %v23189_v24 = vld [vmem:[%s29597_s5 + $0x1b00] ss:$16 sps:$4 sm:$0xff]   ;;  %v23230_v52 = vld [vmem:[%s29597_s5 + $0x1b6c] ss:$16 sps:$4 sm:$0xff]  }
0x1d97   : > { %15302 = vmatpush1.bf16.msra.mxu0 %v23156_v51  ;;  %15341 = vmatpush1.bf16.msra.mxu1 %v23198_v4  ;;  %v23228_v51 = vld [vmem:[%s29597_s5 + $0x1b68] ss:$16 sps:$4 sm:$0xff]   ;;  %v23233_v4 = vld [vmem:[%s29597_s5 + $0x1b4c] ss:$16 sps:$4 sm:$0xff]  }
0x1d98   : > { %15303 = vmatprep.subr.bf16.mxu0 %v23161_v61  ;;  %15342 = vmatprep.subr.bf16.mxu1 %v23203_v44  ;;  %v23231_v61 = vld [vmem:[%s29597_s5 + $0x1b48] ss:$16 sps:$4 sm:$0xff]  }
0x1d99   : > { %v23234_v44 = vld [vmem:[%s29597_s5 + $0x1b28] ss:$16 sps:$4 sm:$0xff]  }
0x1d9b   : > { %15304 = vmatpush1.bf16.msra.mxu0 %v23159_v36  ;;  %15343 = vmatpush1.bf16.msra.mxu1 %v23201_v39  ;;  %v23236_v36 = vld [vmem:[%s29597_s5 + $0x1b2c] ss:$16 sps:$4 sm:$0xff]  }
0x1d9c   : > { %15305 = vmatprep.subr.bf16.mxu0 %v23164_v2  ;;  %15344 = vmatprep.subr.bf16.mxu1 %v23206_v9  ;;  %v23239_v39 = vld [vmem:[%s29597_s5 + $0x1b0c] ss:$16 sps:$4 sm:$0xff]   ;;  %v23237_v2 = vld [vmem:[%s29597_s5 + $0x1b08] ss:$16 sps:$4 sm:$0xff]   ;;  %v23242_v9 = vld [vmem:[%s29597_s5 + $0x1ce4] ss:$16 sps:$4 sm:$0xff]  }
0x1d9f   : > { %15306 = vmatpush1.bf16.msra.mxu0 %v23162_v55  ;;  %15345 = vmatpush1.bf16.msra.mxu1 %v23204_v6  ;;  %v29039_v55 = vpop.f32.mrf.mxu1 }
0x1da0   : > { %15307 = vmatprep.subr.bf16.mxu0 %v23167_v42  ;;  %15346 = vmatprep.subr.bf16.mxu1 %v23209_v23 }
0x1da3   : > { %15308 = vmatpush1.bf16.msra.mxu0 %v23165_v50  ;;  %15347 = vmatpush1.bf16.msra.mxu1 %v23207_v60 }
0x1da4   : > { %15309 = vmatprep.subr.bf16.mxu0 %v23170_v25  ;;  %15348 = vmatprep.subr.bf16.mxu1 %v23212_v31 }
0x1da7   : > { %15310 = vmatpush2.bf16.msra.mxu0 %v23168_v14  ;;  %15349 = vmatpush1.bf16.msra.mxu1 %v23210_v33 }
0x1da8   : > { %15311 = vmatprep.subr.bf16.mxu0 %v23173_v47  ;;  %15350 = vmatprep.subr.bf16.mxu1 %v23215_v13 }
0x1dab   : > { %15312 = vmatpush2.bf16.msra.mxu0 %v23171_v19  ;;  %15351 = vmatpush1.bf16.msra.mxu1 %v23213_v15 }
0x1dac   : > { %15313 = vmatprep.subr.bf16.mxu0 %v23176_v58  ;;  %15352 = vmatprep.subr.bf16.mxu1 %v23218_v45 }
0x1daf   : > { %15314 = vmatpush2.bf16.msra.mxu0 %v23174_v43  ;;  %15353 = vmatpush2.bf16.msra.mxu1 %v23216_v59 }
0x1db0   : > { %15315 = vmatprep.subr.bf16.mxu0 %v23179_v49  ;;  %15354 = vmatprep.subr.bf16.mxu1 %v23221_v57  ;;  %v23248_v49 = vld [vmem:[%s29597_s5 + $0x1ca4] ss:$16 sps:$4 sm:$0xff]  }
0x1db1   : > { %v23249_v57 = vld [vmem:[%s29600_s8 + $0x70] sm:$0x1f]  }
0x1db3   : > { %15316 = vmatpush2.bf16.msra.mxu0 %v23177_v27  ;;  %15355 = vmatpush2.bf16.msra.mxu1 %v23219_v26  ;;  %v23246_v27 = vld [vmem:[%s29597_s5 + $0x1ca0] ss:$16 sps:$4 sm:$0xff]   ;;  %v23289_v26 = vld [vmem:[%s29597_s5 + $0x1ce8] ss:$16 sps:$4 sm:$0xff]  }
0x1db4   : > { %15317 = vmatprep.subr.bf16.mxu0 %v23182_v12  ;;  %15356 = vmatprep.subr.bf16.mxu1 %v23224_v21  ;;  %v23252_v12 = vld [vmem:[%s29597_s5 + $0x1c84] ss:$16 sps:$4 sm:$0xff]   ;;  %v23294_v21 = vld [vmem:[%s29597_s5 + $0x1ccc] ss:$16 sps:$4 sm:$0xff]  }
0x1db7   : > { %15318 = vmatpush2.bf16.msra.mxu0 %v23180_v40  ;;  %15357 = vmatpush2.bf16.msra.mxu1 %v23222_v54  ;;  %v23250_v40 = vld [vmem:[%s29597_s5 + $0x1c80] ss:$16 sps:$4 sm:$0xff]   ;;  %v23292_v54 = vld [vmem:[%s29597_s5 + $0x1cc8] ss:$16 sps:$4 sm:$0xff]  }
0x1db8   : > { %15319 = vmatprep.subr.bf16.mxu0 %v23185_v17  ;;  %15358 = vmatprep.subr.bf16.mxu1 %v23227_v30  ;;  %v23255_v17 = vld [vmem:[%s29597_s5 + $0x1c64] ss:$16 sps:$4 sm:$0xff]   ;;  %v23297_v30 = vld [vmem:[%s29597_s5 + $0x1cac] ss:$16 sps:$4 sm:$0xff]  }
0x1dbb   : > { %15320 = vmatpush2.bf16.msra.mxu0 %v23183_v32  ;;  %15359 = vmatpush2.bf16.msra.mxu1 %v23225_v56  ;;  %v23253_v32 = vld [vmem:[%s29597_s5 + $0x1c60] ss:$16 sps:$4 sm:$0xff]   ;;  %v23295_v56 = vld [vmem:[%s29597_s5 + $0x1ca8] ss:$16 sps:$4 sm:$0xff]  }
0x1dbc   : > { %15321 = vmatprep.subr.bf16.mxu0 %v23188_v8  ;;  %15360 = vmatprep.subr.bf16.mxu1 %v23230_v52  ;;  %v23258_v8 = vld [vmem:[%s29597_s5 + $0x1c44] ss:$16 sps:$4 sm:$0xff]  }
0x1dbd   : > { %v23261_v52 = vld [vmem:[%s29597_s5 + $0x1c24] ss:$16 sps:$4 sm:$0xff]  }
0x1dbf   : > { %15322 = vmatpush2.bf16.msra.mxu0 %v23186_v28  ;;  %15361 = vmatpush2.bf16.msra.mxu1 %v23228_v51  ;;  %v23300_v28 = vld [vmem:[%s29597_s5 + $0x1c8c] ss:$16 sps:$4 sm:$0xff]  }
0x1dc0   : > { %15323 = vmatprep.subr.bf16.mxu0 %v23191_v63  ;;  %15362 = vmatprep.subr.bf16.mxu1 %v23233_v4  ;;  %v23256_v63 = vld [vmem:[%s29597_s5 + $0x1c40] ss:$16 sps:$4 sm:$0xff]   ;;  %v23303_v51 = vld [vmem:[%s29597_s5 + $0x1c6c] ss:$16 sps:$4 sm:$0xff]  }
0x1dc1   : > { %v23259_v4 = vld [vmem:[%s29597_s5 + $0x1c20] ss:$16 sps:$4 sm:$0xff]  }
0x1dc3   : > { %15324 = vmatpush2.bf16.msra.mxu0 %v23189_v24  ;;  %15363 = vmatpush2.bf16.msra.mxu1 %v23231_v61  ;;  %v23298_v24 = vld [vmem:[%s29597_s5 + $0x1c88] ss:$16 sps:$4 sm:$0xff]  }
0x1dc4   : > { %15412 = vmatprep.subr.bf16.mxu0 %v26070_v46  ;;  %15364 = vmatprep.subr.bf16.mxu1 %v23236_v36  ;;  %v23301_v61 = vld [vmem:[%s29597_s5 + $0x1c68] ss:$16 sps:$4 sm:$0xff]   ;;  %v23306_v36 = vld [vmem:[%s29597_s5 + $0x1c4c] ss:$16 sps:$4 sm:$0xff]  }
0x1dc7   : > { %15365 = vmatpush2.bf16.msra.mxu1 %v23234_v44  ;;  %v23264_v44 = vld [vmem:[%s29597_s5 + $0x1c04] ss:$16 sps:$4 sm:$0xff]  }
0x1dc8   : > { %15366 = vmatprep.subr.bf16.mxu1 %v23239_v39  ;;  %v23262_v39 = vld [vmem:[%s29597_s5 + $0x1c00] ss:$16 sps:$4 sm:$0xff]  }
0x1dcb   : > { %15367 = vmatpush2.bf16.msra.mxu1 %v23237_v2  ;;  %v23304_v2 = vld [vmem:[%s29597_s5 + $0x1c48] ss:$16 sps:$4 sm:$0xff]  }
0x1dcc   : > { %15828 = vmatprep.subr.bf16.mxu1 %v23242_v9  ;;  %v23267_v9 = vld [vmem:[%s29597_s5 + $0x1de4] ss:$16 sps:$4 sm:$0xff]  }
0x1e46   : > { %v14792_v6 = vpop.f32.mrf.mxu1  ;;  %v14835_v42 = vpop.f32.mrf.mxu0 }
0x1e47   : > { %v29042_v23 = vadd.f32 %v14792_v6, %v28820_v37  ;;  %v29045_v50 = vadd.f32 %v14835_v42, %v28823_v53  ;;  %v23309_v6 = vld [vmem:[%s29597_s5 + $0x1c2c] ss:$16 sps:$4 sm:$0xff]   ;;  %v23265_v42 = vld [vmem:[%s29597_s5 + $0x1de0] ss:$16 sps:$4 sm:$0xff]  }
0x1e48   : > { %v14794_v60 = vpop.f32.mrf.mxu1  ;;  %v14837_v25 = vpop.f32.mrf.mxu0 }
0x1e49   : > { %v29048_v31 = vadd.f32 %v14794_v60, %v28826_v18  ;;  %v29051_v14 = vadd.f32 %v14837_v25, %v28829_v10  ;;  %v23240_v10 = vld [vmem:[%s29597_s5 + $0x1ce0] ss:$16 sps:$4 sm:$0xff]   ;;  %v23307_v60 = vld [vmem:[%s29597_s5 + $0x1c28] ss:$16 sps:$4 sm:$0xff]   ;;  %v23270_v25 = vld [vmem:[%s29597_s5 + $0x1dc4] ss:$16 sps:$4 sm:$0xff]  }
0x1e4a   : > { %v14796_v33 = vpop.f32.mrf.mxu1  ;;  %v14839_v47 = vpop.f32.mrf.mxu0 }
0x1e4b   : > { %v29054_v13 = vadd.f32 %v14796_v33, %v28832_v48  ;;  %v29057_v19 = vadd.f32 %v14839_v47, %v28835_v3  ;;  %v23245_v48 = vld [vmem:[%s29597_s5 + $0x1cc4] ss:$16 sps:$4 sm:$0xff]   ;;  %v23291_v3 = vld [vmem:[%s29597_s5 + $0x1cec] ss:$16 sps:$4 sm:$0xff]   ;;  %v23268_v47 = vld [vmem:[%s29597_s5 + $0x1dc0] ss:$16 sps:$4 sm:$0xff]  }
0x1e4c   : > { %v14798_v37 = vpop.f32.mrf.mxu1  ;;  %v23312_v33 = vld [vmem:[%s29597_s5 + $0x1c0c] ss:$16 sps:$4 sm:$0xff]  }
0x1e4d   : > { %v29060_v53 = vadd.f32 %v14798_v37, %v28838_v16  ;;  %v23243_v16 = vld [vmem:[%s29597_s5 + $0x1cc0] ss:$16 sps:$4 sm:$0xff]   ;;  %v23310_v37 = vld [vmem:[%s29597_s5 + $0x1c08] ss:$16 sps:$4 sm:$0xff]  }
0x1e4e   : > { %v14897_v15 = vpop.f32.mrf.mxu1 }
0x1e50   : > { %v14899_v58 = vpop.f32.mrf.mxu1 }
0x1e52   : > { %v14901_v45 = vpop.f32.mrf.mxu1 }
0x1e53   : > { %v14906_v59 = vpack.c.bf16 %v14901_v45, %v14897_v15  ;;  %v23273_v15 = vld [vmem:[%s29597_s5 + $0x1da4] ss:$16 sps:$4 sm:$0xff]   ;;  %v23271_v45 = vld [vmem:[%s29597_s5 + $0x1da0] ss:$16 sps:$4 sm:$0xff]  }
0x1e54   : > { %v14903_v18 = vpop.f32.mrf.mxu1 }
0x1e55   : > { %v14907_v43 = vpack.c.bf16 %v14903_v18, %v14899_v58  ;;  %v23315_v58 = vld [vmem:[%s29597_s5 + $0x1dec] ss:$16 sps:$4 sm:$0xff]   ;;  %v23313_v18 = vld [vmem:[%s29597_s5 + $0x1de8] ss:$16 sps:$4 sm:$0xff]  }
0x1e57   : > { %15325 = vmatprep.mubr.bf16.mxu0 %v14907_v43  ;;  %15368 = vmatprep.mubr.bf16.mxu1 %v14907_v43  ;;  %v23276_v43 = vld [vmem:[%s29597_s5 + $0x1d84] ss:$16 sps:$4 sm:$0xff]  }
0x1e58   : > { %15326 = vmatmul.mubr.bf16.vlgmr.msra.gmra.mxu0 %v14906_v59  ;;  %15369 = vmatmul.mubr.bf16.vlgmr.msra.gmra.mxu1 %v14906_v59  ;;  %v23274_v59 = vld [vmem:[%s29597_s5 + $0x1d80] ss:$16 sps:$4 sm:$0xff]  }
0x1e59   : > { %15413 = vmatpush1.bf16.msra.mxu0 %v26068_v38  ;;  %15829 = vmatpush1.bf16.msra.mxu1 %v23240_v10  ;;  %v23318_v10 = vld [vmem:[%s29597_s5 + $0x1dcc] ss:$16 sps:$4 sm:$0xff]  }
0x1e5a   : > { %15830 = vmatprep.subr.bf16.mxu1 %v23245_v48  ;;  %15430 = vmatprep.mubr.bf16.mxu0 %v23458_v62  ;;  %v23316_v48 = vld [vmem:[%s29597_s5 + $0x1dc8] ss:$16 sps:$4 sm:$0xff]  }
0x1e5b   : > { %15871 = vmatprep.subr.bf16.mxu0 %v23291_v3  ;;  %v23279_v3 = vld [vmem:[%s29597_s5 + $0x1d64] ss:$16 sps:$4 sm:$0xff]  }
0x1e5d   : > { %15831 = vmatpush1.bf16.msra.mxu1 %v23243_v16  ;;  %v23321_v16 = vld [vmem:[%s29597_s5 + $0x1dac] ss:$16 sps:$4 sm:$0xff]  }
0x1e5e   : > { %15832 = vmatprep.subr.bf16.mxu1 %v23248_v49  ;;  %v23277_v49 = vld [vmem:[%s29597_s5 + $0x1d60] ss:$16 sps:$4 sm:$0xff]  }
0x1e60   : > { %19559 = vmatmul.mubr.msk.bf16.vlgmr.msra.gmra.mxu0 %vm7921_vm14, %v23249_v57  ;;  %v23319_v57 = vld [vmem:[%s29597_s5 + $0x1da8] ss:$16 sps:$4 sm:$0xff]  }
0x1e61   : > { %15833 = vmatpush1.bf16.msra.mxu1 %v23246_v27  ;;  %15872 = vmatpush1.bf16.msra.mxu0 %v23289_v26  ;;  %v23282_v27 = vld [vmem:[%s29597_s5 + $0x1d44] ss:$16 sps:$4 sm:$0xff]   ;;  %v23324_v26 = vld [vmem:[%s29597_s5 + $0x1d8c] ss:$16 sps:$4 sm:$0xff]  }
0x1e62   : > { %15834 = vmatprep.subr.bf16.mxu1 %v23252_v12  ;;  %15873 = vmatprep.subr.bf16.mxu0 %v23294_v21  ;;  %v23280_v12 = vld [vmem:[%s29597_s5 + $0x1d40] ss:$16 sps:$4 sm:$0xff]   ;;  %v23322_v21 = vld [vmem:[%s29597_s5 + $0x1d88] ss:$16 sps:$4 sm:$0xff]  }
0x1e65   : > { %15835 = vmatpush1.bf16.msra.mxu1 %v23250_v40  ;;  %15874 = vmatpush1.bf16.msra.mxu0 %v23292_v54  ;;  %v23285_v40 = vld [vmem:[%s29597_s5 + $0x1d24] ss:$16 sps:$4 sm:$0xff]   ;;  %v23283_v54 = vld [vmem:[%s29597_s5 + $0x1d20] ss:$16 sps:$4 sm:$0xff]  }
0x1e66   : > { %15836 = vmatprep.subr.bf16.mxu1 %v23255_v17  ;;  %15875 = vmatprep.subr.bf16.mxu0 %v23297_v30  ;;  %v23288_v17 = vld [vmem:[%s29597_s5 + $0x1d04] ss:$16 sps:$4 sm:$0xff]   ;;  %v23286_v30 = vld [vmem:[%s29597_s5 + $0x1d00] ss:$16 sps:$4 sm:$0xff]  }
0x1e69   : > { %15837 = vmatpush1.bf16.msra.mxu1 %v23253_v32  ;;  %15876 = vmatpush1.bf16.msra.mxu0 %v23295_v56  ;;  %v23327_v32 = vld [vmem:[%s29597_s5 + $0x1d6c] ss:$16 sps:$4 sm:$0xff]   ;;  %v23325_v56 = vld [vmem:[%s29597_s5 + $0x1d68] ss:$16 sps:$4 sm:$0xff]  }
0x1e6a   : > { %15838 = vmatprep.subr.bf16.mxu1 %v23258_v8  ;;  %15877 = vmatprep.subr.bf16.mxu0 %v23300_v28  ;;  %v23330_v8 = vld [vmem:[%s29597_s5 + $0x1d4c] ss:$16 sps:$4 sm:$0xff]   ;;  %v23328_v28 = vld [vmem:[%s29597_s5 + $0x1d48] ss:$16 sps:$4 sm:$0xff]  }
0x1e6d   : > { %15839 = vmatpush1.bf16.msra.mxu1 %v23256_v63  ;;  %15878 = vmatpush1.bf16.msra.mxu0 %v23298_v24  ;;  %v23331_v63 = vld [vmem:[%s29597_s5 + $0x1d28] ss:$16 sps:$4 sm:$0xff]   ;;  %v23336_v24 = vld [vmem:[%s29597_s5 + $0x1d0c] ss:$16 sps:$4 sm:$0xff]  }
0x1e6e   : > { %15840 = vmatprep.subr.bf16.mxu1 %v23261_v52  ;;  %15879 = vmatprep.subr.bf16.mxu0 %v23303_v51  ;;  %v23334_v52 = vld [vmem:[%s29597_s5 + $0x1d08] ss:$16 sps:$4 sm:$0xff]   ;;  %v23340_v51 = vld [vmem:[%s29597_s5 + $0x1ee4] ss:$16 sps:$4 sm:$0xff]  }
0x1e71   : > { %15841 = vmatpush1.bf16.msra.mxu1 %v23259_v4  ;;  %15880 = vmatpush1.bf16.msra.mxu0 %v23301_v61  ;;  %v29261_v4 = vpop.f32.mrf.mxu0 }
0x1e72   : > { %15842 = vmatprep.subr.bf16.mxu1 %v23264_v44  ;;  %15881 = vmatprep.subr.bf16.mxu0 %v23306_v36 }
0x1e75   : > { %15843 = vmatpush1.bf16.msra.mxu1 %v23262_v39  ;;  %15882 = vmatpush1.bf16.msra.mxu0 %v23304_v2 }
0x1e76   : > { %15844 = vmatprep.subr.bf16.mxu1 %v23267_v9  ;;  %15883 = vmatprep.subr.bf16.mxu0 %v23309_v6 }
0x1e79   : > { %15845 = vmatpush2.bf16.msra.mxu1 %v23265_v42  ;;  %15884 = vmatpush1.bf16.msra.mxu0 %v23307_v60 }
0x1e7a   : > { %15846 = vmatprep.subr.bf16.mxu1 %v23270_v25  ;;  %15885 = vmatprep.subr.bf16.mxu0 %v23312_v33 }
0x1e7d   : > { %15847 = vmatpush2.bf16.msra.mxu1 %v23268_v47  ;;  %15886 = vmatpush1.bf16.msra.mxu0 %v23310_v37 }
0x1e7e   : > { %15848 = vmatprep.subr.bf16.mxu1 %v23273_v15  ;;  %15887 = vmatprep.subr.bf16.mxu0 %v23315_v58 }
0x1e81   : > { %15849 = vmatpush2.bf16.msra.mxu1 %v23271_v45  ;;  %15888 = vmatpush2.bf16.msra.mxu0 %v23313_v18 }
0x1e82   : > { %15850 = vmatprep.subr.bf16.mxu1 %v23276_v43  ;;  %15889 = vmatprep.subr.bf16.mxu0 %v23318_v10  ;;  %v23352_v43 = vld [vmem:[%s29597_s5 + $0x1ea4] ss:$16 sps:$4 sm:$0xff]   ;;  %v23337_v10 = vld [vmem:[%s29600_s8 + $0x78] sm:$0x1f]  }
0x1e85   : > { %15851 = vmatpush2.bf16.msra.mxu1 %v23274_v59  ;;  %15890 = vmatpush2.bf16.msra.mxu0 %v23316_v48  ;;  %v23350_v59 = vld [vmem:[%s29597_s5 + $0x1ea0] ss:$16 sps:$4 sm:$0xff]   ;;  %v23358_v48 = vld [vmem:[%s29597_s5 + $0x1e84] ss:$16 sps:$4 sm:$0xff]  }
0x1e86   : > { %15852 = vmatprep.subr.bf16.mxu1 %v23279_v3  ;;  %15891 = vmatprep.subr.bf16.mxu0 %v23321_v16  ;;  %v23347_v3 = vld [vmem:[%s29597_s5 + $0x1ec8] ss:$16 sps:$4 sm:$0xff]   ;;  %v23355_v16 = vld [vmem:[%s29597_s5 + $0x1eac] ss:$16 sps:$4 sm:$0xff]  }
0x1e89   : > { %15853 = vmatpush2.bf16.msra.mxu1 %v23277_v49  ;;  %15892 = vmatpush2.bf16.msra.mxu0 %v23319_v57  ;;  %v23356_v49 = vld [vmem:[%s29597_s5 + $0x1e80] ss:$16 sps:$4 sm:$0xff]   ;;  %v23364_v57 = vld [vmem:[%s29597_s5 + $0x1e64] ss:$16 sps:$4 sm:$0xff]  }
0x1e8a   : > { %15854 = vmatprep.subr.bf16.mxu1 %v23282_v27  ;;  %15893 = vmatprep.subr.bf16.mxu0 %v23324_v26  ;;  %v23353_v27 = vld [vmem:[%s29597_s5 + $0x1ea8] ss:$16 sps:$4 sm:$0xff]   ;;  %v23361_v26 = vld [vmem:[%s29597_s5 + $0x1e8c] ss:$16 sps:$4 sm:$0xff]  }
0x1e8d   : > { %15855 = vmatpush2.bf16.msra.mxu1 %v23280_v12  ;;  %15894 = vmatpush2.bf16.msra.mxu0 %v23322_v21  ;;  %v23362_v12 = vld [vmem:[%s29597_s5 + $0x1e60] ss:$16 sps:$4 sm:$0xff]   ;;  %v23370_v21 = vld [vmem:[%s29597_s5 + $0x1e44] ss:$16 sps:$4 sm:$0xff]  }
0x1e8e   : > { %15856 = vmatprep.subr.bf16.mxu1 %v23285_v40  ;;  %15895 = vmatprep.subr.bf16.mxu0 %v23327_v32  ;;  %v23359_v40 = vld [vmem:[%s29597_s5 + $0x1e88] ss:$16 sps:$4 sm:$0xff]  }
0x1e8f   : > { %v23365_v32 = vld [vmem:[%s29597_s5 + $0x1e68] ss:$16 sps:$4 sm:$0xff]  }
0x1e91   : > { %15857 = vmatpush2.bf16.msra.mxu1 %v23283_v54  ;;  %15896 = vmatpush2.bf16.msra.mxu0 %v23325_v56  ;;  %v23367_v54 = vld [vmem:[%s29597_s5 + $0x1e6c] ss:$16 sps:$4 sm:$0xff]  }
0x1e92   : > { %15858 = vmatprep.subr.bf16.mxu1 %v23288_v17  ;;  %15897 = vmatprep.subr.bf16.mxu0 %v23330_v8  ;;  %v23368_v17 = vld [vmem:[%s29597_s5 + $0x1e40] ss:$16 sps:$4 sm:$0xff]   ;;  %v23373_v56 = vld [vmem:[%s29597_s5 + $0x1e4c] ss:$16 sps:$4 sm:$0xff]  }
0x1e93   : > { %v23374_v8 = vld [vmem:[%s29597_s5 + $0x1e20] ss:$16 sps:$4 sm:$0xff]  }
0x1e95   : > { %15859 = vmatpush2.bf16.msra.mxu1 %v23286_v30  ;;  %15898 = vmatpush2.bf16.msra.mxu0 %v23328_v28  ;;  %v23376_v30 = vld [vmem:[%s29597_s5 + $0x1e24] ss:$16 sps:$4 sm:$0xff]  }
0x1e96   : > { %15947 = vmatprep.subr.bf16.mxu1 %v26070_v46  ;;  %v23333_v46 = vld [vmem:[%s29597_s5 + $0x1d2c] ss:$16 sps:$4 sm:$0xff]   ;;  %v23382_v28 = vld [vmem:[%s29597_s5 + $0x1e04] ss:$16 sps:$4 sm:$0xff]  }
0x1e97   : > { %15899 = vmatprep.subr.bf16.mxu0 %v23333_v46  ;;  %v23371_v46 = vld [vmem:[%s29597_s5 + $0x1e48] ss:$16 sps:$4 sm:$0xff]  }
0x1e99   : > { %15900 = vmatpush2.bf16.msra.mxu0 %v23331_v63  ;;  %v23379_v63 = vld [vmem:[%s29597_s5 + $0x1e2c] ss:$16 sps:$4 sm:$0xff]  }
0x1e9a   : > { %15901 = vmatprep.subr.bf16.mxu0 %v23336_v24  ;;  %v23380_v24 = vld [vmem:[%s29597_s5 + $0x1e00] ss:$16 sps:$4 sm:$0xff]  }
0x1e9d   : > { %15902 = vmatpush2.bf16.msra.mxu0 %v23334_v52  ;;  %v23388_v52 = vld [vmem:[%s29597_s5 + $0x1fe4] ss:$16 sps:$4 sm:$0xff]  }
0x1e9e   : > { %16363 = vmatprep.subr.bf16.mxu0 %v23340_v51  ;;  %v23377_v51 = vld [vmem:[%s29597_s5 + $0x1e28] ss:$16 sps:$4 sm:$0xff]  }
0x1f18   : > { %v15327_v61 = vpop.f32.mrf.mxu0  ;;  %v15370_v44 = vpop.f32.mrf.mxu1 }
0x1f19   : > { %v29264_v36 = vadd.f32 %v15327_v61, %v29042_v23  ;;  %v29267_v39 = vadd.f32 %v15370_v44, %v29045_v50  ;;  %v23385_v61 = vld [vmem:[%s29597_s5 + $0x1e0c] ss:$16 sps:$4 sm:$0xff]   ;;  %v23386_v44 = vld [vmem:[%s29597_s5 + $0x1fe0] ss:$16 sps:$4 sm:$0xff]  }
0x1f1a   : > { %v15329_v2 = vpop.f32.mrf.mxu0  ;;  %v15372_v9 = vpop.f32.mrf.mxu1 }
0x1f1b   : > { %v29270_v6 = vadd.f32 %v15329_v2, %v29048_v31  ;;  %v29273_v42 = vadd.f32 %v15372_v9, %v29051_v14  ;;  %v23338_v14 = vld [vmem:[%s29597_s5 + $0x1ee0] ss:$16 sps:$4 sm:$0xff]   ;;  %v23394_v2 = vld [vmem:[%s29597_s5 + $0x1fc4] ss:$16 sps:$4 sm:$0xff]   ;;  %v23383_v9 = vld [vmem:[%s29597_s5 + $0x1e08] ss:$16 sps:$4 sm:$0xff]  }
0x1f1c   : > { %v15331_v60 = vpop.f32.mrf.mxu0  ;;  %v15374_v25 = vpop.f32.mrf.mxu1 }
0x1f1d   : > { %v29276_v33 = vadd.f32 %v15331_v60, %v29054_v13  ;;  %v29279_v47 = vadd.f32 %v15374_v25, %v29057_v19  ;;  %v23343_v13 = vld [vmem:[%s29597_s5 + $0x1eec] ss:$16 sps:$4 sm:$0xff]   ;;  %v23346_v19 = vld [vmem:[%s29597_s5 + $0x1ec4] ss:$16 sps:$4 sm:$0xff]   ;;  %v23392_v25 = vld [vmem:[%s29597_s5 + $0x1fc0] ss:$16 sps:$4 sm:$0xff]  }
0x1f1e   : > { %v15333_v23 = vpop.f32.mrf.mxu0  ;;  %v23391_v60 = vld [vmem:[%s29597_s5 + $0x1fec] ss:$16 sps:$4 sm:$0xff]  }
0x1f1f   : > { %v29282_v50 = vadd.f32 %v15333_v23, %v29060_v53  ;;  %v23344_v53 = vld [vmem:[%s29597_s5 + $0x1ec0] ss:$16 sps:$4 sm:$0xff]   ;;  %v23400_v23 = vld [vmem:[%s29597_s5 + $0x1fa4] ss:$16 sps:$4 sm:$0xff]  }
0x1f20   : > { %v15432_v37 = vpop.f32.mrf.mxu0 }
0x1f22   : > { %v15434_v15 = vpop.f32.mrf.mxu0 }
0x1f24   : > { %v15436_v58 = vpop.f32.mrf.mxu0 }
0x1f25   : > { %v15441_v18 = vpack.c.bf16 %v15436_v58, %v15432_v37  ;;  %v23389_v37 = vld [vmem:[%s29597_s5 + $0x1fe8] ss:$16 sps:$4 sm:$0xff]   ;;  %v23398_v58 = vld [vmem:[%s29597_s5 + $0x1fa0] ss:$16 sps:$4 sm:$0xff]  }
0x1f26   : > { %v15438_v31 = vpop.f32.mrf.mxu0 }
0x1f27   : > { %v15442_v45 = vpack.c.bf16 %v15438_v31, %v15434_v15  ;;  %v23397_v15 = vld [vmem:[%s29597_s5 + $0x1fcc] ss:$16 sps:$4 sm:$0xff]   ;;  %v23406_v31 = vld [vmem:[%s29597_s5 + $0x1f84] ss:$16 sps:$4 sm:$0xff]  }
0x1f29   : > { %15860 = vmatprep.mubr.bf16.mxu1 %v15442_v45  ;;  %15903 = vmatprep.mubr.bf16.mxu0 %v15442_v45  ;;  %v23395_v45 = vld [vmem:[%s29597_s5 + $0x1fc8] ss:$16 sps:$4 sm:$0xff]  }
0x1f2a   : > { %15861 = vmatmul.mubr.bf16.vlgmr.msra.gmra.mxu1 %v15441_v18  ;;  %15904 = vmatmul.mubr.bf16.vlgmr.msra.gmra.mxu0 %v15441_v18  ;;  %v23403_v18 = vld [vmem:[%s29597_s5 + $0x1fac] ss:$16 sps:$4 sm:$0xff]  }
0x1f2b   : > { %15948 = vmatpush1.bf16.msra.mxu1 %v26068_v38  ;;  %15965 = vmatprep.mubr.bf16.mxu1 %v23458_v62  ;;  %v23341_v38 = vld [vmem:[%s29597_s5 + $0x1ee8] ss:$16 sps:$4 sm:$0xff]   ;;  %v23349_v62 = vld [vmem:[%s29597_s5 + $0x1ecc] ss:$16 sps:$4 sm:$0xff]  }
0x1f2c   : > { %16406 = vmatprep.subr.bf16.mxu1 %v23343_v13  ;;  %16364 = vmatpush1.bf16.msra.mxu0 %v23338_v14  ;;  %v23404_v14 = vld [vmem:[%s29597_s5 + $0x1f80] ss:$16 sps:$4 sm:$0xff]   ;;  %v23401_v13 = vld [vmem:[%s29597_s5 + $0x1fa8] ss:$16 sps:$4 sm:$0xff]  }
0x1f2d   : > { %16365 = vmatprep.subr.bf16.mxu0 %v23346_v19  ;;  %v23409_v19 = vld [vmem:[%s29597_s5 + $0x1f8c] ss:$16 sps:$4 sm:$0xff]  }
0x1f30   : > { %16366 = vmatpush1.bf16.msra.mxu0 %v23344_v53  ;;  %v23407_v53 = vld [vmem:[%s29597_s5 + $0x1f88] ss:$16 sps:$4 sm:$0xff]  }
0x1f31   : > { %16367 = vmatprep.subr.bf16.mxu0 %v23352_v43  ;;  %v23412_v43 = vld [vmem:[%s29597_s5 + $0x1f64] ss:$16 sps:$4 sm:$0xff]  }
0x1f32   : > { %19691 = vmatmul.mubr.msk.bf16.vlgmr.msra.gmra.mxu1 %vm7921_vm14, %v23337_v10  ;;  %v23415_v10 = vld [vmem:[%s29597_s5 + $0x1f6c] ss:$16 sps:$4 sm:$0xff]  }
0x1f33   : > { %16407 = vmatpush1.bf16.msra.mxu1 %v23341_v38  ;;  %v23410_v38 = vld [vmem:[%s29597_s5 + $0x1f60] ss:$16 sps:$4 sm:$0xff]  }
0x1f34   : > { %16408 = vmatprep.subr.bf16.mxu1 %v23349_v62  ;;  %16368 = vmatpush1.bf16.msra.mxu0 %v23350_v59  ;;  %v23413_v62 = vld [vmem:[%s29597_s5 + $0x1f68] ss:$16 sps:$4 sm:$0xff]   ;;  %v23418_v59 = vld [vmem:[%s29597_s5 + $0x1f44] ss:$16 sps:$4 sm:$0xff]  }
0x1f35   : > { %16369 = vmatprep.subr.bf16.mxu0 %v23358_v48  ;;  %v23421_v48 = vld [vmem:[%s29597_s5 + $0x1f4c] ss:$16 sps:$4 sm:$0xff]  }
0x1f37   : > { %16409 = vmatpush1.bf16.msra.mxu1 %v23347_v3  ;;  %v23416_v3 = vld [vmem:[%s29597_s5 + $0x1f40] ss:$16 sps:$4 sm:$0xff]  }
0x1f38   : > { %16410 = vmatprep.subr.bf16.mxu1 %v23355_v16  ;;  %16370 = vmatpush1.bf16.msra.mxu0 %v23356_v49  ;;  %v23419_v16 = vld [vmem:[%s29597_s5 + $0x1f48] ss:$16 sps:$4 sm:$0xff]   ;;  %v23424_v49 = vld [vmem:[%s29597_s5 + $0x1f24] ss:$16 sps:$4 sm:$0xff]  }
0x1f39   : > { %16371 = vmatprep.subr.bf16.mxu0 %v23364_v57  ;;  %v23427_v57 = vld [vmem:[%s29597_s5 + $0x1f2c] ss:$16 sps:$4 sm:$0xff]  }
0x1f3b   : > { %16411 = vmatpush1.bf16.msra.mxu1 %v23353_v27  ;;  %v23422_v27 = vld [vmem:[%s29597_s5 + $0x1f20] ss:$16 sps:$4 sm:$0xff]  }
0x1f3c   : > { %16412 = vmatprep.subr.bf16.mxu1 %v23361_v26  ;;  %16372 = vmatpush1.bf16.msra.mxu0 %v23362_v12  ;;  %v23425_v26 = vld [vmem:[%s29597_s5 + $0x1f28] ss:$16 sps:$4 sm:$0xff]   ;;  %v23430_v12 = vld [vmem:[%s29597_s5 + $0x1f04] ss:$16 sps:$4 sm:$0xff]  }
0x1f3d   : > { %16373 = vmatprep.subr.bf16.mxu0 %v23370_v21  ;;  %v23433_v21 = vld [vmem:[%s29597_s5 + $0x1f0c] ss:$16 sps:$4 sm:$0xff]  }
0x1f3f   : > { %16413 = vmatpush1.bf16.msra.mxu1 %v23359_v40  ;;  %v23428_v40 = vld [vmem:[%s29597_s5 + $0x1f00] ss:$16 sps:$4 sm:$0xff]  }
0x1f40   : > { %16414 = vmatprep.subr.bf16.mxu1 %v23367_v54  ;;  %16374 = vmatpush1.bf16.msra.mxu0 %v23368_v17  ;;  %v23431_v54 = vld [vmem:[%s29597_s5 + $0x1f08] ss:$16 sps:$4 sm:$0xff]   ;;  %v15376_v17 = vpop.f32.mrf.mxu1 }
0x1f41   : > { %16375 = vmatprep.subr.bf16.mxu0 %v23376_v30 }
0x1f43   : > { %16415 = vmatpush1.bf16.msra.mxu1 %v23365_v32 }
0x1f44   : > { %16416 = vmatprep.subr.bf16.mxu1 %v23373_v56  ;;  %16376 = vmatpush1.bf16.msra.mxu0 %v23374_v8 }
0x1f45   : > { %16377 = vmatprep.subr.bf16.mxu0 %v23382_v28 }
0x1f47   : > { %16417 = vmatpush1.bf16.msra.mxu1 %v23371_v46 }
0x1f48   : > { %16418 = vmatprep.subr.bf16.mxu1 %v23379_v63  ;;  %16378 = vmatpush1.bf16.msra.mxu0 %v23380_v24 }
0x1f49   : > { %16379 = vmatprep.subr.bf16.mxu0 %v23388_v52 }
0x1f4b   : > { %16419 = vmatpush1.bf16.msra.mxu1 %v23377_v51 }
0x1f4c   : > { %16420 = vmatprep.subr.bf16.mxu1 %v23385_v61  ;;  %16380 = vmatpush2.bf16.msra.mxu0 %v23386_v44 }
0x1f4d   : > { %16381 = vmatprep.subr.bf16.mxu0 %v23394_v2 }
0x1f4f   : > { %16421 = vmatpush1.bf16.msra.mxu1 %v23383_v9 }
0x1f50   : > { %16422 = vmatprep.subr.bf16.mxu1 %v23391_v60  ;;  %16382 = vmatpush2.bf16.msra.mxu0 %v23392_v25 }
0x1f51   : > { %16383 = vmatprep.subr.bf16.mxu0 %v23400_v23 }
0x1f53   : > { %16423 = vmatpush2.bf16.msra.mxu1 %v23389_v37 }
0x1f54   : > { %16424 = vmatprep.subr.bf16.mxu1 %v23397_v15  ;;  %16384 = vmatpush2.bf16.msra.mxu0 %v23398_v58 }
0x1f55   : > { %16385 = vmatprep.subr.bf16.mxu0 %v23406_v31 }
0x1f57   : > { %16425 = vmatpush2.bf16.msra.mxu1 %v23395_v45 }
0x1f58   : > { %16426 = vmatprep.subr.bf16.mxu1 %v23403_v18  ;;  %16386 = vmatpush2.bf16.msra.mxu0 %v23404_v14 }
0x1f59   : > { %16387 = vmatprep.subr.bf16.mxu0 %v23412_v43 }
0x1f5b   : > { %16427 = vmatpush2.bf16.msra.mxu1 %v23401_v13 }
0x1f5c   : > { %16428 = vmatprep.subr.bf16.mxu1 %v23409_v19  ;;  %16388 = vmatpush2.bf16.msra.mxu0 %v23410_v38 }
0x1f5d   : > { %16389 = vmatprep.subr.bf16.mxu0 %v23418_v59 }
0x1f5f   : > { %16429 = vmatpush2.bf16.msra.mxu1 %v23407_v53 }
0x1f60   : > { %16430 = vmatprep.subr.bf16.mxu1 %v23415_v10  ;;  %16390 = vmatpush2.bf16.msra.mxu0 %v23416_v3 }
0x1f61   : > { %16391 = vmatprep.subr.bf16.mxu0 %v23424_v49 }
0x1f63   : > { %16431 = vmatpush2.bf16.msra.mxu1 %v23413_v62 }
0x1f64   : > { %16432 = vmatprep.subr.bf16.mxu1 %v23421_v48  ;;  %16392 = vmatpush2.bf16.msra.mxu0 %v23422_v27 }
0x1f65   : > { %16393 = vmatprep.subr.bf16.mxu0 %v23430_v12 }
0x1f67   : > { %16433 = vmatpush2.bf16.msra.mxu1 %v23419_v16 }
0x1f68   : > { %16434 = vmatprep.subr.bf16.mxu1 %v23427_v57  ;;  %16394 = vmatpush2.bf16.msra.mxu0 %v23428_v40 }
0x1f6b   : > { %16435 = vmatpush2.bf16.msra.mxu1 %v23425_v26 }
0x1f6c   : > { %16436 = vmatprep.subr.bf16.mxu1 %v23433_v21 }
0x1f6f   : > { %16437 = vmatpush2.bf16.msra.mxu1 %v23431_v54 }
0x1fea   : > { %v15862_v30 = vpop.f32.mrf.mxu1 }
0x1feb   : > { %v15914_v32 = vadd.f32 %v15862_v30, %v29264_v36  ;;  %v8965_v36 = vadd.f32 %v26819_v29, %v26604_v20 }
0x1fec   : > { %v15864_v56 = vpop.f32.mrf.mxu1 }
0x1fed   : > { %v15915_v8 = vadd.f32 %v15864_v56, %v29270_v6  ;;  %v9501_v6 = vadd.f32 %v27041_v34, %v8965_v36 }
0x1fee   : > { %v15866_v28 = vpop.f32.mrf.mxu1 }
0x1fef   : > { %v15918_v46 = vadd.f32 %v15866_v28, %v29276_v33  ;;  %v10036_v33 = vadd.f32 %v27263_v7, %v9501_v6 }
0x1ff0   : > { %v15868_v63 = vpop.f32.mrf.mxu1 }
0x1ff1   : > { %v15919_v24 = vadd.f32 %v15868_v63, %v29282_v50  ;;  %v10571_v60 = vadd.f32 %v27485_v11, %v10036_v33  ;;  %v15905_v50 = vpop.f32.mrf.mxu0 }
0x1ff2   : > { %v15967_v52 = vpop.f32.mrf.mxu1  ;;  %v15916_v7 = vadd.f32 %v15905_v50, %v29267_v39 }
0x1ff3   : > { %v11106_v25 = vadd.f32 %v27707_v0, %v10571_v60  ;;  %v15907_v37 = vpop.f32.mrf.mxu0 }
0x1ff4   : > { %v15969_v51 = vpop.f32.mrf.mxu1  ;;  %v15917_v13 = vadd.f32 %v15907_v37, %v29273_v42 }
0x1ff5   : > { %v11641_v23 = vadd.f32 %v27929_v1, %v11106_v25  ;;  %v15909_v31 = vpop.f32.mrf.mxu0 }
0x1ff6   : > { %v15971_v61 = vpop.f32.mrf.mxu1 }
0x1ff7   : > { %v15976_v9 = vpack.c.bf16 %v15971_v61, %v15967_v52  ;;  %v12176_v15 = vadd.f32 %v28151_v41, %v11641_v23  ;;  %v15911_v29 = vpop.f32.mrf.mxu0 }
0x1ff8   : > { %v15973_v44 = vpop.f32.mrf.mxu1 }
0x1ff9   : > { %v15977_v2 = vpack.c.bf16 %v15973_v44, %v15969_v51  ;;  %v12711_v58 = vadd.f32 %v28373_v22, %v12176_v15 }
0x1ffb   : > { %16395 = vmatprep.mubr.bf16.mxu0 %v15977_v2  ;;  %16438 = vmatprep.mubr.bf16.mxu1 %v15977_v2  ;;  %v13246_v45 = vadd.f32 %v28595_v5, %v12711_v58  ;;  %v15920_v5 = vadd.f32 %v15909_v31, %v29279_v47 }
0x1ffc   : > { %16396 = vmatmul.mubr.bf16.vlgmr.msra.gmra.mxu0 %v15976_v9  ;;  %16439 = vmatmul.mubr.bf16.vlgmr.msra.gmra.mxu1 %v15976_v9 }
0x1ffd   : > { %v13781_v20 = vadd.f32 %v28817_v35, %v13246_v45 }
0x1fff   : > { %v14316_v34 = vadd.f32 %v29039_v55, %v13781_v20 }
0x2001   : > { %v14851_v0 = vadd.f32 %v29261_v4, %v14316_v34 }
0x2003   : > { %v15386_v35 = vadd.f32 %v15376_v17, %v14851_v0 }
0x2005   : > { %v15921_v10 = vadd.f32 %v15911_v29, %v15386_v35 }
0x20bc   : > { %v16397_v11 = vpop.f32.mrf.mxu0  ;;  %v16440_v18 = vpop.f32.mrf.mxu1 }
0x20bd   : > { %v29497_v1 = vadd.f32 %v16397_v11, %v15914_v32  ;;  %v29499_v14 = vadd.f32 %v16440_v18, %v15916_v7 }
0x20be   : > { %v16399_v41 = vpop.f32.mrf.mxu0  ;;  %v16442_v22 = vpop.f32.mrf.mxu1 }
0x20bf   : > { %v29503_v53 = vadd.f32 %v16399_v41, %v15915_v8  ;;  %v29505_v39 = vadd.f32 %v16442_v22, %v15917_v13  ;;  %v16495_v38 = vmul.f32 %v29497_v1, %v29497_v1  ;;  %v16497_v42 = vmul.f32 %v29499_v14, %v29499_v14 }
0x20c0   : > { %v16401_v19 = vpop.f32.mrf.mxu0  ;;  %v16444_v55 = vpop.f32.mrf.mxu1 }
0x20c1   : > { %v29507_v43 = vadd.f32 %v16401_v19, %v15918_v46  ;;  %v29509_v4 = vadd.f32 %v16444_v55, %v15920_v5  ;;  %v16496_v12 = vmul.f32 %v29503_v53, %v29503_v53  ;;  %v16498_v21 = vmul.f32 %v29505_v39, %v29505_v39 }
0x20c2   : > { %v16403_v47 = vpop.f32.mrf.mxu0  ;;  %v16446_v62 = vpop.f32.mrf.mxu1 }
0x20c3   : > { %v16458_v59 = vsel %vm16457_vm15, %v29507_v43, 0.0  ;;  %v16499_v48 = vmul.f32 %v29507_v43, %v29507_v43  ;;  %v16474_v3 = vsel %vm16457_vm15, %v29509_v4, 0.0  ;;  %v16501_v16 = vmul.f32 %v29509_v4, %v29509_v4 }
0x20c4   : > { %v16459_v49 = vadd.f32 %v16458_v59, %v29497_v1  ;;  %v16475_v57 = vadd.f32 %v16474_v3, %v29499_v14  ;;  %v29525_v27 = vadd.f32 %v16403_v47, %v15919_v24  ;;  %v29527_v26 = vadd.f32 %v16446_v62, %v15921_v10 }
0x20c5   : > { %v16503_v40 = vsel %vm16457_vm15, %v16499_v48, 0.0  ;;  %v16519_v54 = vsel %vm16457_vm15, %v16501_v16, 0.0 }
0x20c6   : > { %v16460_v17 = vrot.slane %v16459_v49, 4  ;;  %v16504_v30 = vadd.f32 %v16503_v40, %v16495_v38  ;;  %v16476_v32 = vrot.slane %v16475_v57, 4  ;;  %v16520_v56 = vadd.f32 %v16519_v54, %v16497_v42 }
0x20c7   : > { %v16466_v8 = vsel %vm16457_vm15, %v29525_v27, 0.0  ;;  %v16500_v28 = vmul.f32 %v29525_v27, %v29525_v27  ;;  %v16482_v46 = vsel %vm16457_vm15, %v29527_v26, 0.0  ;;  %v16502_v63 = vmul.f32 %v29527_v26, %v29527_v26 }
0x20c8   : > { %v16461_v24 = vadd.f32 %v16460_v17, %v16459_v49  ;;  %v16505_v52 = vrot.slane %v16504_v30, 4  ;;  %v16477_v51 = vadd.f32 %v16476_v32, %v16475_v57  ;;  %v16521_v61 = vrot.slane %v16520_v56, 4 }
0x20c9   : > { %v16467_v44 = vadd.f32 %v16466_v8, %v29503_v53  ;;  %v16511_v2 = vsel %vm16457_vm15, %v16500_v28, 0.0  ;;  %v16483_v9 = vadd.f32 %v16482_v46, %v29505_v39  ;;  %v16527_v36 = vsel %vm16457_vm15, %v16502_v63, 0.0 }
0x20ca   : > { %v16462_v6 = vrot.slane %v16461_v24, 2  ;;  %v16506_v33 = vadd.f32 %v16505_v52, %v16504_v30  ;;  %v16478_v60 = vrot.slane %v16477_v51, 2  ;;  %v16522_v50 = vadd.f32 %v16521_v61, %v16520_v56 }
0x20cb   : > { %v16468_v25 = vrot.slane %v16467_v44, 4  ;;  %v16512_v23 = vadd.f32 %v16511_v2, %v16496_v12  ;;  %v16484_v37 = vrot.slane %v16483_v9, 4  ;;  %v16528_v15 = vadd.f32 %v16527_v36, %v16498_v21 }
0x20cc   : > { %v16463_v58 = vadd.f32 %v16462_v6, %v16461_v24  ;;  %v16507_v31 = vrot.slane %v16506_v33, 2  ;;  %v16479_v45 = vadd.f32 %v16478_v60, %v16477_v51  ;;  %v16523_v20 = vrot.slane %v16522_v50, 2 }
0x20cd   : > { %v16469_v29 = vadd.f32 %v16468_v25, %v16467_v44  ;;  %v16513_v34 = vrot.slane %v16512_v23, 4  ;;  %v16485_v7 = vadd.f32 %v16484_v37, %v16483_v9  ;;  %v16529_v11 = vrot.slane %v16528_v15, 4 }
0x20ce   : > { %v16464_v18 = vrot.slane %v16463_v58, 1  ;;  %v16508_v0 = vadd.f32 %v16507_v31, %v16506_v33  ;;  %v16480_v41 = vrot.slane %v16479_v45, 1  ;;  %v16524_v22 = vadd.f32 %v16523_v20, %v16522_v50 }
0x20cf   : > { %v16470_v13 = vrot.slane %v16469_v29, 2  ;;  %v16514_v5 = vadd.f32 %v16513_v34, %v16512_v23  ;;  %v16486_v35 = vrot.slane %v16485_v7, 2  ;;  %v16530_v19 = vadd.f32 %v16529_v11, %v16528_v15 }
0x20d0   : > { %v16465_v55 = vadd.f32 %v16464_v18, %v16463_v58  ;;  %v16509_v10 = vrot.slane %v16508_v0, 1  ;;  %v16481_v38 = vadd.f32 %v16480_v41, %v16479_v45  ;;  %v16525_v42 = vrot.slane %v16524_v22, 1 }
0x20d1   : > { %v16471_v47 = vadd.f32 %v16470_v13, %v16469_v29  ;;  %v16515_v62 = vrot.slane %v16514_v5, 2  ;;  %v16487_v59 = vadd.f32 %v16486_v35, %v16485_v7  ;;  %v16531_v48 = vrot.slane %v16530_v19, 2 }
0x20d2   : > { %v16491_v3 = vmul.f32 0.11111111, %v16465_v55  ;;  %v16510_v16 = vadd.f32 %v16509_v10, %v16508_v0  ;;  %v16493_v49 = vmul.f32 0.11111111, %v16481_v38  ;;  %v16526_v57 = vadd.f32 %v16525_v42, %v16524_v22  ;;  %v16603_v10 = vld [vmem:[%s29601_s9 + $0x20] sm:$0x1] }
0x20d3   : > { %v16472_v12 = vrot.slane %v16471_v47, 1  ;;  %v16516_v21 = vadd.f32 %v16515_v62, %v16514_v5  ;;  %v16488_v40 = vrot.slane %v16487_v59, 1  ;;  %v16532_v54 = vadd.f32 %v16531_v48, %v16530_v19  ;;  %v16605_v62 = vld [vmem:[%s29601_s9 + $0x30] sm:$0x1] }
0x20d4   : > { %v16535_v17 = vmul.f32 0.11111111, %v16510_v16  ;;  %v16539_v30 = vmul.f32 %v16491_v3, %v16491_v3  ;;  %v16551_v32 = vsub.f32 %v29497_v1, %v16491_v3  ;;  %v16555_v56 = vsub.f32 %v29507_v43, %v16491_v3  ;;  %v16599_v3 = vld [vmem:[%s29601_s9] sm:$0xff] }
0x20d5   : > { %v16537_v8 = vmul.f32 0.11111111, %v16526_v57  ;;  %v16541_v28 = vmul.f32 %v16493_v49, %v16493_v49  ;;  %v16557_v46 = vsub.f32 %v29509_v4, %v16493_v49  ;;  %v16473_v63 = vadd.f32 %v16472_v12, %v16471_v47  ;;  %v16604_v57 = vld [vmem:[%s29601_s9 + $0x28] sm:$0x1] }
0x20d6   : > { %v16543_v24 = vsub.f32 %v16535_v17, %v16539_v30  ;;  %v16517_v52 = vrot.slane %v16516_v21, 1  ;;  %v16489_v51 = vadd.f32 %v16488_v40, %v16487_v59  ;;  %v16533_v61 = vrot.slane %v16532_v54, 1  ;;  %v16606_v30 = vld [vmem:[%s29601_s9 + $0x38] sm:$0x1] }
0x20d7   : > { %v16545_v44 = vsub.f32 %v16537_v8, %v16541_v28  ;;  %v16492_v2 = vmul.f32 0.11111111, %v16473_v63  ;;  %v16553_v9 = vsub.f32 %v29499_v14, %v16493_v49 }
0x20d8   : > { %v16547_v36 = vmax.f32 %v16543_v24, 0.0  ;;  %v16518_v6 = vadd.f32 %v16517_v52, %v16516_v21  ;;  %v16494_v33 = vmul.f32 0.11111111, %v16489_v51  ;;  %v16534_v60 = vadd.f32 %v16533_v61, %v16532_v54  ;;  %v16600_v54 = vld [vmem:[%s29601_s9 + $0x8] sm:$0xff]  ;;  %v16601_v24 = vld [vmem:[%s29601_s9 + $0x10] sm:$0xff] }
0x20d9   : > { %v16549_v1 = vmax.f32 %v16545_v44, 0.0  ;;  %v16540_v50 = vmul.f32 %v16492_v2, %v16492_v2  ;;  %v16552_v43 = vsub.f32 %v29503_v53, %v16492_v2  ;;  %v16556_v25 = vsub.f32 %v29525_v27, %v16492_v2 }
0x20da   : > { %v16559_v4 = vadd.f32 1e-05, %v16547_v36  ;;  %v16536_v23 = vmul.f32 0.11111111, %v16518_v6  ;;  %v16538_v37 = vmul.f32 0.11111111, %v16534_v60  ;;  %v16542_v15 = vmul.f32 %v16494_v33, %v16494_v33 }
0x20db   : > { %v16561_v58 = vadd.f32 1e-05, %v16549_v1  ;;  %v16558_v31 = vsub.f32 %v29527_v26, %v16494_v33  ;;  %v16554_v45 = vsub.f32 %v29505_v39, %v16494_v33  ;;  %v16602_v36 = vld [vmem:[%s29601_s9 + $0x18] sm:$0xff] }
0x20dc   : > { %23440 = vrsqrt.f32 %v16559_v4  ;;  %v16544_v14 = vsub.f32 %v16536_v23, %v16540_v50  ;;  %v16546_v20 = vsub.f32 %v16538_v37, %v16542_v15 }
0x20dd   : > { %23442 = vrsqrt.f32 %v16561_v58 }
0x20de   : > { %v16548_v29 = vmax.f32 %v16544_v14, 0.0  ;;  %v16550_v34 = vmax.f32 %v16546_v20, 0.0 }
0x20e0   : > { %v16560_v7 = vadd.f32 1e-05, %v16548_v29  ;;  %v16562_v11 = vadd.f32 1e-05, %v16550_v34 }
0x20e2   : > { %23444 = vrsqrt.f32 %v16560_v7 }
0x20e3   : > { %23446 = vrsqrt.f32 %v16562_v11  ;;  %v16637_v11 = vld [vmem:[#allocation2] sm:$0x1] }
0x20e9   : > { %v23441_v53 = vpop.eup %23440 }
0x20ea   : > { %v23443_v27 = vpop.eup %23442  ;;  %v16571_v18 = vmul.f32 %v23441_v53, %v16555_v56  ;;  %v16567_v0 = vmul.f32 %v23441_v53, %v16551_v32 }
0x20eb   : > { %v16573_v41 = vmul.f32 %v23443_v27, %v16557_v46  ;;  %v16569_v22 = vmul.f32 %v23443_v27, %v16553_v9 }
0x20ec   : > { %v16587_v13 = vmul.f32 0.2, %v16571_v18  ;;  %vm16579_vm0 = vcmp.ge.f32.partialorder %v16571_v18, 0.0  ;;  %v16583_v26 = vmul.f32 0.2, %v16567_v0  ;;  %vm16575_vm1 = vcmp.ge.f32.partialorder %v16567_v0, 0.0 }
0x20ed   : > { %v16589_v39 = vmul.f32 0.2, %v16573_v41  ;;  %vm16581_vm2 = vcmp.ge.f32.partialorder %v16573_v41, 0.0  ;;  %v16585_v42 = vmul.f32 0.2, %v16569_v22  ;;  %vm16577_vm3 = vcmp.ge.f32.partialorder %v16569_v22, 0.0 }
0x20ee   : > { %v16595_v55 = vsel %vm16579_vm0, %v16571_v18, %v16587_v13  ;;  %v16591_v48 = vsel %vm16575_vm1, %v16567_v0, %v16583_v26 }
0x20ef   : > { %v23445_v5 = vpop.eup %23444  ;;  %v16597_v49 = vsel %vm16581_vm2, %v16573_v41, %v16589_v39  ;;  %v16611_v21 = vmul.f32 %v16603_v10, %v16595_v55  ;;  %v16593_v56 = vsel %vm16577_vm3, %v16569_v22, %v16585_v42  ;;  %v16607_v52 = vmul.f32 %v16599_v3, %v16591_v48 }
0x20f0   : > { %v23447_v35 = vpop.eup %23446  ;;  %v16572_v19 = vmul.f32 %v23445_v5, %v16556_v25  ;;  %v16568_v38 = vmul.f32 %v23445_v5, %v16552_v43  ;;  %v16613_v46 = vmul.f32 %v16605_v62, %v16597_v49  ;;  %v16609_v33 = vmul.f32 %v16601_v24, %v16593_v56 }
0x20f1   : > { %v16574_v47 = vmul.f32 %v23447_v35, %v16558_v31  ;;  %v16570_v59 = vmul.f32 %v23447_v35, %v16554_v45  ;;  %v16620_v44 = vsel %vm16457_vm15, %v16611_v21, 0.0 }
0x20f2   : > { %v16588_v16 = vmul.f32 0.2, %v16572_v19  ;;  %vm16580_vm4 = vcmp.ge.f32.partialorder %v16572_v19, 0.0  ;;  %vm16576_vm5 = vcmp.ge.f32.partialorder %v16568_v38, 0.0  ;;  %v16584_v40 = vmul.f32 0.2, %v16568_v38 }
0x20f3   : > { %vm16582_vm6 = vcmp.ge.f32.partialorder %v16574_v47, 0.0  ;;  %v16590_v12 = vmul.f32 0.2, %v16574_v47  ;;  %vm16578_vm7 = vcmp.ge.f32.partialorder %v16570_v59, 0.0  ;;  %v16586_v32 = vmul.f32 0.2, %v16570_v59 }
0x20f4   : > { %v16596_v17 = vsel %vm16580_vm4, %v16572_v19, %v16588_v16  ;;  %v16592_v63 = vsel %vm16576_vm5, %v16568_v38, %v16584_v40  ;;  %v16623_v1 = vsel %vm16457_vm15, %v16613_v46, 0.0 }
0x20f5   : > { %v16598_v8 = vsel %vm16582_vm6, %v16574_v47, %v16590_v12  ;;  %v16612_v28 = vmul.f32 %v16604_v57, %v16596_v17  ;;  %v16608_v51 = vmul.f32 %v16600_v54, %v16592_v63  ;;  %v16594_v9 = vsel %vm16578_vm7, %v16570_v59, %v16586_v32 }
0x20f6   : > { %v16614_v61 = vmul.f32 %v16606_v30, %v16598_v8  ;;  %v16610_v43 = vmul.f32 %v16602_v36, %v16594_v9 }
0x20f7   : > { %v16621_v2 = vsel %vm16457_vm15, %v16612_v28, 0.0  ;;  %v16615_v60 = vadd.f32 %v16608_v51, %v16607_v52 }
0x20f8   : > { %v16622_v6 = vadd.f32 %v16621_v2, %v16620_v44  ;;  %v16625_v4 = vsel %vm16457_vm15, %v16614_v61, 0.0 }
0x20f9   : > { %v16616_v25 = vadd.f32 %v16615_v60, %v16609_v33 }
0x20fa   : > { %v16624_v50 = vadd.f32 %v16623_v1, %v16622_v6 }
0x20fb   : > { %v16617_v37 = vadd.f32 %v16616_v25, %v16610_v43 }
0x20fc   : > { %v16626_v23 = vadd.f32 %v16625_v4, %v16624_v50 }
0x20fe   : > { %16627 = vadd.xlane.f32.xlu0 %v16626_v23 }
0x2102   : > { %16618 = vadd.xlane.f32.xlu0 %v16617_v37 }
0x2187   : > { %v16628_v15 = vpop.xlane.xlu0 %16627 }
0x2188   : > { %v16629_v58 = vsel %vm16457_vm15, %v16628_v15, 0.0 }
0x218b   : > { %v16619_v31 = vpop.xlane.xlu0 %16618 }
0x218c   : > { %v16630_v45 = vadd.f32 %v16629_v58, %v16619_v31 }
0x218e   : > { %v16631_v14 = vrot.slane %v16630_v45, 4 }
0x2190   : > { %v16632_v20 = vadd.f32 %v16631_v14, %v16630_v45 }
0x2192   : > { %v16633_v29 = vrot.slane %v16632_v20, 2 }
0x2194   : > { %v16634_v34 = vadd.f32 %v16633_v29, %v16632_v20 }
0x2196   : > { %v16635_v7 = vrot.slane %v16634_v34, 1 }
0x2198   : > { %v16636_v53 = vadd.f32 %v16635_v7, %v16634_v34 }
0x219a   : > { %v16638_v27 = vadd.f32 %v16637_v11, %v16636_v53 }
0x219c   : > { %16640 = vst.msk [vmem:[%s384_s26] sm:$0x1] %vm16639_vm8, %v16638_v27 }
0x219d PF: > { %s23_s19 = sadd.s32 1, %s23454_s19  }
0x219e   : > { %p20_p4 = scmp.ge.s32.totalorder %s23_s19, 4  }
0x21a0   :  { %22 = sbr.rel (!%p20_p4) target bundleno = 3 (0x3), region = 184 }

</bundles_post_ra>
